<compile_context>
chip_gen: v5e
topology: v5e:2x2
jax: 0.10.0
libtpu: 0.0.40
codegen_flags: <defaults>
</compile_context>

<pallas_src>
import jax
import jax.numpy as jnp
from jax.experimental import pallas as pl
from jax.experimental.pallas import tpu as pltpu


def _round_up(x, m):
    return ((x + m - 1) // m) * m


def _pick_tile(full, cap, base):
    """Pick a tile size for a dim of (already base-aligned) extent `full`.

    Returns (tile, padded_full).  Prefers covering the whole dim, then an exact
    divisor >= cap/2 (no padding), else near-equal tiles with minimal padding.
    """
    if full <= cap:
        return full, full
    t = (cap // base) * base
    lo = max(base, (cap // 2 // base) * base)
    while t >= lo:
        if full % t == 0:
            return t, full
        t -= base
    n = -(-full // cap)                      # ceil-div: number of tiles
    tile = _round_up(-(-full // n), base)    # near-equal tile, base-aligned
    return tile, tile * n


# ---------------------------------------------------------------------------
# Kernels: y = relu(x @ w + b), accumulating directly into the resident output
# block (its BlockSpec ignores the K grid axis).
# ---------------------------------------------------------------------------
def _kernel_multi_k(x_ref, w_ref, b_ref, o_ref):
    # x_ref: (tm, tk) f32   w_ref: (tk, tn) bf16   b_ref: (1, tn) f32
    # o_ref: (tm, tn) f32 — resident across the K axis, doubles as accumulator.
    k = pl.program_id(2)

    @pl.when(k == 0)
    def _():
        o_ref[...] = jnp.zeros_like(o_ref)

    o_ref[...] += jnp.dot(
        x_ref[...].astype(jnp.bfloat16),          # VPU cast right before MXU
        w_ref[...],
        preferred_element_type=jnp.float32,
    )

    @pl.when(k == pl.num_programs(2) - 1)
    def _():
        o_ref[...] = jnp.maximum(o_ref[...] + b_ref[...], 0.0)


def _kernel_single_k(x_ref, w_ref, b_ref, o_ref):
    # One K tile covers the whole contraction: single-shot, no init/finalize.
    o_ref[...] = jnp.maximum(
        jnp.dot(
            x_ref[...].astype(jnp.bfloat16),
            w_ref[...],
            preferred_element_type=jnp.float32,
        )
        + b_ref[...],
        0.0,
    )


def _linear_relu_pallas(x, wb, b2d, *, H, Dp, Hp, tk, tn, tm_cap):
    """x: (B, D_in) f32, wb: (Dp, Hp) bf16 (pre-padded), b2d: (1, Hp) f32."""
    B, D_in = x.shape

    # Batch tile: cover B when small, otherwise divide it (avoids padding B).
    tm, Bp = _pick_tile(_round_up(B, 8), tm_cap, 8)
    n_i = Bp // tm
    n_j = Hp // tn
    n_k = Dp // tk

    # v7x has 2 TensorCores per chip: keep >= 2 blocks along a "parallel" grid
    # axis so the grid can shard across both cores instead of collapsing to
    # (1, 1, K).  Halving tn keeps x refetch at 2x, still cheaper than a
    # wrapper-side bf16 copy of x.
    if n_i == 1 and n_j == 1 and tn >= 256 and (tn // 2) % 128 == 0:
        tn //= 2
        n_j = 2

    xp = x
    if Bp != B or Dp != D_in:
        xp = jnp.pad(x, ((0, Bp - B), (0, Dp - D_in)))  # zero K-pad adds nothing

    grid = (n_i, n_j, n_k)
    kernel = _kernel_single_k if n_k == 1 else _kernel_multi_k

    cost = pl.CostEstimate(
        flops=2 * Bp * Hp * Dp,
        transcendentals=0,
        bytes_accessed=(
            (Bp * Dp * 4) * n_j        # f32 x, refetched once per j tile
            + (Dp * Hp * 2) * n_i      # bf16 w, refetched once per i tile
            + (Hp * 4) * n_i           # bias
            + Bp * Hp * 4              # f32 output
        ),
    )

    out = pl.pallas_call(
        kernel,
        out_shape=jax.ShapeDtypeStruct((Bp, Hp), jnp.float32),
        grid_spec=pltpu.PrefetchScalarGridSpec(
            num_scalar_prefetch=0,
            grid=grid,
            in_specs=[
                pl.BlockSpec((tm, tk), lambda i, j, k: (i, k)),  # x (f32)
                pl.BlockSpec((tk, tn), lambda i, j, k: (k, j)),  # w (bf16)
                pl.BlockSpec((1, tn), lambda i, j, k: (0, j)),   # bias (f32)
            ],
            out_specs=pl.BlockSpec((tm, tn), lambda i, j, k: (i, j)),
        ),
        compiler_params=pltpu.CompilerParams(
            dimension_semantics=("parallel", "parallel", "arbitrary"),
        ),
        cost_estimate=cost,
    )(xp, wb, b2d)

    if (Bp, Hp) != (B, H):
        out = out[:B, :H]
    return out


class FeatureModulePallas:
    """Pallas TPU FeatureModule wrapping Linear(D_in -> H) + ReLU.

    Weights are cast to bf16 and padded to lane-aligned shapes ONCE here
    (hoisted out of the per-call path); the forward pass only pads/casts the
    activations inside the kernel.
    """

    def __init__(self, w, b, *, tm_cap=512, tn_cap=1024, tk_cap=1024):
        D_in, H = w.shape
        assert b.shape == (H,)
        self.D_in, self.H = D_in, H
        self.tm_cap = tm_cap

        self.tk, self.Dp = _pick_tile(_round_up(D_in, 128), tk_cap, 128)
        self.tn, self.Hp = _pick_tile(_round_up(H, 128), tn_cap, 128)

        wb = w.astype(jnp.bfloat16)
        if (self.Dp, self.Hp) != (D_in, H):
            wb = jnp.pad(wb, ((0, self.Dp - D_in), (0, self.Hp - H)))
        b2d = b.astype(jnp.float32).reshape(1, H)
        if self.Hp != H:
            b2d = jnp.pad(b2d, ((0, 0), (0, self.Hp - H)))
        self.wb = wb
        self.b2d = b2d

    def __call__(self, features, mask, info):
        # states.features.float()  (no-op for f32 inputs; folded away by XLA)
        if features.dtype != jnp.float32:
            features = features.astype(jnp.float32)
        out = _linear_relu_pallas(
            features,
            self.wb,
            self.b2d,
            H=self.H,
            Dp=self.Dp,
            Hp=self.Hp,
            tk=self.tk,
            tn=self.tn,
            tm_cap=self.tm_cap,
        )
        # State(features, mask=states.mask, info=states.info): pass-through.
        return out, mask, info


def _reference(x, w, b):
    # Reference at the kernel's precision: bf16-rounded operands, f32 matmul.
    xf = x.astype(jnp.bfloat16).astype(jnp.float32)
    wf = w.astype(jnp.bfloat16).astype(jnp.float32)
    y = jnp.dot(xf, wf, precision=jax.lax.Precision.HIGHEST)
    return jnp.maximum(y + b.astype(jnp.float32), 0.0)


if __name__ == "__main__":
    key = jax.random.PRNGKey(0)

    # --- Case 1: multi-tile grid (1, 2, 2) — exercises the K-axis accumulation
    # into the resident output block and the v7x j-split (>=2 parallel blocks).
    B, D_IN, H = 384, 2048, 1024
    k_x, k_w, k_b, key = jax.random.split(key, 4)
    features = jax.random.normal(k_x, (B, D_IN), dtype=jnp.float32)
    mask = jnp.ones((B,), dtype=jnp.float32)
    info = jnp.zeros((B,), dtype=jnp.float32)
    w = jax.random.normal(k_w, (D_IN, H), dtype=jnp.float32) * 0.05
    b = jax.random.normal(k_b, (H,), dtype=jnp.float32) * 0.05

    mod = FeatureModulePallas(w, b)          # weight cast+pad happens ONCE here
    fwd = jax.jit(mod.__call__)
    out, om, oi = fwd(features, mask, info)
    jax.block_until_ready(out)

    ref = _reference(features, w, b)
    assert out.shape == (B, H)
    assert jnp.allclose(out, ref, atol=5e-3, rtol=5e-3)
    assert jnp.array_equal(om, mask)
    assert jnp.array_equal(oi, info)

    # --- Case 2: tiny, unaligned shapes (K/H padding path, single-tile grid).
    Bs, Ds, Hs = 8, 32, 100
    k_x2, k_w2, k_b2, key = jax.random.split(key, 4)
    f2 = jax.random.normal(k_x2, (Bs, Ds), dtype=jnp.float32)
    m2 = jnp.ones((Bs,), dtype=jnp.bool_)
    i2 = jnp.zeros((Bs,), dtype=jnp.float32)
    w2 = jax.random.normal(k_w2, (Ds, Hs), dtype=jnp.float32) * 0.05
    b2 = jax.random.normal(k_b2, (Hs,), dtype=jnp.float32) * 0.05

    mod2 = FeatureModulePallas(w2, b2)
    o2, om2, oi2 = jax.jit(mod2.__call__)(f2, m2, i2)
    jax.block_until_ready(o2)
    ref2 = _reference(f2, w2, b2)
    assert o2.shape == (Bs, Hs)
    assert jnp.allclose(o2, ref2, atol=5e-3, rtol=5e-3)
    assert jnp.array_equal(om2, m2)
    assert jnp.array_equal(oi2, i2)

    # --- Case 3: batch needing row padding (B=50 -> 56), no H/K padding.
    Bq, Dq, Hq = 50, 256, 384
    k_x3, k_w3, k_b3, key = jax.random.split(key, 4)
    f3 = jax.random.normal(k_x3, (Bq, Dq), dtype=jnp.float32)
    m3 = jnp.ones((Bq,), dtype=jnp.float32)
    i3 = jnp.arange(Bq, dtype=jnp.float32)
    w3 = jax.random.normal(k_w3, (Dq, Hq), dtype=jnp.float32) * 0.05
    b3 = jax.random.normal(k_b3, (Hq,), dtype=jnp.float32) * 0.05

    mod3 = FeatureModulePallas(w3, b3)
    o3, om3, oi3 = jax.jit(mod3.__call__)(f3, m3, i3)
    jax.block_until_ready(o3)
    ref3 = _reference(f3, w3, b3)
    assert o3.shape == (Bq, Hq)
    assert jnp.allclose(o3, ref3, atol=5e-3, rtol=5e-3)
    assert jnp.array_equal(om3, m3)
    assert jnp.array_equal(oi3, i3)

    print("KERNEL_OK")
</pallas_src>

<mosaic_0001>
module attributes {stable_mosaic.version = 11 : i64} {
  func.func @_kernel_multi_k(%arg0: i32, %arg1: i32, %arg2: i32, %arg3: memref<384x1024xf32, #tpu.memory_space<vmem>>, %arg4: memref<1024x512xbf16, #tpu.memory_space<vmem>>, %arg5: memref<1x512xf32, #tpu.memory_space<vmem>>, %arg6: memref<384x512xf32, #tpu.memory_space<vmem>>) attributes {dimension_semantics = [#tpu.dimension_semantics<parallel>, #tpu.dimension_semantics<parallel>, #tpu.dimension_semantics<arbitrary>], iteration_bounds = array<i64: 1, 2, 2>, scalar_prefetch = 0 : i64, scratch_operands = 0 : i64, tpu.core_type = #tpu.core_type<tc>, window_params = [{transform_indices = @transform_0, window_bounds = array<i64: 384, 1024>}, {transform_indices = @transform_1, window_bounds = array<i64: 1024, 512>}, {transform_indices = @transform_2, window_bounds = array<i64: 1, 512>}, {transform_indices = @transform_3, window_bounds = array<i64: 384, 512>}]} {
    %c0_i32 = arith.constant 0 : i32
    %0 = arith.cmpi eq, %arg2, %c0_i32 : i32
    %1 = arith.extui %0 : i1 to i32
    %c0_i32_0 = arith.constant 0 : i32
    %2 = arith.cmpi ne, %1, %c0_i32_0 : i32
    scf.if %2 {
      %cst_9 = arith.constant 0.000000e+00 : f32
      %13 = vector.broadcast %cst_9 : f32 to vector<384x512xf32>
      %c0_10 = arith.constant 0 : index
      %c0_11 = arith.constant 0 : index
      %14 = vector.load %arg6[%c0_10, %c0_11] : memref<384x512xf32, #tpu.memory_space<vmem>>, vector<384x512xf32>
      tpu.vector_store %arg6[%c0_10, %c0_11], %13 {strides = array<i32>} : memref<384x512xf32, #tpu.memory_space<vmem>>, vector<384x512xf32>,
    } else {
    }
    %c0 = arith.constant 0 : index
    %c0_1 = arith.constant 0 : index
    %3 = vector.load %arg6[%c0, %c0_1] : memref<384x512xf32, #tpu.memory_space<vmem>>, vector<384x512xf32>
    %c0_2 = arith.constant 0 : index
    %c0_3 = arith.constant 0 : index
    %4 = vector.load %arg3[%c0_2, %c0_3] : memref<384x1024xf32, #tpu.memory_space<vmem>>, vector<384x1024xf32>
    %5 = arith.truncf %4 : vector<384x1024xf32> to vector<384x1024xbf16>
    %c0_4 = arith.constant 0 : index
    %c0_5 = arith.constant 0 : index
    %6 = vector.load %arg4[%c0_4, %c0_5] : memref<1024x512xbf16, #tpu.memory_space<vmem>>, vector<1024x512xbf16>
    %cst = arith.constant dense<0.000000e+00> : vector<384x512xf32>
    %7 = tpu.matmul %5, %6, %cst {dimension_numbers = #tpu.dot_dimension_numbers<[1], [0], [0], [1], [0, 0, 1, 1], [], []>} : vector<384x1024xbf16>, vector<1024x512xbf16>, vector<384x512xf32> -> vector<384x512xf32>
    %8 = arith.addf %3, %7 : vector<384x512xf32>
    %c0_6 = arith.constant 0 : index
    %c0_7 = arith.constant 0 : index
    %9 = vector.load %arg6[%c0_6, %c0_7] : memref<384x512xf32, #tpu.memory_space<vmem>>, vector<384x512xf32>
    tpu.vector_store %arg6[%c0_6, %c0_7], %8 {strides = array<i32>} : memref<384x512xf32, #tpu.memory_space<vmem>>, vector<384x512xf32>,
    %c1_i32 = arith.constant 1 : i32
    %10 = arith.cmpi eq, %arg2, %c1_i32 : i32
    %11 = arith.extui %10 : i1 to i32
    %c0_i32_8 = arith.constant 0 : i32
    %12 = arith.cmpi ne, %11, %c0_i32_8 : i32
    scf.if %12 {
      %c0_9 = arith.constant 0 : index
      %c0_10 = arith.constant 0 : index
      %13 = vector.load %arg6[%c0_9, %c0_10] : memref<384x512xf32, #tpu.memory_space<vmem>>, vector<384x512xf32>
      %c0_11 = arith.constant 0 : index
      %c0_12 = arith.constant 0 : index
      %14 = vector.load %arg5[%c0_11, %c0_12] : memref<1x512xf32, #tpu.memory_space<vmem>>, vector<1x512xf32>
      %15 = vector.broadcast %14 : vector<1x512xf32> to vector<384x512xf32>
      %16 = arith.addf %13, %15 : vector<384x512xf32>
      %cst_13 = arith.constant 0.000000e+00 : f32
      %17 = vector.broadcast %cst_13 : f32 to vector<384x512xf32>
      %18 = arith.maximumf %16, %17 : vector<384x512xf32>
      %c0_14 = arith.constant 0 : index
      %c0_15 = arith.constant 0 : index
      %19 = vector.load %arg6[%c0_14, %c0_15] : memref<384x512xf32, #tpu.memory_space<vmem>>, vector<384x512xf32>
      tpu.vector_store %arg6[%c0_14, %c0_15], %18 {strides = array<i32>} : memref<384x512xf32, #tpu.memory_space<vmem>>, vector<384x512xf32>,
    } else {
    }
    return
  }
  func.func @transform_0(%arg0: i32, %arg1: i32, %arg2: i32) -> (i32, i32) {
    %c0_i32 = arith.constant 0 : i32
    return %arg0, %arg2 : i32, i32
  }
  func.func @transform_1(%arg0: i32, %arg1: i32, %arg2: i32) -> (i32, i32) {
    %c0_i32 = arith.constant 0 : i32
    return %arg2, %arg1 : i32, i32
  }
  func.func @transform_2(%arg0: i32, %arg1: i32, %arg2: i32) -> (i32, i32) {
    %c0_i32 = arith.constant 0 : i32
    %c0_i32_0 = arith.constant 0 : i32
    return %c0_i32, %arg1 : i32, i32
  }
  func.func @transform_3(%arg0: i32, %arg1: i32, %arg2: i32) -> (i32, i32) {
    %c0_i32 = arith.constant 0 : i32
    return %arg0, %arg1 : i32, i32
  }
}

</mosaic_0001>

<bundles_post_ra>
// kernel: a_call__.1
= control target key start
LH: loop header
LB: loop body
LE: loop exit
PB: predicated region body
PF: predicated region fallthrough
CT: control target
= control target key end

     0   :  { %s14285_s0 = inlined_call_operand.hbm [shape: f32[384,2048], index: 0, kind: input, shape index: {}]   ;;  %s14286_s1 = inlined_call_operand.hbm [shape: bf16[2048,1024], index: 1, kind: input, shape index: {}]   ;;  %s14287_s2 = inlined_call_operand.hbm [shape: f32[1,1024], index: 2, kind: input, shape index: {}]   ;;  %s14288_s3 = inlined_call_operand.hbm [shape: f32[384,1024], index: 3, kind: output, shape index: {}]  }
   0x1   :  { %14652 = sst [smem:[#allocation223_spill]] %s14285_s0 }
   0x2   :  { %14653 = sst [smem:[#allocation224_spill]] %s14286_s1 }
   0x3   :  { %14654 = sst [smem:[#allocation225_spill]] %s14288_s3 }
   0x4   :  { %8 = vsyncpa [#allocation3], 0 }
   0x5   :  { %10 = vsyncpa [#allocation3 + $0x1], 0 }
   0x6   :  { %11 = vsyncpa [#allocation6], 0 }
   0x7   :  { %13 = vsyncpa [#allocation6 + $0x1], 0 }
   0x8   :  { %14 = vsyncpa [#allocation4], 0 }
   0x9   :  { %16 = vsyncpa [#allocation4 + $0x1], 0  ;;  %s9989_s12 = smov 0   ;;  %s9991_s13 = smov 0  }
   0xa   :  { %s9993_s14 = smov 0   ;;  %s9995_s15 = smov 0  }
   0xb   :  { %s9997_s16 = smov 0   ;;  %s9999_s17 = smov 0  }
   0xc   :  { %s10001_s18 = smov 0   ;;  %s10003_s19 = smov 0  }
   0xd   :  { %s10005_s20 = smov 0   ;;  %s10007_s21 = smov 0  }
   0xe   :  { %s10009_s22 = smov 0   ;;  %s10011_s23 = smov 0  }
   0xf   :  { %s10013_s24 = smov 0   ;;  %s10015_s25 = smov 0  }
  0x10 LB: > { %14655 = sst [smem:[#allocation13_spill]] %s9925_s17  ;;  %s34_s26 = sadd.s32 1, %s9949_s23  ;;  %s9957_s25 = sphi %s10015_s25, %s22_s25   ;;  %s9953_s24 = sphi %s10013_s24, %s15544_s24   ;;  %s9949_s23 = sphi %s10011_s23, %s15543_s23   ;;  %s9945_s22 = sphi %s10009_s22, %s15542_s22   ;;  %s9941_s21 = sphi %s10007_s21, %s15552_s21   ;;  %s9937_s20 = sphi %s10005_s20, %s15540_s20   ;;  %s9933_s19 = sphi %s10003_s19, %s15551_s19   ;;  %s9929_s18 = sphi %s10001_s18, %s15550_s18   ;;  %s9925_s17 = sphi %s9999_s17, %s15538_s17   ;;  %s9921_s16 = sphi %s9997_s16, %s15549_s16   ;;  %s9917_s15 = sphi %s9995_s15, %s15548_s15   ;;  %s9913_s14 = sphi %s9993_s14, %s15547_s14   ;;  %s9909_s13 = sphi %s9991_s13, %s15546_s13   ;;  %s9905_s12 = sphi %s9989_s12, %s15545_s12  }
  0x11   : > { %14656 = sst [smem:[#allocation14_spill]] %s9937_s20  ;;  %s37_s27 = sadd.s32 1, %s9953_s24 }
  0x12   : > { %14657 = sst [smem:[#allocation15_spill]] %s9949_s23  ;;  %p35_p0 = scmp.ge.s32.totalorder %s34_s26, 2 }
  0x13   : > { %14658 = sst [smem:[#allocation16_spill]] %s9953_s24  ;;  %p58_p1 = scmp.eq.s32.totalorder %s9957_s25, 0 }
  0x14   : > { %p85_p2 = scmp.ne.s32.totalorder %s9925_s17, %s9921_s16  ;;  %s15554_s26 = smov (%p35_p0, %s34_s26), 0 }
  0x15   : > { %14659 = sst [smem:[#allocation17_spill]] %s15554_s26  ;;  %s15556_s27 = smov (!%p35_p0, %s37_s27), %s9953_s24 }
  0x16   : > { %s10072_s29 = ssub.s32 %s9949_s23, %s15554_s26  ;;  %p10076_p3 = por %p85_p2, %p58_p1 }
  0x17   : > { %p39_p4 = scmp.ge.s32.totalorder %s15556_s27, 2  ;;  %p48_p5 = scmp.eq.s32.totalorder %s10072_s29, 0 }
  0x18   : > { %p91_p6 = scmp.ne.s32.totalorder %s9921_s16, %s9917_s15  ;;  %p9589_p7 = scmp.lt.s32.totalorder %s9957_s25, 4 }
  0x19   : > { %s194_s4 = sand.u32 1, %s9957_s25   ;;  %s196_s5 = sand.u32 1, %s9925_s17  }
  0x1a   : > { %s8265_s6 = sshll.u32 %s196_s5, 11  ;;  %s14291_s7 = sshll.u32 %s9953_s24, 2 }
  0x1b   : > { %s9306_s8 = sshll.u32 %s9949_s23, 10  ;;  %s198_s10 = scalar_lea.vmem [#allocation5], %s8265_s6 }
  0x1c   : > { %s204_s9 = sadd.s32 %s9306_s8, %s14291_s7  ;;  %s209_s11 = sshll.u32 %s198_s10, 4  ;;  %s210_s11 = int_to_ptr.vmem [resolvable:$true] %s209_s11 }
  0x1d   : > { %s8269_s28 = sshll.u32 %s204_s9, 2  ;;  %s14661_s1 = sld [smem:[#allocation224_spill]] }
  0x1e   : > { %p9579_p8 = pnand %p9589_p7, %p10076_p3  ;;  %s10098_s8 = scalar_lea.sflag [#allocation6], %s194_s4 }
  0x1f   : > { %s9959_s9 = smov 512   ;;  %s9960_s10 = smov 256  }
  0x20   : > { %s9961_s7 = smov 16   ;;  %p8272_p9 = scmp.ge.s32.totalorder %s9957_s25, 1 }
  0x21   : > { %p236_p10 = scmp.lt.s32.totalorder %s9957_s25, 5  ;;  %s50_s26 = sadd.s32 1, %s9937_s20 }
  0x22   : > { %p57_p12 = scmp.ne.s32.totalorder %s9937_s20, %s9933_s19  ;;  %p63_p13 = scmp.ne.s32.totalorder %s9933_s19, %s9929_s18 }
  0x23   : > { %s206_s5 = scalar_lea.hbm %s14661_s1, %s8269_s28  ;;  %p10103_p11 = pnand %p8272_p9, %p236_p10 }
  0x24   : > { %s207_s6 = sshll.u32 %s206_s5, 4  ;;  %s169_s30 = sand.u32 1, %s9937_s20   ;;  %s208_s6 = int_to_ptr.hbm [resolvable:$true] %s207_s6 }
  0x25   : > { %9581 = dma.hbm_to_vmem [thread:$0]  (!%p9579_p8), %s208_s6, 32768, %s210_s11, %s10098_s8, %s9959_s9, %s9960_s10, %s9961_s7  }
  0x26   : > { %s10111_s28 = scalar_select %p48_p5, %s9937_s20, %s50_s26  }
  0x27   : > { %s9305_s4 = sshll.u32 %s9949_s23, 6  ;;  %p59_p0 = por %p58_p1, %p57_p12 }
  0x28   : > { %14663 = sst [smem:[#allocation18_spill]] %s10111_s28  ;;  %s9564_s7 = smul.u32 3072, %s169_s30 }
  0x29   : > { %s14664_s0 = sld [smem:[#allocation223_spill]]  ;;  %p9576_p2 = pnand %p9589_p7, %p59_p0 }
  0x2a   : > { %s173_s10 = scalar_lea.vmem [#allocation2], %s9564_s7  ;;  %s170_s1 = scalar_lea.sflag [#allocation3], %s169_s30 }
  0x2b   : > { %s184_s26 = sshll.u32 %s173_s10, 4  ;;  %s9962_s23 = smov 2048   ;;  %s185_s26 = int_to_ptr.vmem [resolvable:$true] %s184_s26 }
  0x2c   : > { %s9964_s11 = smov 64   ;;  %s10127_s5 = sadd.s32 4294967295, %s9957_s25  }
  0x2d   : > { %s8260_s7 = sadd.s32 4294967294, %s9957_s25   ;;  %s15558_s27 = smov (%p39_p4, %s15556_s27), 0 }
  0x2e   : > { %14665 = sst [smem:[#allocation19_spill]] %s15558_s27  ;;  %p64_p3 = scmp.eq.s32.totalorder %s10127_s5, 0 }
  0x2f   : > { %s181_s6 = scalar_lea.hbm %s14664_s0, %s9305_s4  ;;  %s9963_s4 = smov 1024  }
  0x30   : > { %s182_s9 = sshll.u32 %s181_s6, 4  ;;  %s104_s30 = sadd.s32 1, %s9913_s14  ;;  %s183_s9 = int_to_ptr.hbm [resolvable:$true] %s182_s9 }
  0x31   : > { %9578 = dma.hbm_to_vmem [thread:$0]  (!%p9576_p2), %s183_s9, 49152, %s185_s26, %s170_s1, %s9962_s23, %s9963_s4, %s9964_s11  }
  0x32   : > { %s74_s1 = ssub.s32 %s9953_s24, %s15558_s27  ;;  %p111_p5 = scmp.ne.s32.totalorder %s9913_s14, %s9909_s13 }
  0x33   : > { %p10146_p8 = por %p64_p3, %p63_p13  ;;  %s75_s6 = sor.u32 %s74_s1, %s10072_s29 }
  0x34   : > { %p76_p9 = scmp.eq.s32.totalorder %s75_s6, 0  ;;  %p10156_p4 = por %p91_p6, %p64_p3 }
  0x35   : > { %p102_p10 = scmp.eq.s32.totalorder %s74_s1, 0  ;;  %p10165_p12 = por %p111_p5, %p58_p1 }
  0x36   : > { %s14669_s18 = sadd.s32 1, %s9925_s17  ;;  %p117_p13 = scmp.ne.s32.totalorder %s9909_s13, %s9905_s12 }
  0x37   : > { %s10172_s26 = scalar_select %p76_p9, %s9925_s17, %s14669_s18  }
  0x38   : > { %s10175_s29 = scalar_select %p102_p10, %s9913_s14, %s104_s30  }
  0x39   : > { %14670 = sst [smem:[#allocation20_spill]] %s10172_s26  ;;  %p143_p6 = scmp.eq.s32.totalorder %s10127_s5, 3 }
  0x3a   : > { %p149_p0 = scmp.eq.s32.totalorder %s8260_s7, 3  ;;  %s221_s15 = sand.u32 1, %s9913_s14  }
  0x3b   : > { %p10183_p2 = por %p117_p13, %p64_p3  ;;  %p10190_p1 = por %p143_p6, %p111_p5 }
  0x3c   : > { %p10194_p9 = por %p149_p0, %p117_p13  ;;  %s8270_s30 = sshll.u32 %s221_s15, 2 }
  0x3d   : > { %s14674_s6 = sshll.u32 %s9953_s24, 2  ;;  %s223_s28 = scalar_lea.vmem [#allocation7], %s8270_s30 }
  0x3e   : > { %s227_s7 = scalar_lea.hbm %s14287_s2, %s14674_s6  ;;  %s231_s20 = sshll.u32 %s223_s28, 4  ;;  %s232_s20 = int_to_ptr.vmem [resolvable:$true] %s231_s20 }
  0x3f   : > { %s229_s27 = sshll.u32 %s227_s7, 4  ;;  %p9582_p3 = pnand %p9589_p7, %p10165_p12  ;;  %s230_s27 = int_to_ptr.hbm [resolvable:$true] %s229_s27 }
  0x40   : > { %240 = sbr.rel (%p10103_p11) target bundleno = 3744 (0xea0), region = 32 }
  0x41   : > { %9584 = dma.hbm_to_vmem [thread:$0]  (!%p9582_p3), %s230_s27, 64, %s232_s20, %s10098_s8  }
  0x45   : > { %s242_s15 = sand.u32 1, %s9933_s19  }
  0x46   : > { %s9565_s24 = smul.u32 3072, %s242_s15  ;;  %s243_s26 = scalar_lea.sflag [#allocation3], %s242_s15 }
  0x48   : > { %s10211_s17 = scalar_lea.vmem [#allocation2], %s9565_s24 }
  0x49   : > { %9888 = dma.done.wait (%p10146_p8), %s243_s26, 49152  }
  0x4a   : > { %9890 = vsyncadd (%p10146_p8), %s243_s26, 4294918144  ;;  %s252_s0 = sand.u32 1, %s10127_s5   ;;  %s254_s20 = sand.u32 1, %s9921_s16  }
  0x4b   : > { %s8273_s27 = sshll.u32 %s254_s20, 11  ;;  %s253_s8 = scalar_lea.sflag [#allocation6], %s252_s0 }
  0x4c   : > { %s10219_s3 = scalar_lea.vmem [#allocation5], %s8273_s27 }
  0x4d   : > { %9892 = dma.done.wait (%p10156_p4), %s253_s8, 32768  }
  0x4e   : > { %9894 = vsyncadd (%p10156_p4), %s253_s8, 4294934528  ;;  %s10226_s24 = sand.u32 1, %s9909_s13  }
  0x4f   : > { %s8274_s28 = sshll.u32 %s10226_s24, 2 }
  0x50   : > { %s10229_s23 = scalar_lea.vmem [#allocation7], %s8274_s28 }
  0x51   : > { %9896 = dma.done.wait (%p10183_p2), %s253_s8, 64  }
  0x52   : > { %9898 = vsyncadd (%p10183_p2), %s253_s8, 4294967232  ;;  %s9566_s5 = smul.u32 1536, %s10226_s24  ;;  %p8275_p7 = scmp.ne.s32.totalorder %s9941_s21, 0 }
  0x54   : > { %s10236_s10 = scalar_lea.vmem [#allocation8], %s9566_s5  ;;  %310 = sbr.rel (%p8275_p7) target bundleno = 282 (0x11a), region = 48 }
  0x59   : > { %v9965_v0 = vmov 0.0  }
  0x5a   : > { %311 = vst [vmem:[%s10236_s10] sm:$0xff] %v9965_v0 }
  0x5b   : > { %312 = vst [vmem:[%s10236_s10 + $0x8] sm:$0xff] %v9965_v0 }
  0x5c   : > { %313 = vst [vmem:[%s10236_s10 + $0x10] sm:$0xff] %v9965_v0 }
  0x5d   : > { %314 = vst [vmem:[%s10236_s10 + $0x18] sm:$0xff] %v9965_v0 }
  0x5e   : > { %315 = vst [vmem:[%s10236_s10 + $0x20] sm:$0xff] %v9965_v0 }
  0x5f   : > { %316 = vst [vmem:[%s10236_s10 + $0x28] sm:$0xff] %v9965_v0 }
  0x60   : > { %317 = vst [vmem:[%s10236_s10 + $0x30] sm:$0xff] %v9965_v0 }
  0x61   : > { %318 = vst [vmem:[%s10236_s10 + $0x38] sm:$0xff] %v9965_v0 }
  0x62   : > { %319 = vst [vmem:[%s10236_s10 + $0x40] sm:$0xff] %v9965_v0 }
  0x63   : > { %320 = vst [vmem:[%s10236_s10 + $0x48] sm:$0xff] %v9965_v0 }
  0x64   : > { %321 = vst [vmem:[%s10236_s10 + $0x50] sm:$0xff] %v9965_v0 }
  0x65   : > { %322 = vst [vmem:[%s10236_s10 + $0x58] sm:$0xff] %v9965_v0 }
  0x66   : > { %323 = vst [vmem:[%s10236_s10 + $0x60] sm:$0xff] %v9965_v0 }
  0x67   : > { %324 = vst [vmem:[%s10236_s10 + $0x68] sm:$0xff] %v9965_v0 }
  0x68   : > { %325 = vst [vmem:[%s10236_s10 + $0x70] sm:$0xff] %v9965_v0 }
  0x69   : > { %326 = vst [vmem:[%s10236_s10 + $0x78] sm:$0xff] %v9965_v0 }
  0x6a   : > { %327 = vst [vmem:[%s10236_s10 + $0x80] sm:$0xff] %v9965_v0 }
  0x6b   : > { %328 = vst [vmem:[%s10236_s10 + $0x88] sm:$0xff] %v9965_v0 }
  0x6c   : > { %329 = vst [vmem:[%s10236_s10 + $0x90] sm:$0xff] %v9965_v0 }
  0x6d   : > { %330 = vst [vmem:[%s10236_s10 + $0x98] sm:$0xff] %v9965_v0 }
  0x6e   : > { %331 = vst [vmem:[%s10236_s10 + $0xa0] sm:$0xff] %v9965_v0 }
  0x6f   : > { %332 = vst [vmem:[%s10236_s10 + $0xa8] sm:$0xff] %v9965_v0 }
  0x70   : > { %333 = vst [vmem:[%s10236_s10 + $0xb0] sm:$0xff] %v9965_v0 }
  0x71   : > { %334 = vst [vmem:[%s10236_s10 + $0xb8] sm:$0xff] %v9965_v0 }
  0x72   : > { %335 = vst [vmem:[%s10236_s10 + $0xc0] sm:$0xff] %v9965_v0 }
  0x73   : > { %336 = vst [vmem:[%s10236_s10 + $0xc8] sm:$0xff] %v9965_v0 }
  0x74   : > { %337 = vst [vmem:[%s10236_s10 + $0xd0] sm:$0xff] %v9965_v0 }
  0x75   : > { %338 = vst [vmem:[%s10236_s10 + $0xd8] sm:$0xff] %v9965_v0 }
  0x76   : > { %339 = vst [vmem:[%s10236_s10 + $0xe0] sm:$0xff] %v9965_v0 }
  0x77   : > { %340 = vst [vmem:[%s10236_s10 + $0xe8] sm:$0xff] %v9965_v0 }
  0x78   : > { %341 = vst [vmem:[%s10236_s10 + $0xf0] sm:$0xff] %v9965_v0 }
  0x79   : > { %342 = vst [vmem:[%s10236_s10 + $0xf8] sm:$0xff] %v9965_v0 }
  0x7a   : > { %343 = vst [vmem:[%s10236_s10 + $0x100] sm:$0xff] %v9965_v0 }
  0x7b   : > { %344 = vst [vmem:[%s10236_s10 + $0x108] sm:$0xff] %v9965_v0 }
  0x7c   : > { %345 = vst [vmem:[%s10236_s10 + $0x110] sm:$0xff] %v9965_v0 }
  0x7d   : > { %346 = vst [vmem:[%s10236_s10 + $0x118] sm:$0xff] %v9965_v0 }
  0x7e   : > { %347 = vst [vmem:[%s10236_s10 + $0x120] sm:$0xff] %v9965_v0 }
  0x7f   : > { %348 = vst [vmem:[%s10236_s10 + $0x128] sm:$0xff] %v9965_v0 }
  0x80   : > { %349 = vst [vmem:[%s10236_s10 + $0x130] sm:$0xff] %v9965_v0 }
  0x81   : > { %350 = vst [vmem:[%s10236_s10 + $0x138] sm:$0xff] %v9965_v0 }
  0x82   : > { %351 = vst [vmem:[%s10236_s10 + $0x140] sm:$0xff] %v9965_v0 }
  0x83   : > { %352 = vst [vmem:[%s10236_s10 + $0x148] sm:$0xff] %v9965_v0 }
  0x84   : > { %353 = vst [vmem:[%s10236_s10 + $0x150] sm:$0xff] %v9965_v0 }
  0x85   : > { %354 = vst [vmem:[%s10236_s10 + $0x158] sm:$0xff] %v9965_v0 }
  0x86   : > { %355 = vst [vmem:[%s10236_s10 + $0x160] sm:$0xff] %v9965_v0 }
  0x87   : > { %356 = vst [vmem:[%s10236_s10 + $0x168] sm:$0xff] %v9965_v0 }
  0x88   : > { %357 = vst [vmem:[%s10236_s10 + $0x170] sm:$0xff] %v9965_v0 }
  0x89   : > { %358 = vst [vmem:[%s10236_s10 + $0x178] sm:$0xff] %v9965_v0 }
  0x8a   : > { %359 = vst [vmem:[%s10236_s10 + $0x180] sm:$0xff] %v9965_v0 }
  0x8b   : > { %360 = vst [vmem:[%s10236_s10 + $0x188] sm:$0xff] %v9965_v0 }
  0x8c   : > { %361 = vst [vmem:[%s10236_s10 + $0x190] sm:$0xff] %v9965_v0 }
  0x8d   : > { %362 = vst [vmem:[%s10236_s10 + $0x198] sm:$0xff] %v9965_v0 }
  0x8e   : > { %363 = vst [vmem:[%s10236_s10 + $0x1a0] sm:$0xff] %v9965_v0 }
  0x8f   : > { %364 = vst [vmem:[%s10236_s10 + $0x1a8] sm:$0xff] %v9965_v0 }
  0x90   : > { %365 = vst [vmem:[%s10236_s10 + $0x1b0] sm:$0xff] %v9965_v0 }
  0x91   : > { %366 = vst [vmem:[%s10236_s10 + $0x1b8] sm:$0xff] %v9965_v0 }
  0x92   : > { %367 = vst [vmem:[%s10236_s10 + $0x1c0] sm:$0xff] %v9965_v0 }
  0x93   : > { %368 = vst [vmem:[%s10236_s10 + $0x1c8] sm:$0xff] %v9965_v0 }
  0x94   : > { %369 = vst [vmem:[%s10236_s10 + $0x1d0] sm:$0xff] %v9965_v0 }
  0x95   : > { %370 = vst [vmem:[%s10236_s10 + $0x1d8] sm:$0xff] %v9965_v0 }
  0x96   : > { %371 = vst [vmem:[%s10236_s10 + $0x1e0] sm:$0xff] %v9965_v0 }
  0x97   : > { %372 = vst [vmem:[%s10236_s10 + $0x1e8] sm:$0xff] %v9965_v0 }
  0x98   : > { %373 = vst [vmem:[%s10236_s10 + $0x1f0] sm:$0xff] %v9965_v0 }
  0x99   : > { %374 = vst [vmem:[%s10236_s10 + $0x1f8] sm:$0xff] %v9965_v0 }
  0x9a   : > { %375 = vst [vmem:[%s10236_s10 + $0x200] sm:$0xff] %v9965_v0 }
  0x9b   : > { %376 = vst [vmem:[%s10236_s10 + $0x208] sm:$0xff] %v9965_v0 }
  0x9c   : > { %377 = vst [vmem:[%s10236_s10 + $0x210] sm:$0xff] %v9965_v0 }
  0x9d   : > { %378 = vst [vmem:[%s10236_s10 + $0x218] sm:$0xff] %v9965_v0 }
  0x9e   : > { %379 = vst [vmem:[%s10236_s10 + $0x220] sm:$0xff] %v9965_v0 }
  0x9f   : > { %380 = vst [vmem:[%s10236_s10 + $0x228] sm:$0xff] %v9965_v0 }
  0xa0   : > { %381 = vst [vmem:[%s10236_s10 + $0x230] sm:$0xff] %v9965_v0 }
  0xa1   : > { %382 = vst [vmem:[%s10236_s10 + $0x238] sm:$0xff] %v9965_v0 }
  0xa2   : > { %383 = vst [vmem:[%s10236_s10 + $0x240] sm:$0xff] %v9965_v0 }
  0xa3   : > { %384 = vst [vmem:[%s10236_s10 + $0x248] sm:$0xff] %v9965_v0 }
  0xa4   : > { %385 = vst [vmem:[%s10236_s10 + $0x250] sm:$0xff] %v9965_v0 }
  0xa5   : > { %386 = vst [vmem:[%s10236_s10 + $0x258] sm:$0xff] %v9965_v0 }
  0xa6   : > { %387 = vst [vmem:[%s10236_s10 + $0x260] sm:$0xff] %v9965_v0 }
  0xa7   : > { %388 = vst [vmem:[%s10236_s10 + $0x268] sm:$0xff] %v9965_v0 }
  0xa8   : > { %389 = vst [vmem:[%s10236_s10 + $0x270] sm:$0xff] %v9965_v0 }
  0xa9   : > { %390 = vst [vmem:[%s10236_s10 + $0x278] sm:$0xff] %v9965_v0 }
  0xaa   : > { %391 = vst [vmem:[%s10236_s10 + $0x280] sm:$0xff] %v9965_v0 }
  0xab   : > { %392 = vst [vmem:[%s10236_s10 + $0x288] sm:$0xff] %v9965_v0 }
  0xac   : > { %393 = vst [vmem:[%s10236_s10 + $0x290] sm:$0xff] %v9965_v0 }
  0xad   : > { %394 = vst [vmem:[%s10236_s10 + $0x298] sm:$0xff] %v9965_v0 }
  0xae   : > { %395 = vst [vmem:[%s10236_s10 + $0x2a0] sm:$0xff] %v9965_v0 }
  0xaf   : > { %396 = vst [vmem:[%s10236_s10 + $0x2a8] sm:$0xff] %v9965_v0 }
  0xb0   : > { %397 = vst [vmem:[%s10236_s10 + $0x2b0] sm:$0xff] %v9965_v0 }
  0xb1   : > { %398 = vst [vmem:[%s10236_s10 + $0x2b8] sm:$0xff] %v9965_v0 }
  0xb2   : > { %399 = vst [vmem:[%s10236_s10 + $0x2c0] sm:$0xff] %v9965_v0 }
  0xb3   : > { %400 = vst [vmem:[%s10236_s10 + $0x2c8] sm:$0xff] %v9965_v0 }
  0xb4   : > { %401 = vst [vmem:[%s10236_s10 + $0x2d0] sm:$0xff] %v9965_v0 }
  0xb5   : > { %402 = vst [vmem:[%s10236_s10 + $0x2d8] sm:$0xff] %v9965_v0 }
  0xb6   : > { %403 = vst [vmem:[%s10236_s10 + $0x2e0] sm:$0xff] %v9965_v0 }
  0xb7   : > { %404 = vst [vmem:[%s10236_s10 + $0x2e8] sm:$0xff] %v9965_v0 }
  0xb8   : > { %405 = vst [vmem:[%s10236_s10 + $0x2f0] sm:$0xff] %v9965_v0 }
  0xb9   : > { %406 = vst [vmem:[%s10236_s10 + $0x2f8] sm:$0xff] %v9965_v0 }
  0xba   : > { %407 = vst [vmem:[%s10236_s10 + $0x300] sm:$0xff] %v9965_v0 }
  0xbb   : > { %408 = vst [vmem:[%s10236_s10 + $0x308] sm:$0xff] %v9965_v0 }
  0xbc   : > { %409 = vst [vmem:[%s10236_s10 + $0x310] sm:$0xff] %v9965_v0 }
  0xbd   : > { %410 = vst [vmem:[%s10236_s10 + $0x318] sm:$0xff] %v9965_v0 }
  0xbe   : > { %411 = vst [vmem:[%s10236_s10 + $0x320] sm:$0xff] %v9965_v0 }
  0xbf   : > { %412 = vst [vmem:[%s10236_s10 + $0x328] sm:$0xff] %v9965_v0 }
  0xc0   : > { %413 = vst [vmem:[%s10236_s10 + $0x330] sm:$0xff] %v9965_v0 }
  0xc1   : > { %414 = vst [vmem:[%s10236_s10 + $0x338] sm:$0xff] %v9965_v0 }
  0xc2   : > { %415 = vst [vmem:[%s10236_s10 + $0x340] sm:$0xff] %v9965_v0 }
  0xc3   : > { %416 = vst [vmem:[%s10236_s10 + $0x348] sm:$0xff] %v9965_v0 }
  0xc4   : > { %417 = vst [vmem:[%s10236_s10 + $0x350] sm:$0xff] %v9965_v0 }
  0xc5   : > { %418 = vst [vmem:[%s10236_s10 + $0x358] sm:$0xff] %v9965_v0 }
  0xc6   : > { %419 = vst [vmem:[%s10236_s10 + $0x360] sm:$0xff] %v9965_v0 }
  0xc7   : > { %420 = vst [vmem:[%s10236_s10 + $0x368] sm:$0xff] %v9965_v0 }
  0xc8   : > { %421 = vst [vmem:[%s10236_s10 + $0x370] sm:$0xff] %v9965_v0 }
  0xc9   : > { %422 = vst [vmem:[%s10236_s10 + $0x378] sm:$0xff] %v9965_v0 }
  0xca   : > { %423 = vst [vmem:[%s10236_s10 + $0x380] sm:$0xff] %v9965_v0 }
  0xcb   : > { %424 = vst [vmem:[%s10236_s10 + $0x388] sm:$0xff] %v9965_v0 }
  0xcc   : > { %425 = vst [vmem:[%s10236_s10 + $0x390] sm:$0xff] %v9965_v0 }
  0xcd   : > { %426 = vst [vmem:[%s10236_s10 + $0x398] sm:$0xff] %v9965_v0 }
  0xce   : > { %427 = vst [vmem:[%s10236_s10 + $0x3a0] sm:$0xff] %v9965_v0 }
  0xcf   : > { %428 = vst [vmem:[%s10236_s10 + $0x3a8] sm:$0xff] %v9965_v0 }
  0xd0   : > { %429 = vst [vmem:[%s10236_s10 + $0x3b0] sm:$0xff] %v9965_v0 }
  0xd1   : > { %430 = vst [vmem:[%s10236_s10 + $0x3b8] sm:$0xff] %v9965_v0 }
  0xd2   : > { %431 = vst [vmem:[%s10236_s10 + $0x3c0] sm:$0xff] %v9965_v0 }
  0xd3   : > { %432 = vst [vmem:[%s10236_s10 + $0x3c8] sm:$0xff] %v9965_v0 }
  0xd4   : > { %433 = vst [vmem:[%s10236_s10 + $0x3d0] sm:$0xff] %v9965_v0 }
  0xd5   : > { %434 = vst [vmem:[%s10236_s10 + $0x3d8] sm:$0xff] %v9965_v0 }
  0xd6   : > { %435 = vst [vmem:[%s10236_s10 + $0x3e0] sm:$0xff] %v9965_v0 }
  0xd7   : > { %436 = vst [vmem:[%s10236_s10 + $0x3e8] sm:$0xff] %v9965_v0 }
  0xd8   : > { %437 = vst [vmem:[%s10236_s10 + $0x3f0] sm:$0xff] %v9965_v0 }
  0xd9   : > { %438 = vst [vmem:[%s10236_s10 + $0x3f8] sm:$0xff] %v9965_v0 }
  0xda   : > { %439 = vst [vmem:[%s10236_s10 + $0x400] sm:$0xff] %v9965_v0 }
  0xdb   : > { %440 = vst [vmem:[%s10236_s10 + $0x408] sm:$0xff] %v9965_v0 }
  0xdc   : > { %441 = vst [vmem:[%s10236_s10 + $0x410] sm:$0xff] %v9965_v0 }
  0xdd   : > { %442 = vst [vmem:[%s10236_s10 + $0x418] sm:$0xff] %v9965_v0 }
  0xde   : > { %443 = vst [vmem:[%s10236_s10 + $0x420] sm:$0xff] %v9965_v0 }
  0xdf   : > { %444 = vst [vmem:[%s10236_s10 + $0x428] sm:$0xff] %v9965_v0 }
  0xe0   : > { %445 = vst [vmem:[%s10236_s10 + $0x430] sm:$0xff] %v9965_v0 }
  0xe1   : > { %446 = vst [vmem:[%s10236_s10 + $0x438] sm:$0xff] %v9965_v0 }
  0xe2   : > { %447 = vst [vmem:[%s10236_s10 + $0x440] sm:$0xff] %v9965_v0 }
  0xe3   : > { %448 = vst [vmem:[%s10236_s10 + $0x448] sm:$0xff] %v9965_v0 }
  0xe4   : > { %449 = vst [vmem:[%s10236_s10 + $0x450] sm:$0xff] %v9965_v0 }
  0xe5   : > { %450 = vst [vmem:[%s10236_s10 + $0x458] sm:$0xff] %v9965_v0 }
  0xe6   : > { %451 = vst [vmem:[%s10236_s10 + $0x460] sm:$0xff] %v9965_v0 }
  0xe7   : > { %452 = vst [vmem:[%s10236_s10 + $0x468] sm:$0xff] %v9965_v0 }
  0xe8   : > { %453 = vst [vmem:[%s10236_s10 + $0x470] sm:$0xff] %v9965_v0 }
  0xe9   : > { %454 = vst [vmem:[%s10236_s10 + $0x478] sm:$0xff] %v9965_v0 }
  0xea   : > { %455 = vst [vmem:[%s10236_s10 + $0x480] sm:$0xff] %v9965_v0 }
  0xeb   : > { %456 = vst [vmem:[%s10236_s10 + $0x488] sm:$0xff] %v9965_v0 }
  0xec   : > { %457 = vst [vmem:[%s10236_s10 + $0x490] sm:$0xff] %v9965_v0 }
  0xed   : > { %458 = vst [vmem:[%s10236_s10 + $0x498] sm:$0xff] %v9965_v0 }
  0xee   : > { %459 = vst [vmem:[%s10236_s10 + $0x4a0] sm:$0xff] %v9965_v0 }
  0xef   : > { %460 = vst [vmem:[%s10236_s10 + $0x4a8] sm:$0xff] %v9965_v0 }
  0xf0   : > { %461 = vst [vmem:[%s10236_s10 + $0x4b0] sm:$0xff] %v9965_v0 }
  0xf1   : > { %462 = vst [vmem:[%s10236_s10 + $0x4b8] sm:$0xff] %v9965_v0 }
  0xf2   : > { %463 = vst [vmem:[%s10236_s10 + $0x4c0] sm:$0xff] %v9965_v0 }
  0xf3   : > { %464 = vst [vmem:[%s10236_s10 + $0x4c8] sm:$0xff] %v9965_v0 }
  0xf4   : > { %465 = vst [vmem:[%s10236_s10 + $0x4d0] sm:$0xff] %v9965_v0 }
  0xf5   : > { %466 = vst [vmem:[%s10236_s10 + $0x4d8] sm:$0xff] %v9965_v0 }
  0xf6   : > { %467 = vst [vmem:[%s10236_s10 + $0x4e0] sm:$0xff] %v9965_v0 }
  0xf7   : > { %468 = vst [vmem:[%s10236_s10 + $0x4e8] sm:$0xff] %v9965_v0 }
  0xf8   : > { %469 = vst [vmem:[%s10236_s10 + $0x4f0] sm:$0xff] %v9965_v0 }
  0xf9   : > { %470 = vst [vmem:[%s10236_s10 + $0x4f8] sm:$0xff] %v9965_v0 }
  0xfa   : > { %471 = vst [vmem:[%s10236_s10 + $0x500] sm:$0xff] %v9965_v0 }
  0xfb   : > { %472 = vst [vmem:[%s10236_s10 + $0x508] sm:$0xff] %v9965_v0 }
  0xfc   : > { %473 = vst [vmem:[%s10236_s10 + $0x510] sm:$0xff] %v9965_v0 }
  0xfd   : > { %474 = vst [vmem:[%s10236_s10 + $0x518] sm:$0xff] %v9965_v0 }
  0xfe   : > { %475 = vst [vmem:[%s10236_s10 + $0x520] sm:$0xff] %v9965_v0 }
  0xff   : > { %476 = vst [vmem:[%s10236_s10 + $0x528] sm:$0xff] %v9965_v0 }
 0x100   : > { %477 = vst [vmem:[%s10236_s10 + $0x530] sm:$0xff] %v9965_v0 }
 0x101   : > { %478 = vst [vmem:[%s10236_s10 + $0x538] sm:$0xff] %v9965_v0 }
 0x102   : > { %479 = vst [vmem:[%s10236_s10 + $0x540] sm:$0xff] %v9965_v0 }
 0x103   : > { %480 = vst [vmem:[%s10236_s10 + $0x548] sm:$0xff] %v9965_v0 }
 0x104   : > { %481 = vst [vmem:[%s10236_s10 + $0x550] sm:$0xff] %v9965_v0 }
 0x105   : > { %482 = vst [vmem:[%s10236_s10 + $0x558] sm:$0xff] %v9965_v0 }
 0x106   : > { %483 = vst [vmem:[%s10236_s10 + $0x560] sm:$0xff] %v9965_v0 }
 0x107   : > { %484 = vst [vmem:[%s10236_s10 + $0x568] sm:$0xff] %v9965_v0 }
 0x108   : > { %485 = vst [vmem:[%s10236_s10 + $0x570] sm:$0xff] %v9965_v0 }
 0x109   : > { %486 = vst [vmem:[%s10236_s10 + $0x578] sm:$0xff] %v9965_v0 }
 0x10a   : > { %487 = vst [vmem:[%s10236_s10 + $0x580] sm:$0xff] %v9965_v0 }
 0x10b   : > { %488 = vst [vmem:[%s10236_s10 + $0x588] sm:$0xff] %v9965_v0 }
 0x10c   : > { %489 = vst [vmem:[%s10236_s10 + $0x590] sm:$0xff] %v9965_v0 }
 0x10d   : > { %490 = vst [vmem:[%s10236_s10 + $0x598] sm:$0xff] %v9965_v0 }
 0x10e   : > { %491 = vst [vmem:[%s10236_s10 + $0x5a0] sm:$0xff] %v9965_v0 }
 0x10f   : > { %492 = vst [vmem:[%s10236_s10 + $0x5a8] sm:$0xff] %v9965_v0 }
 0x110   : > { %493 = vst [vmem:[%s10236_s10 + $0x5b0] sm:$0xff] %v9965_v0 }
 0x111   : > { %494 = vst [vmem:[%s10236_s10 + $0x5b8] sm:$0xff] %v9965_v0 }
 0x112   : > { %495 = vst [vmem:[%s10236_s10 + $0x5c0] sm:$0xff] %v9965_v0 }
 0x113   : > { %496 = vst [vmem:[%s10236_s10 + $0x5c8] sm:$0xff] %v9965_v0 }
 0x114   : > { %497 = vst [vmem:[%s10236_s10 + $0x5d0] sm:$0xff] %v9965_v0 }
 0x115   : > { %498 = vst [vmem:[%s10236_s10 + $0x5d8] sm:$0xff] %v9965_v0 }
 0x116   : > { %499 = vst [vmem:[%s10236_s10 + $0x5e0] sm:$0xff] %v9965_v0 }
 0x117   : > { %500 = vst [vmem:[%s10236_s10 + $0x5e8] sm:$0xff] %v9965_v0 }
 0x118   : > { %501 = vst [vmem:[%s10236_s10 + $0x5f0] sm:$0xff] %v9965_v0 }
 0x119   : > { %502 = vst [vmem:[%s10236_s10 + $0x5f8] sm:$0xff] %v9965_v0 }
 0x11a PF: > { %v8390_v1 = vld [vmem:[%s10219_s3 + $0xe0] sm:$0xf]  ;;  %v9337_v2 = vld [vmem:[%s10219_s3 + $0xec] sm:$0xf0]  ;;  %p9300_p11 = scmp.ne.s32.totalorder %s9941_s21, 1 }
 0x11b   : > { %v8518_v3 = vld [vmem:[%s10219_s3 + $0x1e0] sm:$0xf]  ;;  %v8391_v4 = vor.u32 %v9337_v2, %v8390_v1  ;;  %v9369_v5 = vld [vmem:[%s10219_s3 + $0x1ec] sm:$0xf0] }
 0x11c   : > { %v8646_v6 = vld [vmem:[%s10219_s3 + $0x2e0] sm:$0xf]  ;;  %v9401_v7 = vld [vmem:[%s10219_s3 + $0x2ec] sm:$0xf0]  ;;  %v8519_v8 = vor.u32 %v9369_v5, %v8518_v3 }
 0x11d   : > { %v8647_v9 = vor.u32 %v9401_v7, %v8646_v6  ;;  %v8774_v10 = vld [vmem:[%s10219_s3 + $0x3e0] sm:$0xf]  ;;  %v9433_v11 = vld [vmem:[%s10219_s3 + $0x3ec] sm:$0xf0]  ;;  %2807 = vmatpush.bf16.msra.mxu0 %v8391_v4 }
 0x11e   : > { %v8374_v12 = vld [vmem:[%s10219_s3 + $0xc0] sm:$0xf]  ;;  %v8775_v13 = vor.u32 %v9433_v11, %v8774_v10  ;;  %v9333_v14 = vld [vmem:[%s10219_s3 + $0xcc] sm:$0xf0]  ;;  %2936 = vmatpush.bf16.msra.mxu1 %v8519_v8 }
 0x11f   : > { %v8502_v15 = vld [vmem:[%s10219_s3 + $0x1c0] sm:$0xf]  ;;  %v9365_v16 = vld [vmem:[%s10219_s3 + $0x1cc] sm:$0xf0]  ;;  %3065 = vmatpush.bf16.msra.mxu2 %v8647_v9  ;;  %v8375_v17 = vor.u32 %v9333_v14, %v8374_v12 }
 0x120   : > { %v8503_v18 = vor.u32 %v9365_v16, %v8502_v15  ;;  %v8630_v19 = vld [vmem:[%s10219_s3 + $0x2c0] sm:$0xf]  ;;  %v9397_v20 = vld [vmem:[%s10219_s3 + $0x2cc] sm:$0xf0]  ;;  %3194 = vmatpush.bf16.msra.mxu3 %v8775_v13 }
 0x121   : > { %v8758_v21 = vld [vmem:[%s10219_s3 + $0x3c0] sm:$0xf]  ;;  %v8631_v22 = vor.u32 %v9397_v20, %v8630_v19  ;;  %v9429_v23 = vld [vmem:[%s10219_s3 + $0x3cc] sm:$0xf0]  ;;  %2808 = vmatpush.bf16.msra.mxu0 %v8375_v17 }
 0x122   : > { %v8358_v24 = vld [vmem:[%s10219_s3 + $0xa0] sm:$0xf]  ;;  %v9329_v25 = vld [vmem:[%s10219_s3 + $0xac] sm:$0xf0]  ;;  %v8759_v26 = vor.u32 %v9429_v23, %v8758_v21  ;;  %2937 = vmatpush.bf16.msra.mxu1 %v8503_v18 }
 0x123   : > { %v8486_v27 = vld [vmem:[%s10219_s3 + $0x1a0] sm:$0xf]  ;;  %v9361_v28 = vld [vmem:[%s10219_s3 + $0x1ac] sm:$0xf0]  ;;  %v8359_v30 = vor.u32 %v9329_v25, %v8358_v24  ;;  %3066 = vmatpush.bf16.msra.mxu2 %v8631_v22 }
 0x124   : > { %v8614_v29 = vld [vmem:[%s10219_s3 + $0x2a0] sm:$0xf]  ;;  %v9393_v31 = vld [vmem:[%s10219_s3 + $0x2ac] sm:$0xf0]  ;;  %v8487_v34 = vor.u32 %v9361_v28, %v8486_v27  ;;  %3195 = vmatpush.bf16.msra.mxu3 %v8759_v26 }
 0x125   : > { %v8742_v32 = vld [vmem:[%s10219_s3 + $0x3a0] sm:$0xf]  ;;  %v9425_v33 = vld [vmem:[%s10219_s3 + $0x3ac] sm:$0xf0]  ;;  %v8615_v35 = vor.u32 %v9393_v31, %v8614_v29  ;;  %2809 = vmatpush.bf16.msra.mxu0 %v8359_v30  ;;  %v696_v31 = vld [vmem:[%s10211_s17 + $0x8] sm:$0xff] }
 0x126   : > { %v8342_v36 = vld [vmem:[%s10219_s3 + $0x80] sm:$0xf]  ;;  %v9325_v37 = vld [vmem:[%s10219_s3 + $0x8c] sm:$0xf0]  ;;  %v8743_v39 = vor.u32 %v9425_v33, %v8742_v32  ;;  %2938 = vmatpush.bf16.msra.mxu1 %v8487_v34 }
 0x127   : > { %v8470_v38 = vld [vmem:[%s10219_s3 + $0x180] sm:$0xf]  ;;  %v9357_v40 = vld [vmem:[%s10219_s3 + $0x18c] sm:$0xf0]  ;;  %v8343_v45 = vor.u32 %v9325_v37, %v8342_v36  ;;  %3067 = vmatpush.bf16.msra.mxu2 %v8615_v35  ;;  %v704_v35 = vld [vmem:[%s10211_s17 + $0x48] sm:$0xff] }
 0x128   : > { %v8598_v41 = vld [vmem:[%s10219_s3 + $0x280] sm:$0xf]  ;;  %v9389_v42 = vld [vmem:[%s10219_s3 + $0x28c] sm:$0xf0]  ;;  %v8471_v46 = vor.u32 %v9357_v40, %v8470_v38  ;;  %3196 = vmatpush.bf16.msra.mxu3 %v8743_v39 }
 0x129   : > { %v8726_v43 = vld [vmem:[%s10219_s3 + $0x380] sm:$0xf]  ;;  %v9421_v44 = vld [vmem:[%s10219_s3 + $0x38c] sm:$0xf0]  ;;  %v8599_v47 = vor.u32 %v9389_v42, %v8598_v41  ;;  %2810 = vmatpush.bf16.msra.mxu0 %v8343_v45  ;;  %v698_v42 = vld [vmem:[%s10211_s17 + $0x18] sm:$0xff] }
 0x12a   : > { %v8326_v48 = vld [vmem:[%s10219_s3 + $0x60] sm:$0xf]  ;;  %v9321_v49 = vld [vmem:[%s10219_s3 + $0x6c] sm:$0xf0]  ;;  %v8727_v51 = vor.u32 %v9421_v44, %v8726_v43  ;;  %2939 = vmatpush.bf16.msra.mxu1 %v8471_v46  ;;  %v706_v44 = vld [vmem:[%s10211_s17 + $0x58] sm:$0xff] }
 0x12b   : > { %v8454_v50 = vld [vmem:[%s10219_s3 + $0x160] sm:$0xf]  ;;  %v9353_v52 = vld [vmem:[%s10219_s3 + $0x16c] sm:$0xf0]  ;;  %v8327_v57 = vor.u32 %v9321_v49, %v8326_v48  ;;  %3068 = vmatpush.bf16.msra.mxu2 %v8599_v47 }
 0x12c   : > { %v8582_v53 = vld [vmem:[%s10219_s3 + $0x260] sm:$0xf]  ;;  %v9385_v54 = vld [vmem:[%s10219_s3 + $0x26c] sm:$0xf0]  ;;  %v8455_v58 = vor.u32 %v9353_v52, %v8454_v50  ;;  %3197 = vmatpush.bf16.msra.mxu3 %v8727_v51  ;;  %v10705_v52 = vpack.c.bf16 %v704_v35, %v696_v31  ;;  %v744_v31 = vld [vmem:[%s10211_s17 + $0x188] sm:$0xff] }
 0x12d   : > { %v8710_v55 = vld [vmem:[%s10219_s3 + $0x360] sm:$0xf]  ;;  %v9417_v56 = vld [vmem:[%s10219_s3 + $0x36c] sm:$0xf0]  ;;  %v8583_v59 = vor.u32 %v9385_v54, %v8582_v53  ;;  %2811 = vmatpush.bf16.msra.mxu0 %v8327_v57  ;;  %v10709_v54 = vpack.c.bf16 %v706_v44, %v698_v42  ;;  %v746_v35 = vld [vmem:[%s10211_s17 + $0x198] sm:$0xff] }
 0x12e   : > { %v8310_v60 = vld [vmem:[%s10219_s3 + $0x40] sm:$0xf]  ;;  %v9317_v61 = vld [vmem:[%s10219_s3 + $0x4c] sm:$0xf0]  ;;  %v8711_v63 = vor.u32 %v9417_v56, %v8710_v55  ;;  %2940 = vmatpush.bf16.msra.mxu1 %v8455_v58  ;;  %14676 = vst [vmem:[#allocation22_spill] sm:$0xff] %v10705_v52  ;;  %v768_v44 = vld [vmem:[%s10211_s17 + $0x248] sm:$0xff] }
 0x12f   : > { %v8438_v62 = vld [vmem:[%s10219_s3 + $0x140] sm:$0xf]  ;;  %v9349_v0 = vld [vmem:[%s10219_s3 + $0x14c] sm:$0xf0]  ;;  %v8311_v5 = vor.u32 %v9317_v61, %v8310_v60  ;;  %3069 = vmatpush.bf16.msra.mxu2 %v8583_v59  ;;  %14678 = vst [vmem:[#allocation24_spill] sm:$0xff] %v10709_v54  ;;  %v712_v59 = vld [vmem:[%s10211_s17 + $0x88] sm:$0xff] }
 0x130   : > { %v8566_v1 = vld [vmem:[%s10219_s3 + $0x240] sm:$0xf]  ;;  %v9381_v2 = vld [vmem:[%s10219_s3 + $0x24c] sm:$0xf0]  ;;  %v8439_v6 = vor.u32 %v9349_v0, %v8438_v62  ;;  %3198 = vmatpush.bf16.msra.mxu3 %v8711_v63  ;;  %v720_v60 = vld [vmem:[%s10211_s17 + $0xc8] sm:$0xff] }
 0x131   : > { %v8694_v3 = vld [vmem:[%s10219_s3 + $0x340] sm:$0xf]  ;;  %v9413_v4 = vld [vmem:[%s10219_s3 + $0x34c] sm:$0xf0]  ;;  %v8567_v7 = vor.u32 %v9381_v2, %v8566_v1  ;;  %2812 = vmatpush.bf16.msra.mxu0 %v8311_v5  ;;  %v714_v63 = vld [vmem:[%s10211_s17 + $0x98] sm:$0xff]  ;;  %v10725_v2 = vpack.c.bf16 %v720_v60, %v712_v59 }
 0x132   : > { %v8294_v8 = vld [vmem:[%s10219_s3 + $0x20] sm:$0xf]  ;;  %v9313_v9 = vld [vmem:[%s10219_s3 + $0x2c] sm:$0xf0]  ;;  %v8695_v11 = vor.u32 %v9413_v4, %v8694_v3  ;;  %2941 = vmatpush.bf16.msra.mxu1 %v8439_v6  ;;  %v722_v0 = vld [vmem:[%s10211_s17 + $0xd8] sm:$0xff] }
 0x133   : > { %v8422_v10 = vld [vmem:[%s10219_s3 + $0x120] sm:$0xf]  ;;  %v9345_v12 = vld [vmem:[%s10219_s3 + $0x12c] sm:$0xf0]  ;;  %v8295_v18 = vor.u32 %v9313_v9, %v8294_v8  ;;  %3070 = vmatpush.bf16.msra.mxu2 %v8567_v7  ;;  %14680 = vst [vmem:[#allocation26_spill] sm:$0xff] %v10725_v2  ;;  %v10729_v4 = vpack.c.bf16 %v722_v0, %v714_v63 }
 0x134   : > { %v8550_v13 = vld [vmem:[%s10219_s3 + $0x220] sm:$0xf]  ;;  %v9377_v14 = vld [vmem:[%s10219_s3 + $0x22c] sm:$0xf0]  ;;  %v8423_v22 = vor.u32 %v9345_v12, %v8422_v10  ;;  %3199 = vmatpush.bf16.msra.mxu3 %v8695_v11 }
 0x135   : > { %v8678_v15 = vld [vmem:[%s10219_s3 + $0x320] sm:$0xf]  ;;  %v9409_v16 = vld [vmem:[%s10219_s3 + $0x32c] sm:$0xf0]  ;;  %v8551_v23 = vor.u32 %v9377_v14, %v8550_v13  ;;  %2813 = vmatpush.bf16.msra.mxu0 %v8295_v18  ;;  %14682 = vst [vmem:[#allocation28_spill] sm:$0xff] %v10729_v4 }
 0x136   : > { %v8278_v17 = vld [vmem:[%s10219_s3] sm:$0xf]  ;;  %v9309_v19 = vld [vmem:[%s10219_s3 + $0xc] sm:$0xf0]  ;;  %v8679_v27 = vor.u32 %v9409_v16, %v8678_v15  ;;  %2942 = vmatpush.bf16.msra.mxu1 %v8423_v22 }
 0x137   : > { %v8406_v20 = vld [vmem:[%s10219_s3 + $0x100] sm:$0xf]  ;;  %v9341_v21 = vld [vmem:[%s10219_s3 + $0x10c] sm:$0xf0]  ;;  %v8279_v34 = vor.u32 %v9309_v19, %v8278_v17  ;;  %3071 = vmatpush.bf16.msra.mxu2 %v8551_v23  ;;  %v728_v19 = vld [vmem:[%s10211_s17 + $0x108] sm:$0xff] }
 0x138   : > { %v8534_v24 = vld [vmem:[%s10219_s3 + $0x200] sm:$0xf]  ;;  %v9373_v25 = vld [vmem:[%s10219_s3 + $0x20c] sm:$0xf0]  ;;  %v8407_v38 = vor.u32 %v9341_v21, %v8406_v20  ;;  %3200 = vmatpush.bf16.msra.mxu3 %v8679_v27  ;;  %v736_v20 = vld [vmem:[%s10211_s17 + $0x148] sm:$0xff] }
 0x139   : > { %v8662_v26 = vld [vmem:[%s10219_s3 + $0x300] sm:$0xf]  ;;  %v9405_v28 = vld [vmem:[%s10219_s3 + $0x30c] sm:$0xf0]  ;;  %v8535_v39 = vor.u32 %v9373_v25, %v8534_v24  ;;  %2814 = vmatpush.bf16.msra.mxu0 %v8279_v34  ;;  %v730_v23 = vld [vmem:[%s10211_s17 + $0x118] sm:$0xff] }
 0x13a   : > { %v695_v29 = vld [vmem:[%s10211_s17] sm:$0xff]  ;;  %v9529_v33 = vld [vmem:[%s10219_s3 + $0x6ec] sm:$0xf0]  ;;  %v8663_v43 = vor.u32 %v9405_v28, %v8662_v26  ;;  %2943 = vmatpush.bf16.msra.mxu1 %v8407_v38  ;;  %v738_v24 = vld [vmem:[%s10211_s17 + $0x158] sm:$0xff]  ;;  %v10753_v26 = vpack.c.bf16 %v736_v20, %v728_v19 }
 0x13b   : > { %v703_v30 = vld [vmem:[%s10211_s17 + $0x40] sm:$0xff]  ;;  %v9561_v37 = vld [vmem:[%s10219_s3 + $0x7ec] sm:$0xf0]  ;;  %3072 = vmatpush.bf16.msra.mxu2 %v8535_v39  ;;  %v10757_v28 = vpack.c.bf16 %v738_v24, %v730_v23  ;;  %v792_v23 = vld [vmem:[%s10211_s17 + $0x308] sm:$0xff] }
 0x13c   : > { %v9158_v32 = vld [vmem:[%s10219_s3 + $0x6e0] sm:$0xf]  ;;  %v697_v40 = vld [vmem:[%s10211_s17 + $0x10] sm:$0xff]  ;;  %v10701_v48 = vpack.c.bf16 %v703_v30, %v695_v29  ;;  %3201 = vmatpush.bf16.msra.mxu3 %v8663_v43  ;;  %14684 = vst [vmem:[#allocation30_spill] sm:$0xff] %v10753_v26  ;;  %v760_v43 = vld [vmem:[%s10211_s17 + $0x208] sm:$0xff] }
 0x13d   : > { %v9286_v36 = vld [vmem:[%s10219_s3 + $0x7e0] sm:$0xf]  ;;  %v705_v41 = vld [vmem:[%s10211_s17 + $0x50] sm:$0xff]  ;;  %v9159_v45 = vor.u32 %v9529_v33, %v9158_v32  ;;  %2944 = vmatmul.bf16.vlgmr.msra.gmra.mxu1 %v10705_v52  ;;  %14686 = vst [vmem:[#allocation32_spill] sm:$0xff] %v10757_v28  ;;  %v752_v32 = vld [vmem:[%s10211_s17 + $0x1c8] sm:$0xff] }
 0x13e   : > { %v8902_v46 = vld [vmem:[%s10219_s3 + $0x4e0] sm:$0xf]  ;;  %v9465_v47 = vld [vmem:[%s10219_s3 + $0x4ec] sm:$0xf0]  ;;  %14675 = vst [vmem:[#allocation21_spill] sm:$0xff] %v10701_v48  ;;  %v9287_v49 = vor.u32 %v9561_v37, %v9286_v36  ;;  %v10707_v53 = vpack.c.bf16 %v705_v41, %v697_v40  ;;  %2815 = vmatmul.bf16.vlgmr.msra.gmra.mxu0 %v10701_v48  ;;  %v754_v36 = vld [vmem:[%s10211_s17 + $0x1d8] sm:$0xff]  ;;  %v10773_v38 = vpack.c.bf16 %v752_v32, %v744_v31 }
 0x13f   : > { %v9030_v50 = vld [vmem:[%s10219_s3 + $0x5e0] sm:$0xf]  ;;  %v9497_v51 = vld [vmem:[%s10219_s3 + $0x5ec] sm:$0xf0]  ;;  %v8903_v55 = vor.u32 %v9465_v47, %v8902_v46  ;;  %3581 = vmatpush.bf16.msrb.mxu2 %v9159_v45  ;;  %3202 = vmatmul.bf16.vlgmr.msra.gmra.mxu3 %v10709_v54  ;;  %v10777_v40 = vpack.c.bf16 %v754_v36, %v746_v35  ;;  %v762_v47 = vld [vmem:[%s10211_s17 + $0x218] sm:$0xff] }
 0x140   : > { %14677 = vst [vmem:[#allocation23_spill] sm:$0xff] %v10707_v53  ;;  %v9031_v56 = vor.u32 %v9497_v51, %v9030_v50  ;;  %3710 = vmatpush.bf16.msrb.mxu3 %v9287_v49  ;;  %3073 = vmatmul.bf16.vlgmr.msra.gmra.mxu2 %v10707_v53  ;;  %v711_v57 = vld [vmem:[%s10211_s17 + $0x80] sm:$0xff]  ;;  %v713_v61 = vld [vmem:[%s10211_s17 + $0x90] sm:$0xff]  ;;  %v770_v49 = vld [vmem:[%s10211_s17 + $0x258] sm:$0xff]  ;;  %v10793_v51 = vpack.c.bf16 %v768_v44, %v760_v43 }
 0x141   : > { %3323 = vmatpush.bf16.msrb.mxu0 %v8903_v55  ;;  %v719_v58 = vld [vmem:[%s10211_s17 + $0xc0] sm:$0xff]  ;;  %v721_v62 = vld [vmem:[%s10211_s17 + $0xd0] sm:$0xff]  ;;  %14688 = vst [vmem:[#allocation34_spill] sm:$0xff] %v10773_v38  ;;  %v800_v24 = vld [vmem:[%s10211_s17 + $0x348] sm:$0xff] }
 0x142   : > { %3452 = vmatpush.bf16.msrb.mxu1 %v9031_v56  ;;  %v10723_v1 = vpack.c.bf16 %v719_v58, %v711_v57  ;;  %v10727_v3 = vpack.c.bf16 %v721_v62, %v713_v61  ;;  %v9142_v5 = vld [vmem:[%s10219_s3 + $0x6c0] sm:$0xf]  ;;  %v9525_v6 = vld [vmem:[%s10219_s3 + $0x6cc] sm:$0xf0]  ;;  %14690 = vst [vmem:[#allocation36_spill] sm:$0xff] %v10777_v40  ;;  %v10797_v56 = vpack.c.bf16 %v770_v49, %v762_v47  ;;  %v794_v31 = vld [vmem:[%s10211_s17 + $0x318] sm:$0xff] }
 0x143   : > { %v8886_v7 = vld [vmem:[%s10219_s3 + $0x4c0] sm:$0xf]  ;;  %v9143_v8 = vor.u32 %v9525_v6, %v9142_v5  ;;  %v9461_v9 = vld [vmem:[%s10219_s3 + $0x4cc] sm:$0xf0]  ;;  %14692 = vst [vmem:[#allocation38_spill] sm:$0xff] %v10793_v51  ;;  %v802_v32 = vld [vmem:[%s10211_s17 + $0x358] sm:$0xff] }
 0x144   : > { %14679 = vst [vmem:[#allocation25_spill] sm:$0xff] %v10723_v1  ;;  %v9270_v10 = vld [vmem:[%s10219_s3 + $0x7c0] sm:$0xf]  ;;  %v9557_v11 = vld [vmem:[%s10219_s3 + $0x7cc] sm:$0xf0]  ;;  %v8887_v12 = vor.u32 %v9461_v9, %v8886_v7  ;;  %v10845_v36 = vpack.c.bf16 %v802_v32, %v794_v31  ;;  %v808_v43 = vld [vmem:[%s10211_s17 + $0x388] sm:$0xff] }
 0x145   : > { %14681 = vst [vmem:[#allocation27_spill] sm:$0xff] %v10727_v3  ;;  %v9271_v13 = vor.u32 %v9557_v11, %v9270_v10  ;;  %v9014_v14 = vld [vmem:[%s10219_s3 + $0x5c0] sm:$0xf]  ;;  %v9493_v15 = vld [vmem:[%s10219_s3 + $0x5cc] sm:$0xf0]  ;;  %3582 = vmatpush.bf16.msrb.mxu2 %v9143_v8  ;;  %v776_v11 = vld [vmem:[%s10211_s17 + $0x288] sm:$0xff] }
 0x146   : > { %v9015_v16 = vor.u32 %v9493_v15, %v9014_v14  ;;  %3324 = vmatpush.bf16.msrb.mxu0 %v8887_v12  ;;  %v727_v17 = vld [vmem:[%s10211_s17 + $0x100] sm:$0xff]  ;;  %v729_v21 = vld [vmem:[%s10211_s17 + $0x110] sm:$0xff]  ;;  %14694 = vst [vmem:[#allocation40_spill] sm:$0xff] %v10797_v56  ;;  %v784_v12 = vld [vmem:[%s10211_s17 + $0x2c8] sm:$0xff] }
 0x147   : > { %3711 = vmatpush.bf16.msrb.mxu3 %v9271_v13  ;;  %v735_v18 = vld [vmem:[%s10211_s17 + $0x140] sm:$0xff]  ;;  %v737_v22 = vld [vmem:[%s10211_s17 + $0x150] sm:$0xff]  ;;  %v778_v15 = vld [vmem:[%s10211_s17 + $0x298] sm:$0xff]  ;;  %14702 = vst [vmem:[#allocation48_spill] sm:$0xff] %v10845_v36 }
 0x148   : > { %3453 = vmatpush.bf16.msrb.mxu1 %v9015_v16  ;;  %v10751_v25 = vpack.c.bf16 %v735_v18, %v727_v17  ;;  %v10755_v27 = vpack.c.bf16 %v737_v22, %v729_v21  ;;  %v743_v29 = vld [vmem:[%s10211_s17 + $0x180] sm:$0xff]  ;;  %v745_v33 = vld [vmem:[%s10211_s17 + $0x190] sm:$0xff]  ;;  %v786_v16 = vld [vmem:[%s10211_s17 + $0x2d8] sm:$0xff]  ;;  %v10821_v18 = vpack.c.bf16 %v784_v12, %v776_v11 }
 0x149   : > { %v751_v30 = vld [vmem:[%s10211_s17 + $0x1c0] sm:$0xff]  ;;  %v753_v34 = vld [vmem:[%s10211_s17 + $0x1d0] sm:$0xff]  ;;  %v10825_v20 = vpack.c.bf16 %v786_v16, %v778_v15  ;;  %v816_v44 = vld [vmem:[%s10211_s17 + $0x3c8] sm:$0xff] }
 0x14a   : > { %14683 = vst [vmem:[#allocation29_spill] sm:$0xff] %v10751_v25  ;;  %v10771_v37 = vpack.c.bf16 %v751_v30, %v743_v29  ;;  %v10775_v39 = vpack.c.bf16 %v753_v34, %v745_v33  ;;  %v759_v41 = vld [vmem:[%s10211_s17 + $0x200] sm:$0xff]  ;;  %v761_v45 = vld [vmem:[%s10211_s17 + $0x210] sm:$0xff]  ;;  %v10841_v34 = vpack.c.bf16 %v800_v24, %v792_v23  ;;  %v810_v47 = vld [vmem:[%s10211_s17 + $0x398] sm:$0xff] }
 0x14b   : > { %14685 = vst [vmem:[#allocation31_spill] sm:$0xff] %v10755_v27  ;;  %v767_v42 = vld [vmem:[%s10211_s17 + $0x240] sm:$0xff]  ;;  %v769_v46 = vld [vmem:[%s10211_s17 + $0x250] sm:$0xff]  ;;  %v818_v49 = vld [vmem:[%s10211_s17 + $0x3d8] sm:$0xff] }
 0x14c   : > { %14687 = vst [vmem:[#allocation33_spill] sm:$0xff] %v10771_v37  ;;  %v10791_v50 = vpack.c.bf16 %v767_v42, %v759_v41  ;;  %v10795_v55 = vpack.c.bf16 %v769_v46, %v761_v45  ;;  %v9126_v57 = vld [vmem:[%s10219_s3 + $0x6a0] sm:$0xf]  ;;  %v9521_v58 = vld [vmem:[%s10219_s3 + $0x6ac] sm:$0xf0]  ;;  %v824_v15 = vld [vmem:[%s10211_s17 + $0x408] sm:$0xff] }
 0x14d   : > { %2949 = vmatmul.bf16.gmra.mxu1 %v10725_v2  ;;  %14689 = vst [vmem:[#allocation35_spill] sm:$0xff] %v10775_v39  ;;  %v8870_v59 = vld [vmem:[%s10219_s3 + $0x4a0] sm:$0xf]  ;;  %v9127_v60 = vor.u32 %v9521_v58, %v9126_v57  ;;  %v9457_v61 = vld [vmem:[%s10219_s3 + $0x4ac] sm:$0xf0]  ;;  %v10861_v58 = vpack.c.bf16 %v816_v44, %v808_v43  ;;  %v832_v16 = vld [vmem:[%s10211_s17 + $0x448] sm:$0xff] }
 0x14e   : > { %2820 = vmatmul.bf16.gmra.mxu0 %v10723_v1  ;;  %14691 = vst [vmem:[#allocation37_spill] sm:$0xff] %v10791_v50  ;;  %v9254_v62 = vld [vmem:[%s10219_s3 + $0x7a0] sm:$0xf]  ;;  %v9553_v63 = vld [vmem:[%s10219_s3 + $0x7ac] sm:$0xf0]  ;;  %v8871_v0 = vor.u32 %v9457_v61, %v8870_v59  ;;  %v826_v23 = vld [vmem:[%s10211_s17 + $0x418] sm:$0xff]  ;;  %v10889_v31 = vpack.c.bf16 %v832_v16, %v824_v15 }
 0x14f   : > { %3207 = vmatmul.bf16.gmra.mxu3 %v10729_v4  ;;  %14693 = vst [vmem:[#allocation39_spill] sm:$0xff] %v10795_v55  ;;  %v9255_v5 = vor.u32 %v9553_v63, %v9254_v62  ;;  %v8998_v6 = vld [vmem:[%s10219_s3 + $0x5a0] sm:$0xf]  ;;  %v9489_v7 = vld [vmem:[%s10219_s3 + $0x5ac] sm:$0xf0]  ;;  %3583 = vmatpush.bf16.msrb.mxu2 %v9127_v60  ;;  %v10865_v60 = vpack.c.bf16 %v818_v49, %v810_v47  ;;  %v834_v24 = vld [vmem:[%s10211_s17 + $0x458] sm:$0xff] }
 0x150   : > { %3078 = vmatmul.bf16.gmra.mxu2 %v10727_v3  ;;  %v8999_v8 = vor.u32 %v9489_v7, %v8998_v6  ;;  %3325 = vmatpush.bf16.msrb.mxu0 %v8871_v0  ;;  %v775_v9 = vld [vmem:[%s10211_s17 + $0x280] sm:$0xff]  ;;  %v777_v13 = vld [vmem:[%s10211_s17 + $0x290] sm:$0xff]  ;;  %14696 = vst [vmem:[#allocation42_spill] sm:$0xff] %v10821_v18 }
 0x151   : > { %3712 = vmatpush.bf16.msrb.mxu3 %v9255_v5  ;;  %v783_v10 = vld [vmem:[%s10211_s17 + $0x2c0] sm:$0xff]  ;;  %v785_v14 = vld [vmem:[%s10211_s17 + $0x2d0] sm:$0xff]  ;;  %14698 = vst [vmem:[#allocation44_spill] sm:$0xff] %v10825_v20 }
 0x152   : > { %3454 = vmatpush.bf16.msrb.mxu1 %v8999_v8  ;;  %v10819_v17 = vpack.c.bf16 %v783_v10, %v775_v9  ;;  %v10823_v19 = vpack.c.bf16 %v785_v14, %v777_v13  ;;  %v791_v21 = vld [vmem:[%s10211_s17 + $0x300] sm:$0xff]  ;;  %v793_v29 = vld [vmem:[%s10211_s17 + $0x310] sm:$0xff]  ;;  %14700 = vst [vmem:[#allocation46_spill] sm:$0xff] %v10841_v34 }
 0x153   : > { %v799_v22 = vld [vmem:[%s10211_s17 + $0x340] sm:$0xff]  ;;  %v801_v30 = vld [vmem:[%s10211_s17 + $0x350] sm:$0xff]  ;;  %14704 = vst [vmem:[#allocation50_spill] sm:$0xff] %v10861_v58 }
 0x154   : > { %14695 = vst [vmem:[#allocation41_spill] sm:$0xff] %v10819_v17  ;;  %v10839_v33 = vpack.c.bf16 %v799_v22, %v791_v21  ;;  %v10843_v35 = vpack.c.bf16 %v801_v30, %v793_v29  ;;  %v807_v41 = vld [vmem:[%s10211_s17 + $0x380] sm:$0xff]  ;;  %v809_v45 = vld [vmem:[%s10211_s17 + $0x390] sm:$0xff] }
 0x155   : > { %14697 = vst [vmem:[#allocation43_spill] sm:$0xff] %v10823_v19  ;;  %v815_v42 = vld [vmem:[%s10211_s17 + $0x3c0] sm:$0xff]  ;;  %v817_v46 = vld [vmem:[%s10211_s17 + $0x3d0] sm:$0xff] }
 0x156   : > { %14699 = vst [vmem:[#allocation45_spill] sm:$0xff] %v10839_v33  ;;  %v10859_v57 = vpack.c.bf16 %v815_v42, %v807_v41  ;;  %v10863_v59 = vpack.c.bf16 %v817_v46, %v809_v45  ;;  %v9110_v61 = vld [vmem:[%s10219_s3 + $0x680] sm:$0xf]  ;;  %v9517_v62 = vld [vmem:[%s10219_s3 + $0x68c] sm:$0xf0]  ;;  %v10893_v42 = vpack.c.bf16 %v834_v24, %v826_v23 }
 0x157   : > { %14701 = vst [vmem:[#allocation47_spill] sm:$0xff] %v10843_v35  ;;  %v8854_v63 = vld [vmem:[%s10219_s3 + $0x480] sm:$0xf]  ;;  %v9111_v0 = vor.u32 %v9517_v62, %v9110_v61  ;;  %v9453_v5 = vld [vmem:[%s10219_s3 + $0x48c] sm:$0xf0] }
 0x158   : > { %14703 = vst [vmem:[#allocation49_spill] sm:$0xff] %v10859_v57  ;;  %v9238_v6 = vld [vmem:[%s10219_s3 + $0x780] sm:$0xf]  ;;  %v9549_v7 = vld [vmem:[%s10219_s3 + $0x78c] sm:$0xf0]  ;;  %v8855_v8 = vor.u32 %v9453_v5, %v8854_v63  ;;  %v840_v5 = vld [vmem:[%s10211_s17 + $0x488] sm:$0xff] }
 0x159   : > { %14705 = vst [vmem:[#allocation51_spill] sm:$0xff] %v10863_v59  ;;  %v9239_v9 = vor.u32 %v9549_v7, %v9238_v6  ;;  %3584 = vmatpush.bf16.msrb.mxu2 %v9111_v0  ;;  %v8982_v10 = vld [vmem:[%s10219_s3 + $0x580] sm:$0xf]  ;;  %v9485_v11 = vld [vmem:[%s10219_s3 + $0x58c] sm:$0xf0]  ;;  %v848_v6 = vld [vmem:[%s10211_s17 + $0x4c8] sm:$0xff] }
 0x15a   : > { %14706 = vst [vmem:[#allocation52_spill] sm:$0xff] %v10865_v60  ;;  %3326 = vmatpush.bf16.msrb.mxu0 %v8855_v8  ;;  %v8983_v12 = vor.u32 %v9485_v11, %v8982_v10  ;;  %v823_v13 = vld [vmem:[%s10211_s17 + $0x400] sm:$0xff]  ;;  %v825_v21 = vld [vmem:[%s10211_s17 + $0x410] sm:$0xff]  ;;  %v850_v10 = vld [vmem:[%s10211_s17 + $0x4d8] sm:$0xff]  ;;  %v10911_v16 = vpack.c.bf16 %v848_v6, %v840_v5 }
 0x15b   : > { %3713 = vmatpush.bf16.msrb.mxu3 %v9239_v9  ;;  %v831_v14 = vld [vmem:[%s10211_s17 + $0x440] sm:$0xff]  ;;  %v833_v22 = vld [vmem:[%s10211_s17 + $0x450] sm:$0xff]  ;;  %14708 = vst [vmem:[#allocation54_spill] sm:$0xff] %v10889_v31  ;;  %v842_v9 = vld [vmem:[%s10211_s17 + $0x498] sm:$0xff] }
 0x15c   : > { %3455 = vmatpush.bf16.msrb.mxu1 %v8983_v12  ;;  %v10887_v29 = vpack.c.bf16 %v831_v14, %v823_v13  ;;  %v10891_v32 = vpack.c.bf16 %v833_v22, %v825_v21  ;;  %14710 = vst [vmem:[#allocation56_spill] sm:$0xff] %v10893_v42  ;;  %v839_v63 = vld [vmem:[%s10211_s17 + $0x480] sm:$0xff]  ;;  %v841_v7 = vld [vmem:[%s10211_s17 + $0x490] sm:$0xff]  ;;  %v10915_v23 = vpack.c.bf16 %v850_v10, %v842_v9  ;;  %v864_v5 = vld [vmem:[%s10211_s17 + $0x548] sm:$0xff] }
 0x15d   : > { %2954 = vmatmul.bf16.gmra.mxu1 %v10753_v26  ;;  %v847_v0 = vld [vmem:[%s10211_s17 + $0x4c0] sm:$0xff]  ;;  %v849_v8 = vld [vmem:[%s10211_s17 + $0x4d0] sm:$0xff]  ;;  %14712 = vst [vmem:[#allocation58_spill] sm:$0xff] %v10911_v16  ;;  %v866_v9 = vld [vmem:[%s10211_s17 + $0x558] sm:$0xff] }
 0x15e   : > { %2825 = vmatmul.bf16.gmra.mxu0 %v10751_v25  ;;  %14707 = vst [vmem:[#allocation53_spill] sm:$0xff] %v10887_v29  ;;  %v10909_v12 = vpack.c.bf16 %v847_v0, %v839_v63  ;;  %v10913_v21 = vpack.c.bf16 %v849_v8, %v841_v7  ;;  %v863_v63 = vld [vmem:[%s10211_s17 + $0x540] sm:$0xff]  ;;  %v856_v0 = vld [vmem:[%s10211_s17 + $0x508] sm:$0xff]  ;;  %v857_v6 = vld [vmem:[%s10211_s17 + $0x510] sm:$0xff] }
 0x15f   : > { %3212 = vmatmul.bf16.gmra.mxu3 %v10757_v28  ;;  %14709 = vst [vmem:[#allocation55_spill] sm:$0xff] %v10891_v32  ;;  %v865_v7 = vld [vmem:[%s10211_s17 + $0x550] sm:$0xff]  ;;  %v858_v8 = vld [vmem:[%s10211_s17 + $0x518] sm:$0xff]  ;;  %v9355_v4 = vld [vmem:[%s10219_s3 + $0x184] sm:$0xf] }
 0x160   : > { %3083 = vmatmul.bf16.gmra.mxu2 %v10755_v27  ;;  %14711 = vst [vmem:[#allocation57_spill] sm:$0xff] %v10909_v12 }
 0x161   : > { %14713 = vst [vmem:[#allocation59_spill] sm:$0xff] %v10913_v21 }
 0x162   : > { %14714 = vst [vmem:[#allocation60_spill] sm:$0xff] %v10915_v23 }
 0x16d   : > { %2959 = vmatmul.bf16.gmra.mxu1 %v10773_v38 }
 0x16e   : > { %2830 = vmatmul.bf16.gmra.mxu0 %v10771_v37 }
 0x16f   : > { %3217 = vmatmul.bf16.gmra.mxu3 %v10777_v40 }
 0x170   : > { %3088 = vmatmul.bf16.gmra.mxu2 %v10775_v39 }
 0x17d   : > { %2964 = vmatmul.bf16.gmra.mxu1 %v10793_v51 }
 0x17e   : > { %2835 = vmatmul.bf16.gmra.mxu0 %v10791_v50 }
 0x17f   : > { %3222 = vmatmul.bf16.gmra.mxu3 %v10797_v56 }
 0x180   : > { %3093 = vmatmul.bf16.gmra.mxu2 %v10795_v55 }
 0x18d   : > { %2969 = vmatmul.bf16.gmra.mxu1 %v10821_v18 }
 0x18e   : > { %2840 = vmatmul.bf16.gmra.mxu0 %v10819_v17 }
 0x18f   : > { %3227 = vmatmul.bf16.gmra.mxu3 %v10825_v20 }
 0x190   : > { %3098 = vmatmul.bf16.gmra.mxu2 %v10823_v19 }
 0x19d   : > { %2974 = vmatmul.bf16.gmra.mxu1 %v10841_v34 }
 0x19e   : > { %2845 = vmatmul.bf16.gmra.mxu0 %v10839_v33 }
 0x19f   : > { %3232 = vmatmul.bf16.gmra.mxu3 %v10845_v36 }
 0x1a0   : > { %3103 = vmatmul.bf16.gmra.mxu2 %v10843_v35 }
 0x1ad   : > { %2979 = vmatmul.bf16.gmra.mxu1 %v10861_v58 }
 0x1ae   : > { %2850 = vmatmul.bf16.gmra.mxu0 %v10859_v57 }
 0x1af   : > { %3237 = vmatmul.bf16.gmra.mxu3 %v10865_v60 }
 0x1b0   : > { %3108 = vmatmul.bf16.gmra.mxu2 %v10863_v59 }
 0x1ba   : > { %v2945_v41 = vpop.f32.mrf.mxu1 }
 0x1bb   : > { %v2816_v30 = vpop.f32.mrf.mxu0 }
 0x1bc   : > { %v2946_v43 = vadd.f32 %v2945_v41, %v2816_v30 }
 0x1bd   : > { %2984 = vmatmul.bf16.gmra.mxu1 %v10889_v31 }
 0x1be   : > { %2855 = vmatmul.bf16.gmra.mxu0 %v10887_v29 }
 0x1bf   : > { %3242 = vmatmul.bf16.gmra.mxu3 %v10893_v42 }
 0x1c0   : > { %3113 = vmatmul.bf16.gmra.mxu2 %v10891_v32 }
 0x1c2   : > { %v3203_v46 = vpop.f32.mrf.mxu3  ;;  %v2947_v49 = vpop.f32.mrf.mxu1 }
 0x1c3   : > { %v3074_v44 = vpop.f32.mrf.mxu2  ;;  %v2818_v47 = vpop.f32.mrf.mxu0 }
 0x1c4   : > { %v3075_v45 = vadd.f32 %v3074_v44, %v2946_v43  ;;  %v2948_v62 = vadd.f32 %v2947_v49, %v2818_v47 }
 0x1c6   : > { %v10899_v61 = vadd.f32 %v3203_v46, %v3075_v45 }
 0x1ca   : > { %v3205_v14 = vpop.f32.mrf.mxu3  ;;  %v2950_v22 = vpop.f32.mrf.mxu1 }
 0x1cb   : > { %v3076_v11 = vpop.f32.mrf.mxu2  ;;  %v2821_v15 = vpop.f32.mrf.mxu0 }
 0x1cc   : > { %v3077_v13 = vadd.f32 %v3076_v11, %v2948_v62  ;;  %v2951_v30 = vadd.f32 %v2950_v22, %v2821_v15  ;;  %v855_v62 = vld [vmem:[%s10211_s17 + $0x500] sm:$0xff]  ;;  %v10935_v22 = vpack.c.bf16 %v864_v5, %v856_v0  ;;  %v9449_v0 = vld [vmem:[%s10219_s3 + $0x46c] sm:$0xf0] }
 0x1cd   : > { %2989 = vmatmul.bf16.gmra.mxu1 %v10911_v16  ;;  %v10933_v11 = vpack.c.bf16 %v863_v63, %v855_v62  ;;  %v8838_v62 = vld [vmem:[%s10219_s3 + $0x460] sm:$0xf] }
 0x1ce   : > { %v10917_v24 = vadd.f32 %v3205_v14, %v3077_v13  ;;  %2860 = vmatmul.bf16.gmra.mxu0 %v10909_v12  ;;  %14716 = vst [vmem:[#allocation62_spill] sm:$0xff] %v10935_v22  ;;  %v9222_v5 = vld [vmem:[%s10219_s3 + $0x760] sm:$0xf] }
 0x1cf   : > { %3247 = vmatmul.bf16.gmra.mxu3 %v10915_v23  ;;  %14715 = vst [vmem:[#allocation61_spill] sm:$0xff] %v10933_v11 }
 0x1d0   : > { %3118 = vmatmul.bf16.gmra.mxu2 %v10913_v21 }
 0x1d2   : > { %v3208_v44 = vpop.f32.mrf.mxu3  ;;  %v2952_v46 = vpop.f32.mrf.mxu1 }
 0x1d3   : > { %v3079_v41 = vpop.f32.mrf.mxu2  ;;  %v2823_v45 = vpop.f32.mrf.mxu0 }
 0x1d4   : > { %v3080_v43 = vadd.f32 %v3079_v41, %v2951_v30  ;;  %v2953_v49 = vadd.f32 %v2952_v46, %v2823_v45  ;;  %v10937_v30 = vpack.c.bf16 %v865_v7, %v857_v6  ;;  %v9094_v46 = vld [vmem:[%s10219_s3 + $0x660] sm:$0xf]  ;;  %v9545_v6 = vld [vmem:[%s10219_s3 + $0x76c] sm:$0xf0] }
 0x1d6   : > { %v10923_v47 = vadd.f32 %v3208_v44, %v3080_v43  ;;  %14717 = vst [vmem:[#allocation63_spill] sm:$0xff] %v10937_v30  ;;  %v10939_v43 = vpack.c.bf16 %v866_v9, %v858_v8  ;;  %v8839_v8 = vor.u32 %v9449_v0, %v8838_v62  ;;  %v9223_v9 = vor.u32 %v9545_v6, %v9222_v5  ;;  %v871_v0 = vld [vmem:[%s10211_s17 + $0x580] sm:$0xff]  ;;  %v872_v6 = vld [vmem:[%s10211_s17 + $0x588] sm:$0xff] }
 0x1d7   : > { %v879_v5 = vld [vmem:[%s10211_s17 + $0x5c0] sm:$0xff] }
 0x1d8   : > { %14718 = vst [vmem:[#allocation64_spill] sm:$0xff] %v10939_v43  ;;  %3327 = vmatpush.bf16.msrb.mxu0 %v8839_v8  ;;  %3714 = vmatpush.bf16.msrb.mxu3 %v9223_v9  ;;  %v10965_v23 = vpack.c.bf16 %v879_v5, %v871_v0 }
 0x1da   : > { %v3210_v14 = vpop.f32.mrf.mxu3  ;;  %v2955_v41 = vpop.f32.mrf.mxu1  ;;  %14719 = vst [vmem:[#allocation65_spill] sm:$0xff] %v10965_v23 }
 0x1db   : > { %v3081_v10 = vpop.f32.mrf.mxu2  ;;  %v2826_v15 = vpop.f32.mrf.mxu0 }
 0x1dc   : > { %v3082_v13 = vadd.f32 %v3081_v10, %v2953_v49  ;;  %v2956_v45 = vadd.f32 %v2955_v41, %v2826_v15  ;;  %v9513_v49 = vld [vmem:[%s10219_s3 + $0x66c] sm:$0xf0] }
 0x1dd   : > { %2994 = vmatmul.bf16.gmra.mxu1 %v10935_v22  ;;  %v9095_v63 = vor.u32 %v9513_v49, %v9094_v46  ;;  %v8966_v49 = vld [vmem:[%s10219_s3 + $0x560] sm:$0xf]  ;;  %v874_v22 = vld [vmem:[%s10211_s17 + $0x598] sm:$0xff] }
 0x1de   : > { %v10941_v44 = vadd.f32 %v3210_v14, %v3082_v13  ;;  %2865 = vmatmul.bf16.gmra.mxu0 %v10933_v11 }
 0x1df   : > { %3252 = vmatmul.bf16.gmra.mxu3 %v10939_v43  ;;  %3585 = vmatpush.bf16.msrb.mxu2 %v9095_v63  ;;  %v9481_v43 = vld [vmem:[%s10219_s3 + $0x56c] sm:$0xf0]  ;;  %v882_v63 = vld [vmem:[%s10211_s17 + $0x5d8] sm:$0xff] }
 0x1e0   : > { %3123 = vmatmul.bf16.gmra.mxu2 %v10937_v30  ;;  %v8967_v62 = vor.u32 %v9481_v43, %v8966_v49  ;;  %v881_v30 = vld [vmem:[%s10211_s17 + $0x5d0] sm:$0xff] }
 0x1e2   : > { %v3213_v13 = vpop.f32.mrf.mxu3  ;;  %v2957_v15 = vpop.f32.mrf.mxu1  ;;  %3456 = vmatpush.bf16.msrb.mxu1 %v8967_v62 }
 0x1e3   : > { %v3084_v7 = vpop.f32.mrf.mxu2  ;;  %v2828_v14 = vpop.f32.mrf.mxu0 }
 0x1e4   : > { %v3085_v10 = vadd.f32 %v3084_v7, %v2956_v45  ;;  %v2958_v46 = vadd.f32 %v2957_v15, %v2828_v14  ;;  %v880_v45 = vld [vmem:[%s10211_s17 + $0x5c8] sm:$0xff]  ;;  %v873_v7 = vld [vmem:[%s10211_s17 + $0x590] sm:$0xff]  ;;  %v10971_v15 = vpack.c.bf16 %v882_v63, %v874_v22 }
 0x1e5   : > { %v10969_v14 = vpack.c.bf16 %v881_v30, %v873_v7  ;;  %v895_v7 = vld [vmem:[%s10211_s17 + $0x640] sm:$0xff]  ;;  %v888_v63 = vld [vmem:[%s10211_s17 + $0x608] sm:$0xff] }
 0x1e6   : > { %v10953_v41 = vadd.f32 %v3213_v13, %v3085_v10  ;;  %v10967_v13 = vpack.c.bf16 %v880_v45, %v872_v6  ;;  %14722 = vst [vmem:[#allocation68_spill] sm:$0xff] %v10971_v15  ;;  %v887_v45 = vld [vmem:[%s10211_s17 + $0x600] sm:$0xff] }
 0x1e7   : > { %14721 = vst [vmem:[#allocation67_spill] sm:$0xff] %v10969_v14 }
 0x1e8   : > { %14720 = vst [vmem:[#allocation66_spill] sm:$0xff] %v10967_v13 }
 0x1ea   : > { %v3215_v9 = vpop.f32.mrf.mxu3  ;;  %v2960_v43 = vpop.f32.mrf.mxu1 }
 0x1eb   : > { %v3086_v11 = vpop.f32.mrf.mxu2  ;;  %v2831_v10 = vpop.f32.mrf.mxu0 }
 0x1ec   : > { %v3087_v8 = vadd.f32 %v3086_v11, %v2958_v46  ;;  %v2961_v62 = vadd.f32 %v2960_v43, %v2831_v10  ;;  %v897_v10 = vld [vmem:[%s10211_s17 + $0x650] sm:$0xff]  ;;  %v890_v43 = vld [vmem:[%s10211_s17 + $0x618] sm:$0xff] }
 0x1ed   : > { %2999 = vmatmul.bf16.gmra.mxu1 %v10967_v13  ;;  %v898_v13 = vld [vmem:[%s10211_s17 + $0x658] sm:$0xff] }
 0x1ee   : > { %v10973_v49 = vadd.f32 %v3215_v9, %v3087_v8  ;;  %2870 = vmatmul.bf16.gmra.mxu0 %v10965_v23  ;;  %v896_v8 = vld [vmem:[%s10211_s17 + $0x648] sm:$0xff]  ;;  %v889_v9 = vld [vmem:[%s10211_s17 + $0x610] sm:$0xff]  ;;  %v10989_v23 = vpack.c.bf16 %v895_v7, %v887_v45 }
 0x1ef   : > { %3257 = vmatmul.bf16.gmra.mxu3 %v10971_v15  ;;  %v10993_v16 = vpack.c.bf16 %v897_v10, %v889_v9  ;;  %v904_v9 = vld [vmem:[%s10211_s17 + $0x688] sm:$0xff] }
 0x1f0   : > { %3128 = vmatmul.bf16.gmra.mxu2 %v10969_v14  ;;  %14723 = vst [vmem:[#allocation69_spill] sm:$0xff] %v10989_v23  ;;  %v912_v10 = vld [vmem:[%s10211_s17 + $0x6c8] sm:$0xff] }
 0x1f1   : > { %14725 = vst [vmem:[#allocation71_spill] sm:$0xff] %v10993_v16 }
 0x1f2   : > { %v3218_v30 = vpop.f32.mrf.mxu3  ;;  %v2962_v0 = vpop.f32.mrf.mxu1 }
 0x1f3   : > { %v3089_v11 = vpop.f32.mrf.mxu2  ;;  %v2833_v46 = vpop.f32.mrf.mxu0 }
 0x1f4   : > { %v3090_v22 = vadd.f32 %v3089_v11, %v2961_v62  ;;  %v2963_v6 = vadd.f32 %v2962_v0, %v2833_v46  ;;  %v10991_v11 = vpack.c.bf16 %v896_v8, %v888_v63  ;;  %v903_v63 = vld [vmem:[%s10211_s17 + $0x680] sm:$0xff] }
 0x1f5   : > { %v911_v8 = vld [vmem:[%s10211_s17 + $0x6c0] sm:$0xff] }
 0x1f6   : > { %v10979_v5 = vadd.f32 %v3218_v30, %v3090_v22  ;;  %14724 = vst [vmem:[#allocation70_spill] sm:$0xff] %v10991_v11  ;;  %v10995_v30 = vpack.c.bf16 %v898_v13, %v890_v43  ;;  %v905_v43 = vld [vmem:[%s10211_s17 + $0x690] sm:$0xff] }
 0x1f8   : > { %14726 = vst [vmem:[#allocation72_spill] sm:$0xff] %v10995_v30 }
 0x1fa   : > { %v3220_v21 = vpop.f32.mrf.mxu3  ;;  %v2965_v22 = vpop.f32.mrf.mxu1 }
 0x1fb   : > { %v3091_v14 = vpop.f32.mrf.mxu2  ;;  %v2836_v62 = vpop.f32.mrf.mxu0 }
 0x1fc   : > { %v3092_v15 = vadd.f32 %v3091_v14, %v2963_v6  ;;  %v2966_v0 = vadd.f32 %v2965_v22, %v2836_v62  ;;  %v913_v62 = vld [vmem:[%s10211_s17 + $0x6d0] sm:$0xff]  ;;  %v906_v22 = vld [vmem:[%s10211_s17 + $0x698] sm:$0xff] }
 0x1fd   : > { %3004 = vmatmul.bf16.gmra.mxu1 %v10991_v11  ;;  %v914_v11 = vld [vmem:[%s10211_s17 + $0x6d8] sm:$0xff] }
 0x1fe   : > { %v10997_v46 = vadd.f32 %v3220_v21, %v3092_v15  ;;  %2875 = vmatmul.bf16.gmra.mxu0 %v10989_v23  ;;  %v11019_v23 = vpack.c.bf16 %v914_v11, %v906_v22  ;;  %v9206_v11 = vld [vmem:[%s10219_s3 + $0x740] sm:$0xf] }
 0x1ff   : > { %3262 = vmatmul.bf16.gmra.mxu3 %v10995_v30  ;;  %v11013_v30 = vpack.c.bf16 %v911_v8, %v903_v63  ;;  %v8822_v63 = vld [vmem:[%s10219_s3 + $0x440] sm:$0xf] }
 0x200   : > { %3133 = vmatmul.bf16.gmra.mxu2 %v10993_v16  ;;  %14730 = vst [vmem:[#allocation76_spill] sm:$0xff] %v11019_v23 }
 0x201   : > { %14727 = vst [vmem:[#allocation73_spill] sm:$0xff] %v11013_v30 }
 0x202   : > { %v3223_v6 = vpop.f32.mrf.mxu3  ;;  %v2967_v21 = vpop.f32.mrf.mxu1 }
 0x203   : > { %v3094_v14 = vpop.f32.mrf.mxu2  ;;  %v2838_v45 = vpop.f32.mrf.mxu0 }
 0x204   : > { %v3095_v13 = vadd.f32 %v3094_v14, %v2966_v0  ;;  %v2968_v7 = vadd.f32 %v2967_v21, %v2838_v45  ;;  %v11017_v45 = vpack.c.bf16 %v913_v62, %v905_v43 }
 0x206   : > { %v11003_v15 = vadd.f32 %v3223_v6, %v3095_v13  ;;  %v11015_v6 = vpack.c.bf16 %v912_v10, %v904_v9  ;;  %14729 = vst [vmem:[#allocation75_spill] sm:$0xff] %v11017_v45  ;;  %v9445_v9 = vld [vmem:[%s10219_s3 + $0x44c] sm:$0xf0] }
 0x207   : > { %v9541_v10 = vld [vmem:[%s10219_s3 + $0x74c] sm:$0xf0]  ;;  %v8823_v62 = vor.u32 %v9445_v9, %v8822_v63  ;;  %v919_v9 = vld [vmem:[%s10211_s17 + $0x700] sm:$0xff] }
 0x208   : > { %14728 = vst [vmem:[#allocation74_spill] sm:$0xff] %v11015_v6  ;;  %v9207_v22 = vor.u32 %v9541_v10, %v9206_v11  ;;  %v927_v11 = vld [vmem:[%s10211_s17 + $0x740] sm:$0xff]  ;;  %v920_v10 = vld [vmem:[%s10211_s17 + $0x708] sm:$0xff] }
 0x209   : > { %3328 = vmatpush.bf16.msrb.mxu0 %v8823_v62  ;;  %v11045_v31 = vpack.c.bf16 %v927_v11, %v919_v9 }
 0x20a   : > { %v3225_v14 = vpop.f32.mrf.mxu3  ;;  %v2970_v21 = vpop.f32.mrf.mxu1  ;;  %3715 = vmatpush.bf16.msrb.mxu3 %v9207_v22 }
 0x20b   : > { %v3096_v16 = vpop.f32.mrf.mxu2  ;;  %v2841_v13 = vpop.f32.mrf.mxu0  ;;  %14731 = vst [vmem:[#allocation77_spill] sm:$0xff] %v11045_v31 }
 0x20c   : > { %v3097_v0 = vadd.f32 %v3096_v16, %v2968_v7  ;;  %v2971_v42 = vadd.f32 %v2970_v21, %v2841_v13  ;;  %v9078_v16 = vld [vmem:[%s10219_s3 + $0x640] sm:$0xf]  ;;  %v9509_v7 = vld [vmem:[%s10219_s3 + $0x64c] sm:$0xf0] }
 0x20d   : > { %3009 = vmatmul.bf16.gmra.mxu1 %v11015_v6  ;;  %v9079_v8 = vor.u32 %v9509_v7, %v9078_v16  ;;  %v929_v6 = vld [vmem:[%s10211_s17 + $0x750] sm:$0xff] }
 0x20e   : > { %v11021_v12 = vadd.f32 %v3225_v14, %v3097_v0  ;;  %2880 = vmatmul.bf16.gmra.mxu0 %v11013_v30  ;;  %v922_v30 = vld [vmem:[%s10211_s17 + $0x718] sm:$0xff] }
 0x20f   : > { %3267 = vmatmul.bf16.gmra.mxu3 %v11019_v23  ;;  %3586 = vmatpush.bf16.msrb.mxu2 %v9079_v8  ;;  %v8950_v23 = vld [vmem:[%s10219_s3 + $0x540] sm:$0xf]  ;;  %v930_v8 = vld [vmem:[%s10211_s17 + $0x758] sm:$0xff] }
 0x210   : > { %3138 = vmatmul.bf16.gmra.mxu2 %v11017_v45  ;;  %v9477_v45 = vld [vmem:[%s10219_s3 + $0x54c] sm:$0xf0] }
 0x211   : > { %v8951_v63 = vor.u32 %v9477_v45, %v8950_v23  ;;  %v11051_v45 = vpack.c.bf16 %v930_v8, %v922_v30  ;;  %v936_v8 = vld [vmem:[%s10211_s17 + $0x788] sm:$0xff] }
 0x212   : > { %v3228_v14 = vpop.f32.mrf.mxu3  ;;  %v2972_v21 = vpop.f32.mrf.mxu1 }
 0x213   : > { %v3099_v43 = vpop.f32.mrf.mxu2  ;;  %v2843_v13 = vpop.f32.mrf.mxu0  ;;  %3457 = vmatpush.bf16.msrb.mxu1 %v8951_v63  ;;  %14734 = vst [vmem:[#allocation80_spill] sm:$0xff] %v11051_v45 }
 0x214   : > { %v3100_v0 = vadd.f32 %v3099_v43, %v2971_v42  ;;  %v2973_v7 = vadd.f32 %v2972_v21, %v2843_v13  ;;  %v928_v42 = vld [vmem:[%s10211_s17 + $0x748] sm:$0xff]  ;;  %v921_v43 = vld [vmem:[%s10211_s17 + $0x710] sm:$0xff] }
 0x215   : > { %v11049_v13 = vpack.c.bf16 %v929_v6, %v921_v43  ;;  %v943_v43 = vld [vmem:[%s10211_s17 + $0x7c0] sm:$0xff] }
 0x216   : > { %v11033_v16 = vadd.f32 %v3228_v14, %v3100_v0  ;;  %v11047_v14 = vpack.c.bf16 %v928_v42, %v920_v10  ;;  %v935_v42 = vld [vmem:[%s10211_s17 + $0x780] sm:$0xff] }
 0x217   : > { %14733 = vst [vmem:[#allocation79_spill] sm:$0xff] %v11049_v13 }
 0x218   : > { %14732 = vst [vmem:[#allocation78_spill] sm:$0xff] %v11047_v14 }
 0x21a   : > { %v3230_v22 = vpop.f32.mrf.mxu3  ;;  %v2975_v23 = vpop.f32.mrf.mxu1 }
 0x21b   : > { %v3101_v32 = vpop.f32.mrf.mxu2  ;;  %v2846_v0 = vpop.f32.mrf.mxu0 }
 0x21c   : > { %v3102_v62 = vadd.f32 %v3101_v32, %v2973_v7  ;;  %v2976_v63 = vadd.f32 %v2975_v23, %v2846_v0  ;;  %v945_v0 = vld [vmem:[%s10211_s17 + $0x7d0] sm:$0xff]  ;;  %v938_v23 = vld [vmem:[%s10211_s17 + $0x798] sm:$0xff] }
 0x21d   : > { %3014 = vmatmul.bf16.gmra.mxu1 %v11047_v14  ;;  %v946_v14 = vld [vmem:[%s10211_s17 + $0x7d8] sm:$0xff] }
 0x21e   : > { %v11053_v21 = vadd.f32 %v3230_v22, %v3102_v62  ;;  %2885 = vmatmul.bf16.gmra.mxu0 %v11045_v31  ;;  %v944_v62 = vld [vmem:[%s10211_s17 + $0x7c8] sm:$0xff]  ;;  %v937_v22 = vld [vmem:[%s10211_s17 + $0x790] sm:$0xff]  ;;  %v11069_v31 = vpack.c.bf16 %v943_v43, %v935_v42 }
 0x21f   : > { %3272 = vmatmul.bf16.gmra.mxu3 %v11051_v45  ;;  %v11073_v60 = vpack.c.bf16 %v945_v0, %v937_v22  ;;  %v952_v22 = vld [vmem:[%s10211_s17 + $0x808] sm:$0xff] }
 0x220   : > { %3143 = vmatmul.bf16.gmra.mxu2 %v11049_v13  ;;  %14735 = vst [vmem:[#allocation81_spill] sm:$0xff] %v11069_v31  ;;  %v960_v0 = vld [vmem:[%s10211_s17 + $0x848] sm:$0xff] }
 0x221   : > { %14737 = vst [vmem:[#allocation83_spill] sm:$0xff] %v11073_v60 }
 0x222   : > { %v3233_v6 = vpop.f32.mrf.mxu3  ;;  %v2977_v9 = vpop.f32.mrf.mxu1 }
 0x223   : > { %v3104_v32 = vpop.f32.mrf.mxu2  ;;  %v2848_v7 = vpop.f32.mrf.mxu0 }
 0x224   : > { %v3105_v30 = vadd.f32 %v3104_v32, %v2976_v63  ;;  %v2978_v10 = vadd.f32 %v2977_v9, %v2848_v7  ;;  %v11071_v32 = vpack.c.bf16 %v944_v62, %v936_v8  ;;  %v951_v8 = vld [vmem:[%s10211_s17 + $0x800] sm:$0xff] }
 0x225   : > { %v959_v62 = vld [vmem:[%s10211_s17 + $0x840] sm:$0xff] }
 0x226   : > { %v11059_v11 = vadd.f32 %v3233_v6, %v3105_v30  ;;  %14736 = vst [vmem:[#allocation82_spill] sm:$0xff] %v11071_v32  ;;  %v11075_v6 = vpack.c.bf16 %v946_v14, %v938_v23  ;;  %v953_v23 = vld [vmem:[%s10211_s17 + $0x810] sm:$0xff] }
 0x228   : > { %14738 = vst [vmem:[#allocation84_spill] sm:$0xff] %v11075_v6 }
 0x22a   : > { %v3235_v29 = vpop.f32.mrf.mxu3  ;;  %v2980_v30 = vpop.f32.mrf.mxu1 }
 0x22b   : > { %v3106_v13 = vpop.f32.mrf.mxu2  ;;  %v2851_v63 = vpop.f32.mrf.mxu0 }
 0x22c   : > { %v3107_v45 = vadd.f32 %v3106_v13, %v2978_v10  ;;  %v2981_v9 = vadd.f32 %v2980_v30, %v2851_v63  ;;  %v961_v63 = vld [vmem:[%s10211_s17 + $0x850] sm:$0xff]  ;;  %v954_v30 = vld [vmem:[%s10211_s17 + $0x818] sm:$0xff] }
 0x22d   : > { %3019 = vmatmul.bf16.gmra.mxu1 %v11071_v32  ;;  %v962_v32 = vld [vmem:[%s10211_s17 + $0x858] sm:$0xff] }
 0x22e   : > { %v11077_v7 = vadd.f32 %v3235_v29, %v3107_v45  ;;  %2890 = vmatmul.bf16.gmra.mxu0 %v11069_v31  ;;  %v11099_v31 = vpack.c.bf16 %v962_v32, %v954_v30  ;;  %v9190_v32 = vld [vmem:[%s10219_s3 + $0x720] sm:$0xf] }
 0x22f   : > { %3277 = vmatmul.bf16.gmra.mxu3 %v11075_v6  ;;  %v11093_v6 = vpack.c.bf16 %v959_v62, %v951_v8  ;;  %v8806_v8 = vld [vmem:[%s10219_s3 + $0x420] sm:$0xf] }
 0x230   : > { %3148 = vmatmul.bf16.gmra.mxu2 %v11073_v60  ;;  %14742 = vst [vmem:[#allocation88_spill] sm:$0xff] %v11099_v31 }
 0x231   : > { %14739 = vst [vmem:[#allocation85_spill] sm:$0xff] %v11093_v6 }
 0x232   : > { %v3238_v10 = vpop.f32.mrf.mxu3  ;;  %v2982_v29 = vpop.f32.mrf.mxu1 }
 0x233   : > { %v3109_v13 = vpop.f32.mrf.mxu2  ;;  %v2853_v42 = vpop.f32.mrf.mxu0 }
 0x234   : > { %v3110_v14 = vadd.f32 %v3109_v13, %v2981_v9  ;;  %v2983_v43 = vadd.f32 %v2982_v29, %v2853_v42  ;;  %v11097_v42 = vpack.c.bf16 %v961_v63, %v953_v23 }
 0x236   : > { %v11083_v45 = vadd.f32 %v3238_v10, %v3110_v14  ;;  %v11095_v10 = vpack.c.bf16 %v960_v0, %v952_v22  ;;  %14741 = vst [vmem:[#allocation87_spill] sm:$0xff] %v11097_v42  ;;  %v9441_v22 = vld [vmem:[%s10219_s3 + $0x42c] sm:$0xf0] }
 0x237   : > { %v9537_v0 = vld [vmem:[%s10219_s3 + $0x72c] sm:$0xf0]  ;;  %v8807_v63 = vor.u32 %v9441_v22, %v8806_v8  ;;  %v967_v22 = vld [vmem:[%s10211_s17 + $0x880] sm:$0xff] }
 0x238   : > { %14740 = vst [vmem:[#allocation86_spill] sm:$0xff] %v11095_v10  ;;  %v9191_v30 = vor.u32 %v9537_v0, %v9190_v32  ;;  %v975_v32 = vld [vmem:[%s10211_s17 + $0x8c0] sm:$0xff]  ;;  %v968_v0 = vld [vmem:[%s10211_s17 + $0x888] sm:$0xff] }
 0x239   : > { %3329 = vmatpush.bf16.msrb.mxu0 %v8807_v63  ;;  %v11125_v36 = vpack.c.bf16 %v975_v32, %v967_v22 }
 0x23a   : > { %v3240_v13 = vpop.f32.mrf.mxu3  ;;  %v2985_v29 = vpop.f32.mrf.mxu1  ;;  %3716 = vmatpush.bf16.msrb.mxu3 %v9191_v30 }
 0x23b   : > { %v3111_v60 = vpop.f32.mrf.mxu2  ;;  %v2856_v14 = vpop.f32.mrf.mxu0  ;;  %14743 = vst [vmem:[#allocation89_spill] sm:$0xff] %v11125_v36 }
 0x23c   : > { %v3112_v9 = vadd.f32 %v3111_v60, %v2983_v43  ;;  %v2986_v58 = vadd.f32 %v2985_v29, %v2856_v14  ;;  %v9062_v60 = vld [vmem:[%s10219_s3 + $0x620] sm:$0xf]  ;;  %v9505_v43 = vld [vmem:[%s10219_s3 + $0x62c] sm:$0xf0] }
 0x23d   : > { %3024 = vmatmul.bf16.gmra.mxu1 %v11095_v10  ;;  %v9063_v62 = vor.u32 %v9505_v43, %v9062_v60  ;;  %v977_v10 = vld [vmem:[%s10211_s17 + $0x8d0] sm:$0xff] }
 0x23e   : > { %v11101_v59 = vadd.f32 %v3240_v13, %v3112_v9  ;;  %2895 = vmatmul.bf16.gmra.mxu0 %v11093_v6  ;;  %v970_v6 = vld [vmem:[%s10211_s17 + $0x898] sm:$0xff] }
 0x23f   : > { %3282 = vmatmul.bf16.gmra.mxu3 %v11099_v31  ;;  %3587 = vmatpush.bf16.msrb.mxu2 %v9063_v62  ;;  %v8934_v31 = vld [vmem:[%s10219_s3 + $0x520] sm:$0xf]  ;;  %v978_v62 = vld [vmem:[%s10211_s17 + $0x8d8] sm:$0xff] }
 0x240   : > { %3153 = vmatmul.bf16.gmra.mxu2 %v11097_v42  ;;  %v9473_v42 = vld [vmem:[%s10219_s3 + $0x52c] sm:$0xf0] }
 0x241   : > { %v8935_v8 = vor.u32 %v9473_v42, %v8934_v31  ;;  %v11131_v42 = vpack.c.bf16 %v978_v62, %v970_v6  ;;  %v984_v62 = vld [vmem:[%s10211_s17 + $0x908] sm:$0xff] }
 0x242   : > { %v3243_v13 = vpop.f32.mrf.mxu3  ;;  %v2987_v29 = vpop.f32.mrf.mxu1 }
 0x243   : > { %v3114_v23 = vpop.f32.mrf.mxu2  ;;  %v2858_v14 = vpop.f32.mrf.mxu0  ;;  %3458 = vmatpush.bf16.msrb.mxu1 %v8935_v8  ;;  %14746 = vst [vmem:[#allocation92_spill] sm:$0xff] %v11131_v42 }
 0x244   : > { %v3115_v9 = vadd.f32 %v3114_v23, %v2986_v58  ;;  %v2988_v43 = vadd.f32 %v2987_v29, %v2858_v14  ;;  %v976_v58 = vld [vmem:[%s10211_s17 + $0x8c8] sm:$0xff]  ;;  %v969_v23 = vld [vmem:[%s10211_s17 + $0x890] sm:$0xff] }
 0x245   : > { %v11129_v14 = vpack.c.bf16 %v977_v10, %v969_v23  ;;  %v991_v23 = vld [vmem:[%s10211_s17 + $0x940] sm:$0xff] }
 0x246   : > { %v11113_v60 = vadd.f32 %v3243_v13, %v3115_v9  ;;  %v11127_v13 = vpack.c.bf16 %v976_v58, %v968_v0  ;;  %v983_v58 = vld [vmem:[%s10211_s17 + $0x900] sm:$0xff] }
 0x247   : > { %14745 = vst [vmem:[#allocation91_spill] sm:$0xff] %v11129_v14 }
 0x248   : > { %14744 = vst [vmem:[#allocation90_spill] sm:$0xff] %v11127_v13 }
 0x24a   : > { %v3245_v30 = vpop.f32.mrf.mxu3  ;;  %v2990_v31 = vpop.f32.mrf.mxu1 }
 0x24b   : > { %v3116_v57 = vpop.f32.mrf.mxu2  ;;  %v2861_v9 = vpop.f32.mrf.mxu0 }
 0x24c   : > { %v3117_v63 = vadd.f32 %v3116_v57, %v2988_v43  ;;  %v2991_v8 = vadd.f32 %v2990_v31, %v2861_v9  ;;  %v993_v9 = vld [vmem:[%s10211_s17 + $0x950] sm:$0xff]  ;;  %v986_v31 = vld [vmem:[%s10211_s17 + $0x918] sm:$0xff] }
 0x24d   : > { %3029 = vmatmul.bf16.gmra.mxu1 %v11127_v13  ;;  %v994_v13 = vld [vmem:[%s10211_s17 + $0x958] sm:$0xff] }
 0x24e   : > { %v11133_v29 = vadd.f32 %v3245_v30, %v3117_v63  ;;  %2900 = vmatmul.bf16.gmra.mxu0 %v11125_v36  ;;  %v992_v63 = vld [vmem:[%s10211_s17 + $0x948] sm:$0xff]  ;;  %v985_v30 = vld [vmem:[%s10211_s17 + $0x910] sm:$0xff]  ;;  %v11149_v36 = vpack.c.bf16 %v991_v23, %v983_v58 }
 0x24f   : > { %3287 = vmatmul.bf16.gmra.mxu3 %v11131_v42  ;;  %v11153_v34 = vpack.c.bf16 %v993_v9, %v985_v30  ;;  %v1000_v30 = vld [vmem:[%s10211_s17 + $0x988] sm:$0xff] }
 0x250   : > { %3158 = vmatmul.bf16.gmra.mxu2 %v11129_v14  ;;  %14747 = vst [vmem:[#allocation93_spill] sm:$0xff] %v11149_v36  ;;  %v1008_v9 = vld [vmem:[%s10211_s17 + $0x9c8] sm:$0xff] }
 0x251   : > { %14749 = vst [vmem:[#allocation95_spill] sm:$0xff] %v11153_v34 }
 0x252   : > { %v3248_v10 = vpop.f32.mrf.mxu3  ;;  %v2992_v22 = vpop.f32.mrf.mxu1 }
 0x253   : > { %v3119_v57 = vpop.f32.mrf.mxu2  ;;  %v2863_v43 = vpop.f32.mrf.mxu0 }
 0x254   : > { %v3120_v6 = vadd.f32 %v3119_v57, %v2991_v8  ;;  %v2993_v0 = vadd.f32 %v2992_v22, %v2863_v43  ;;  %v11151_v57 = vpack.c.bf16 %v992_v63, %v984_v62  ;;  %v999_v62 = vld [vmem:[%s10211_s17 + $0x980] sm:$0xff] }
 0x255   : > { %v1007_v63 = vld [vmem:[%s10211_s17 + $0x9c0] sm:$0xff] }
 0x256   : > { %v11139_v32 = vadd.f32 %v3248_v10, %v3120_v6  ;;  %14748 = vst [vmem:[#allocation94_spill] sm:$0xff] %v11151_v57  ;;  %v11155_v10 = vpack.c.bf16 %v994_v13, %v986_v31  ;;  %v1001_v31 = vld [vmem:[%s10211_s17 + $0x990] sm:$0xff] }
 0x258   : > { %14750 = vst [vmem:[#allocation96_spill] sm:$0xff] %v11155_v10 }
 0x25a   : > { %v3250_v35 = vpop.f32.mrf.mxu3  ;;  %v2995_v6 = vpop.f32.mrf.mxu1 }
 0x25b   : > { %v3121_v14 = vpop.f32.mrf.mxu2  ;;  %v2866_v8 = vpop.f32.mrf.mxu0 }
 0x25c   : > { %v3122_v42 = vadd.f32 %v3121_v14, %v2993_v0  ;;  %v2996_v22 = vadd.f32 %v2995_v6, %v2866_v8  ;;  %v1009_v8 = vld [vmem:[%s10211_s17 + $0x9d0] sm:$0xff]  ;;  %v1002_v6 = vld [vmem:[%s10211_s17 + $0x998] sm:$0xff] }
 0x25d   : > { %3034 = vmatmul.bf16.gmra.mxu1 %v11151_v57  ;;  %v1010_v57 = vld [vmem:[%s10211_s17 + $0x9d8] sm:$0xff] }
 0x25e   : > { %v11157_v43 = vadd.f32 %v3250_v35, %v3122_v42  ;;  %2905 = vmatmul.bf16.gmra.mxu0 %v11149_v36  ;;  %v11179_v36 = vpack.c.bf16 %v1010_v57, %v1002_v6  ;;  %v9174_v57 = vld [vmem:[%s10219_s3 + $0x700] sm:$0xf] }
 0x25f   : > { %3292 = vmatmul.bf16.gmra.mxu3 %v11155_v10  ;;  %v11173_v10 = vpack.c.bf16 %v1007_v63, %v999_v62  ;;  %v8790_v62 = vld [vmem:[%s10219_s3 + $0x400] sm:$0xf] }
 0x260   : > { %3163 = vmatmul.bf16.gmra.mxu2 %v11153_v34  ;;  %14754 = vst [vmem:[#allocation100_spill] sm:$0xff] %v11179_v36 }
 0x261   : > { %14751 = vst [vmem:[#allocation97_spill] sm:$0xff] %v11173_v10 }
 0x262   : > { %v3253_v0 = vpop.f32.mrf.mxu3  ;;  %v2997_v35 = vpop.f32.mrf.mxu1 }
 0x263   : > { %v3124_v14 = vpop.f32.mrf.mxu2  ;;  %v2868_v58 = vpop.f32.mrf.mxu0 }
 0x264   : > { %v3125_v13 = vadd.f32 %v3124_v14, %v2996_v22  ;;  %v2998_v23 = vadd.f32 %v2997_v35, %v2868_v58  ;;  %v11177_v58 = vpack.c.bf16 %v1009_v8, %v1001_v31 }
 0x266   : > { %v11163_v42 = vadd.f32 %v3253_v0, %v3125_v13  ;;  %v11175_v0 = vpack.c.bf16 %v1008_v9, %v1000_v30  ;;  %14753 = vst [vmem:[#allocation99_spill] sm:$0xff] %v11177_v58  ;;  %v9437_v30 = vld [vmem:[%s10219_s3 + $0x40c] sm:$0xf0] }
 0x267   : > { %v9533_v9 = vld [vmem:[%s10219_s3 + $0x70c] sm:$0xf0]  ;;  %v8791_v8 = vor.u32 %v9437_v30, %v8790_v62  ;;  %v1015_v30 = vld [vmem:[%s10211_s17 + $0xa00] sm:$0xff] }
 0x268   : > { %14752 = vst [vmem:[#allocation98_spill] sm:$0xff] %v11175_v0  ;;  %v9175_v6 = vor.u32 %v9533_v9, %v9174_v57  ;;  %v1023_v57 = vld [vmem:[%s10211_s17 + $0xa40] sm:$0xff]  ;;  %v1016_v9 = vld [vmem:[%s10211_s17 + $0xa08] sm:$0xff] }
 0x269   : > { %3330 = vmatpush.bf16.msrb.mxu0 %v8791_v8  ;;  %v11205_v18 = vpack.c.bf16 %v1023_v57, %v1015_v30 }
 0x26a   : > { %v3255_v14 = vpop.f32.mrf.mxu3  ;;  %v3000_v35 = vpop.f32.mrf.mxu1  ;;  %3717 = vmatpush.bf16.msrb.mxu3 %v9175_v6 }
 0x26b   : > { %v3126_v34 = vpop.f32.mrf.mxu2  ;;  %v2871_v13 = vpop.f32.mrf.mxu0  ;;  %14755 = vst [vmem:[#allocation101_spill] sm:$0xff] %v11205_v18 }
 0x26c   : > { %v3127_v22 = vadd.f32 %v3126_v34, %v2998_v23  ;;  %v3001_v20 = vadd.f32 %v3000_v35, %v2871_v13  ;;  %v9046_v34 = vld [vmem:[%s10219_s3 + $0x600] sm:$0xf]  ;;  %v9501_v23 = vld [vmem:[%s10219_s3 + $0x60c] sm:$0xf0] }
 0x26d   : > { %3039 = vmatmul.bf16.gmra.mxu1 %v11175_v0  ;;  %v9047_v63 = vor.u32 %v9501_v23, %v9046_v34  ;;  %v1025_v0 = vld [vmem:[%s10211_s17 + $0xa50] sm:$0xff] }
 0x26e   : > { %v11181_v33 = vadd.f32 %v3255_v14, %v3127_v22  ;;  %2910 = vmatmul.bf16.gmra.mxu0 %v11173_v10  ;;  %v1018_v10 = vld [vmem:[%s10211_s17 + $0xa18] sm:$0xff] }
 0x26f   : > { %3297 = vmatmul.bf16.gmra.mxu3 %v11179_v36  ;;  %3588 = vmatpush.bf16.msrb.mxu2 %v9047_v63  ;;  %v8918_v36 = vld [vmem:[%s10219_s3 + $0x500] sm:$0xf]  ;;  %v1026_v63 = vld [vmem:[%s10211_s17 + $0xa58] sm:$0xff] }
 0x270   : > { %3168 = vmatmul.bf16.gmra.mxu2 %v11177_v58  ;;  %v9469_v58 = vld [vmem:[%s10219_s3 + $0x50c] sm:$0xf0] }
 0x271   : > { %v8919_v62 = vor.u32 %v9469_v58, %v8918_v36  ;;  %v11211_v58 = vpack.c.bf16 %v1026_v63, %v1018_v10  ;;  %v1032_v63 = vld [vmem:[%s10211_s17 + $0xa88] sm:$0xff] }
 0x272   : > { %v3258_v14 = vpop.f32.mrf.mxu3  ;;  %v3002_v35 = vpop.f32.mrf.mxu1 }
 0x273   : > { %v3129_v31 = vpop.f32.mrf.mxu2  ;;  %v2873_v13 = vpop.f32.mrf.mxu0  ;;  %3459 = vmatpush.bf16.msrb.mxu1 %v8919_v62  ;;  %14758 = vst [vmem:[#allocation104_spill] sm:$0xff] %v11211_v58 }
 0x274   : > { %v3130_v22 = vadd.f32 %v3129_v31, %v3001_v20  ;;  %v3003_v23 = vadd.f32 %v3002_v35, %v2873_v13  ;;  %v1024_v20 = vld [vmem:[%s10211_s17 + $0xa48] sm:$0xff]  ;;  %v1017_v31 = vld [vmem:[%s10211_s17 + $0xa10] sm:$0xff] }
 0x275   : > { %v11209_v13 = vpack.c.bf16 %v1025_v0, %v1017_v31  ;;  %v1039_v31 = vld [vmem:[%s10211_s17 + $0xac0] sm:$0xff] }
 0x276   : > { %v11193_v34 = vadd.f32 %v3258_v14, %v3130_v22  ;;  %v11207_v14 = vpack.c.bf16 %v1024_v20, %v1016_v9  ;;  %v1031_v20 = vld [vmem:[%s10211_s17 + $0xa80] sm:$0xff] }
 0x277   : > { %14757 = vst [vmem:[#allocation103_spill] sm:$0xff] %v11209_v13 }
 0x278   : > { %14756 = vst [vmem:[#allocation102_spill] sm:$0xff] %v11207_v14 }
 0x27a   : > { %v3260_v6 = vpop.f32.mrf.mxu3  ;;  %v3005_v36 = vpop.f32.mrf.mxu1 }
 0x27b   : > { %v3131_v19 = vpop.f32.mrf.mxu2  ;;  %v2876_v22 = vpop.f32.mrf.mxu0 }
 0x27c   : > { %v3132_v8 = vadd.f32 %v3131_v19, %v3003_v23  ;;  %v3006_v62 = vadd.f32 %v3005_v36, %v2876_v22  ;;  %v1041_v22 = vld [vmem:[%s10211_s17 + $0xad0] sm:$0xff]  ;;  %v1034_v36 = vld [vmem:[%s10211_s17 + $0xa98] sm:$0xff] }
 0x27d   : > { %3044 = vmatmul.bf16.gmra.mxu1 %v11207_v14  ;;  %v1042_v14 = vld [vmem:[%s10211_s17 + $0xad8] sm:$0xff] }
 0x27e   : > { %v11213_v35 = vadd.f32 %v3260_v6, %v3132_v8  ;;  %2915 = vmatmul.bf16.gmra.mxu0 %v11205_v18  ;;  %v1040_v8 = vld [vmem:[%s10211_s17 + $0xac8] sm:$0xff]  ;;  %v1033_v6 = vld [vmem:[%s10211_s17 + $0xa90] sm:$0xff]  ;;  %v11229_v18 = vpack.c.bf16 %v1039_v31, %v1031_v20 }
 0x27f   : > { %3302 = vmatmul.bf16.gmra.mxu3 %v11211_v58  ;;  %v11233_v56 = vpack.c.bf16 %v1041_v22, %v1033_v6  ;;  %v1048_v6 = vld [vmem:[%s10211_s17 + $0xb08] sm:$0xff] }
 0x280   : > { %3173 = vmatmul.bf16.gmra.mxu2 %v11209_v13  ;;  %14759 = vst [vmem:[#allocation105_spill] sm:$0xff] %v11229_v18  ;;  %v1056_v22 = vld [vmem:[%s10211_s17 + $0xb48] sm:$0xff] }
 0x281   : > { %14761 = vst [vmem:[#allocation107_spill] sm:$0xff] %v11233_v56 }
 0x282   : > { %v3263_v0 = vpop.f32.mrf.mxu3  ;;  %v3007_v30 = vpop.f32.mrf.mxu1 }
 0x283   : > { %v3134_v19 = vpop.f32.mrf.mxu2  ;;  %v2878_v23 = vpop.f32.mrf.mxu0 }
 0x284   : > { %v3135_v10 = vadd.f32 %v3134_v19, %v3006_v62  ;;  %v3008_v9 = vadd.f32 %v3007_v30, %v2878_v23  ;;  %v11231_v19 = vpack.c.bf16 %v1040_v8, %v1032_v63  ;;  %v1047_v63 = vld [vmem:[%s10211_s17 + $0xb00] sm:$0xff] }
 0x285   : > { %v1055_v8 = vld [vmem:[%s10211_s17 + $0xb40] sm:$0xff] }
 0x286   : > { %v11219_v57 = vadd.f32 %v3263_v0, %v3135_v10  ;;  %14760 = vst [vmem:[#allocation106_spill] sm:$0xff] %v11231_v19  ;;  %v11235_v0 = vpack.c.bf16 %v1042_v14, %v1034_v36  ;;  %v1049_v36 = vld [vmem:[%s10211_s17 + $0xb10] sm:$0xff] }
 0x288   : > { %14762 = vst [vmem:[#allocation108_spill] sm:$0xff] %v11235_v0 }
 0x28a   : > { %v3265_v17 = vpop.f32.mrf.mxu3  ;;  %v3010_v10 = vpop.f32.mrf.mxu1 }
 0x28b   : > { %v3136_v13 = vpop.f32.mrf.mxu2  ;;  %v2881_v62 = vpop.f32.mrf.mxu0 }
 0x28c   : > { %v3137_v58 = vadd.f32 %v3136_v13, %v3008_v9  ;;  %v3011_v30 = vadd.f32 %v3010_v10, %v2881_v62  ;;  %v1057_v62 = vld [vmem:[%s10211_s17 + $0xb50] sm:$0xff]  ;;  %v1050_v10 = vld [vmem:[%s10211_s17 + $0xb18] sm:$0xff] }
 0x28d   : > { %3049 = vmatmul.bf16.gmra.mxu1 %v11231_v19  ;;  %v1058_v19 = vld [vmem:[%s10211_s17 + $0xb58] sm:$0xff] }
 0x28e   : > { %v11237_v23 = vadd.f32 %v3265_v17, %v3137_v58  ;;  %2920 = vmatmul.bf16.gmra.mxu0 %v11229_v18  ;;  %v11259_v18 = vpack.c.bf16 %v1058_v19, %v1050_v10  ;;  %v9431_v19 = vld [vmem:[%s10219_s3 + $0x3e4] sm:$0xf] }
 0x28f   : > { %3307 = vmatmul.bf16.gmra.mxu3 %v11235_v0  ;;  %v11253_v0 = vpack.c.bf16 %v1055_v8, %v1047_v63  ;;  %v9335_v63 = vld [vmem:[%s10219_s3 + $0xe4] sm:$0xf] }
 0x290   : > { %3178 = vmatmul.bf16.gmra.mxu2 %v11233_v56  ;;  %14766 = vst [vmem:[#allocation112_spill] sm:$0xff] %v11259_v18 }
 0x291   : > { %14763 = vst [vmem:[#allocation109_spill] sm:$0xff] %v11253_v0 }
 0x292   : > { %v3268_v9 = vpop.f32.mrf.mxu3  ;;  %v3012_v17 = vpop.f32.mrf.mxu1 }
 0x293   : > { %v3139_v13 = vpop.f32.mrf.mxu2  ;;  %v2883_v20 = vpop.f32.mrf.mxu0 }
 0x294   : > { %v3140_v14 = vadd.f32 %v3139_v13, %v3011_v30  ;;  %v3013_v31 = vadd.f32 %v3012_v17, %v2883_v20  ;;  %v11257_v20 = vpack.c.bf16 %v1057_v62, %v1049_v36 }
 0x296   : > { %v11243_v58 = vadd.f32 %v3268_v9, %v3140_v14  ;;  %v11255_v9 = vpack.c.bf16 %v1056_v22, %v1048_v6  ;;  %14765 = vst [vmem:[#allocation111_spill] sm:$0xff] %v11257_v20  ;;  %v8392_v6 = vld [vmem:[%s10219_s3 + $0xf0] sm:$0xf0] }
 0x297   : > { %v8776_v22 = vld [vmem:[%s10219_s3 + $0x3f0] sm:$0xf0]  ;;  %v8395_v62 = vor.u32 %v9335_v63, %v8392_v6  ;;  %v1063_v6 = vld [vmem:[%s10211_s17 + $0xb80] sm:$0xff] }
 0x298   : > { %14764 = vst [vmem:[#allocation110_spill] sm:$0xff] %v11255_v9  ;;  %v8779_v10 = vor.u32 %v9431_v19, %v8776_v22  ;;  %v1071_v19 = vld [vmem:[%s10211_s17 + $0xbc0] sm:$0xff]  ;;  %v1064_v22 = vld [vmem:[%s10211_s17 + $0xb88] sm:$0xff] }
 0x299   : > { %3839 = vmatpush.bf16.msra.mxu0 %v8395_v62  ;;  %v11285_v40 = vpack.c.bf16 %v1071_v19, %v1063_v6 }
 0x29a   : > { %v3270_v13 = vpop.f32.mrf.mxu3  ;;  %v3015_v17 = vpop.f32.mrf.mxu1  ;;  %4226 = vmatpush.bf16.msra.mxu3 %v8779_v10 }
 0x29b   : > { %v3141_v56 = vpop.f32.mrf.mxu2  ;;  %v2886_v14 = vpop.f32.mrf.mxu0  ;;  %14767 = vst [vmem:[#allocation113_spill] sm:$0xff] %v11285_v40 }
 0x29c   : > { %v3142_v30 = vadd.f32 %v3141_v56, %v3013_v31  ;;  %v3016_v51 = vadd.f32 %v3015_v17, %v2886_v14  ;;  %v9399_v56 = vld [vmem:[%s10219_s3 + $0x2e4] sm:$0xf]  ;;  %v8648_v31 = vld [vmem:[%s10219_s3 + $0x2f0] sm:$0xf0] }
 0x29d   : > { %3054 = vmatmul.bf16.gmra.mxu1 %v11255_v9  ;;  %v8651_v8 = vor.u32 %v9399_v56, %v8648_v31  ;;  %v1073_v9 = vld [vmem:[%s10211_s17 + $0xbd0] sm:$0xff] }
 0x29e   : > { %v11261_v55 = vadd.f32 %v3270_v13, %v3142_v30  ;;  %2925 = vmatmul.bf16.gmra.mxu0 %v11253_v0  ;;  %v1066_v0 = vld [vmem:[%s10211_s17 + $0xb98] sm:$0xff] }
 0x29f   : > { %3312 = vmatmul.bf16.gmra.mxu3 %v11259_v18  ;;  %4097 = vmatpush.bf16.msra.mxu2 %v8651_v8  ;;  %v9367_v18 = vld [vmem:[%s10219_s3 + $0x1e4] sm:$0xf]  ;;  %v1074_v8 = vld [vmem:[%s10211_s17 + $0xbd8] sm:$0xff] }
 0x2a0   : > { %3183 = vmatmul.bf16.gmra.mxu2 %v11257_v20  ;;  %v8520_v20 = vld [vmem:[%s10219_s3 + $0x1f0] sm:$0xf0] }
 0x2a1   : > { %v8523_v63 = vor.u32 %v9367_v18, %v8520_v20  ;;  %v11291_v20 = vpack.c.bf16 %v1074_v8, %v1066_v0  ;;  %v700_v8 = vld [vmem:[%s10211_s17 + $0x28] sm:$0xff] }
 0x2a2   : > { %v3273_v13 = vpop.f32.mrf.mxu3  ;;  %v3017_v17 = vpop.f32.mrf.mxu1 }
 0x2a3   : > { %v3144_v36 = vpop.f32.mrf.mxu2  ;;  %v2888_v14 = vpop.f32.mrf.mxu0  ;;  %3968 = vmatpush.bf16.msra.mxu1 %v8523_v63  ;;  %14770 = vst [vmem:[#allocation116_spill] sm:$0xff] %v11291_v20 }
 0x2a4   : > { %v3145_v30 = vadd.f32 %v3144_v36, %v3016_v51  ;;  %v3018_v31 = vadd.f32 %v3017_v17, %v2888_v14  ;;  %v1072_v51 = vld [vmem:[%s10211_s17 + $0xbc8] sm:$0xff]  ;;  %v1065_v36 = vld [vmem:[%s10211_s17 + $0xb90] sm:$0xff] }
 0x2a5   : > { %v11289_v14 = vpack.c.bf16 %v1073_v9, %v1065_v36  ;;  %v707_v36 = vld [vmem:[%s10211_s17 + $0x60] sm:$0xff] }
 0x2a6   : > { %v11273_v56 = vadd.f32 %v3273_v13, %v3145_v30  ;;  %v11287_v13 = vpack.c.bf16 %v1072_v51, %v1064_v22  ;;  %v699_v51 = vld [vmem:[%s10211_s17 + $0x20] sm:$0xff] }
 0x2a7   : > { %14769 = vst [vmem:[#allocation115_spill] sm:$0xff] %v11289_v14 }
 0x2a8   : > { %14768 = vst [vmem:[#allocation114_spill] sm:$0xff] %v11287_v13 }
 0x2aa   : > { %v3275_v10 = vpop.f32.mrf.mxu3  ;;  %v3020_v18 = vpop.f32.mrf.mxu1 }
 0x2ab   : > { %v3146_v50 = vpop.f32.mrf.mxu2  ;;  %v2891_v30 = vpop.f32.mrf.mxu0 }
 0x2ac   : > { %v3147_v62 = vadd.f32 %v3146_v50, %v3018_v31  ;;  %v3021_v63 = vadd.f32 %v3020_v18, %v2891_v30  ;;  %v709_v30 = vld [vmem:[%s10211_s17 + $0x70] sm:$0xff]  ;;  %v702_v18 = vld [vmem:[%s10211_s17 + $0x38] sm:$0xff] }
 0x2ad   : > { %3059 = vmatmul.bf16.gmra.mxu1 %v11287_v13  ;;  %v710_v13 = vld [vmem:[%s10211_s17 + $0x78] sm:$0xff] }
 0x2ae   : > { %v11293_v17 = vadd.f32 %v3275_v10, %v3147_v62  ;;  %2930 = vmatmul.bf16.gmra.mxu0 %v11285_v40  ;;  %v708_v62 = vld [vmem:[%s10211_s17 + $0x68] sm:$0xff]  ;;  %v701_v10 = vld [vmem:[%s10211_s17 + $0x30] sm:$0xff]  ;;  %v11309_v40 = vpack.c.bf16 %v707_v36, %v699_v51 }
 0x2af   : > { %3317 = vmatmul.bf16.gmra.mxu3 %v11291_v20  ;;  %v11313_v38 = vpack.c.bf16 %v709_v30, %v701_v10  ;;  %v716_v10 = vld [vmem:[%s10211_s17 + $0xa8] sm:$0xff] }
 0x2b0   : > { %3188 = vmatmul.bf16.gmra.mxu2 %v11289_v14  ;;  %14771 = vst [vmem:[#allocation117_spill] sm:$0xff] %v11309_v40  ;;  %v724_v30 = vld [vmem:[%s10211_s17 + $0xe8] sm:$0xff] }
 0x2b1   : > { %14773 = vst [vmem:[#allocation119_spill] sm:$0xff] %v11313_v38 }
 0x2b2   : > { %v3278_v9 = vpop.f32.mrf.mxu3  ;;  %v3022_v6 = vpop.f32.mrf.mxu1 }
 0x2b3   : > { %v3149_v50 = vpop.f32.mrf.mxu2  ;;  %v2893_v31 = vpop.f32.mrf.mxu0 }
 0x2b4   : > { %v3150_v0 = vadd.f32 %v3149_v50, %v3021_v63  ;;  %v3023_v22 = vadd.f32 %v3022_v6, %v2893_v31  ;;  %v11311_v50 = vpack.c.bf16 %v708_v62, %v700_v8  ;;  %v715_v8 = vld [vmem:[%s10211_s17 + $0xa0] sm:$0xff] }
 0x2b5   : > { %v723_v62 = vld [vmem:[%s10211_s17 + $0xe0] sm:$0xff] }
 0x2b6   : > { %v11299_v19 = vadd.f32 %v3278_v9, %v3150_v0  ;;  %14772 = vst [vmem:[#allocation118_spill] sm:$0xff] %v11311_v50  ;;  %v11315_v9 = vpack.c.bf16 %v710_v13, %v702_v18  ;;  %v717_v18 = vld [vmem:[%s10211_s17 + $0xb0] sm:$0xff] }
 0x2b8   : > { %14774 = vst [vmem:[#allocation120_spill] sm:$0xff] %v11315_v9 }
 0x2ba   : > { %v3280_v39 = vpop.f32.mrf.mxu3  ;;  %v3025_v0 = vpop.f32.mrf.mxu1 }
 0x2bb   : > { %v3151_v14 = vpop.f32.mrf.mxu2  ;;  %v2896_v63 = vpop.f32.mrf.mxu0 }
 0x2bc   : > { %v3152_v20 = vadd.f32 %v3151_v14, %v3023_v22  ;;  %v3026_v6 = vadd.f32 %v3025_v0, %v2896_v63  ;;  %v725_v63 = vld [vmem:[%s10211_s17 + $0xf0] sm:$0xff]  ;;  %v718_v0 = vld [vmem:[%s10211_s17 + $0xb8] sm:$0xff] }
 0x2bd   : > { %3460 = vmatmul.bf16.vlgmr.msrb.gmra.mxu1 %v11311_v50  ;;  %v726_v50 = vld [vmem:[%s10211_s17 + $0xf8] sm:$0xff] }
 0x2be   : > { %v11317_v31 = vadd.f32 %v3280_v39, %v3152_v20  ;;  %3331 = vmatmul.bf16.vlgmr.msrb.gmra.mxu0 %v11309_v40  ;;  %v11339_v40 = vpack.c.bf16 %v726_v50, %v718_v0  ;;  %v9427_v50 = vld [vmem:[%s10219_s3 + $0x3c4] sm:$0xf] }
 0x2bf   : > { %3718 = vmatmul.bf16.vlgmr.msrb.gmra.mxu3 %v11315_v9  ;;  %v11333_v9 = vpack.c.bf16 %v723_v62, %v715_v8  ;;  %v9331_v8 = vld [vmem:[%s10219_s3 + $0xc4] sm:$0xf] }
 0x2c0   : > { %3589 = vmatmul.bf16.vlgmr.msrb.gmra.mxu2 %v11313_v38  ;;  %14778 = vst [vmem:[#allocation124_spill] sm:$0xff] %v11339_v40 }
 0x2c1   : > { %14775 = vst [vmem:[#allocation121_spill] sm:$0xff] %v11333_v9 }
 0x2c2   : > { %v3283_v22 = vpop.f32.mrf.mxu3  ;;  %v3027_v39 = vpop.f32.mrf.mxu1 }
 0x2c3   : > { %v3154_v14 = vpop.f32.mrf.mxu2  ;;  %v2898_v51 = vpop.f32.mrf.mxu0 }
 0x2c4   : > { %v3155_v13 = vadd.f32 %v3154_v14, %v3026_v6  ;;  %v3028_v36 = vadd.f32 %v3027_v39, %v2898_v51  ;;  %v11337_v51 = vpack.c.bf16 %v725_v63, %v717_v18 }
 0x2c6   : > { %v11323_v20 = vadd.f32 %v3283_v22, %v3155_v13  ;;  %v11335_v22 = vpack.c.bf16 %v724_v30, %v716_v10  ;;  %14777 = vst [vmem:[#allocation123_spill] sm:$0xff] %v11337_v51  ;;  %v8376_v10 = vld [vmem:[%s10219_s3 + $0xd0] sm:$0xf0] }
 0x2c7   : > { %v8760_v30 = vld [vmem:[%s10219_s3 + $0x3d0] sm:$0xf0]  ;;  %v8379_v63 = vor.u32 %v9331_v8, %v8376_v10  ;;  %v731_v10 = vld [vmem:[%s10211_s17 + $0x120] sm:$0xff] }
 0x2c8   : > { %14776 = vst [vmem:[#allocation122_spill] sm:$0xff] %v11335_v22  ;;  %v8763_v0 = vor.u32 %v9427_v50, %v8760_v30  ;;  %v739_v50 = vld [vmem:[%s10211_s17 + $0x160] sm:$0xff]  ;;  %v732_v30 = vld [vmem:[%s10211_s17 + $0x128] sm:$0xff] }
 0x2c9   : > { %3840 = vmatpush.bf16.msra.mxu0 %v8379_v63  ;;  %v11365_v26 = vpack.c.bf16 %v739_v50, %v731_v10 }
 0x2ca   : > { %v3285_v14 = vpop.f32.mrf.mxu3  ;;  %v3030_v39 = vpop.f32.mrf.mxu1  ;;  %4227 = vmatpush.bf16.msra.mxu3 %v8763_v0 }
 0x2cb   : > { %v3156_v38 = vpop.f32.mrf.mxu2  ;;  %v2901_v13 = vpop.f32.mrf.mxu0  ;;  %14779 = vst [vmem:[#allocation125_spill] sm:$0xff] %v11365_v26 }
 0x2cc   : > { %v3157_v6 = vadd.f32 %v3156_v38, %v3028_v36  ;;  %v3031_v28 = vadd.f32 %v3030_v39, %v2901_v13  ;;  %v9395_v38 = vld [vmem:[%s10219_s3 + $0x2c4] sm:$0xf]  ;;  %v8632_v36 = vld [vmem:[%s10219_s3 + $0x2d0] sm:$0xf0] }
 0x2cd   : > { %3465 = vmatmul.bf16.gmra.mxu1 %v11335_v22  ;;  %v8635_v62 = vor.u32 %v9395_v38, %v8632_v36  ;;  %v741_v22 = vld [vmem:[%s10211_s17 + $0x170] sm:$0xff] }
 0x2ce   : > { %v11341_v37 = vadd.f32 %v3285_v14, %v3157_v6  ;;  %3336 = vmatmul.bf16.gmra.mxu0 %v11333_v9  ;;  %v734_v9 = vld [vmem:[%s10211_s17 + $0x138] sm:$0xff] }
 0x2cf   : > { %3723 = vmatmul.bf16.gmra.mxu3 %v11339_v40  ;;  %4098 = vmatpush.bf16.msra.mxu2 %v8635_v62  ;;  %v9363_v40 = vld [vmem:[%s10219_s3 + $0x1c4] sm:$0xf]  ;;  %v742_v62 = vld [vmem:[%s10211_s17 + $0x178] sm:$0xff] }
 0x2d0   : > { %3594 = vmatmul.bf16.gmra.mxu2 %v11337_v51  ;;  %v8504_v51 = vld [vmem:[%s10219_s3 + $0x1d0] sm:$0xf0] }
 0x2d1   : > { %v8507_v8 = vor.u32 %v9363_v40, %v8504_v51  ;;  %v11371_v51 = vpack.c.bf16 %v742_v62, %v734_v9  ;;  %v748_v62 = vld [vmem:[%s10211_s17 + $0x1a8] sm:$0xff] }
 0x2d2   : > { %v3288_v14 = vpop.f32.mrf.mxu3  ;;  %v3032_v39 = vpop.f32.mrf.mxu1 }
 0x2d3   : > { %v3159_v18 = vpop.f32.mrf.mxu2  ;;  %v2903_v13 = vpop.f32.mrf.mxu0  ;;  %3969 = vmatpush.bf16.msra.mxu1 %v8507_v8  ;;  %14782 = vst [vmem:[#allocation128_spill] sm:$0xff] %v11371_v51 }
 0x2d4   : > { %v3160_v6 = vadd.f32 %v3159_v18, %v3031_v28  ;;  %v3033_v36 = vadd.f32 %v3032_v39, %v2903_v13  ;;  %v740_v28 = vld [vmem:[%s10211_s17 + $0x168] sm:$0xff]  ;;  %v733_v18 = vld [vmem:[%s10211_s17 + $0x130] sm:$0xff] }
 0x2d5   : > { %v11369_v13 = vpack.c.bf16 %v741_v22, %v733_v18  ;;  %v755_v18 = vld [vmem:[%s10211_s17 + $0x1e0] sm:$0xff] }
 0x2d6   : > { %v11353_v38 = vadd.f32 %v3288_v14, %v3160_v6  ;;  %v11367_v14 = vpack.c.bf16 %v740_v28, %v732_v30  ;;  %v747_v28 = vld [vmem:[%s10211_s17 + $0x1a0] sm:$0xff] }
 0x2d7   : > { %14781 = vst [vmem:[#allocation127_spill] sm:$0xff] %v11369_v13 }
 0x2d8   : > { %14780 = vst [vmem:[#allocation126_spill] sm:$0xff] %v11367_v14 }
 0x2da   : > { %v3290_v0 = vpop.f32.mrf.mxu3  ;;  %v3035_v40 = vpop.f32.mrf.mxu1 }
 0x2db   : > { %v3161_v27 = vpop.f32.mrf.mxu2  ;;  %v2906_v6 = vpop.f32.mrf.mxu0 }
 0x2dc   : > { %v3162_v63 = vadd.f32 %v3161_v27, %v3033_v36  ;;  %v3036_v8 = vadd.f32 %v3035_v40, %v2906_v6  ;;  %v757_v6 = vld [vmem:[%s10211_s17 + $0x1f0] sm:$0xff]  ;;  %v750_v40 = vld [vmem:[%s10211_s17 + $0x1b8] sm:$0xff] }
 0x2dd   : > { %3470 = vmatmul.bf16.gmra.mxu1 %v11367_v14  ;;  %v758_v14 = vld [vmem:[%s10211_s17 + $0x1f8] sm:$0xff] }
 0x2de   : > { %v11373_v39 = vadd.f32 %v3290_v0, %v3162_v63  ;;  %3341 = vmatmul.bf16.gmra.mxu0 %v11365_v26  ;;  %v756_v63 = vld [vmem:[%s10211_s17 + $0x1e8] sm:$0xff]  ;;  %v749_v0 = vld [vmem:[%s10211_s17 + $0x1b0] sm:$0xff]  ;;  %v11389_v26 = vpack.c.bf16 %v755_v18, %v747_v28 }
 0x2df   : > { %3728 = vmatmul.bf16.gmra.mxu3 %v11371_v51 }
 0x2e0   : > { %14783 = vst [vmem:[#allocation129_spill] sm:$0xff] %v11373_v39  ;;  %3599 = vmatmul.bf16.gmra.mxu2 %v11369_v13  ;;  %v11393_v39 = vpack.c.bf16 %v757_v6, %v749_v0  ;;  %v764_v0 = vld [vmem:[%s10211_s17 + $0x228] sm:$0xff] }
 0x2e1   : > { %14785 = vst [vmem:[#allocation131_spill] sm:$0xff] %v11389_v26  ;;  %v772_v6 = vld [vmem:[%s10211_s17 + $0x268] sm:$0xff] }
 0x2e2   : > { %v3293_v22 = vpop.f32.mrf.mxu3  ;;  %v3037_v10 = vpop.f32.mrf.mxu1  ;;  %14787 = vst [vmem:[#allocation133_spill] sm:$0xff] %v11393_v39 }
 0x2e3   : > { %v3164_v27 = vpop.f32.mrf.mxu2  ;;  %v2908_v36 = vpop.f32.mrf.mxu0 }
 0x2e4   : > { %v3165_v9 = vadd.f32 %v3164_v27, %v3036_v8  ;;  %v3038_v30 = vadd.f32 %v3037_v10, %v2908_v36  ;;  %v11391_v27 = vpack.c.bf16 %v756_v63, %v748_v62  ;;  %v763_v62 = vld [vmem:[%s10211_s17 + $0x220] sm:$0xff] }
 0x2e5   : > { %v771_v63 = vld [vmem:[%s10211_s17 + $0x260] sm:$0xff] }
 0x2e6   : > { %v11379_v50 = vadd.f32 %v3293_v22, %v3165_v9  ;;  %14786 = vst [vmem:[#allocation132_spill] sm:$0xff] %v11391_v27  ;;  %v11395_v22 = vpack.c.bf16 %v758_v14, %v750_v40  ;;  %v765_v40 = vld [vmem:[%s10211_s17 + $0x230] sm:$0xff] }
 0x2e8   : > { %14784 = vst [vmem:[#allocation130_spill] sm:$0xff] %v11379_v50 }
 0x2e9   : > { %14788 = vst [vmem:[#allocation134_spill] sm:$0xff] %v11395_v22 }
 0x2ea   : > { %v3295_v25 = vpop.f32.mrf.mxu3  ;;  %v3040_v9 = vpop.f32.mrf.mxu1 }
 0x2eb   : > { %v3166_v13 = vpop.f32.mrf.mxu2  ;;  %v2911_v8 = vpop.f32.mrf.mxu0 }
 0x2ec   : > { %v3167_v51 = vadd.f32 %v3166_v13, %v3038_v30  ;;  %v3041_v10 = vadd.f32 %v3040_v9, %v2911_v8  ;;  %v773_v8 = vld [vmem:[%s10211_s17 + $0x270] sm:$0xff]  ;;  %v766_v9 = vld [vmem:[%s10211_s17 + $0x238] sm:$0xff] }
 0x2ed   : > { %3475 = vmatmul.bf16.gmra.mxu1 %v11391_v27  ;;  %v774_v27 = vld [vmem:[%s10211_s17 + $0x278] sm:$0xff] }
 0x2ee   : > { %v11397_v36 = vadd.f32 %v3295_v25, %v3167_v51  ;;  %3346 = vmatmul.bf16.gmra.mxu0 %v11389_v26  ;;  %v11419_v26 = vpack.c.bf16 %v774_v27, %v766_v9  ;;  %v9423_v27 = vld [vmem:[%s10219_s3 + $0x3a4] sm:$0xf] }
 0x2ef   : > { %3733 = vmatmul.bf16.gmra.mxu3 %v11395_v22  ;;  %v11413_v22 = vpack.c.bf16 %v771_v63, %v763_v62  ;;  %v9327_v62 = vld [vmem:[%s10219_s3 + $0xa4] sm:$0xf] }
 0x2f0   : > { %14789 = vst [vmem:[#allocation135_spill] sm:$0xff] %v11397_v36  ;;  %3604 = vmatmul.bf16.gmra.mxu2 %v11393_v39 }
 0x2f1   : > { %14791 = vst [vmem:[#allocation137_spill] sm:$0xff] %v11413_v22 }
 0x2f2   : > { %v3298_v30 = vpop.f32.mrf.mxu3  ;;  %v3042_v25 = vpop.f32.mrf.mxu1  ;;  %14794 = vst [vmem:[#allocation140_spill] sm:$0xff] %v11419_v26 }
 0x2f3   : > { %v3169_v13 = vpop.f32.mrf.mxu2  ;;  %v2913_v28 = vpop.f32.mrf.mxu0 }
 0x2f4   : > { %v3170_v14 = vadd.f32 %v3169_v13, %v3041_v10  ;;  %v3043_v18 = vadd.f32 %v3042_v25, %v2913_v28  ;;  %v11417_v28 = vpack.c.bf16 %v773_v8, %v765_v40 }
 0x2f6   : > { %v11403_v51 = vadd.f32 %v3298_v30, %v3170_v14  ;;  %v11415_v30 = vpack.c.bf16 %v772_v6, %v764_v0  ;;  %14793 = vst [vmem:[#allocation139_spill] sm:$0xff] %v11417_v28  ;;  %v8360_v0 = vld [vmem:[%s10219_s3 + $0xb0] sm:$0xf0] }
 0x2f7   : > { %v8744_v6 = vld [vmem:[%s10219_s3 + $0x3b0] sm:$0xf0]  ;;  %v8363_v8 = vor.u32 %v9327_v62, %v8360_v0  ;;  %v779_v0 = vld [vmem:[%s10211_s17 + $0x2a0] sm:$0xff] }
 0x2f8   : > { %14790 = vst [vmem:[#allocation136_spill] sm:$0xff] %v11403_v51  ;;  %v8747_v9 = vor.u32 %v9423_v27, %v8744_v6  ;;  %v787_v27 = vld [vmem:[%s10211_s17 + $0x2e0] sm:$0xff]  ;;  %v780_v6 = vld [vmem:[%s10211_s17 + $0x2a8] sm:$0xff] }
 0x2f9   : > { %14792 = vst [vmem:[#allocation138_spill] sm:$0xff] %v11415_v30  ;;  %3841 = vmatpush.bf16.msra.mxu0 %v8363_v8  ;;  %v11445_v50 = vpack.c.bf16 %v787_v27, %v779_v0 }
 0x2fa   : > { %v3300_v13 = vpop.f32.mrf.mxu3  ;;  %v3045_v25 = vpop.f32.mrf.mxu1  ;;  %4228 = vmatpush.bf16.msra.mxu3 %v8747_v9 }
 0x2fb   : > { %v3171_v39 = vpop.f32.mrf.mxu2  ;;  %v2916_v14 = vpop.f32.mrf.mxu0  ;;  %14797 = vst [vmem:[#allocation143_spill] sm:$0xff] %v11445_v50 }
 0x2fc   : > { %v3172_v10 = vadd.f32 %v3171_v39, %v3043_v18  ;;  %v3046_v36 = vadd.f32 %v3045_v25, %v2916_v14  ;;  %v9391_v39 = vld [vmem:[%s10219_s3 + $0x2a4] sm:$0xf]  ;;  %v8616_v18 = vld [vmem:[%s10219_s3 + $0x2b0] sm:$0xf0] }
 0x2fd   : > { %3480 = vmatmul.bf16.gmra.mxu1 %v11415_v30  ;;  %v8619_v63 = vor.u32 %v9391_v39, %v8616_v18  ;;  %v789_v30 = vld [vmem:[%s10211_s17 + $0x2f0] sm:$0xff] }
 0x2fe   : > { %v11421_v51 = vadd.f32 %v3300_v13, %v3172_v10  ;;  %3351 = vmatmul.bf16.gmra.mxu0 %v11413_v22  ;;  %v782_v22 = vld [vmem:[%s10211_s17 + $0x2b8] sm:$0xff] }
 0x2ff   : > { %3738 = vmatmul.bf16.gmra.mxu3 %v11419_v26  ;;  %4099 = vmatpush.bf16.msra.mxu2 %v8619_v63  ;;  %v9359_v26 = vld [vmem:[%s10219_s3 + $0x1a4] sm:$0xf]  ;;  %v790_v63 = vld [vmem:[%s10211_s17 + $0x2f8] sm:$0xff] }
 0x300   : > { %14795 = vst [vmem:[#allocation141_spill] sm:$0xff] %v11421_v51  ;;  %3609 = vmatmul.bf16.gmra.mxu2 %v11417_v28  ;;  %v8488_v28 = vld [vmem:[%s10219_s3 + $0x1b0] sm:$0xf0] }
 0x301   : > { %v8491_v62 = vor.u32 %v9359_v26, %v8488_v28  ;;  %v11451_v28 = vpack.c.bf16 %v790_v63, %v782_v22  ;;  %v796_v63 = vld [vmem:[%s10211_s17 + $0x328] sm:$0xff] }
 0x302   : > { %v3303_v13 = vpop.f32.mrf.mxu3  ;;  %v3047_v25 = vpop.f32.mrf.mxu1 }
 0x303   : > { %v3174_v40 = vpop.f32.mrf.mxu2  ;;  %v2918_v14 = vpop.f32.mrf.mxu0  ;;  %3970 = vmatpush.bf16.msra.mxu1 %v8491_v62  ;;  %14800 = vst [vmem:[#allocation146_spill] sm:$0xff] %v11451_v28 }
 0x304   : > { %v3175_v10 = vadd.f32 %v3174_v40, %v3046_v36  ;;  %v3048_v18 = vadd.f32 %v3047_v25, %v2918_v14  ;;  %v788_v36 = vld [vmem:[%s10211_s17 + $0x2e8] sm:$0xff]  ;;  %v781_v40 = vld [vmem:[%s10211_s17 + $0x2b0] sm:$0xff] }
 0x305   : > { %v11449_v14 = vpack.c.bf16 %v789_v30, %v781_v40  ;;  %v803_v40 = vld [vmem:[%s10211_s17 + $0x360] sm:$0xff] }
 0x306   : > { %v11433_v39 = vadd.f32 %v3303_v13, %v3175_v10  ;;  %v11447_v13 = vpack.c.bf16 %v788_v36, %v780_v6  ;;  %v795_v36 = vld [vmem:[%s10211_s17 + $0x320] sm:$0xff] }
 0x307   : > { %14799 = vst [vmem:[#allocation145_spill] sm:$0xff] %v11449_v14 }
 0x308   : > { %14796 = vst [vmem:[#allocation142_spill] sm:$0xff] %v11433_v39 }
 0x309   : > { %14798 = vst [vmem:[#allocation144_spill] sm:$0xff] %v11447_v13 }
 0x30a   : > { %v3305_v9 = vpop.f32.mrf.mxu3  ;;  %v3050_v26 = vpop.f32.mrf.mxu1 }
 0x30b   : > { %v3176_v51 = vpop.f32.mrf.mxu2  ;;  %v2921_v10 = vpop.f32.mrf.mxu0 }
 0x30c   : > { %v3177_v8 = vadd.f32 %v3176_v51, %v3048_v18  ;;  %v3051_v62 = vadd.f32 %v3050_v26, %v2921_v10  ;;  %v805_v10 = vld [vmem:[%s10211_s17 + $0x370] sm:$0xff]  ;;  %v798_v26 = vld [vmem:[%s10211_s17 + $0x338] sm:$0xff] }
 0x30d   : > { %3485 = vmatmul.bf16.gmra.mxu1 %v11447_v13  ;;  %v806_v13 = vld [vmem:[%s10211_s17 + $0x378] sm:$0xff] }
 0x30e   : > { %v11453_v25 = vadd.f32 %v3305_v9, %v3177_v8  ;;  %3356 = vmatmul.bf16.gmra.mxu0 %v11445_v50  ;;  %v804_v8 = vld [vmem:[%s10211_s17 + $0x368] sm:$0xff]  ;;  %v797_v9 = vld [vmem:[%s10211_s17 + $0x330] sm:$0xff]  ;;  %v11469_v50 = vpack.c.bf16 %v803_v40, %v795_v36 }
 0x30f   : > { %3743 = vmatmul.bf16.gmra.mxu3 %v11451_v28  ;;  %v11473_v39 = vpack.c.bf16 %v805_v10, %v797_v9  ;;  %v812_v9 = vld [vmem:[%s10211_s17 + $0x3a8] sm:$0xff] }
 0x310   : > { %14801 = vst [vmem:[#allocation147_spill] sm:$0xff] %v11453_v25  ;;  %3614 = vmatmul.bf16.gmra.mxu2 %v11449_v14  ;;  %v820_v10 = vld [vmem:[%s10211_s17 + $0x3e8] sm:$0xff] }
 0x311   : > { %14803 = vst [vmem:[#allocation149_spill] sm:$0xff] %v11469_v50 }
 0x312   : > { %v3308_v30 = vpop.f32.mrf.mxu3  ;;  %v3052_v0 = vpop.f32.mrf.mxu1  ;;  %14805 = vst [vmem:[#allocation151_spill] sm:$0xff] %v11473_v39 }
 0x313   : > { %v3179_v51 = vpop.f32.mrf.mxu2  ;;  %v2923_v18 = vpop.f32.mrf.mxu0 }
 0x314   : > { %v3180_v22 = vadd.f32 %v3179_v51, %v3051_v62  ;;  %v3053_v6 = vadd.f32 %v3052_v0, %v2923_v18  ;;  %v11471_v51 = vpack.c.bf16 %v804_v8, %v796_v63  ;;  %v811_v63 = vld [vmem:[%s10211_s17 + $0x3a0] sm:$0xff] }
 0x315   : > { %v819_v8 = vld [vmem:[%s10211_s17 + $0x3e0] sm:$0xff] }
 0x316   : > { %v11459_v27 = vadd.f32 %v3308_v30, %v3180_v22  ;;  %14804 = vst [vmem:[#allocation150_spill] sm:$0xff] %v11471_v51  ;;  %v11475_v30 = vpack.c.bf16 %v806_v13, %v798_v26  ;;  %v813_v26 = vld [vmem:[%s10211_s17 + $0x3b0] sm:$0xff] }
 0x318   : > { %14802 = vst [vmem:[#allocation148_spill] sm:$0xff] %v11459_v27  ;;  %v838_v27 = vld [vmem:[%s10211_s17 + $0x478] sm:$0xff] }
 0x319   : > { %14806 = vst [vmem:[#allocation152_spill] sm:$0xff] %v11475_v30 }
 0x31a   : > { %v3310_v25 = vpop.f32.mrf.mxu3  ;;  %v3055_v22 = vpop.f32.mrf.mxu1 }
 0x31b   : > { %v3181_v14 = vpop.f32.mrf.mxu2  ;;  %v2926_v62 = vpop.f32.mrf.mxu0 }
 0x31c   : > { %v3182_v28 = vadd.f32 %v3181_v14, %v3053_v6  ;;  %v3056_v0 = vadd.f32 %v3055_v22, %v2926_v62  ;;  %v821_v62 = vld [vmem:[%s10211_s17 + $0x3f0] sm:$0xff]  ;;  %v814_v22 = vld [vmem:[%s10211_s17 + $0x3b8] sm:$0xff] }
 0x31d   : > { %3490 = vmatmul.bf16.gmra.mxu1 %v11471_v51  ;;  %v822_v51 = vld [vmem:[%s10211_s17 + $0x3f8] sm:$0xff] }
 0x31e   : > { %v11477_v18 = vadd.f32 %v3310_v25, %v3182_v28  ;;  %3361 = vmatmul.bf16.gmra.mxu0 %v11469_v50 }
 0x31f   : > { %3748 = vmatmul.bf16.gmra.mxu3 %v11475_v30  ;;  %v11493_v30 = vpack.c.bf16 %v819_v8, %v811_v63  ;;  %v9323_v63 = vld [vmem:[%s10219_s3 + $0x84] sm:$0xf] }
 0x320   : > { %14807 = vst [vmem:[#allocation153_spill] sm:$0xff] %v11477_v18  ;;  %3619 = vmatmul.bf16.gmra.mxu2 %v11473_v39 }
 0x321   : > { %14809 = vst [vmem:[#allocation155_spill] sm:$0xff] %v11493_v30 }
 0x322   : > { %v3313_v6 = vpop.f32.mrf.mxu3  ;;  %v3057_v28 = vpop.f32.mrf.mxu1 }
 0x323   : > { %v3184_v14 = vpop.f32.mrf.mxu2  ;;  %v2928_v36 = vpop.f32.mrf.mxu0 }
 0x324   : > { %v3185_v13 = vadd.f32 %v3184_v14, %v3056_v0  ;;  %v3058_v40 = vadd.f32 %v3057_v28, %v2928_v36  ;;  %v11499_v28 = vpack.c.bf16 %v822_v51, %v814_v22  ;;  %v8344_v51 = vld [vmem:[%s10219_s3 + $0x90] sm:$0xf0] }
 0x326   : > { %v11483_v25 = vadd.f32 %v3313_v6, %v3185_v13  ;;  %v11495_v13 = vpack.c.bf16 %v820_v10, %v812_v9  ;;  %v11497_v6 = vpack.c.bf16 %v821_v62, %v813_v26  ;;  %14812 = vst [vmem:[#allocation158_spill] sm:$0xff] %v11499_v28  ;;  %v9419_v10 = vld [vmem:[%s10219_s3 + $0x384] sm:$0xf] }
 0x328   : > { %14808 = vst [vmem:[#allocation154_spill] sm:$0xff] %v11483_v25 }
 0x329   : > { %14810 = vst [vmem:[#allocation156_spill] sm:$0xff] %v11495_v13 }
 0x32a   : > { %v3315_v14 = vpop.f32.mrf.mxu3  ;;  %14811 = vst [vmem:[#allocation157_spill] sm:$0xff] %v11497_v6  ;;  %v3060_v36 = vpop.f32.mrf.mxu1 }
 0x32b   : > { %v3186_v39 = vpop.f32.mrf.mxu2  ;;  %v2931_v50 = vpop.f32.mrf.mxu0 }
 0x32c   : > { %v3187_v0 = vadd.f32 %v3186_v39, %v3058_v40  ;;  %v3061_v18 = vadd.f32 %v3060_v36, %v2931_v50  ;;  %v9387_v39 = vld [vmem:[%s10219_s3 + $0x284] sm:$0xf]  ;;  %v8600_v40 = vld [vmem:[%s10219_s3 + $0x290] sm:$0xf0] }
 0x32d   : > { %3495 = vmatmul.bf16.gmra.mxu1 %v11495_v13  ;;  %v8603_v9 = vor.u32 %v9387_v39, %v8600_v40  ;;  %v8728_v50 = vld [vmem:[%s10219_s3 + $0x390] sm:$0xf0]  ;;  %v828_v13 = vld [vmem:[%s10211_s17 + $0x428] sm:$0xff] }
 0x32e   : > { %v11501_v25 = vadd.f32 %v3315_v14, %v3187_v0  ;;  %3366 = vmatmul.bf16.gmra.mxu0 %v11493_v30  ;;  %v8347_v0 = vor.u32 %v9323_v63, %v8344_v51  ;;  %v8731_v14 = vor.u32 %v9419_v10, %v8728_v50  ;;  %v837_v30 = vld [vmem:[%s10211_s17 + $0x470] sm:$0xff] }
 0x32f   : > { %3753 = vmatmul.bf16.gmra.mxu3 %v11499_v28  ;;  %4100 = vmatpush.bf16.msra.mxu2 %v8603_v9  ;;  %v827_v28 = vld [vmem:[%s10211_s17 + $0x420] sm:$0xff]  ;;  %v8472_v63 = vld [vmem:[%s10219_s3 + $0x190] sm:$0xf0] }
 0x330   : > { %14813 = vst [vmem:[#allocation159_spill] sm:$0xff] %v11501_v25  ;;  %3624 = vmatmul.bf16.gmra.mxu2 %v11497_v6  ;;  %3842 = vmatpush.bf16.msra.mxu0 %v8347_v0  ;;  %v835_v6 = vld [vmem:[%s10211_s17 + $0x460] sm:$0xff]  ;;  %v830_v25 = vld [vmem:[%s10211_s17 + $0x438] sm:$0xff]  ;;  %v8475_v50 = vor.u32 %v9355_v4, %v8472_v63 }
 0x331   : > { %4229 = vmatpush.bf16.msra.mxu3 %v8731_v14  ;;  %v11525_v10 = vpack.c.bf16 %v835_v6, %v827_v28  ;;  %v851_v63 = vld [vmem:[%s10211_s17 + $0x4e0] sm:$0xff] }
 0x332   : > { %v3318_v62 = vpop.f32.mrf.mxu3  ;;  %v3062_v36 = vpop.f32.mrf.mxu1  ;;  %3971 = vmatpush.bf16.msra.mxu1 %v8475_v50  ;;  %v852_v50 = vld [vmem:[%s10211_s17 + $0x4e8] sm:$0xff] }
 0x333   : > { %v3189_v8 = vpop.f32.mrf.mxu2  ;;  %v2933_v22 = vpop.f32.mrf.mxu0 }
 0x334   : > { %v3190_v26 = vadd.f32 %v3189_v8, %v3061_v18  ;;  %v3063_v40 = vadd.f32 %v3062_v36, %v2933_v22  ;;  %v836_v18 = vld [vmem:[%s10211_s17 + $0x468] sm:$0xff]  ;;  %v829_v8 = vld [vmem:[%s10211_s17 + $0x430] sm:$0xff]  ;;  %v11531_v36 = vpack.c.bf16 %v838_v27, %v830_v25 }
 0x335   : > { %v11527_v22 = vpack.c.bf16 %v836_v18, %v828_v13  ;;  %v11529_v0 = vpack.c.bf16 %v837_v30, %v829_v8  ;;  %v503_v13 = vld [vmem:[%s10236_s10] sm:$0xff]  ;;  %v843_v8 = vld [vmem:[%s10211_s17 + $0x4a0] sm:$0xff] }
 0x336   : > { %v11513_v39 = vadd.f32 %v3318_v62, %v3190_v26  ;;  %14816 = vst [vmem:[#allocation162_spill] sm:$0xff] %v11531_v36 }
 0x337   : > { %14815 = vst [vmem:[#allocation161_spill] sm:$0xff] %v11529_v0 }
 0x338   : > { %14814 = vst [vmem:[#allocation160_spill] sm:$0xff] %v11513_v39 }
 0x33a   : > { %v3320_v26 = vpop.f32.mrf.mxu3  ;;  %v3461_v14 = vpop.f32.mrf.mxu1 }
 0x33b   : > { %v3191_v51 = vpop.f32.mrf.mxu2  ;;  %v3332_v62 = vpop.f32.mrf.mxu0 }
 0x33c   : > { %v3192_v9 = vadd.f32 %v3191_v51, %v3063_v40  ;;  %v3333_v3 = vadd.f32 %v3332_v62, %v10899_v61  ;;  %v844_v51 = vld [vmem:[%s10211_s17 + $0x4a8] sm:$0xff]  ;;  %v846_v62 = vld [vmem:[%s10211_s17 + $0x4b8] sm:$0xff] }
 0x33d   : > { %3500 = vmatmul.bf16.gmra.mxu1 %v11527_v22 }
 0x33e   : > { %v11533_v39 = vadd.f32 %v3320_v26, %v3192_v9  ;;  %3371 = vmatmul.bf16.gmra.mxu0 %v11525_v10  ;;  %v3462_v4 = vadd.f32 %v3461_v14, %v3333_v3  ;;  %v845_v9 = vld [vmem:[%s10211_s17 + $0x4b0] sm:$0xff]  ;;  %v854_v14 = vld [vmem:[%s10211_s17 + $0x4f8] sm:$0xff] }
 0x33f   : > { %3758 = vmatmul.bf16.gmra.mxu3 %v11531_v36  ;;  %v853_v3 = vld [vmem:[%s10211_s17 + $0x4f0] sm:$0xff] }
 0x340   : > { %3629 = vmatmul.bf16.gmra.mxu2 %v11529_v0  ;;  %v11558_v0 = vpack.c.bf16 %v854_v14, %v846_v62  ;;  %v859_v14 = vld [vmem:[%s10211_s17 + $0x520] sm:$0xff] }
 0x342   : > { %v3719_v25 = vpop.f32.mrf.mxu3  ;;  %v3463_v6 = vpop.f32.mrf.mxu1  ;;  %14818 = vst [vmem:[#allocation164_spill] sm:$0xff] %v11558_v0 }
 0x343   : > { %v3590_v27 = vpop.f32.mrf.mxu2  ;;  %v3334_v61 = vpop.f32.mrf.mxu0 }
 0x344   : > { %v3591_v30 = vadd.f32 %v3590_v27, %v3462_v4  ;;  %v3335_v40 = vadd.f32 %v3334_v61, %v10917_v24  ;;  %v11551_v27 = vpack.c.bf16 %v851_v63, %v843_v8  ;;  %v11553_v24 = vpack.c.bf16 %v852_v50, %v844_v51  ;;  %v511_v50 = vld [vmem:[%s10236_s10 + $0x40] sm:$0xff] }
 0x345   : > { %v11555_v61 = vpack.c.bf16 %v853_v3, %v845_v9 }
 0x346   : > { %v3720_v28 = vadd.f32 %v3719_v25, %v3591_v30  ;;  %v3464_v26 = vadd.f32 %v3463_v6, %v3335_v40 }
 0x347   : > { %14817 = vst [vmem:[#allocation163_spill] sm:$0xff] %v11555_v61 }
 0x348   : > { %v6935_v18 = vadd.f32 %v3720_v28, %v503_v13  ;;  %v507_v13 = vld [vmem:[%s10236_s10 + $0x20] sm:$0xff] }
 0x34a   : > { %7127 = vst [vmem:[%s10236_s10] sm:$0xff] %v6935_v18  ;;  %v3721_v30 = vpop.f32.mrf.mxu3  ;;  %v3466_v28 = vpop.f32.mrf.mxu1 }
 0x34b   : > { %v3592_v4 = vpop.f32.mrf.mxu2  ;;  %v3337_v25 = vpop.f32.mrf.mxu0 }
 0x34c   : > { %v3593_v36 = vadd.f32 %v3592_v4, %v3464_v26  ;;  %v3338_v6 = vadd.f32 %v3337_v25, %v10923_v47  ;;  %v867_v4 = vld [vmem:[%s10211_s17 + $0x560] sm:$0xff]  ;;  %v868_v25 = vld [vmem:[%s10211_s17 + $0x568] sm:$0xff] }
 0x34d   : > { %3505 = vmatmul.bf16.gmra.mxu1 %v11553_v24 }
 0x34e   : > { %v3722_v18 = vadd.f32 %v3721_v30, %v3593_v36  ;;  %3376 = vmatmul.bf16.gmra.mxu0 %v11551_v27  ;;  %v3467_v8 = vadd.f32 %v3466_v28, %v3338_v6  ;;  %v860_v30 = vld [vmem:[%s10211_s17 + $0x528] sm:$0xff]  ;;  %v869_v28 = vld [vmem:[%s10211_s17 + $0x570] sm:$0xff]  ;;  %v862_v6 = vld [vmem:[%s10211_s17 + $0x538] sm:$0xff] }
 0x34f   : > { %3763 = vmatmul.bf16.gmra.mxu3 %v11558_v0 }
 0x350   : > { %v6939_v40 = vadd.f32 %v3722_v18, %v507_v13  ;;  %3634 = vmatmul.bf16.gmra.mxu2 %v11555_v61  ;;  %v861_v13 = vld [vmem:[%s10211_s17 + $0x530] sm:$0xff] }
 0x352   : > { %7131 = vst [vmem:[%s10236_s10 + $0x20] sm:$0xff] %v6939_v40  ;;  %v3724_v63 = vpop.f32.mrf.mxu3  ;;  %v3468_v9 = vpop.f32.mrf.mxu1  ;;  %v870_v40 = vld [vmem:[%s10211_s17 + $0x578] sm:$0xff] }
 0x353   : > { %v3595_v36 = vpop.f32.mrf.mxu2  ;;  %v3339_v51 = vpop.f32.mrf.mxu0 }
 0x354   : > { %v3596_v47 = vadd.f32 %v3595_v36, %v3467_v8  ;;  %v3340_v26 = vadd.f32 %v3339_v51, %v10941_v44  ;;  %v11577_v36 = vpack.c.bf16 %v867_v4, %v859_v14  ;;  %v11581_v51 = vpack.c.bf16 %v869_v28, %v861_v13 }
 0x356   : > { %v3725_v3 = vadd.f32 %v3724_v63, %v3596_v47  ;;  %v3469_v18 = vadd.f32 %v3468_v9, %v3340_v26  ;;  %14819 = vst [vmem:[#allocation165_spill] sm:$0xff] %v11577_v36  ;;  %v11579_v63 = vpack.c.bf16 %v868_v25, %v860_v30  ;;  %v11584_v9 = vpack.c.bf16 %v870_v40, %v862_v6  ;;  %v9383_v30 = vld [vmem:[%s10219_s3 + $0x264] sm:$0xf]  ;;  %v8584_v25 = vld [vmem:[%s10219_s3 + $0x270] sm:$0xf0] }
 0x357   : > { %14821 = vst [vmem:[#allocation167_spill] sm:$0xff] %v11581_v51  ;;  %v8587_v28 = vor.u32 %v9383_v30, %v8584_v25  ;;  %v883_v25 = vld [vmem:[%s10211_s17 + $0x5e0] sm:$0xff] }
 0x358   : > { %v6943_v62 = vadd.f32 %v3725_v3, %v511_v50  ;;  %14820 = vst [vmem:[#allocation166_spill] sm:$0xff] %v11579_v63  ;;  %v515_v50 = vld [vmem:[%s10236_s10 + $0x60] sm:$0xff] }
 0x359   : > { %14822 = vst [vmem:[#allocation168_spill] sm:$0xff] %v11584_v9  ;;  %4101 = vmatpush.bf16.msra.mxu2 %v8587_v28 }
 0x35a   : > { %7135 = vst [vmem:[%s10236_s10 + $0x40] sm:$0xff] %v6943_v62  ;;  %v3726_v47 = vpop.f32.mrf.mxu3  ;;  %v3471_v3 = vpop.f32.mrf.mxu1 }
 0x35b   : > { %v3597_v8 = vpop.f32.mrf.mxu2  ;;  %v3342_v44 = vpop.f32.mrf.mxu0 }
 0x35c   : > { %v3598_v0 = vadd.f32 %v3597_v8, %v3469_v18  ;;  %v3343_v62 = vadd.f32 %v3342_v44, %v10953_v41  ;;  %v8328_v41 = vld [vmem:[%s10219_s3 + $0x70] sm:$0xf0]  ;;  %v9415_v18 = vld [vmem:[%s10219_s3 + $0x364] sm:$0xf] }
 0x35d   : > { %3510 = vmatmul.bf16.gmra.mxu1 %v11579_v63  ;;  %v8712_v44 = vld [vmem:[%s10219_s3 + $0x370] sm:$0xf0]  ;;  %v886_v63 = vld [vmem:[%s10211_s17 + $0x5f8] sm:$0xff] }
 0x35e   : > { %v3727_v26 = vadd.f32 %v3726_v47, %v3598_v0  ;;  %3381 = vmatmul.bf16.gmra.mxu0 %v11577_v36  ;;  %v3472_v4 = vadd.f32 %v3471_v3, %v3343_v62  ;;  %v9319_v0 = vld [vmem:[%s10219_s3 + $0x64] sm:$0xf]  ;;  %v523_v36 = vld [vmem:[%s10236_s10 + $0xa0] sm:$0xff] }
 0x35f   : > { %3768 = vmatmul.bf16.gmra.mxu3 %v11584_v9  ;;  %v8331_v47 = vor.u32 %v9319_v0, %v8328_v41  ;;  %v884_v0 = vld [vmem:[%s10211_s17 + $0x5e8] sm:$0xff]  ;;  %v877_v41 = vld [vmem:[%s10211_s17 + $0x5b0] sm:$0xff] }
 0x360   : > { %v6947_v14 = vadd.f32 %v3727_v26, %v515_v50  ;;  %3639 = vmatmul.bf16.gmra.mxu2 %v11581_v51  ;;  %v519_v50 = vld [vmem:[%s10236_s10 + $0x80] sm:$0xff]  ;;  %v8715_v26 = vor.u32 %v9415_v18, %v8712_v44  ;;  %v885_v9 = vld [vmem:[%s10211_s17 + $0x5f0] sm:$0xff]  ;;  %v878_v51 = vld [vmem:[%s10211_s17 + $0x5b8] sm:$0xff] }
 0x361   : > { %3843 = vmatpush.bf16.msra.mxu0 %v8331_v47  ;;  %v9351_v18 = vld [vmem:[%s10219_s3 + $0x164] sm:$0xf]  ;;  %v8456_v44 = vld [vmem:[%s10219_s3 + $0x170] sm:$0xf0] }
 0x362   : > { %7139 = vst [vmem:[%s10236_s10 + $0x60] sm:$0xff] %v6947_v14  ;;  %v3729_v40 = vpop.f32.mrf.mxu3  ;;  %v3473_v3 = vpop.f32.mrf.mxu1  ;;  %4230 = vmatpush.bf16.msra.mxu3 %v8715_v26 }
 0x363   : > { %v3600_v13 = vpop.f32.mrf.mxu2  ;;  %v3344_v8 = vpop.f32.mrf.mxu0 }
 0x364   : > { %v3601_v6 = vadd.f32 %v3600_v13, %v3472_v4  ;;  %v3345_v14 = vadd.f32 %v3344_v8, %v10973_v49  ;;  %v875_v4 = vld [vmem:[%s10211_s17 + $0x5a0] sm:$0xff]  ;;  %v876_v13 = vld [vmem:[%s10211_s17 + $0x5a8] sm:$0xff]  ;;  %v8459_v49 = vor.u32 %v9351_v18, %v8456_v44 }
 0x365   : > { %v11613_v26 = vpack.c.bf16 %v884_v0, %v876_v13  ;;  %v891_v18 = vld [vmem:[%s10211_s17 + $0x620] sm:$0xff] }
 0x366   : > { %v3730_v62 = vadd.f32 %v3729_v40, %v3601_v6  ;;  %v3474_v28 = vadd.f32 %v3473_v3, %v3345_v14  ;;  %v11611_v40 = vpack.c.bf16 %v883_v25, %v875_v4  ;;  %3972 = vmatpush.bf16.msra.mxu1 %v8459_v49  ;;  %v527_v25 = vld [vmem:[%s10236_s10 + $0xc0] sm:$0xff]  ;;  %v899_v44 = vld [vmem:[%s10211_s17 + $0x660] sm:$0xff] }
 0x367   : > { %v900_v49 = vld [vmem:[%s10211_s17 + $0x668] sm:$0xff] }
 0x368   : > { %v6951_v30 = vadd.f32 %v3730_v62, %v519_v50  ;;  %v11615_v62 = vpack.c.bf16 %v885_v9, %v877_v41 }
 0x36a   : > { %7143 = vst [vmem:[%s10236_s10 + $0x80] sm:$0xff] %v6951_v30  ;;  %v3731_v47 = vpop.f32.mrf.mxu3  ;;  %v3476_v61 = vpop.f32.mrf.mxu1  ;;  %v11618_v30 = vpack.c.bf16 %v886_v63, %v878_v51 }
 0x36b   : > { %v3602_v6 = vpop.f32.mrf.mxu2  ;;  %v3347_v50 = vpop.f32.mrf.mxu0 }
 0x36c   : > { %v3603_v8 = vadd.f32 %v3602_v6, %v3474_v28  ;;  %v3348_v14 = vadd.f32 %v3347_v50, %v10979_v5  ;;  %v892_v6 = vld [vmem:[%s10211_s17 + $0x628] sm:$0xff]  ;;  %v894_v50 = vld [vmem:[%s10211_s17 + $0x638] sm:$0xff] }
 0x36d   : > { %3515 = vmatmul.bf16.gmra.mxu1 %v11613_v26 }
 0x36e   : > { %v3732_v3 = vadd.f32 %v3731_v47, %v3603_v8  ;;  %3386 = vmatmul.bf16.gmra.mxu0 %v11611_v40  ;;  %v3477_v63 = vadd.f32 %v3476_v61, %v3348_v14  ;;  %v893_v8 = vld [vmem:[%s10211_s17 + $0x630] sm:$0xff] }
 0x36f   : > { %3773 = vmatmul.bf16.gmra.mxu3 %v11618_v30  ;;  %v901_v61 = vld [vmem:[%s10211_s17 + $0x670] sm:$0xff] }
 0x370   : > { %v6955_v4 = vadd.f32 %v3732_v3, %v523_v36  ;;  %3644 = vmatmul.bf16.gmra.mxu2 %v11615_v62  ;;  %v902_v3 = vld [vmem:[%s10211_s17 + $0x678] sm:$0xff] }
 0x372   : > { %7147 = vst [vmem:[%s10236_s10 + $0xa0] sm:$0xff] %v6955_v4  ;;  %v3734_v9 = vpop.f32.mrf.mxu3  ;;  %v3478_v13 = vpop.f32.mrf.mxu1  ;;  %v11637_v4 = vpack.c.bf16 %v899_v44, %v891_v18 }
 0x373   : > { %v3605_v51 = vpop.f32.mrf.mxu2  ;;  %v3349_v36 = vpop.f32.mrf.mxu0 }
 0x374   : > { %v3606_v5 = vadd.f32 %v3605_v51, %v3477_v63  ;;  %v3350_v41 = vadd.f32 %v3349_v36, %v10997_v46  ;;  %v11639_v46 = vpack.c.bf16 %v900_v49, %v892_v6  ;;  %v531_v36 = vld [vmem:[%s10236_s10 + $0xe0] sm:$0xff] }
 0x376   : > { %v3735_v0 = vadd.f32 %v3734_v9, %v3606_v5  ;;  %v3479_v47 = vadd.f32 %v3478_v13, %v3350_v41  ;;  %v11641_v9 = vpack.c.bf16 %v901_v61, %v893_v8  ;;  %v535_v8 = vld [vmem:[%s10236_s10 + $0x100] sm:$0xff] }
 0x378   : > { %v6959_v28 = vadd.f32 %v3735_v0, %v527_v25  ;;  %14823 = vst [vmem:[#allocation169_spill] sm:$0xff] %v11641_v9  ;;  %v11644_v0 = vpack.c.bf16 %v902_v3, %v894_v50 }
 0x37a   : > { %7151 = vst [vmem:[%s10236_s10 + $0xc0] sm:$0xff] %v6959_v28  ;;  %v3736_v51 = vpop.f32.mrf.mxu3  ;;  %v3481_v25 = vpop.f32.mrf.mxu1 }
 0x37b   : > { %v3607_v14 = vpop.f32.mrf.mxu2  ;;  %v3352_v5 = vpop.f32.mrf.mxu0  ;;  %14824 = vst [vmem:[#allocation170_spill] sm:$0xff] %v11644_v0 }
 0x37c   : > { %v3608_v63 = vadd.f32 %v3607_v14, %v3479_v47  ;;  %v3353_v13 = vadd.f32 %v3352_v5, %v11003_v15  ;;  %v907_v14 = vld [vmem:[%s10211_s17 + $0x6a0] sm:$0xff]  ;;  %v916_v5 = vld [vmem:[%s10211_s17 + $0x6e8] sm:$0xff] }
 0x37d   : > { %3520 = vmatmul.bf16.gmra.mxu1 %v11639_v46 }
 0x37e   : > { %v3737_v28 = vadd.f32 %v3736_v51, %v3608_v63  ;;  %3391 = vmatmul.bf16.gmra.mxu0 %v11637_v4  ;;  %v3482_v18 = vadd.f32 %v3481_v25, %v3353_v13  ;;  %v915_v63 = vld [vmem:[%s10211_s17 + $0x6e0] sm:$0xff]  ;;  %v908_v51 = vld [vmem:[%s10211_s17 + $0x6a8] sm:$0xff]  ;;  %v917_v25 = vld [vmem:[%s10211_s17 + $0x6f0] sm:$0xff] }
 0x37f   : > { %3778 = vmatmul.bf16.gmra.mxu3 %v11644_v0  ;;  %v910_v13 = vld [vmem:[%s10211_s17 + $0x6b8] sm:$0xff] }
 0x380   : > { %v6963_v41 = vadd.f32 %v3737_v28, %v531_v36  ;;  %3649 = vmatmul.bf16.gmra.mxu2 %v11641_v9  ;;  %v909_v36 = vld [vmem:[%s10211_s17 + $0x6b0] sm:$0xff] }
 0x382   : > { %7155 = vst [vmem:[%s10236_s10 + $0xe0] sm:$0xff] %v6963_v41  ;;  %v3739_v6 = vpop.f32.mrf.mxu3  ;;  %v3483_v61 = vpop.f32.mrf.mxu1  ;;  %v918_v41 = vld [vmem:[%s10211_s17 + $0x6f8] sm:$0xff] }
 0x383   : > { %v3610_v44 = vpop.f32.mrf.mxu2  ;;  %v3354_v49 = vpop.f32.mrf.mxu0 }
 0x384   : > { %v3611_v15 = vadd.f32 %v3610_v44, %v3482_v18  ;;  %v3355_v50 = vadd.f32 %v3354_v49, %v11021_v12  ;;  %v11663_v44 = vpack.c.bf16 %v915_v63, %v907_v14  ;;  %v11667_v49 = vpack.c.bf16 %v917_v25, %v909_v36 }
 0x386   : > { %v3740_v47 = vadd.f32 %v3739_v6, %v3611_v15  ;;  %v3484_v28 = vadd.f32 %v3483_v61, %v3355_v50  ;;  %14825 = vst [vmem:[#allocation171_spill] sm:$0xff] %v11663_v44  ;;  %v11665_v6 = vpack.c.bf16 %v916_v5, %v908_v51  ;;  %v11670_v61 = vpack.c.bf16 %v918_v41, %v910_v13  ;;  %v9379_v51 = vld [vmem:[%s10219_s3 + $0x244] sm:$0xf]  ;;  %v8568_v5 = vld [vmem:[%s10219_s3 + $0x250] sm:$0xf0] }
 0x387   : > { %14827 = vst [vmem:[#allocation173_spill] sm:$0xff] %v11667_v49  ;;  %v8571_v25 = vor.u32 %v9379_v51, %v8568_v5  ;;  %v931_v5 = vld [vmem:[%s10211_s17 + $0x760] sm:$0xff] }
 0x388   : > { %v6967_v3 = vadd.f32 %v3740_v47, %v535_v8  ;;  %14826 = vst [vmem:[#allocation172_spill] sm:$0xff] %v11665_v6  ;;  %v539_v8 = vld [vmem:[%s10236_s10 + $0x120] sm:$0xff] }
 0x389   : > { %14828 = vst [vmem:[#allocation174_spill] sm:$0xff] %v11670_v61  ;;  %4102 = vmatpush.bf16.msra.mxu2 %v8571_v25 }
 0x38a   : > { %7159 = vst [vmem:[%s10236_s10 + $0x100] sm:$0xff] %v6967_v3  ;;  %v3741_v15 = vpop.f32.mrf.mxu3  ;;  %v3486_v47 = vpop.f32.mrf.mxu1 }
 0x38b   : > { %v3612_v18 = vpop.f32.mrf.mxu2  ;;  %v3357_v12 = vpop.f32.mrf.mxu0 }
 0x38c   : > { %v3613_v0 = vadd.f32 %v3612_v18, %v3484_v28  ;;  %v3358_v3 = vadd.f32 %v3357_v12, %v11033_v16  ;;  %v8312_v16 = vld [vmem:[%s10219_s3 + $0x50] sm:$0xf0]  ;;  %v9411_v28 = vld [vmem:[%s10219_s3 + $0x344] sm:$0xf] }
 0x38d   : > { %3525 = vmatmul.bf16.gmra.mxu1 %v11665_v6  ;;  %v8696_v12 = vld [vmem:[%s10219_s3 + $0x350] sm:$0xf0]  ;;  %v934_v6 = vld [vmem:[%s10211_s17 + $0x778] sm:$0xff] }
 0x38e   : > { %v3742_v50 = vadd.f32 %v3741_v15, %v3613_v0  ;;  %3396 = vmatmul.bf16.gmra.mxu0 %v11663_v44  ;;  %v3487_v63 = vadd.f32 %v3486_v47, %v3358_v3  ;;  %v9315_v0 = vld [vmem:[%s10219_s3 + $0x44] sm:$0xf]  ;;  %v547_v44 = vld [vmem:[%s10236_s10 + $0x160] sm:$0xff] }
 0x38f   : > { %3783 = vmatmul.bf16.gmra.mxu3 %v11670_v61  ;;  %v8315_v15 = vor.u32 %v9315_v0, %v8312_v16  ;;  %v932_v0 = vld [vmem:[%s10211_s17 + $0x768] sm:$0xff]  ;;  %v925_v16 = vld [vmem:[%s10211_s17 + $0x730] sm:$0xff] }
 0x390   : > { %v6971_v14 = vadd.f32 %v3742_v50, %v539_v8  ;;  %3654 = vmatmul.bf16.gmra.mxu2 %v11667_v49  ;;  %v543_v8 = vld [vmem:[%s10236_s10 + $0x140] sm:$0xff]  ;;  %v8699_v50 = vor.u32 %v9411_v28, %v8696_v12  ;;  %v933_v61 = vld [vmem:[%s10211_s17 + $0x770] sm:$0xff]  ;;  %v926_v49 = vld [vmem:[%s10211_s17 + $0x738] sm:$0xff] }
 0x391   : > { %3844 = vmatpush.bf16.msra.mxu0 %v8315_v15  ;;  %v9347_v28 = vld [vmem:[%s10219_s3 + $0x144] sm:$0xf]  ;;  %v8440_v12 = vld [vmem:[%s10219_s3 + $0x150] sm:$0xf0] }
 0x392   : > { %7163 = vst [vmem:[%s10236_s10 + $0x120] sm:$0xff] %v6971_v14  ;;  %v3744_v41 = vpop.f32.mrf.mxu3  ;;  %v3488_v47 = vpop.f32.mrf.mxu1  ;;  %4231 = vmatpush.bf16.msra.mxu3 %v8699_v50 }
 0x393   : > { %v3615_v36 = vpop.f32.mrf.mxu2  ;;  %v3359_v18 = vpop.f32.mrf.mxu0 }
 0x394   : > { %v3616_v13 = vadd.f32 %v3615_v36, %v3487_v63  ;;  %v3360_v14 = vadd.f32 %v3359_v18, %v11053_v21  ;;  %v923_v63 = vld [vmem:[%s10211_s17 + $0x720] sm:$0xff]  ;;  %v924_v36 = vld [vmem:[%s10211_s17 + $0x728] sm:$0xff]  ;;  %v8443_v21 = vor.u32 %v9347_v28, %v8440_v12 }
 0x395   : > { %v11699_v50 = vpack.c.bf16 %v932_v0, %v924_v36  ;;  %v939_v28 = vld [vmem:[%s10211_s17 + $0x7a0] sm:$0xff] }
 0x396   : > { %v3745_v3 = vadd.f32 %v3744_v41, %v3616_v13  ;;  %v3489_v25 = vadd.f32 %v3488_v47, %v3360_v14  ;;  %v11697_v41 = vpack.c.bf16 %v931_v5, %v923_v63  ;;  %3973 = vmatpush.bf16.msra.mxu1 %v8443_v21  ;;  %v551_v5 = vld [vmem:[%s10236_s10 + $0x180] sm:$0xff]  ;;  %v947_v12 = vld [vmem:[%s10211_s17 + $0x7e0] sm:$0xff] }
 0x397   : > { %v948_v21 = vld [vmem:[%s10211_s17 + $0x7e8] sm:$0xff] }
 0x398   : > { %v6975_v51 = vadd.f32 %v3745_v3, %v543_v8  ;;  %v11701_v3 = vpack.c.bf16 %v933_v61, %v925_v16 }
 0x39a   : > { %7167 = vst [vmem:[%s10236_s10 + $0x140] sm:$0xff] %v6975_v51  ;;  %v3746_v15 = vpop.f32.mrf.mxu3  ;;  %v3491_v9 = vpop.f32.mrf.mxu1  ;;  %v11704_v51 = vpack.c.bf16 %v934_v6, %v926_v49 }
 0x39b   : > { %v3617_v13 = vpop.f32.mrf.mxu2  ;;  %v3362_v8 = vpop.f32.mrf.mxu0 }
 0x39c   : > { %v3618_v18 = vadd.f32 %v3617_v13, %v3489_v25  ;;  %v3363_v14 = vadd.f32 %v3362_v8, %v11059_v11  ;;  %v940_v13 = vld [vmem:[%s10211_s17 + $0x7a8] sm:$0xff]  ;;  %v942_v8 = vld [vmem:[%s10211_s17 + $0x7b8] sm:$0xff] }
 0x39d   : > { %3530 = vmatmul.bf16.gmra.mxu1 %v11699_v50 }
 0x39e   : > { %v3747_v47 = vadd.f32 %v3746_v15, %v3618_v18  ;;  %3401 = vmatmul.bf16.gmra.mxu0 %v11697_v41  ;;  %v3492_v6 = vadd.f32 %v3491_v9, %v3363_v14  ;;  %v941_v18 = vld [vmem:[%s10211_s17 + $0x7b0] sm:$0xff] }
 0x39f   : > { %3788 = vmatmul.bf16.gmra.mxu3 %v11704_v51  ;;  %v949_v9 = vld [vmem:[%s10211_s17 + $0x7f0] sm:$0xff] }
 0x3a0   : > { %v6979_v63 = vadd.f32 %v3747_v47, %v547_v44  ;;  %3659 = vmatmul.bf16.gmra.mxu2 %v11701_v3  ;;  %v950_v47 = vld [vmem:[%s10211_s17 + $0x7f8] sm:$0xff] }
 0x3a2   : > { %7171 = vst [vmem:[%s10236_s10 + $0x160] sm:$0xff] %v6979_v63  ;;  %v3749_v61 = vpop.f32.mrf.mxu3  ;;  %v3493_v36 = vpop.f32.mrf.mxu1  ;;  %v11723_v63 = vpack.c.bf16 %v947_v12, %v939_v28 }
 0x3a3   : > { %v3620_v49 = vpop.f32.mrf.mxu2  ;;  %v3364_v44 = vpop.f32.mrf.mxu0 }
 0x3a4   : > { %v3621_v11 = vadd.f32 %v3620_v49, %v3492_v6  ;;  %v3365_v16 = vadd.f32 %v3364_v44, %v11077_v7  ;;  %v11725_v7 = vpack.c.bf16 %v948_v21, %v940_v13  ;;  %v555_v44 = vld [vmem:[%s10236_s10 + $0x1a0] sm:$0xff] }
 0x3a6   : > { %v3750_v0 = vadd.f32 %v3749_v61, %v3621_v11  ;;  %v3494_v15 = vadd.f32 %v3493_v36, %v3365_v16  ;;  %14829 = vst [vmem:[#allocation175_spill] sm:$0xff] %v11725_v7  ;;  %v11727_v61 = vpack.c.bf16 %v949_v9, %v941_v18  ;;  %v559_v18 = vld [vmem:[%s10236_s10 + $0x1c0] sm:$0xff] }
 0x3a8   : > { %v6983_v25 = vadd.f32 %v3750_v0, %v551_v5  ;;  %14830 = vst [vmem:[#allocation176_spill] sm:$0xff] %v11727_v61  ;;  %v11730_v0 = vpack.c.bf16 %v950_v47, %v942_v8 }
 0x3aa   : > { %7175 = vst [vmem:[%s10236_s10 + $0x180] sm:$0xff] %v6983_v25  ;;  %v3751_v49 = vpop.f32.mrf.mxu3  ;;  %v3496_v5 = vpop.f32.mrf.mxu1 }
 0x3ab   : > { %v3622_v14 = vpop.f32.mrf.mxu2  ;;  %v3367_v11 = vpop.f32.mrf.mxu0  ;;  %14831 = vst [vmem:[#allocation177_spill] sm:$0xff] %v11730_v0 }
 0x3ac   : > { %v3623_v6 = vadd.f32 %v3622_v14, %v3494_v15  ;;  %v3368_v36 = vadd.f32 %v3367_v11, %v11083_v45  ;;  %v955_v14 = vld [vmem:[%s10211_s17 + $0x820] sm:$0xff]  ;;  %v964_v11 = vld [vmem:[%s10211_s17 + $0x868] sm:$0xff] }
 0x3ad   : > { %3535 = vmatmul.bf16.gmra.mxu1 %v11725_v7 }
 0x3ae   : > { %v3752_v25 = vadd.f32 %v3751_v49, %v3623_v6  ;;  %3406 = vmatmul.bf16.gmra.mxu0 %v11723_v63  ;;  %v3497_v28 = vadd.f32 %v3496_v5, %v3368_v36  ;;  %v963_v6 = vld [vmem:[%s10211_s17 + $0x860] sm:$0xff]  ;;  %v956_v49 = vld [vmem:[%s10211_s17 + $0x828] sm:$0xff]  ;;  %v965_v5 = vld [vmem:[%s10211_s17 + $0x870] sm:$0xff] }
 0x3af   : > { %3793 = vmatmul.bf16.gmra.mxu3 %v11730_v0  ;;  %v958_v36 = vld [vmem:[%s10211_s17 + $0x838] sm:$0xff] }
 0x3b0   : > { %v6987_v16 = vadd.f32 %v3752_v25, %v555_v44  ;;  %3664 = vmatmul.bf16.gmra.mxu2 %v11727_v61  ;;  %v957_v44 = vld [vmem:[%s10211_s17 + $0x830] sm:$0xff] }
 0x3b2   : > { %7179 = vst [vmem:[%s10236_s10 + $0x1a0] sm:$0xff] %v6987_v16  ;;  %v3754_v13 = vpop.f32.mrf.mxu3  ;;  %v3498_v9 = vpop.f32.mrf.mxu1  ;;  %v966_v16 = vld [vmem:[%s10211_s17 + $0x878] sm:$0xff] }
 0x3b3   : > { %v3625_v12 = vpop.f32.mrf.mxu2  ;;  %v3369_v21 = vpop.f32.mrf.mxu0 }
 0x3b4   : > { %v3626_v45 = vadd.f32 %v3625_v12, %v3497_v28  ;;  %v3370_v8 = vadd.f32 %v3369_v21, %v11101_v59  ;;  %v11749_v12 = vpack.c.bf16 %v963_v6, %v955_v14  ;;  %v11753_v21 = vpack.c.bf16 %v965_v5, %v957_v44 }
 0x3b6   : > { %v3755_v15 = vadd.f32 %v3754_v13, %v3626_v45  ;;  %v3499_v25 = vadd.f32 %v3498_v9, %v3370_v8  ;;  %14832 = vst [vmem:[#allocation178_spill] sm:$0xff] %v11749_v12  ;;  %v11751_v13 = vpack.c.bf16 %v964_v11, %v956_v49  ;;  %v11756_v9 = vpack.c.bf16 %v966_v16, %v958_v36  ;;  %v9375_v49 = vld [vmem:[%s10219_s3 + $0x224] sm:$0xf]  ;;  %v8552_v11 = vld [vmem:[%s10219_s3 + $0x230] sm:$0xf0] }
 0x3b7   : > { %14834 = vst [vmem:[#allocation180_spill] sm:$0xff] %v11753_v21  ;;  %v8555_v5 = vor.u32 %v9375_v49, %v8552_v11  ;;  %v979_v11 = vld [vmem:[%s10211_s17 + $0x8e0] sm:$0xff] }
 0x3b8   : > { %v6991_v47 = vadd.f32 %v3755_v15, %v559_v18  ;;  %14833 = vst [vmem:[#allocation179_spill] sm:$0xff] %v11751_v13  ;;  %v563_v18 = vld [vmem:[%s10236_s10 + $0x1e0] sm:$0xff] }
 0x3b9   : > { %14835 = vst [vmem:[#allocation181_spill] sm:$0xff] %v11756_v9  ;;  %4103 = vmatpush.bf16.msra.mxu2 %v8555_v5 }
 0x3ba   : > { %7183 = vst [vmem:[%s10236_s10 + $0x1c0] sm:$0xff] %v6991_v47  ;;  %v3756_v45 = vpop.f32.mrf.mxu3  ;;  %v3501_v15 = vpop.f32.mrf.mxu1 }
 0x3bb   : > { %v3627_v28 = vpop.f32.mrf.mxu2  ;;  %v3372_v59 = vpop.f32.mrf.mxu0 }
 0x3bc   : > { %v3628_v0 = vadd.f32 %v3627_v28, %v3499_v25  ;;  %v3373_v47 = vadd.f32 %v3372_v59, %v11113_v60  ;;  %v8296_v60 = vld [vmem:[%s10219_s3 + $0x30] sm:$0xf0]  ;;  %v9407_v25 = vld [vmem:[%s10219_s3 + $0x324] sm:$0xf] }
 0x3bd   : > { %3540 = vmatmul.bf16.gmra.mxu1 %v11751_v13  ;;  %v8680_v59 = vld [vmem:[%s10219_s3 + $0x330] sm:$0xf0]  ;;  %v982_v13 = vld [vmem:[%s10211_s17 + $0x8f8] sm:$0xff] }
 0x3be   : > { %v3757_v8 = vadd.f32 %v3756_v45, %v3628_v0  ;;  %3411 = vmatmul.bf16.gmra.mxu0 %v11749_v12  ;;  %v3502_v6 = vadd.f32 %v3501_v15, %v3373_v47  ;;  %v9311_v0 = vld [vmem:[%s10219_s3 + $0x24] sm:$0xf]  ;;  %v571_v12 = vld [vmem:[%s10236_s10 + $0x220] sm:$0xff] }
 0x3bf   : > { %3798 = vmatmul.bf16.gmra.mxu3 %v11756_v9  ;;  %v8299_v45 = vor.u32 %v9311_v0, %v8296_v60  ;;  %v980_v0 = vld [vmem:[%s10211_s17 + $0x8e8] sm:$0xff]  ;;  %v973_v60 = vld [vmem:[%s10211_s17 + $0x8b0] sm:$0xff] }
 0x3c0   : > { %v6995_v14 = vadd.f32 %v3757_v8, %v563_v18  ;;  %3669 = vmatmul.bf16.gmra.mxu2 %v11753_v21  ;;  %v567_v18 = vld [vmem:[%s10236_s10 + $0x200] sm:$0xff]  ;;  %v8683_v8 = vor.u32 %v9407_v25, %v8680_v59  ;;  %v981_v9 = vld [vmem:[%s10211_s17 + $0x8f0] sm:$0xff]  ;;  %v974_v21 = vld [vmem:[%s10211_s17 + $0x8b8] sm:$0xff] }
 0x3c1   : > { %3845 = vmatpush.bf16.msra.mxu0 %v8299_v45  ;;  %v9343_v25 = vld [vmem:[%s10219_s3 + $0x124] sm:$0xf]  ;;  %v8424_v59 = vld [vmem:[%s10219_s3 + $0x130] sm:$0xf0] }
 0x3c2   : > { %7187 = vst [vmem:[%s10236_s10 + $0x1e0] sm:$0xff] %v6995_v14  ;;  %v3759_v16 = vpop.f32.mrf.mxu3  ;;  %v3503_v15 = vpop.f32.mrf.mxu1  ;;  %4232 = vmatpush.bf16.msra.mxu3 %v8683_v8 }
 0x3c3   : > { %v3630_v44 = vpop.f32.mrf.mxu2  ;;  %v3374_v28 = vpop.f32.mrf.mxu0 }
 0x3c4   : > { %v3631_v36 = vadd.f32 %v3630_v44, %v3502_v6  ;;  %v3375_v14 = vadd.f32 %v3374_v28, %v11133_v29  ;;  %v971_v6 = vld [vmem:[%s10211_s17 + $0x8a0] sm:$0xff]  ;;  %v972_v44 = vld [vmem:[%s10211_s17 + $0x8a8] sm:$0xff]  ;;  %v8427_v29 = vor.u32 %v9343_v25, %v8424_v59 }
 0x3c5   : > { %v11785_v8 = vpack.c.bf16 %v980_v0, %v972_v44  ;;  %v987_v25 = vld [vmem:[%s10211_s17 + $0x920] sm:$0xff] }
 0x3c6   : > { %v3760_v47 = vadd.f32 %v3759_v16, %v3631_v36  ;;  %v3504_v5 = vadd.f32 %v3503_v15, %v3375_v14  ;;  %v11783_v16 = vpack.c.bf16 %v979_v11, %v971_v6  ;;  %3974 = vmatpush.bf16.msra.mxu1 %v8427_v29  ;;  %v575_v11 = vld [vmem:[%s10236_s10 + $0x240] sm:$0xff]  ;;  %v995_v59 = vld [vmem:[%s10211_s17 + $0x960] sm:$0xff] }
 0x3c7   : > { %14837 = vst [vmem:[#allocation183_spill] sm:$0xff] %v11785_v8  ;;  %v996_v29 = vld [vmem:[%s10211_s17 + $0x968] sm:$0xff] }
 0x3c8   : > { %v6999_v49 = vadd.f32 %v3760_v47, %v567_v18  ;;  %14836 = vst [vmem:[#allocation182_spill] sm:$0xff] %v11783_v16  ;;  %v11787_v47 = vpack.c.bf16 %v981_v9, %v973_v60 }
 0x3ca   : > { %7191 = vst [vmem:[%s10236_s10 + $0x200] sm:$0xff] %v6999_v49  ;;  %v3761_v45 = vpop.f32.mrf.mxu3  ;;  %v3506_v61 = vpop.f32.mrf.mxu1  ;;  %v11790_v49 = vpack.c.bf16 %v982_v13, %v974_v21 }
 0x3cb   : > { %v3632_v36 = vpop.f32.mrf.mxu2  ;;  %v3377_v18 = vpop.f32.mrf.mxu0  ;;  %14838 = vst [vmem:[#allocation184_spill] sm:$0xff] %v11787_v47 }
 0x3cc   : > { %v3633_v28 = vadd.f32 %v3632_v36, %v3504_v5  ;;  %14839 = vst [vmem:[#allocation185_spill] sm:$0xff] %v11790_v49  ;;  %v3378_v14 = vadd.f32 %v3377_v18, %v11139_v32  ;;  %v988_v36 = vld [vmem:[%s10211_s17 + $0x928] sm:$0xff]  ;;  %v990_v18 = vld [vmem:[%s10211_s17 + $0x938] sm:$0xff] }
 0x3cd   : > { %3545 = vmatmul.bf16.gmra.mxu1 %v11785_v8 }
 0x3ce   : > { %v3762_v15 = vadd.f32 %v3761_v45, %v3633_v28  ;;  %3416 = vmatmul.bf16.gmra.mxu0 %v11783_v16  ;;  %v3507_v13 = vadd.f32 %v3506_v61, %v3378_v14  ;;  %v989_v28 = vld [vmem:[%s10211_s17 + $0x930] sm:$0xff] }
 0x3cf   : > { %3803 = vmatmul.bf16.gmra.mxu3 %v11790_v49  ;;  %v997_v61 = vld [vmem:[%s10211_s17 + $0x970] sm:$0xff] }
 0x3d0   : > { %v7003_v6 = vadd.f32 %v3762_v15, %v571_v12  ;;  %3674 = vmatmul.bf16.gmra.mxu2 %v11787_v47  ;;  %v998_v15 = vld [vmem:[%s10211_s17 + $0x978] sm:$0xff] }
 0x3d2   : > { %7195 = vst [vmem:[%s10236_s10 + $0x220] sm:$0xff] %v7003_v6  ;;  %v3764_v9 = vpop.f32.mrf.mxu3  ;;  %v3508_v44 = vpop.f32.mrf.mxu1  ;;  %v11809_v6 = vpack.c.bf16 %v995_v59, %v987_v25 }
 0x3d3   : > { %v3635_v21 = vpop.f32.mrf.mxu2  ;;  %v3379_v12 = vpop.f32.mrf.mxu0 }
 0x3d4   : > { %v3636_v32 = vadd.f32 %v3635_v21, %v3507_v13  ;;  %v3380_v60 = vadd.f32 %v3379_v12, %v11157_v43  ;;  %14840 = vst [vmem:[#allocation186_spill] sm:$0xff] %v11809_v6  ;;  %v11811_v43 = vpack.c.bf16 %v996_v29, %v988_v36  ;;  %v579_v12 = vld [vmem:[%s10236_s10 + $0x260] sm:$0xff] }
 0x3d6   : > { %v3765_v0 = vadd.f32 %v3764_v9, %v3636_v32  ;;  %v3509_v45 = vadd.f32 %v3508_v44, %v3380_v60  ;;  %14841 = vst [vmem:[#allocation187_spill] sm:$0xff] %v11811_v43  ;;  %v11813_v9 = vpack.c.bf16 %v997_v61, %v989_v28  ;;  %v583_v28 = vld [vmem:[%s10236_s10 + $0x280] sm:$0xff] }
 0x3d8   : > { %v7007_v5 = vadd.f32 %v3765_v0, %v575_v11  ;;  %14842 = vst [vmem:[#allocation188_spill] sm:$0xff] %v11813_v9  ;;  %v11816_v0 = vpack.c.bf16 %v998_v15, %v990_v18 }
 0x3da   : > { %7199 = vst [vmem:[%s10236_s10 + $0x240] sm:$0xff] %v7007_v5  ;;  %v3766_v21 = vpop.f32.mrf.mxu3  ;;  %v3511_v11 = vpop.f32.mrf.mxu1 }
 0x3db   : > { %v3637_v14 = vpop.f32.mrf.mxu2  ;;  %v3382_v32 = vpop.f32.mrf.mxu0  ;;  %14843 = vst [vmem:[#allocation189_spill] sm:$0xff] %v11816_v0 }
 0x3dc   : > { %v3638_v13 = vadd.f32 %v3637_v14, %v3509_v45  ;;  %v3383_v44 = vadd.f32 %v3382_v32, %v11163_v42  ;;  %v1003_v14 = vld [vmem:[%s10211_s17 + $0x9a0] sm:$0xff]  ;;  %v1012_v32 = vld [vmem:[%s10211_s17 + $0x9e8] sm:$0xff] }
 0x3dd   : > { %3550 = vmatmul.bf16.gmra.mxu1 %v11811_v43 }
 0x3de   : > { %v3767_v5 = vadd.f32 %v3766_v21, %v3638_v13  ;;  %3421 = vmatmul.bf16.gmra.mxu0 %v11809_v6  ;;  %v3512_v25 = vadd.f32 %v3511_v11, %v3383_v44  ;;  %v1011_v13 = vld [vmem:[%s10211_s17 + $0x9e0] sm:$0xff]  ;;  %v1004_v21 = vld [vmem:[%s10211_s17 + $0x9a8] sm:$0xff]  ;;  %v1013_v11 = vld [vmem:[%s10211_s17 + $0x9f0] sm:$0xff] }
 0x3df   : > { %3808 = vmatmul.bf16.gmra.mxu3 %v11816_v0  ;;  %v1006_v44 = vld [vmem:[%s10211_s17 + $0x9b8] sm:$0xff] }
 0x3e0   : > { %v7011_v60 = vadd.f32 %v3767_v5, %v579_v12  ;;  %3679 = vmatmul.bf16.gmra.mxu2 %v11813_v9  ;;  %v1005_v12 = vld [vmem:[%s10211_s17 + $0x9b0] sm:$0xff] }
 0x3e2   : > { %7203 = vst [vmem:[%s10236_s10 + $0x260] sm:$0xff] %v7011_v60  ;;  %v3769_v36 = vpop.f32.mrf.mxu3  ;;  %v3513_v61 = vpop.f32.mrf.mxu1  ;;  %v1014_v60 = vld [vmem:[%s10211_s17 + $0x9f8] sm:$0xff] }
 0x3e3   : > { %v3640_v59 = vpop.f32.mrf.mxu2  ;;  %v3384_v29 = vpop.f32.mrf.mxu0 }
 0x3e4   : > { %v3641_v42 = vadd.f32 %v3640_v59, %v3512_v25  ;;  %v3385_v18 = vadd.f32 %v3384_v29, %v11181_v33  ;;  %v11835_v59 = vpack.c.bf16 %v1011_v13, %v1003_v14  ;;  %v11839_v29 = vpack.c.bf16 %v1013_v11, %v1005_v12 }
 0x3e6   : > { %v3770_v45 = vadd.f32 %v3769_v36, %v3641_v42  ;;  %v3514_v5 = vadd.f32 %v3513_v61, %v3385_v18  ;;  %14844 = vst [vmem:[#allocation190_spill] sm:$0xff] %v11835_v59  ;;  %v11837_v36 = vpack.c.bf16 %v1012_v32, %v1004_v21  ;;  %v11842_v61 = vpack.c.bf16 %v1014_v60, %v1006_v44  ;;  %v9371_v21 = vld [vmem:[%s10219_s3 + $0x204] sm:$0xf]  ;;  %v8536_v32 = vld [vmem:[%s10219_s3 + $0x210] sm:$0xf0] }
 0x3e7   : > { %14846 = vst [vmem:[#allocation192_spill] sm:$0xff] %v11839_v29  ;;  %v8539_v11 = vor.u32 %v9371_v21, %v8536_v32  ;;  %v1027_v32 = vld [vmem:[%s10211_s17 + $0xa60] sm:$0xff] }
 0x3e8   : > { %v7015_v15 = vadd.f32 %v3770_v45, %v583_v28  ;;  %14845 = vst [vmem:[#allocation191_spill] sm:$0xff] %v11837_v36  ;;  %v587_v28 = vld [vmem:[%s10236_s10 + $0x2a0] sm:$0xff] }
 0x3e9   : > { %14847 = vst [vmem:[#allocation193_spill] sm:$0xff] %v11842_v61  ;;  %4104 = vmatpush.bf16.msra.mxu2 %v8539_v11 }
 0x3ea   : > { %7207 = vst [vmem:[%s10236_s10 + $0x280] sm:$0xff] %v7015_v15  ;;  %v3771_v42 = vpop.f32.mrf.mxu3  ;;  %v3516_v45 = vpop.f32.mrf.mxu1 }
 0x3eb   : > { %v3642_v25 = vpop.f32.mrf.mxu2  ;;  %v3387_v33 = vpop.f32.mrf.mxu0 }
 0x3ec   : > { %v3643_v0 = vadd.f32 %v3642_v25, %v3514_v5  ;;  %v3388_v15 = vadd.f32 %v3387_v33, %v11193_v34  ;;  %v8280_v34 = vld [vmem:[%s10219_s3 + $0x10] sm:$0xf0]  ;;  %v9403_v5 = vld [vmem:[%s10219_s3 + $0x304] sm:$0xf] }
 0x3ed   : > { %3555 = vmatmul.bf16.gmra.mxu1 %v11837_v36  ;;  %v8664_v33 = vld [vmem:[%s10219_s3 + $0x310] sm:$0xf0]  ;;  %v1030_v36 = vld [vmem:[%s10211_s17 + $0xa78] sm:$0xff] }
 0x3ee   : > { %v3772_v18 = vadd.f32 %v3771_v42, %v3643_v0  ;;  %3426 = vmatmul.bf16.gmra.mxu0 %v11835_v59  ;;  %v3517_v13 = vadd.f32 %v3516_v45, %v3388_v15  ;;  %v9307_v0 = vld [vmem:[%s10219_s3 + $0x4] sm:$0xf]  ;;  %v595_v59 = vld [vmem:[%s10236_s10 + $0x2e0] sm:$0xff] }
 0x3ef   : > { %3813 = vmatmul.bf16.gmra.mxu3 %v11842_v61  ;;  %v8283_v42 = vor.u32 %v9307_v0, %v8280_v34  ;;  %v1028_v0 = vld [vmem:[%s10211_s17 + $0xa68] sm:$0xff]  ;;  %v1021_v34 = vld [vmem:[%s10211_s17 + $0xa30] sm:$0xff] }
 0x3f0   : > { %v7019_v14 = vadd.f32 %v3772_v18, %v587_v28  ;;  %3684 = vmatmul.bf16.gmra.mxu2 %v11839_v29  ;;  %v591_v28 = vld [vmem:[%s10236_s10 + $0x2c0] sm:$0xff]  ;;  %v8667_v18 = vor.u32 %v9403_v5, %v8664_v33  ;;  %v1029_v61 = vld [vmem:[%s10211_s17 + $0xa70] sm:$0xff]  ;;  %v1022_v29 = vld [vmem:[%s10211_s17 + $0xa38] sm:$0xff] }
 0x3f1   : > { %3846 = vmatpush.bf16.msra.mxu0 %v8283_v42  ;;  %v9339_v5 = vld [vmem:[%s10219_s3 + $0x104] sm:$0xf]  ;;  %v8408_v33 = vld [vmem:[%s10219_s3 + $0x110] sm:$0xf0] }
 0x3f2   : > { %7211 = vst [vmem:[%s10236_s10 + $0x2a0] sm:$0xff] %v7019_v14  ;;  %v3774_v60 = vpop.f32.mrf.mxu3  ;;  %v3518_v45 = vpop.f32.mrf.mxu1  ;;  %4233 = vmatpush.bf16.msra.mxu3 %v8667_v18 }
 0x3f3   : > { %v3645_v12 = vpop.f32.mrf.mxu2  ;;  %v3389_v25 = vpop.f32.mrf.mxu0 }
 0x3f4   : > { %v3646_v44 = vadd.f32 %v3645_v12, %v3517_v13  ;;  %v3390_v14 = vadd.f32 %v3389_v25, %v11213_v35  ;;  %v1019_v13 = vld [vmem:[%s10211_s17 + $0xa20] sm:$0xff]  ;;  %v1020_v12 = vld [vmem:[%s10211_s17 + $0xa28] sm:$0xff]  ;;  %v8411_v35 = vor.u32 %v9339_v5, %v8408_v33 }
 0x3f5   : > { %v11871_v18 = vpack.c.bf16 %v1028_v0, %v1020_v12  ;;  %v1035_v5 = vld [vmem:[%s10211_s17 + $0xaa0] sm:$0xff] }
 0x3f6   : > { %v3775_v15 = vadd.f32 %v3774_v60, %v3646_v44  ;;  %v3519_v11 = vadd.f32 %v3518_v45, %v3390_v14  ;;  %v11869_v60 = vpack.c.bf16 %v1027_v32, %v1019_v13  ;;  %3975 = vmatpush.bf16.msra.mxu1 %v8411_v35  ;;  %v599_v32 = vld [vmem:[%s10236_s10 + $0x300] sm:$0xff]  ;;  %v1043_v33 = vld [vmem:[%s10211_s17 + $0xae0] sm:$0xff] }
 0x3f7   : > { %14849 = vst [vmem:[#allocation195_spill] sm:$0xff] %v11871_v18  ;;  %v1044_v35 = vld [vmem:[%s10211_s17 + $0xae8] sm:$0xff] }
 0x3f8   : > { %v7023_v21 = vadd.f32 %v3775_v15, %v591_v28  ;;  %14848 = vst [vmem:[#allocation194_spill] sm:$0xff] %v11869_v60  ;;  %v11873_v15 = vpack.c.bf16 %v1029_v61, %v1021_v34 }
 0x3fa   : > { %7215 = vst [vmem:[%s10236_s10 + $0x2c0] sm:$0xff] %v7023_v21  ;;  %v3776_v42 = vpop.f32.mrf.mxu3  ;;  %v3521_v9 = vpop.f32.mrf.mxu1  ;;  %v11876_v21 = vpack.c.bf16 %v1030_v36, %v1022_v29 }
 0x3fb   : > { %v3647_v44 = vpop.f32.mrf.mxu2  ;;  %v3392_v28 = vpop.f32.mrf.mxu0  ;;  %14850 = vst [vmem:[#allocation196_spill] sm:$0xff] %v11873_v15 }
 0x3fc   : > { %v3648_v25 = vadd.f32 %v3647_v44, %v3519_v11  ;;  %14851 = vst [vmem:[#allocation197_spill] sm:$0xff] %v11876_v21  ;;  %v3393_v14 = vadd.f32 %v3392_v28, %v11219_v57  ;;  %v1036_v44 = vld [vmem:[%s10211_s17 + $0xaa8] sm:$0xff]  ;;  %v1038_v28 = vld [vmem:[%s10211_s17 + $0xab8] sm:$0xff] }
 0x3fd   : > { %3560 = vmatmul.bf16.gmra.mxu1 %v11871_v18 }
 0x3fe   : > { %v3777_v45 = vadd.f32 %v3776_v42, %v3648_v25  ;;  %3431 = vmatmul.bf16.gmra.mxu0 %v11869_v60  ;;  %v3522_v36 = vadd.f32 %v3521_v9, %v3393_v14  ;;  %v1037_v25 = vld [vmem:[%s10211_s17 + $0xab0] sm:$0xff] }
 0x3ff   : > { %3818 = vmatmul.bf16.gmra.mxu3 %v11876_v21  ;;  %v1045_v9 = vld [vmem:[%s10211_s17 + $0xaf0] sm:$0xff] }
 0x400   : > { %v7027_v13 = vadd.f32 %v3777_v45, %v595_v59  ;;  %3689 = vmatmul.bf16.gmra.mxu2 %v11873_v15  ;;  %v1046_v45 = vld [vmem:[%s10211_s17 + $0xaf8] sm:$0xff]  ;;  %v9467_v15 = vld [vmem:[%s10219_s3 + $0x504] sm:$0xf] }
 0x402   : > { %7219 = vst [vmem:[%s10236_s10 + $0x2e0] sm:$0xff] %v7027_v13  ;;  %v3779_v61 = vpop.f32.mrf.mxu3  ;;  %v3523_v12 = vpop.f32.mrf.mxu1  ;;  %v11895_v13 = vpack.c.bf16 %v1043_v33, %v1035_v5 }
 0x403   : > { %v3650_v29 = vpop.f32.mrf.mxu2  ;;  %v3394_v59 = vpop.f32.mrf.mxu0 }
 0x404   : > { %v3651_v57 = vadd.f32 %v3650_v29, %v3522_v36  ;;  %v3395_v34 = vadd.f32 %v3394_v59, %v11237_v23  ;;  %14852 = vst [vmem:[#allocation198_spill] sm:$0xff] %v11895_v13  ;;  %v11897_v23 = vpack.c.bf16 %v1044_v35, %v1036_v44  ;;  %v603_v59 = vld [vmem:[%s10236_s10 + $0x320] sm:$0xff] }
 0x406   : > { %v3780_v0 = vadd.f32 %v3779_v61, %v3651_v57  ;;  %v3524_v42 = vadd.f32 %v3523_v12, %v3395_v34  ;;  %14853 = vst [vmem:[#allocation199_spill] sm:$0xff] %v11897_v23  ;;  %v11899_v61 = vpack.c.bf16 %v1045_v9, %v1037_v25  ;;  %v607_v25 = vld [vmem:[%s10236_s10 + $0x340] sm:$0xff] }
 0x408   : > { %v7031_v11 = vadd.f32 %v3780_v0, %v599_v32  ;;  %14854 = vst [vmem:[#allocation200_spill] sm:$0xff] %v11899_v61  ;;  %v11902_v0 = vpack.c.bf16 %v1046_v45, %v1038_v28 }
 0x40a   : > { %7223 = vst [vmem:[%s10236_s10 + $0x300] sm:$0xff] %v7031_v11  ;;  %v3781_v29 = vpop.f32.mrf.mxu3  ;;  %v3526_v32 = vpop.f32.mrf.mxu1 }
 0x40b   : > { %v3652_v14 = vpop.f32.mrf.mxu2  ;;  %v3397_v57 = vpop.f32.mrf.mxu0  ;;  %14855 = vst [vmem:[#allocation201_spill] sm:$0xff] %v11902_v0 }
 0x40c   : > { %v3653_v36 = vadd.f32 %v3652_v14, %v3524_v42  ;;  %v3398_v12 = vadd.f32 %v3397_v57, %v11243_v58  ;;  %v1051_v14 = vld [vmem:[%s10211_s17 + $0xb20] sm:$0xff]  ;;  %v1060_v57 = vld [vmem:[%s10211_s17 + $0xb68] sm:$0xff] }
 0x40d   : > { %3565 = vmatmul.bf16.gmra.mxu1 %v11897_v23 }
 0x40e   : > { %v3782_v11 = vadd.f32 %v3781_v29, %v3653_v36  ;;  %3436 = vmatmul.bf16.gmra.mxu0 %v11895_v13  ;;  %v3527_v5 = vadd.f32 %v3526_v32, %v3398_v12  ;;  %v1059_v36 = vld [vmem:[%s10211_s17 + $0xb60] sm:$0xff]  ;;  %v1052_v29 = vld [vmem:[%s10211_s17 + $0xb28] sm:$0xff]  ;;  %v1061_v32 = vld [vmem:[%s10211_s17 + $0xb70] sm:$0xff] }
 0x40f   : > { %3823 = vmatmul.bf16.gmra.mxu3 %v11902_v0  ;;  %v1054_v12 = vld [vmem:[%s10211_s17 + $0xb38] sm:$0xff] }
 0x410   : > { %v7035_v34 = vadd.f32 %v3782_v11, %v603_v59  ;;  %3694 = vmatmul.bf16.gmra.mxu2 %v11899_v61  ;;  %v1053_v59 = vld [vmem:[%s10211_s17 + $0xb30] sm:$0xff] }
 0x412   : > { %7227 = vst [vmem:[%s10236_s10 + $0x320] sm:$0xff] %v7035_v34  ;;  %v3784_v44 = vpop.f32.mrf.mxu3  ;;  %v3528_v9 = vpop.f32.mrf.mxu1  ;;  %v1062_v34 = vld [vmem:[%s10211_s17 + $0xb78] sm:$0xff] }
 0x413   : > { %v3655_v33 = vpop.f32.mrf.mxu2  ;;  %v3399_v35 = vpop.f32.mrf.mxu0 }
 0x414   : > { %v3656_v58 = vadd.f32 %v3655_v33, %v3527_v5  ;;  %v3400_v28 = vadd.f32 %v3399_v35, %v11261_v55  ;;  %v11921_v33 = vpack.c.bf16 %v1059_v36, %v1051_v14  ;;  %v11925_v35 = vpack.c.bf16 %v1061_v32, %v1053_v59 }
 0x416   : > { %v3785_v42 = vadd.f32 %v3784_v44, %v3656_v58  ;;  %v3529_v11 = vadd.f32 %v3528_v9, %v3400_v28  ;;  %14856 = vst [vmem:[#allocation202_spill] sm:$0xff] %v11921_v33  ;;  %v11923_v44 = vpack.c.bf16 %v1060_v57, %v1052_v29  ;;  %v11928_v9 = vpack.c.bf16 %v1062_v34, %v1054_v12  ;;  %v9527_v29 = vld [vmem:[%s10219_s3 + $0x6e4] sm:$0xf]  ;;  %v9160_v57 = vld [vmem:[%s10219_s3 + $0x6f0] sm:$0xf0] }
 0x417   : > { %14858 = vst [vmem:[#allocation204_spill] sm:$0xff] %v11925_v35  ;;  %v9163_v32 = vor.u32 %v9527_v29, %v9160_v57  ;;  %v1075_v57 = vld [vmem:[%s10211_s17 + $0xbe0] sm:$0xff] }
 0x418   : > { %v7039_v45 = vadd.f32 %v3785_v42, %v607_v25  ;;  %14857 = vst [vmem:[#allocation203_spill] sm:$0xff] %v11923_v44  ;;  %v611_v25 = vld [vmem:[%s10236_s10 + $0x360] sm:$0xff] }
 0x419   : > { %14859 = vst [vmem:[#allocation205_spill] sm:$0xff] %v11928_v9  ;;  %4613 = vmatpush.bf16.msrb.mxu2 %v9163_v32 }
 0x41a   : > { %7231 = vst [vmem:[%s10236_s10 + $0x340] sm:$0xff] %v7039_v45  ;;  %v3786_v58 = vpop.f32.mrf.mxu3  ;;  %v3531_v42 = vpop.f32.mrf.mxu1 }
 0x41b   : > { %v3657_v5 = vpop.f32.mrf.mxu2  ;;  %v3402_v55 = vpop.f32.mrf.mxu0 }
 0x41c   : > { %v3658_v0 = vadd.f32 %v3657_v5, %v3529_v11  ;;  %v3403_v45 = vadd.f32 %v3402_v55, %v11273_v56  ;;  %v8904_v56 = vld [vmem:[%s10219_s3 + $0x4f0] sm:$0xf0]  ;;  %v9559_v11 = vld [vmem:[%s10219_s3 + $0x7e4] sm:$0xf] }
 0x41d   : > { %3570 = vmatmul.bf16.gmra.mxu1 %v11923_v44  ;;  %v9288_v55 = vld [vmem:[%s10219_s3 + $0x7f0] sm:$0xf0]  ;;  %v1078_v44 = vld [vmem:[%s10211_s17 + $0xbf8] sm:$0xff] }
 0x41e   : > { %v3787_v28 = vadd.f32 %v3786_v58, %v3658_v0  ;;  %3441 = vmatmul.bf16.gmra.mxu0 %v11921_v33  ;;  %v3532_v36 = vadd.f32 %v3531_v42, %v3403_v45  ;;  %v9463_v0 = vld [vmem:[%s10219_s3 + $0x4e4] sm:$0xf]  ;;  %v619_v33 = vld [vmem:[%s10236_s10 + $0x3a0] sm:$0xff] }
 0x41f   : > { %3828 = vmatmul.bf16.gmra.mxu3 %v11928_v9  ;;  %v8907_v58 = vor.u32 %v9463_v0, %v8904_v56  ;;  %v1076_v0 = vld [vmem:[%s10211_s17 + $0xbe8] sm:$0xff]  ;;  %v1069_v56 = vld [vmem:[%s10211_s17 + $0xbb0] sm:$0xff] }
 0x420   : > { %v7043_v14 = vadd.f32 %v3787_v28, %v611_v25  ;;  %3699 = vmatmul.bf16.gmra.mxu2 %v11925_v35  ;;  %v615_v25 = vld [vmem:[%s10236_s10 + $0x380] sm:$0xff]  ;;  %v9291_v28 = vor.u32 %v9559_v11, %v9288_v55  ;;  %v1077_v9 = vld [vmem:[%s10211_s17 + $0xbf0] sm:$0xff]  ;;  %v1070_v35 = vld [vmem:[%s10211_s17 + $0xbb8] sm:$0xff] }
 0x421   : > { %4355 = vmatpush.bf16.msrb.mxu0 %v8907_v58  ;;  %v9495_v11 = vld [vmem:[%s10219_s3 + $0x5e4] sm:$0xf]  ;;  %v9032_v55 = vld [vmem:[%s10219_s3 + $0x5f0] sm:$0xf0] }
 0x422   : > { %7235 = vst [vmem:[%s10236_s10 + $0x360] sm:$0xff] %v7043_v14  ;;  %v3789_v34 = vpop.f32.mrf.mxu3  ;;  %v3533_v42 = vpop.f32.mrf.mxu1  ;;  %4742 = vmatpush.bf16.msrb.mxu3 %v9291_v28 }
 0x423   : > { %v3660_v59 = vpop.f32.mrf.mxu2  ;;  %v3404_v5 = vpop.f32.mrf.mxu0 }
 0x424   : > { %v3661_v12 = vadd.f32 %v3660_v59, %v3532_v36  ;;  %v3405_v14 = vadd.f32 %v3404_v5, %v11293_v17  ;;  %v1067_v36 = vld [vmem:[%s10211_s17 + $0xba0] sm:$0xff]  ;;  %v1068_v59 = vld [vmem:[%s10211_s17 + $0xba8] sm:$0xff]  ;;  %v9035_v17 = vor.u32 %v9495_v11, %v9032_v55 }
 0x425   : > { %v11957_v28 = vpack.c.bf16 %v1076_v0, %v1068_v59  ;;  %v623_v0 = vld [vmem:[%s10236_s10 + $0x3c0] sm:$0xff] }
 0x426   : > { %v3790_v45 = vadd.f32 %v3789_v34, %v3661_v12  ;;  %v3534_v32 = vadd.f32 %v3533_v42, %v3405_v14  ;;  %v11955_v34 = vpack.c.bf16 %v1075_v57, %v1067_v36  ;;  %4484 = vmatpush.bf16.msrb.mxu1 %v9035_v17 }
 0x427   : > { %14861 = vst [vmem:[#allocation207_spill] sm:$0xff] %v11957_v28 }
 0x428   : > { %v7047_v29 = vadd.f32 %v3790_v45, %v615_v25  ;;  %14860 = vst [vmem:[#allocation206_spill] sm:$0xff] %v11955_v34  ;;  %v11959_v45 = vpack.c.bf16 %v1077_v9, %v1069_v56 }
 0x42a   : > { %7239 = vst [vmem:[%s10236_s10 + $0x380] sm:$0xff] %v7047_v29  ;;  %v3791_v58 = vpop.f32.mrf.mxu3  ;;  %v3536_v61 = vpop.f32.mrf.mxu1  ;;  %v11962_v29 = vpack.c.bf16 %v1078_v44, %v1070_v35 }
 0x42b   : > { %v3662_v12 = vpop.f32.mrf.mxu2  ;;  %v3407_v25 = vpop.f32.mrf.mxu0  ;;  %14862 = vst [vmem:[#allocation208_spill] sm:$0xff] %v11959_v45 }
 0x42c   : > { %v3663_v5 = vadd.f32 %v3662_v12, %v3534_v32  ;;  %14863 = vst [vmem:[#allocation209_spill] sm:$0xff] %v11962_v29  ;;  %v3408_v14 = vadd.f32 %v3407_v25, %v11299_v19 }
 0x42d   : > { %3575 = vmatmul.bf16.gmra.mxu1 %v11957_v28 }
 0x42e   : > { %v3792_v42 = vadd.f32 %v3791_v58, %v3663_v5  ;;  %3446 = vmatmul.bf16.gmra.mxu0 %v11955_v34  ;;  %v3537_v9 = vadd.f32 %v3536_v61, %v3408_v14  ;;  %v627_v61 = vld [vmem:[%s10236_s10 + $0x3e0] sm:$0xff] }
 0x42f   : > { %3833 = vmatmul.bf16.gmra.mxu3 %v11962_v29 }
 0x430   : > { %v7051_v36 = vadd.f32 %v3792_v42, %v619_v33  ;;  %3704 = vmatmul.bf16.gmra.mxu2 %v11959_v45  ;;  %v9471_v45 = vld [vmem:[%s10219_s3 + $0x524] sm:$0xf] }
 0x432   : > { %7243 = vst [vmem:[%s10236_s10 + $0x3a0] sm:$0xff] %v7051_v36  ;;  %v3794_v35 = vpop.f32.mrf.mxu3  ;;  %v3538_v56 = vpop.f32.mrf.mxu1 }
 0x433   : > { %v3665_v57 = vpop.f32.mrf.mxu2  ;;  %v3409_v59 = vpop.f32.mrf.mxu0 }
 0x434   : > { %v3666_v44 = vadd.f32 %v3665_v57, %v3537_v9  ;;  %v3410_v32 = vadd.f32 %v3409_v59, %v11317_v31 }
 0x436   : > { %v3795_v19 = vadd.f32 %v3794_v35, %v3666_v44  ;;  %v3539_v33 = vadd.f32 %v3538_v56, %v3410_v32  ;;  %v631_v35 = vld [vmem:[%s10236_s10 + $0x400] sm:$0xff] }
 0x438   : > { %v7055_v11 = vadd.f32 %v3795_v19, %v623_v0 }
 0x43a   : > { %7247 = vst [vmem:[%s10236_s10 + $0x3c0] sm:$0xff] %v7055_v11  ;;  %v3796_v17 = vpop.f32.mrf.mxu3  ;;  %v3541_v58 = vpop.f32.mrf.mxu1 }
 0x43b   : > { %v3667_v55 = vpop.f32.mrf.mxu2  ;;  %v3412_v5 = vpop.f32.mrf.mxu0 }
 0x43c   : > { %v3668_v12 = vadd.f32 %v3667_v55, %v3539_v33  ;;  %v3413_v42 = vadd.f32 %v3412_v5, %v11323_v20 }
 0x43d   : > { %3976 = vmatmul.bf16.vlgmr.msra.gmra.mxu1 %v10705_v52 }
 0x43e   : > { %v3797_v25 = vadd.f32 %v3796_v17, %v3668_v12  ;;  %3847 = vmatmul.bf16.vlgmr.msra.gmra.mxu0 %v10701_v48  ;;  %v3542_v31 = vadd.f32 %v3541_v58, %v3413_v42  ;;  %v635_v12 = vld [vmem:[%s10236_s10 + $0x420] sm:$0xff]  ;;  %v14864_v58 = vld [vmem:[#allocation27_spill] sm:$0xff] }
 0x43f   : > { %4234 = vmatmul.bf16.vlgmr.msra.gmra.mxu3 %v10709_v54 }
 0x440   : > { %v7059_v14 = vadd.f32 %v3797_v25, %v627_v61  ;;  %4105 = vmatmul.bf16.vlgmr.msra.gmra.mxu2 %v10707_v53  ;;  %v14865_v25 = vld [vmem:[#allocation28_spill] sm:$0xff] }
 0x442   : > { %7251 = vst [vmem:[%s10236_s10 + $0x3e0] sm:$0xff] %v7059_v14  ;;  %v3799_v57 = vpop.f32.mrf.mxu3  ;;  %v3543_v59 = vpop.f32.mrf.mxu1  ;;  %v9523_v14 = vld [vmem:[%s10219_s3 + $0x6c4] sm:$0xf] }
 0x443   : > { %v3670_v36 = vpop.f32.mrf.mxu2  ;;  %v3414_v44 = vpop.f32.mrf.mxu0 }
 0x444   : > { %v3671_v9 = vadd.f32 %v3670_v36, %v3542_v31  ;;  %v3415_v0 = vadd.f32 %v3414_v44, %v11341_v37  ;;  %v9144_v31 = vld [vmem:[%s10219_s3 + $0x6d0] sm:$0xf0] }
 0x445   : > { %v8888_v44 = vld [vmem:[%s10219_s3 + $0x4d0] sm:$0xf0] }
 0x446   : > { %v3800_v20 = vadd.f32 %v3799_v57, %v3671_v9  ;;  %v3544_v19 = vadd.f32 %v3543_v59, %v3415_v0  ;;  %v9147_v9 = vor.u32 %v9523_v14, %v9144_v31  ;;  %v9459_v57 = vld [vmem:[%s10219_s3 + $0x4c4] sm:$0xf] }
 0x447   : > { %v8891_v0 = vor.u32 %v9459_v57, %v8888_v44  ;;  %v643_v44 = vld [vmem:[%s10236_s10 + $0x460] sm:$0xff] }
 0x448   : > { %v7063_v56 = vadd.f32 %v3800_v20, %v631_v35  ;;  %4614 = vmatpush.bf16.msrb.mxu2 %v9147_v9 }
 0x449   : > { %4356 = vmatpush.bf16.msrb.mxu0 %v8891_v0 }
 0x44a   : > { %7255 = vst [vmem:[%s10236_s10 + $0x400] sm:$0xff] %v7063_v56  ;;  %v3801_v33 = vpop.f32.mrf.mxu3  ;;  %v3546_v17 = vpop.f32.mrf.mxu1  ;;  %v9272_v56 = vld [vmem:[%s10219_s3 + $0x7d0] sm:$0xf0] }
 0x44b   : > { %v3672_v32 = vpop.f32.mrf.mxu2  ;;  %v3417_v55 = vpop.f32.mrf.mxu0 }
 0x44c   : > { %v3673_v11 = vadd.f32 %v3672_v32, %v3544_v19  ;;  %v3418_v61 = vadd.f32 %v3417_v55, %v11353_v38  ;;  %v9555_v38 = vld [vmem:[%s10219_s3 + $0x7c4] sm:$0xf]  ;;  %v639_v19 = vld [vmem:[%s10236_s10 + $0x440] sm:$0xff] }
 0x44d   : > { %3981 = vmatmul.bf16.gmra.mxu1 %v10725_v2  ;;  %v14866_v55 = vld [vmem:[#allocation129_spill] sm:$0xff] }
 0x44e   : > { %v3802_v5 = vadd.f32 %v3801_v33, %v3673_v11  ;;  %3852 = vmatmul.bf16.gmra.mxu0 %v10723_v1  ;;  %v3547_v42 = vadd.f32 %v3546_v17, %v3418_v61  ;;  %v9275_v11 = vor.u32 %v9555_v38, %v9272_v56  ;;  %v9491_v61 = vld [vmem:[%s10219_s3 + $0x5c4] sm:$0xf]  ;;  %v14869_v56 = vld [vmem:[#allocation30_spill] sm:$0xff] }
 0x44f   : > { %4239 = vmatmul.bf16.gmra.mxu3 %v14865_v25  ;;  %v9475_v1 = vld [vmem:[%s10219_s3 + $0x544] sm:$0xf] }
 0x450   : > { %v7067_v37 = vadd.f32 %v3802_v5, %v635_v12  ;;  %4110 = vmatmul.bf16.gmra.mxu2 %v14864_v58  ;;  %4743 = vmatpush.bf16.msrb.mxu3 %v9275_v11 }
 0x452   : > { %7259 = vst [vmem:[%s10236_s10 + $0x420] sm:$0xff] %v7067_v37  ;;  %v3804_v59 = vpop.f32.mrf.mxu3  ;;  %v3548_v32 = vpop.f32.mrf.mxu1  ;;  %v9016_v37 = vld [vmem:[%s10219_s3 + $0x5d0] sm:$0xf0] }
 0x453   : > { %v3675_v36 = vpop.f32.mrf.mxu2  ;;  %v3419_v20 = vpop.f32.mrf.mxu0  ;;  %v9019_v14 = vor.u32 %v9491_v61, %v9016_v37 }
 0x454   : > { %v3676_v35 = vadd.f32 %v3675_v36, %v3547_v42  ;;  %v3420_v12 = vadd.f32 %v3419_v20, %v14866_v55  ;;  %v14868_v20 = vld [vmem:[#allocation29_spill] sm:$0xff] }
 0x455   : > { %4485 = vmatpush.bf16.msrb.mxu1 %v9019_v14 }
 0x456   : > { %v3805_v33 = vadd.f32 %v3804_v59, %v3676_v35  ;;  %v3549_v5 = vadd.f32 %v3548_v32, %v3420_v12  ;;  %v14867_v35 = vld [vmem:[#allocation130_spill] sm:$0xff]  ;;  %v14871_v32 = vld [vmem:[#allocation32_spill] sm:$0xff] }
 0x458   : > { %v7071_v17 = vadd.f32 %v3805_v33, %v639_v19  ;;  %v14870_v19 = vld [vmem:[#allocation31_spill] sm:$0xff] }
 0x45a   : > { %7263 = vst [vmem:[%s10236_s10 + $0x440] sm:$0xff] %v7071_v17  ;;  %v3806_v36 = vpop.f32.mrf.mxu3  ;;  %v3551_v9 = vpop.f32.mrf.mxu1 }
 0x45b   : > { %v3677_v42 = vpop.f32.mrf.mxu2  ;;  %v3422_v57 = vpop.f32.mrf.mxu0 }
 0x45c   : > { %v3678_v31 = vadd.f32 %v3677_v42, %v3549_v5  ;;  %v3423_v59 = vadd.f32 %v3422_v57, %v14867_v35  ;;  %v647_v5 = vld [vmem:[%s10236_s10 + $0x480] sm:$0xff]  ;;  %v14872_v42 = vld [vmem:[#allocation135_spill] sm:$0xff] }
 0x45d   : > { %3986 = vmatmul.bf16.gmra.mxu1 %v14869_v56 }
 0x45e   : > { %v3807_v38 = vadd.f32 %v3806_v36, %v3678_v31  ;;  %3857 = vmatmul.bf16.gmra.mxu0 %v14868_v20  ;;  %v3552_v11 = vadd.f32 %v3551_v9, %v3423_v59  ;;  %v651_v9 = vld [vmem:[%s10236_s10 + $0x4a0] sm:$0xff] }
 0x45f   : > { %4244 = vmatmul.bf16.gmra.mxu3 %v14871_v32  ;;  %v14874_v32 = vld [vmem:[#allocation33_spill] sm:$0xff] }
 0x460   : > { %v7075_v0 = vadd.f32 %v3807_v38, %v643_v44  ;;  %4115 = vmatmul.bf16.gmra.mxu2 %v14870_v19  ;;  %v667_v20 = vld [vmem:[%s10236_s10 + $0x520] sm:$0xff] }
 0x462   : > { %7267 = vst [vmem:[%s10236_s10 + $0x460] sm:$0xff] %v7075_v0  ;;  %v3809_v12 = vpop.f32.mrf.mxu3  ;;  %v3553_v61 = vpop.f32.mrf.mxu1 }
 0x463   : > { %v3680_v33 = vpop.f32.mrf.mxu2  ;;  %v3424_v17 = vpop.f32.mrf.mxu0 }
 0x464   : > { %v3681_v55 = vadd.f32 %v3680_v33, %v3552_v11  ;;  %v3425_v14 = vadd.f32 %v3424_v17, %v14872_v42  ;;  %v14873_v11 = vld [vmem:[#allocation136_spill] sm:$0xff]  ;;  %v14876_v17 = vld [vmem:[#allocation35_spill] sm:$0xff] }
 0x466   : > { %v3810_v37 = vadd.f32 %v3809_v12, %v3681_v55  ;;  %v3554_v36 = vadd.f32 %v3553_v61, %v3425_v14  ;;  %v14875_v12 = vld [vmem:[#allocation34_spill] sm:$0xff] }
 0x468   : > { %v7079_v31 = vadd.f32 %v3810_v37, %v647_v5  ;;  %v14877_v5 = vld [vmem:[#allocation36_spill] sm:$0xff] }
 0x46a   : > { %7271 = vst [vmem:[%s10236_s10 + $0x480] sm:$0xff] %v7079_v31  ;;  %v3811_v38 = vpop.f32.mrf.mxu3  ;;  %v3556_v59 = vpop.f32.mrf.mxu1 }
 0x46b   : > { %v3682_v57 = vpop.f32.mrf.mxu2  ;;  %v3427_v35 = vpop.f32.mrf.mxu0 }
 0x46c   : > { %v3683_v44 = vadd.f32 %v3682_v57, %v3554_v36  ;;  %v3428_v33 = vadd.f32 %v3427_v35, %v14873_v11  ;;  %v655_v36 = vld [vmem:[%s10236_s10 + $0x4c0] sm:$0xff] }
 0x46d   : > { %3991 = vmatmul.bf16.gmra.mxu1 %v14875_v12 }
 0x46e   : > { %v3812_v0 = vadd.f32 %v3811_v38, %v3683_v44  ;;  %3862 = vmatmul.bf16.gmra.mxu0 %v14874_v32  ;;  %v3557_v61 = vadd.f32 %v3556_v59, %v3428_v33  ;;  %v14878_v38 = vld [vmem:[#allocation141_spill] sm:$0xff] }
 0x46f   : > { %4249 = vmatmul.bf16.gmra.mxu3 %v14877_v5  ;;  %v659_v33 = vld [vmem:[%s10236_s10 + $0x4e0] sm:$0xff] }
 0x470   : > { %v7083_v55 = vadd.f32 %v3812_v0, %v651_v9  ;;  %4120 = vmatmul.bf16.gmra.mxu2 %v14876_v17  ;;  %v14879_v17 = vld [vmem:[#allocation142_spill] sm:$0xff] }
 0x472   : > { %7275 = vst [vmem:[%s10236_s10 + $0x4a0] sm:$0xff] %v7083_v55  ;;  %v3814_v14 = vpop.f32.mrf.mxu3  ;;  %v3558_v57 = vpop.f32.mrf.mxu1 }
 0x473   : > { %v3685_v37 = vpop.f32.mrf.mxu2  ;;  %v3429_v31 = vpop.f32.mrf.mxu0 }
 0x474   : > { %v3686_v42 = vadd.f32 %v3685_v37, %v3557_v61  ;;  %v3430_v35 = vadd.f32 %v3429_v31, %v14878_v38 }
 0x476   : > { %v3815_v44 = vadd.f32 %v3814_v14, %v3686_v42  ;;  %v3559_v9 = vadd.f32 %v3558_v57, %v3430_v35  ;;  %v14880_v14 = vld [vmem:[#allocation37_spill] sm:$0xff]  ;;  %v14882_v57 = vld [vmem:[#allocation39_spill] sm:$0xff]  ;;  %v9519_v35 = vld [vmem:[%s10219_s3 + $0x6a4] sm:$0xf] }
 0x478   : > { %v7087_v11 = vadd.f32 %v3815_v44, %v655_v36  ;;  %v14881_v36 = vld [vmem:[#allocation38_spill] sm:$0xff]  ;;  %v14883_v44 = vld [vmem:[#allocation40_spill] sm:$0xff] }
 0x47a   : > { %7279 = vst [vmem:[%s10236_s10 + $0x4c0] sm:$0xff] %v7087_v11  ;;  %v3816_v55 = vpop.f32.mrf.mxu3  ;;  %v3561_v61 = vpop.f32.mrf.mxu1  ;;  %v9128_v11 = vld [vmem:[%s10219_s3 + $0x6b0] sm:$0xf0] }
 0x47b   : > { %v3687_v0 = vpop.f32.mrf.mxu2  ;;  %v3432_v59 = vpop.f32.mrf.mxu0 }
 0x47c   : > { %v3688_v5 = vadd.f32 %v3687_v0, %v3559_v9  ;;  %v3433_v42 = vadd.f32 %v3432_v59, %v14879_v17  ;;  %v9131_v0 = vor.u32 %v9519_v35, %v9128_v11  ;;  %v9551_v17 = vld [vmem:[%s10219_s3 + $0x7a4] sm:$0xf] }
 0x47d   : > { %3996 = vmatmul.bf16.gmra.mxu1 %v14881_v36 }
 0x47e   : > { %v3817_v37 = vadd.f32 %v3816_v55, %v3688_v5  ;;  %3867 = vmatmul.bf16.gmra.mxu0 %v14880_v14  ;;  %v3562_v38 = vadd.f32 %v3561_v61, %v3433_v42  ;;  %v9455_v5 = vld [vmem:[%s10219_s3 + $0x4a4] sm:$0xf]  ;;  %v8872_v55 = vld [vmem:[%s10219_s3 + $0x4b0] sm:$0xf0]  ;;  %v663_v14 = vld [vmem:[%s10236_s10 + $0x500] sm:$0xff]  ;;  %4615 = vmatpush.bf16.msrb.mxu2 %v9131_v0 }
 0x47f   : > { %4254 = vmatmul.bf16.gmra.mxu3 %v14883_v44  ;;  %v8875_v36 = vor.u32 %v9455_v5, %v8872_v55 }
 0x480   : > { %v7091_v31 = vadd.f32 %v3817_v37, %v659_v33  ;;  %4125 = vmatmul.bf16.gmra.mxu2 %v14882_v57  ;;  %v9256_v57 = vld [vmem:[%s10219_s3 + $0x7b0] sm:$0xf0] }
 0x481   : > { %v9259_v61 = vor.u32 %v9551_v17, %v9256_v57  ;;  %4357 = vmatpush.bf16.msrb.mxu0 %v8875_v36  ;;  %v14885_v17 = vld [vmem:[#allocation148_spill] sm:$0xff]  ;;  %v14886_v36 = vld [vmem:[#allocation41_spill] sm:$0xff] }
 0x482   : > { %7283 = vst [vmem:[%s10236_s10 + $0x4e0] sm:$0xff] %v7091_v31  ;;  %v3819_v33 = vpop.f32.mrf.mxu3  ;;  %v3563_v12 = vpop.f32.mrf.mxu1  ;;  %v14884_v31 = vld [vmem:[#allocation147_spill] sm:$0xff] }
 0x483   : > { %v3690_v9 = vpop.f32.mrf.mxu2  ;;  %v3434_v37 = vpop.f32.mrf.mxu0  ;;  %4744 = vmatpush.bf16.msrb.mxu3 %v9259_v61 }
 0x484   : > { %v3691_v59 = vadd.f32 %v3690_v9, %v3562_v38  ;;  %v3435_v44 = vadd.f32 %v3434_v37, %v14884_v31  ;;  %v9487_v38 = vld [vmem:[%s10219_s3 + $0x5a4] sm:$0xf]  ;;  %v9000_v9 = vld [vmem:[%s10219_s3 + $0x5b0] sm:$0xf0]  ;;  %v671_v31 = vld [vmem:[%s10236_s10 + $0x540] sm:$0xff] }
 0x485   : > { %v9003_v19 = vor.u32 %v9487_v38, %v9000_v9 }
 0x486   : > { %v3820_v42 = vadd.f32 %v3819_v33, %v3691_v59  ;;  %v3564_v11 = vadd.f32 %v3563_v12, %v3435_v44  ;;  %v14887_v12 = vld [vmem:[#allocation42_spill] sm:$0xff]  ;;  %v14888_v44 = vld [vmem:[#allocation43_spill] sm:$0xff]  ;;  %v14889_v33 = vld [vmem:[#allocation44_spill] sm:$0xff] }
 0x487   : > { %4486 = vmatpush.bf16.msrb.mxu1 %v9003_v19 }
 0x488   : > { %v7095_v35 = vadd.f32 %v3820_v42, %v663_v14 }
 0x48a   : > { %7287 = vst [vmem:[%s10236_s10 + $0x500] sm:$0xff] %v7095_v35  ;;  %v3821_v55 = vpop.f32.mrf.mxu3  ;;  %v3566_v0 = vpop.f32.mrf.mxu1 }
 0x48b   : > { %v3692_v32 = vpop.f32.mrf.mxu2  ;;  %v3437_v56 = vpop.f32.mrf.mxu0 }
 0x48c   : > { %v3693_v5 = vadd.f32 %v3692_v32, %v3564_v11  ;;  %v3438_v59 = vadd.f32 %v3437_v56, %v14885_v17  ;;  %v14890_v11 = vld [vmem:[#allocation153_spill] sm:$0xff] }
 0x48d   : > { %4001 = vmatmul.bf16.gmra.mxu1 %v14887_v12 }
 0x48e   : > { %v3822_v57 = vadd.f32 %v3821_v55, %v3693_v5  ;;  %3872 = vmatmul.bf16.gmra.mxu0 %v14886_v36  ;;  %v3567_v32 = vadd.f32 %v3566_v0, %v3438_v59  ;;  %v675_v0 = vld [vmem:[%s10236_s10 + $0x560] sm:$0xff] }
 0x48f   : > { %4259 = vmatmul.bf16.gmra.mxu3 %v14889_v33  ;;  %v14892_v33 = vld [vmem:[#allocation45_spill] sm:$0xff] }
 0x490   : > { %v7099_v14 = vadd.f32 %v3822_v57, %v667_v20  ;;  %4130 = vmatmul.bf16.gmra.mxu2 %v14888_v44 }
 0x492   : > { %7291 = vst [vmem:[%s10236_s10 + $0x520] sm:$0xff] %v7099_v14  ;;  %v3824_v42 = vpop.f32.mrf.mxu3  ;;  %v3568_v35 = vpop.f32.mrf.mxu1 }
 0x493   : > { %v3695_v37 = vpop.f32.mrf.mxu2  ;;  %v3439_v19 = vpop.f32.mrf.mxu0 }
 0x494   : > { %v3696_v61 = vadd.f32 %v3695_v37, %v3567_v32  ;;  %v3440_v38 = vadd.f32 %v3439_v19, %v14890_v11  ;;  %v14891_v32 = vld [vmem:[#allocation154_spill] sm:$0xff]  ;;  %v14894_v19 = vld [vmem:[#allocation47_spill] sm:$0xff] }
 0x496   : > { %v3825_v56 = vadd.f32 %v3824_v42, %v3696_v61  ;;  %v3569_v20 = vadd.f32 %v3568_v35, %v3440_v38  ;;  %v14893_v42 = vld [vmem:[#allocation46_spill] sm:$0xff] }
 0x498   : > { %v7103_v9 = vadd.f32 %v3825_v56, %v671_v31  ;;  %v14895_v31 = vld [vmem:[#allocation48_spill] sm:$0xff] }
 0x49a   : > { %7295 = vst [vmem:[%s10236_s10 + $0x540] sm:$0xff] %v7103_v9  ;;  %v3826_v57 = vpop.f32.mrf.mxu3  ;;  %v3571_v59 = vpop.f32.mrf.mxu1 }
 0x49b   : > { %v3697_v5 = vpop.f32.mrf.mxu2  ;;  %v3442_v17 = vpop.f32.mrf.mxu0 }
 0x49c   : > { %v3698_v55 = vadd.f32 %v3697_v5, %v3569_v20  ;;  %v3443_v37 = vadd.f32 %v3442_v17, %v14891_v32  ;;  %v679_v20 = vld [vmem:[%s10236_s10 + $0x580] sm:$0xff] }
 0x49d   : > { %4006 = vmatmul.bf16.gmra.mxu1 %v14893_v42 }
 0x49e   : > { %v3827_v14 = vadd.f32 %v3826_v57, %v3698_v55  ;;  %3877 = vmatmul.bf16.gmra.mxu0 %v14892_v33  ;;  %v3572_v35 = vadd.f32 %v3571_v59, %v3443_v37  ;;  %v14896_v57 = vld [vmem:[#allocation159_spill] sm:$0xff] }
 0x49f   : > { %4264 = vmatmul.bf16.gmra.mxu3 %v14895_v31 }
 0x4a0   : > { %v7107_v61 = vadd.f32 %v3827_v14, %v675_v0  ;;  %4135 = vmatmul.bf16.gmra.mxu2 %v14894_v19  ;;  %v14897_v19 = vld [vmem:[#allocation160_spill] sm:$0xff] }
 0x4a2   : > { %7299 = vst [vmem:[%s10236_s10 + $0x560] sm:$0xff] %v7107_v61  ;;  %v3829_v38 = vpop.f32.mrf.mxu3  ;;  %v3573_v5 = vpop.f32.mrf.mxu1 }
 0x4a3   : > { %v3700_v56 = vpop.f32.mrf.mxu2  ;;  %v3444_v9 = vpop.f32.mrf.mxu0 }
 0x4a4   : > { %v3701_v11 = vadd.f32 %v3700_v56, %v3572_v35  ;;  %v3445_v17 = vadd.f32 %v3444_v9, %v14896_v57  ;;  %v683_v35 = vld [vmem:[%s10236_s10 + $0x5a0] sm:$0xff]  ;;  %v9515_v57 = vld [vmem:[%s10219_s3 + $0x684] sm:$0xf] }
 0x4a6   : > { %v3830_v55 = vadd.f32 %v3829_v38, %v3701_v11  ;;  %v3574_v0 = vadd.f32 %v3573_v5, %v3445_v17  ;;  %v14898_v38 = vld [vmem:[#allocation49_spill] sm:$0xff]  ;;  %v14900_v5 = vld [vmem:[#allocation51_spill] sm:$0xff]  ;;  %v9112_v17 = vld [vmem:[%s10219_s3 + $0x690] sm:$0xf0] }
 0x4a8   : > { %v7111_v32 = vadd.f32 %v3830_v55, %v679_v20  ;;  %v14899_v20 = vld [vmem:[#allocation50_spill] sm:$0xff]  ;;  %v14901_v55 = vld [vmem:[#allocation52_spill] sm:$0xff] }
 0x4aa   : > { %7303 = vst [vmem:[%s10236_s10 + $0x580] sm:$0xff] %v7111_v32  ;;  %v3831_v59 = vpop.f32.mrf.mxu3  ;;  %v3576_v56 = vpop.f32.mrf.mxu1  ;;  %v9451_v32 = vld [vmem:[%s10219_s3 + $0x484] sm:$0xf] }
 0x4ab   : > { %v3702_v14 = vpop.f32.mrf.mxu2  ;;  %v3447_v37 = vpop.f32.mrf.mxu0 }
 0x4ac   : > { %v3703_v61 = vadd.f32 %v3702_v14, %v3574_v0  ;;  %v3448_v11 = vadd.f32 %v3447_v37, %v14897_v19  ;;  %v9115_v14 = vor.u32 %v9515_v57, %v9112_v17  ;;  %v9547_v19 = vld [vmem:[%s10219_s3 + $0x784] sm:$0xf]  ;;  %v8984_v57 = vld [vmem:[%s10219_s3 + $0x590] sm:$0xf0] }
 0x4ad   : > { %4011 = vmatmul.bf16.gmra.mxu1 %v14899_v20 }
 0x4ae   : > { %v3832_v31 = vadd.f32 %v3831_v59, %v3703_v61  ;;  %3882 = vmatmul.bf16.gmra.mxu0 %v14898_v38  ;;  %v3577_v0 = vadd.f32 %v3576_v56, %v3448_v11  ;;  %v8856_v61 = vld [vmem:[%s10219_s3 + $0x490] sm:$0xf0]  ;;  %4616 = vmatpush.bf16.msrb.mxu2 %v9115_v14  ;;  %v687_v38 = vld [vmem:[%s10236_s10 + $0x5c0] sm:$0xff]  ;;  %v9483_v11 = vld [vmem:[%s10219_s3 + $0x584] sm:$0xf] }
 0x4af   : > { %4269 = vmatmul.bf16.gmra.mxu3 %v14901_v55  ;;  %v8859_v37 = vor.u32 %v9451_v32, %v8856_v61  ;;  %v8987_v17 = vor.u32 %v9483_v11, %v8984_v57 }
 0x4b0   : > { %v7115_v9 = vadd.f32 %v3832_v31, %v683_v35  ;;  %4140 = vmatmul.bf16.gmra.mxu2 %v14900_v5  ;;  %v9240_v31 = vld [vmem:[%s10219_s3 + $0x790] sm:$0xf0] }
 0x4b1   : > { %v9243_v55 = vor.u32 %v9547_v19, %v9240_v31  ;;  %4358 = vmatpush.bf16.msrb.mxu0 %v8859_v37  ;;  %4487 = vmatpush.bf16.msrb.mxu1 %v8987_v17 }
 0x4b2   : > { %7307 = vst [vmem:[%s10236_s10 + $0x5a0] sm:$0xff] %v7115_v9  ;;  %v3834_v20 = vpop.f32.mrf.mxu3  ;;  %v3578_v42 = vpop.f32.mrf.mxu1 }
 0x4b3   : > { %v3705_v59 = vpop.f32.mrf.mxu2  ;;  %v3449_v5 = vpop.f32.mrf.mxu0  ;;  %4745 = vmatpush.bf16.msrb.mxu3 %v9243_v55  ;;  %v14904_v55 = vld [vmem:[#allocation55_spill] sm:$0xff] }
 0x4b4   : > { %v3706_v35 = vadd.f32 %v3705_v59, %v3577_v0  ;;  %v3450_v56 = vadd.f32 %v3449_v5, %v11533_v39  ;;  %v691_v59 = vld [vmem:[%s10236_s10 + $0x5e0] sm:$0xff]  ;;  %v14903_v5 = vld [vmem:[#allocation54_spill] sm:$0xff] }
 0x4b6   : > { %v3835_v9 = vadd.f32 %v3834_v20, %v3706_v35  ;;  %v3579_v32 = vadd.f32 %v3578_v42, %v3450_v56  ;;  %v14902_v20 = vld [vmem:[#allocation53_spill] sm:$0xff] }
 0x4b8   : > { %v7119_v33 = vadd.f32 %v3835_v9, %v687_v38  ;;  %v14905_v38 = vld [vmem:[#allocation56_spill] sm:$0xff] }
 0x4ba   : > { %7311 = vst [vmem:[%s10236_s10 + $0x5c0] sm:$0xff] %v7119_v33  ;;  %v3836_v14 = vpop.f32.mrf.mxu3  ;;  %v3977_v31 = vpop.f32.mrf.mxu1 }
 0x4bb   : > { %v3707_v0 = vpop.f32.mrf.mxu2  ;;  %v3848_v19 = vpop.f32.mrf.mxu0 }
 0x4bc   : > { %v3708_v61 = vadd.f32 %v3707_v0, %v3579_v32  ;;  %v3978_v37 = vadd.f32 %v3977_v31, %v3848_v19  ;;  %v14907_v31 = vld [vmem:[#allocation58_spill] sm:$0xff] }
 0x4bd   : > { %4016 = vmatmul.bf16.gmra.mxu1 %v14903_v5 }
 0x4be   : > { %v3837_v44 = vadd.f32 %v3836_v14, %v3708_v61  ;;  %3887 = vmatmul.bf16.gmra.mxu0 %v14902_v20  ;;  %v9479_v20 = vld [vmem:[%s10219_s3 + $0x564] sm:$0xf] }
 0x4bf   : > { %4274 = vmatmul.bf16.gmra.mxu3 %v14905_v38 }
 0x4c0   : > { %v7123_v39 = vadd.f32 %v3837_v44, %v691_v59  ;;  %4145 = vmatmul.bf16.gmra.mxu2 %v14904_v55  ;;  %v14906_v59 = vld [vmem:[#allocation57_spill] sm:$0xff]  ;;  %v9224_v55 = vld [vmem:[%s10219_s3 + $0x770] sm:$0xf0] }
 0x4c2   : > { %7315 = vst [vmem:[%s10236_s10 + $0x5e0] sm:$0xff] %v7123_v39  ;;  %v4235_v35 = vpop.f32.mrf.mxu3  ;;  %v3979_v56 = vpop.f32.mrf.mxu1  ;;  %v14908_v39 = vld [vmem:[#allocation59_spill] sm:$0xff] }
 0x4c3   : > { %v4106_v33 = vpop.f32.mrf.mxu2  ;;  %v3850_v9 = vpop.f32.mrf.mxu0 }
 0x4c4   : > { %v4107_v42 = vadd.f32 %v4106_v33, %v3978_v37  ;;  %v3980_v57 = vadd.f32 %v3979_v56, %v3850_v9  ;;  %v14909_v37 = vld [vmem:[#allocation60_spill] sm:$0xff] }
 0x4c6   : > { %v12083_v11 = vadd.f32 %v4235_v35, %v4107_v42 }
 0x4ca   : > { %v4237_v0 = vpop.f32.mrf.mxu3  ;;  %v3982_v44 = vpop.f32.mrf.mxu1 }
 0x4cb   : > { %v4108_v17 = vpop.f32.mrf.mxu2  ;;  %v3853_v61 = vpop.f32.mrf.mxu0 }
 0x4cc   : > { %v4109_v32 = vadd.f32 %v4108_v17, %v3980_v57  ;;  %v3983_v19 = vadd.f32 %v3982_v44, %v3853_v61 }
 0x4cd   : > { %4021 = vmatmul.bf16.gmra.mxu1 %v14907_v31  ;;  %v14911_v31 = vld [vmem:[#allocation62_spill] sm:$0xff] }
 0x4ce   : > { %v12085_v14 = vadd.f32 %v4237_v0, %v4109_v32  ;;  %3892 = vmatmul.bf16.gmra.mxu0 %v14906_v59  ;;  %v14912_v59 = vld [vmem:[#allocation63_spill] sm:$0xff] }
 0x4cf   : > { %4279 = vmatmul.bf16.gmra.mxu3 %v14909_v37 }
 0x4d0   : > { %4150 = vmatmul.bf16.gmra.mxu2 %v14908_v39 }
 0x4d2   : > { %v4240_v35 = vpop.f32.mrf.mxu3  ;;  %v3984_v56 = vpop.f32.mrf.mxu1 }
 0x4d3   : > { %v4111_v33 = vpop.f32.mrf.mxu2  ;;  %v3855_v9 = vpop.f32.mrf.mxu0 }
 0x4d4   : > { %v4112_v42 = vadd.f32 %v4111_v33, %v3983_v19  ;;  %v3985_v17 = vadd.f32 %v3984_v56, %v3855_v9  ;;  %v14910_v33 = vld [vmem:[#allocation61_spill] sm:$0xff]  ;;  %v9096_v9 = vld [vmem:[%s10219_s3 + $0x670] sm:$0xf0]  ;;  %v9447_v56 = vld [vmem:[%s10219_s3 + $0x464] sm:$0xf] }
 0x4d6   : > { %v12091_v57 = vadd.f32 %v4240_v35, %v4112_v42  ;;  %v14913_v42 = vld [vmem:[#allocation64_spill] sm:$0xff] }
 0x4d7   : > { %v9511_v35 = vld [vmem:[%s10219_s3 + $0x664] sm:$0xf] }
 0x4d8   : > { %v9099_v38 = vor.u32 %v9511_v35, %v9096_v9  ;;  %v8968_v35 = vld [vmem:[%s10219_s3 + $0x570] sm:$0xf0] }
 0x4d9   : > { %v8971_v9 = vor.u32 %v9479_v20, %v8968_v35 }
 0x4da   : > { %v4242_v61 = vpop.f32.mrf.mxu3  ;;  %v3987_v39 = vpop.f32.mrf.mxu1  ;;  %4617 = vmatpush.bf16.msrb.mxu2 %v9099_v38  ;;  %v14915_v38 = vld [vmem:[#allocation66_spill] sm:$0xff] }
 0x4db   : > { %v4113_v32 = vpop.f32.mrf.mxu2  ;;  %v3858_v44 = vpop.f32.mrf.mxu0  ;;  %4488 = vmatpush.bf16.msrb.mxu1 %v8971_v9 }
 0x4dc   : > { %v4114_v0 = vadd.f32 %v4113_v32, %v3985_v17  ;;  %v3988_v19 = vadd.f32 %v3987_v39, %v3858_v44  ;;  %v8840_v17 = vld [vmem:[%s10219_s3 + $0x470] sm:$0xf0]  ;;  %v9543_v32 = vld [vmem:[%s10219_s3 + $0x764] sm:$0xf] }
 0x4dd   : > { %4026 = vmatmul.bf16.gmra.mxu1 %v14911_v31  ;;  %v9227_v39 = vor.u32 %v9543_v32, %v9224_v55  ;;  %v14916_v32 = vld [vmem:[#allocation67_spill] sm:$0xff] }
 0x4de   : > { %v12093_v37 = vadd.f32 %v4242_v61, %v4114_v0  ;;  %3897 = vmatmul.bf16.gmra.mxu0 %v14910_v33  ;;  %v8843_v61 = vor.u32 %v9447_v56, %v8840_v17  ;;  %v14914_v17 = vld [vmem:[#allocation65_spill] sm:$0xff] }
 0x4df   : > { %4284 = vmatmul.bf16.gmra.mxu3 %v14913_v42 }
 0x4e0   : > { %4155 = vmatmul.bf16.gmra.mxu2 %v14912_v59  ;;  %4359 = vmatpush.bf16.msrb.mxu0 %v8843_v61 }
 0x4e1   : > { %4746 = vmatpush.bf16.msrb.mxu3 %v9227_v39 }
 0x4e2   : > { %v4245_v33 = vpop.f32.mrf.mxu3  ;;  %v3989_v31 = vpop.f32.mrf.mxu1 }
 0x4e3   : > { %v4116_v0 = vpop.f32.mrf.mxu2  ;;  %v3860_v5 = vpop.f32.mrf.mxu0 }
 0x4e4   : > { %v4117_v44 = vadd.f32 %v4116_v0, %v3988_v19  ;;  %v3990_v59 = vadd.f32 %v3989_v31, %v3860_v5 }
 0x4e6   : > { %v12105_v42 = vadd.f32 %v4245_v33, %v4117_v44  ;;  %v14917_v33 = vld [vmem:[#allocation68_spill] sm:$0xff] }
 0x4ea   : > { %v4247_v25 = vpop.f32.mrf.mxu3  ;;  %v3992_v56 = vpop.f32.mrf.mxu1 }
 0x4eb   : > { %v4118_v12 = vpop.f32.mrf.mxu2  ;;  %v3863_v58 = vpop.f32.mrf.mxu0 }
 0x4ec   : > { %v4119_v36 = vadd.f32 %v4118_v12, %v3990_v59  ;;  %v3993_v19 = vadd.f32 %v3992_v56, %v3863_v58  ;;  %v14918_v56 = vld [vmem:[#allocation69_spill] sm:$0xff] }
 0x4ed   : > { %4031 = vmatmul.bf16.gmra.mxu1 %v14915_v38 }
 0x4ee   : > { %v12109_v55 = vadd.f32 %v4247_v25, %v4119_v36  ;;  %3902 = vmatmul.bf16.gmra.mxu0 %v14914_v17  ;;  %v9208_v17 = vld [vmem:[%s10219_s3 + $0x750] sm:$0xf0] }
 0x4ef   : > { %4289 = vmatmul.bf16.gmra.mxu3 %v14917_v33  ;;  %v14920_v33 = vld [vmem:[#allocation71_spill] sm:$0xff] }
 0x4f0   : > { %4160 = vmatmul.bf16.gmra.mxu2 %v14916_v32  ;;  %v14919_v32 = vld [vmem:[#allocation70_spill] sm:$0xff] }
 0x4f2   : > { %v4250_v20 = vpop.f32.mrf.mxu3  ;;  %v3994_v61 = vpop.f32.mrf.mxu1 }
 0x4f3   : > { %v4121_v5 = vpop.f32.mrf.mxu2  ;;  %v3865_v0 = vpop.f32.mrf.mxu0 }
 0x4f4   : > { %v4122_v31 = vadd.f32 %v4121_v5, %v3993_v19  ;;  %v3995_v59 = vadd.f32 %v3994_v61, %v3865_v0  ;;  %v14921_v19 = vld [vmem:[#allocation72_spill] sm:$0xff] }
 0x4f6   : > { %v12115_v12 = vadd.f32 %v4250_v20, %v4122_v31 }
 0x4fa   : > { %v4252_v36 = vpop.f32.mrf.mxu3  ;;  %v3997_v44 = vpop.f32.mrf.mxu1 }
 0x4fb   : > { %v4123_v39 = vpop.f32.mrf.mxu2  ;;  %v3868_v58 = vpop.f32.mrf.mxu0 }
 0x4fc   : > { %v4124_v25 = vadd.f32 %v4123_v39, %v3995_v59  ;;  %v3998_v9 = vadd.f32 %v3997_v44, %v3868_v58 }
 0x4fd   : > { %4036 = vmatmul.bf16.gmra.mxu1 %v14919_v32  ;;  %v14923_v32 = vld [vmem:[#allocation74_spill] sm:$0xff] }
 0x4fe   : > { %v12117_v35 = vadd.f32 %v4252_v36, %v4124_v25  ;;  %3907 = vmatmul.bf16.gmra.mxu0 %v14918_v56  ;;  %v14924_v56 = vld [vmem:[#allocation75_spill] sm:$0xff] }
 0x4ff   : > { %4294 = vmatmul.bf16.gmra.mxu3 %v14921_v19 }
 0x500   : > { %4165 = vmatmul.bf16.gmra.mxu2 %v14920_v33 }
 0x502   : > { %v4255_v20 = vpop.f32.mrf.mxu3  ;;  %v3999_v61 = vpop.f32.mrf.mxu1 }
 0x503   : > { %v4126_v5 = vpop.f32.mrf.mxu2  ;;  %v3870_v0 = vpop.f32.mrf.mxu0 }
 0x504   : > { %v4127_v31 = vadd.f32 %v4126_v5, %v3998_v9  ;;  %v4000_v39 = vadd.f32 %v3999_v61, %v3870_v0  ;;  %v14922_v5 = vld [vmem:[#allocation73_spill] sm:$0xff]  ;;  %v9080_v0 = vld [vmem:[%s10219_s3 + $0x650] sm:$0xf0]  ;;  %v9443_v61 = vld [vmem:[%s10219_s3 + $0x444] sm:$0xf] }
 0x506   : > { %v12123_v59 = vadd.f32 %v4255_v20, %v4127_v31  ;;  %v14925_v31 = vld [vmem:[#allocation76_spill] sm:$0xff] }
 0x507   : > { %v9507_v20 = vld [vmem:[%s10219_s3 + $0x644] sm:$0xf] }
 0x508   : > { %v9083_v38 = vor.u32 %v9507_v20, %v9080_v0  ;;  %v8952_v20 = vld [vmem:[%s10219_s3 + $0x550] sm:$0xf0] }
 0x509   : > { %v8955_v0 = vor.u32 %v9475_v1, %v8952_v20 }
 0x50a   : > { %v4257_v58 = vpop.f32.mrf.mxu3  ;;  %v4002_v33 = vpop.f32.mrf.mxu1  ;;  %4618 = vmatpush.bf16.msrb.mxu2 %v9083_v38  ;;  %v14927_v38 = vld [vmem:[#allocation78_spill] sm:$0xff] }
 0x50b   : > { %v4128_v25 = vpop.f32.mrf.mxu2  ;;  %v3873_v44 = vpop.f32.mrf.mxu0  ;;  %4489 = vmatpush.bf16.msrb.mxu1 %v8955_v0 }
 0x50c   : > { %v4129_v36 = vadd.f32 %v4128_v25, %v4000_v39  ;;  %v4003_v9 = vadd.f32 %v4002_v33, %v3873_v44  ;;  %v8824_v39 = vld [vmem:[%s10219_s3 + $0x450] sm:$0xf0]  ;;  %v9539_v25 = vld [vmem:[%s10219_s3 + $0x744] sm:$0xf] }
 0x50d   : > { %4041 = vmatmul.bf16.gmra.mxu1 %v14923_v32  ;;  %v9211_v33 = vor.u32 %v9539_v25, %v9208_v17  ;;  %v14928_v25 = vld [vmem:[#allocation79_spill] sm:$0xff] }
 0x50e   : > { %v12125_v19 = vadd.f32 %v4257_v58, %v4129_v36  ;;  %3912 = vmatmul.bf16.gmra.mxu0 %v14922_v5  ;;  %v8827_v58 = vor.u32 %v9443_v61, %v8824_v39  ;;  %v14926_v39 = vld [vmem:[#allocation77_spill] sm:$0xff] }
 0x50f   : > { %4299 = vmatmul.bf16.gmra.mxu3 %v14925_v31 }
 0x510   : > { %4170 = vmatmul.bf16.gmra.mxu2 %v14924_v56  ;;  %4360 = vmatpush.bf16.msrb.mxu0 %v8827_v58 }
 0x511   : > { %4747 = vmatpush.bf16.msrb.mxu3 %v9211_v33 }
 0x512   : > { %v4260_v5 = vpop.f32.mrf.mxu3  ;;  %v4004_v32 = vpop.f32.mrf.mxu1 }
 0x513   : > { %v4131_v36 = vpop.f32.mrf.mxu2  ;;  %v3875_v2 = vpop.f32.mrf.mxu0 }
 0x514   : > { %v4132_v44 = vadd.f32 %v4131_v36, %v4003_v9  ;;  %v4005_v56 = vadd.f32 %v4004_v32, %v3875_v2 }
 0x516   : > { %v12137_v31 = vadd.f32 %v4260_v5, %v4132_v44  ;;  %v14929_v5 = vld [vmem:[#allocation80_spill] sm:$0xff] }
 0x51a   : > { %v4262_v52 = vpop.f32.mrf.mxu3  ;;  %v4007_v61 = vpop.f32.mrf.mxu1 }
 0x51b   : > { %v4133_v54 = vpop.f32.mrf.mxu2  ;;  %v3878_v48 = vpop.f32.mrf.mxu0 }
 0x51c   : > { %v4134_v53 = vadd.f32 %v4133_v54, %v4005_v56  ;;  %v4008_v9 = vadd.f32 %v4007_v61, %v3878_v48  ;;  %v14930_v61 = vld [vmem:[#allocation81_spill] sm:$0xff] }
 0x51d   : > { %4046 = vmatmul.bf16.gmra.mxu1 %v14927_v38 }
 0x51e   : > { %v12141_v17 = vadd.f32 %v4262_v52, %v4134_v53  ;;  %3917 = vmatmul.bf16.gmra.mxu0 %v14926_v39  ;;  %v9192_v39 = vld [vmem:[%s10219_s3 + $0x730] sm:$0xf0] }
 0x51f   : > { %4304 = vmatmul.bf16.gmra.mxu3 %v14929_v5  ;;  %v14932_v5 = vld [vmem:[#allocation83_spill] sm:$0xff] }
 0x520   : > { %4175 = vmatmul.bf16.gmra.mxu2 %v14928_v25  ;;  %v14931_v25 = vld [vmem:[#allocation82_spill] sm:$0xff] }
 0x522   : > { %v4265_v1 = vpop.f32.mrf.mxu3  ;;  %v4009_v58 = vpop.f32.mrf.mxu1 }
 0x523   : > { %v4136_v2 = vpop.f32.mrf.mxu2  ;;  %v3880_v36 = vpop.f32.mrf.mxu0 }
 0x524   : > { %v4137_v32 = vadd.f32 %v4136_v2, %v4008_v9  ;;  %v4010_v56 = vadd.f32 %v4009_v58, %v3880_v36  ;;  %v14933_v9 = vld [vmem:[#allocation84_spill] sm:$0xff] }
 0x526   : > { %v12147_v54 = vadd.f32 %v4265_v1, %v4137_v32 }
 0x52a   : > { %v4267_v53 = vpop.f32.mrf.mxu3  ;;  %v4012_v44 = vpop.f32.mrf.mxu1 }
 0x52b   : > { %v4138_v33 = vpop.f32.mrf.mxu2  ;;  %v3883_v48 = vpop.f32.mrf.mxu0 }
 0x52c   : > { %v4139_v52 = vadd.f32 %v4138_v33, %v4010_v56  ;;  %v4013_v0 = vadd.f32 %v4012_v44, %v3883_v48 }
 0x52d   : > { %4051 = vmatmul.bf16.gmra.mxu1 %v14931_v25  ;;  %v14935_v25 = vld [vmem:[#allocation86_spill] sm:$0xff] }
 0x52e   : > { %v12149_v20 = vadd.f32 %v4267_v53, %v4139_v52  ;;  %3922 = vmatmul.bf16.gmra.mxu0 %v14930_v61  ;;  %v14936_v61 = vld [vmem:[#allocation87_spill] sm:$0xff] }
 0x52f   : > { %4309 = vmatmul.bf16.gmra.mxu3 %v14933_v9 }
 0x530   : > { %4180 = vmatmul.bf16.gmra.mxu2 %v14932_v5 }
 0x532   : > { %v4270_v1 = vpop.f32.mrf.mxu3  ;;  %v4014_v58 = vpop.f32.mrf.mxu1 }
 0x533   : > { %v4141_v2 = vpop.f32.mrf.mxu2  ;;  %v3885_v36 = vpop.f32.mrf.mxu0 }
 0x534   : > { %v4142_v32 = vadd.f32 %v4141_v2, %v4013_v0  ;;  %v4015_v33 = vadd.f32 %v4014_v58, %v3885_v36  ;;  %v14934_v2 = vld [vmem:[#allocation85_spill] sm:$0xff]  ;;  %v9064_v36 = vld [vmem:[%s10219_s3 + $0x630] sm:$0xf0]  ;;  %v9439_v58 = vld [vmem:[%s10219_s3 + $0x424] sm:$0xf] }
 0x536   : > { %v12155_v56 = vadd.f32 %v4270_v1, %v4142_v32  ;;  %v14937_v32 = vld [vmem:[#allocation88_spill] sm:$0xff] }
 0x537   : > { %v9503_v1 = vld [vmem:[%s10219_s3 + $0x624] sm:$0xf] }
 0x538   : > { %v9067_v38 = vor.u32 %v9503_v1, %v9064_v36  ;;  %v8936_v1 = vld [vmem:[%s10219_s3 + $0x530] sm:$0xf0] }
 0x539   : > { %v8939_v36 = vor.u32 %v9471_v45, %v8936_v1 }
 0x53a   : > { %v4272_v48 = vpop.f32.mrf.mxu3  ;;  %v4017_v5 = vpop.f32.mrf.mxu1  ;;  %4619 = vmatpush.bf16.msrb.mxu2 %v9067_v38  ;;  %v14939_v38 = vld [vmem:[#allocation90_spill] sm:$0xff] }
 0x53b   : > { %v4143_v52 = vpop.f32.mrf.mxu2  ;;  %v3888_v44 = vpop.f32.mrf.mxu0  ;;  %4490 = vmatpush.bf16.msrb.mxu1 %v8939_v36 }
 0x53c   : > { %v4144_v53 = vadd.f32 %v4143_v52, %v4015_v33  ;;  %v4018_v0 = vadd.f32 %v4017_v5, %v3888_v44  ;;  %v8808_v33 = vld [vmem:[%s10219_s3 + $0x430] sm:$0xf0]  ;;  %v9535_v52 = vld [vmem:[%s10219_s3 + $0x724] sm:$0xf] }
 0x53d   : > { %4056 = vmatmul.bf16.gmra.mxu1 %v14935_v25  ;;  %v9195_v5 = vor.u32 %v9535_v52, %v9192_v39  ;;  %v14940_v52 = vld [vmem:[#allocation91_spill] sm:$0xff] }
 0x53e   : > { %v12157_v9 = vadd.f32 %v4272_v48, %v4144_v53  ;;  %3927 = vmatmul.bf16.gmra.mxu0 %v14934_v2  ;;  %v8811_v48 = vor.u32 %v9439_v58, %v8808_v33  ;;  %v14938_v33 = vld [vmem:[#allocation89_spill] sm:$0xff] }
 0x53f   : > { %4314 = vmatmul.bf16.gmra.mxu3 %v14937_v32 }
 0x540   : > { %4185 = vmatmul.bf16.gmra.mxu2 %v14936_v61  ;;  %4361 = vmatpush.bf16.msrb.mxu0 %v8811_v48 }
 0x541   : > { %4748 = vmatpush.bf16.msrb.mxu3 %v9195_v5 }
 0x542   : > { %v4275_v2 = vpop.f32.mrf.mxu3  ;;  %v4019_v25 = vpop.f32.mrf.mxu1 }
 0x543   : > { %v4146_v53 = vpop.f32.mrf.mxu2  ;;  %v3890_v29 = vpop.f32.mrf.mxu0 }
 0x544   : > { %v4147_v44 = vadd.f32 %v4146_v53, %v4018_v0  ;;  %v4020_v61 = vadd.f32 %v4019_v25, %v3890_v29 }
 0x546   : > { %v12169_v32 = vadd.f32 %v4275_v2, %v4147_v44  ;;  %v14941_v2 = vld [vmem:[#allocation92_spill] sm:$0xff] }
 0x54a   : > { %v4277_v23 = vpop.f32.mrf.mxu3  ;;  %v4022_v58 = vpop.f32.mrf.mxu1 }
 0x54b   : > { %v4148_v28 = vpop.f32.mrf.mxu2  ;;  %v3893_v13 = vpop.f32.mrf.mxu0 }
 0x54c   : > { %v4149_v34 = vadd.f32 %v4148_v28, %v4020_v61  ;;  %v4023_v0 = vadd.f32 %v4022_v58, %v3893_v13  ;;  %v14942_v58 = vld [vmem:[#allocation93_spill] sm:$0xff] }
 0x54d   : > { %4061 = vmatmul.bf16.gmra.mxu1 %v14939_v38 }
 0x54e   : > { %v12173_v39 = vadd.f32 %v4277_v23, %v4149_v34  ;;  %3932 = vmatmul.bf16.gmra.mxu0 %v14938_v33  ;;  %v9176_v33 = vld [vmem:[%s10219_s3 + $0x710] sm:$0xf0] }
 0x54f   : > { %4319 = vmatmul.bf16.gmra.mxu3 %v14941_v2  ;;  %v14944_v2 = vld [vmem:[#allocation95_spill] sm:$0xff] }
 0x550   : > { %4190 = vmatmul.bf16.gmra.mxu2 %v14940_v52  ;;  %v14943_v52 = vld [vmem:[#allocation94_spill] sm:$0xff] }
 0x552   : > { %v4280_v45 = vpop.f32.mrf.mxu3  ;;  %v4024_v48 = vpop.f32.mrf.mxu1 }
 0x553   : > { %v4151_v29 = vpop.f32.mrf.mxu2  ;;  %v3895_v53 = vpop.f32.mrf.mxu0 }
 0x554   : > { %v4152_v25 = vadd.f32 %v4151_v29, %v4023_v0  ;;  %v4025_v61 = vadd.f32 %v4024_v48, %v3895_v53  ;;  %v14945_v0 = vld [vmem:[#allocation96_spill] sm:$0xff] }
 0x556   : > { %v12179_v28 = vadd.f32 %v4280_v45, %v4152_v25 }
 0x55a   : > { %v4282_v34 = vpop.f32.mrf.mxu3  ;;  %v4027_v44 = vpop.f32.mrf.mxu1 }
 0x55b   : > { %v4153_v5 = vpop.f32.mrf.mxu2  ;;  %v3898_v13 = vpop.f32.mrf.mxu0 }
 0x55c   : > { %v4154_v23 = vadd.f32 %v4153_v5, %v4025_v61  ;;  %v4028_v36 = vadd.f32 %v4027_v44, %v3898_v13 }
 0x55d   : > { %4066 = vmatmul.bf16.gmra.mxu1 %v14943_v52  ;;  %v14948_v52 = vld [vmem:[#allocation98_spill] sm:$0xff] }
 0x55e   : > { %v12181_v1 = vadd.f32 %v4282_v34, %v4154_v23  ;;  %3937 = vmatmul.bf16.gmra.mxu0 %v14942_v58  ;;  %v14949_v58 = vld [vmem:[#allocation99_spill] sm:$0xff] }
 0x55f   : > { %4324 = vmatmul.bf16.gmra.mxu3 %v14945_v0 }
 0x560   : > { %4195 = vmatmul.bf16.gmra.mxu2 %v14944_v2 }
 0x562   : > { %v4285_v45 = vpop.f32.mrf.mxu3  ;;  %v4029_v48 = vpop.f32.mrf.mxu1 }
 0x563   : > { %v4156_v29 = vpop.f32.mrf.mxu2  ;;  %v3900_v53 = vpop.f32.mrf.mxu0 }
 0x564   : > { %v4157_v25 = vadd.f32 %v4156_v29, %v4028_v36  ;;  %v4030_v5 = vadd.f32 %v4029_v48, %v3900_v53  ;;  %v14947_v29 = vld [vmem:[#allocation97_spill] sm:$0xff]  ;;  %v9048_v53 = vld [vmem:[%s10219_s3 + $0x610] sm:$0xf0]  ;;  %v9435_v48 = vld [vmem:[%s10219_s3 + $0x404] sm:$0xf] }
 0x566   : > { %v12187_v61 = vadd.f32 %v4285_v45, %v4157_v25  ;;  %v14950_v25 = vld [vmem:[#allocation100_spill] sm:$0xff] }
 0x567   : > { %v9499_v45 = vld [vmem:[%s10219_s3 + $0x604] sm:$0xf] }
 0x568   : > { %v9051_v38 = vor.u32 %v9499_v45, %v9048_v53  ;;  %v8920_v45 = vld [vmem:[%s10219_s3 + $0x510] sm:$0xf0] }
 0x569   : > { %v8923_v53 = vor.u32 %v9467_v15, %v8920_v45 }
 0x56a   : > { %v4287_v13 = vpop.f32.mrf.mxu3  ;;  %v4032_v2 = vpop.f32.mrf.mxu1  ;;  %4620 = vmatpush.bf16.msrb.mxu2 %v9051_v38  ;;  %v14954_v38 = vld [vmem:[#allocation102_spill] sm:$0xff] }
 0x56b   : > { %v4158_v23 = vpop.f32.mrf.mxu2  ;;  %v3903_v44 = vpop.f32.mrf.mxu0  ;;  %4491 = vmatpush.bf16.msrb.mxu1 %v8923_v53 }
 0x56c   : > { %v4159_v34 = vadd.f32 %v4158_v23, %v4030_v5  ;;  %v4033_v36 = vadd.f32 %v4032_v2, %v3903_v44  ;;  %v8792_v5 = vld [vmem:[%s10219_s3 + $0x410] sm:$0xf0]  ;;  %v9531_v23 = vld [vmem:[%s10219_s3 + $0x704] sm:$0xf] }
 0x56d   : > { %4071 = vmatmul.bf16.gmra.mxu1 %v14948_v52  ;;  %v9179_v2 = vor.u32 %v9531_v23, %v9176_v33  ;;  %v14955_v23 = vld [vmem:[#allocation103_spill] sm:$0xff] }
 0x56e   : > { %v12189_v0 = vadd.f32 %v4287_v13, %v4159_v34  ;;  %3942 = vmatmul.bf16.gmra.mxu0 %v14947_v29  ;;  %v8795_v13 = vor.u32 %v9435_v48, %v8792_v5  ;;  %v14953_v5 = vld [vmem:[#allocation101_spill] sm:$0xff] }
 0x56f   : > { %4329 = vmatmul.bf16.gmra.mxu3 %v14950_v25 }
 0x570   : > { %14946 = vst [vmem:[#allocation129_spill] sm:$0xff] %v12189_v0  ;;  %4200 = vmatmul.bf16.gmra.mxu2 %v14949_v58  ;;  %4362 = vmatpush.bf16.msrb.mxu0 %v8795_v13 }
 0x571   : > { %4749 = vmatpush.bf16.msrb.mxu3 %v9179_v2 }
 0x572   : > { %v4290_v29 = vpop.f32.mrf.mxu3  ;;  %v4034_v52 = vpop.f32.mrf.mxu1 }
 0x573   : > { %v4161_v34 = vpop.f32.mrf.mxu2  ;;  %v3905_v21 = vpop.f32.mrf.mxu0 }
 0x574   : > { %v4162_v44 = vadd.f32 %v4161_v34, %v4033_v36  ;;  %v4035_v58 = vadd.f32 %v4034_v52, %v3905_v21 }
 0x576   : > { %v12201_v25 = vadd.f32 %v4290_v29, %v4162_v44  ;;  %v14956_v29 = vld [vmem:[#allocation104_spill] sm:$0xff] }
 0x578   : > { %14951 = vst [vmem:[#allocation130_spill] sm:$0xff] %v12201_v25 }
 0x57a   : > { %v4292_v0 = vpop.f32.mrf.mxu3  ;;  %v4037_v48 = vpop.f32.mrf.mxu1 }
 0x57b   : > { %v4163_v18 = vpop.f32.mrf.mxu2  ;;  %v3908_v43 = vpop.f32.mrf.mxu0 }
 0x57c   : > { %v4164_v60 = vadd.f32 %v4163_v18, %v4035_v58  ;;  %v4038_v36 = vadd.f32 %v4037_v48, %v3908_v43  ;;  %v14959_v48 = vld [vmem:[#allocation105_spill] sm:$0xff] }
 0x57d   : > { %4076 = vmatmul.bf16.gmra.mxu1 %v14954_v38 }
 0x57e   : > { %v12205_v33 = vadd.f32 %v4292_v0, %v4164_v60  ;;  %3947 = vmatmul.bf16.gmra.mxu0 %v14953_v5  ;;  %v9434_v5 = vld [vmem:[%s10219_s3 + $0x3f4] sm:$0xf0] }
 0x57f   : > { %4334 = vmatmul.bf16.gmra.mxu3 %v14956_v29  ;;  %v14961_v29 = vld [vmem:[#allocation107_spill] sm:$0xff] }
 0x580   : > { %14952 = vst [vmem:[#allocation135_spill] sm:$0xff] %v12205_v33  ;;  %4205 = vmatmul.bf16.gmra.mxu2 %v14955_v23  ;;  %v14960_v23 = vld [vmem:[#allocation106_spill] sm:$0xff] }
 0x582   : > { %v4295_v15 = vpop.f32.mrf.mxu3  ;;  %v4039_v13 = vpop.f32.mrf.mxu1 }
 0x583   : > { %v4166_v21 = vpop.f32.mrf.mxu2  ;;  %v3910_v34 = vpop.f32.mrf.mxu0 }
 0x584   : > { %v4167_v52 = vadd.f32 %v4166_v21, %v4038_v36  ;;  %v4040_v58 = vadd.f32 %v4039_v13, %v3910_v34  ;;  %v14962_v36 = vld [vmem:[#allocation108_spill] sm:$0xff] }
 0x586   : > { %v12211_v18 = vadd.f32 %v4295_v15, %v4167_v52 }
 0x588   : > { %14957 = vst [vmem:[#allocation136_spill] sm:$0xff] %v12211_v18 }
 0x58a   : > { %v4297_v0 = vpop.f32.mrf.mxu3  ;;  %v4042_v44 = vpop.f32.mrf.mxu1 }
 0x58b   : > { %v4168_v2 = vpop.f32.mrf.mxu2  ;;  %v3913_v43 = vpop.f32.mrf.mxu0 }
 0x58c   : > { %v4169_v60 = vadd.f32 %v4168_v2, %v4040_v58  ;;  %v4043_v53 = vadd.f32 %v4042_v44, %v3913_v43 }
 0x58d   : > { %4081 = vmatmul.bf16.gmra.mxu1 %v14960_v23  ;;  %v14966_v23 = vld [vmem:[#allocation110_spill] sm:$0xff] }
 0x58e   : > { %v12213_v45 = vadd.f32 %v4297_v0, %v4169_v60  ;;  %3952 = vmatmul.bf16.gmra.mxu0 %v14959_v48  ;;  %v14967_v48 = vld [vmem:[#allocation111_spill] sm:$0xff] }
 0x58f   : > { %4339 = vmatmul.bf16.gmra.mxu3 %v14962_v36 }
 0x590   : > { %14958 = vst [vmem:[#allocation141_spill] sm:$0xff] %v12213_v45  ;;  %4210 = vmatmul.bf16.gmra.mxu2 %v14961_v29 }
 0x592   : > { %v4300_v15 = vpop.f32.mrf.mxu3  ;;  %v4044_v13 = vpop.f32.mrf.mxu1 }
 0x593   : > { %v4171_v21 = vpop.f32.mrf.mxu2  ;;  %v3915_v34 = vpop.f32.mrf.mxu0 }
 0x594   : > { %v4172_v52 = vadd.f32 %v4171_v21, %v4043_v53  ;;  %v4045_v2 = vadd.f32 %v4044_v13, %v3915_v34  ;;  %v14965_v21 = vld [vmem:[#allocation109_spill] sm:$0xff]  ;;  %v9402_v34 = vld [vmem:[%s10219_s3 + $0x2f4] sm:$0xf0] }
 0x595   : > { %v8398_v13 = vld [vmem:[%s10219_s3 + $0xe8] sm:$0xf] }
 0x596   : > { %v12219_v58 = vadd.f32 %v4300_v15, %v4172_v52  ;;  %v14968_v52 = vld [vmem:[#allocation112_spill] sm:$0xff]  ;;  %v8654_v15 = vld [vmem:[%s10219_s3 + $0x2e8] sm:$0xf] }
 0x597   : > { %v8655_v38 = vor.u32 %v9402_v34, %v8654_v15  ;;  %v9370_v15 = vld [vmem:[%s10219_s3 + $0x1f4] sm:$0xf0] }
 0x598   : > { %14963 = vst [vmem:[#allocation142_spill] sm:$0xff] %v12219_v58  ;;  %v8526_v58 = vld [vmem:[%s10219_s3 + $0x1e8] sm:$0xf] }
 0x599   : > { %5129 = vmatpush.bf16.msra.mxu2 %v8655_v38  ;;  %v8527_v34 = vor.u32 %v9370_v15, %v8526_v58  ;;  %v14972_v38 = vld [vmem:[#allocation114_spill] sm:$0xff] }
 0x59a   : > { %v4302_v43 = vpop.f32.mrf.mxu3  ;;  %v4047_v29 = vpop.f32.mrf.mxu1 }
 0x59b   : > { %v4173_v60 = vpop.f32.mrf.mxu2  ;;  %v3918_v44 = vpop.f32.mrf.mxu0  ;;  %5000 = vmatpush.bf16.msra.mxu1 %v8527_v34 }
 0x59c   : > { %v4174_v0 = vadd.f32 %v4173_v60, %v4045_v2  ;;  %v4048_v53 = vadd.f32 %v4047_v29, %v3918_v44  ;;  %v9338_v2 = vld [vmem:[%s10219_s3 + $0xf4] sm:$0xf0]  ;;  %v8782_v60 = vld [vmem:[%s10219_s3 + $0x3e8] sm:$0xf] }
 0x59d   : > { %4086 = vmatmul.bf16.gmra.mxu1 %v14966_v23  ;;  %v8783_v29 = vor.u32 %v9434_v5, %v8782_v60  ;;  %v14973_v60 = vld [vmem:[#allocation115_spill] sm:$0xff] }
 0x59e   : > { %v12221_v36 = vadd.f32 %v4302_v43, %v4174_v0  ;;  %3957 = vmatmul.bf16.gmra.mxu0 %v14965_v21  ;;  %v8399_v43 = vor.u32 %v9338_v2, %v8398_v13  ;;  %v14971_v2 = vld [vmem:[#allocation113_spill] sm:$0xff] }
 0x59f   : > { %4344 = vmatmul.bf16.gmra.mxu3 %v14968_v52 }
 0x5a0   : > { %14964 = vst [vmem:[#allocation147_spill] sm:$0xff] %v12221_v36  ;;  %4215 = vmatmul.bf16.gmra.mxu2 %v14967_v48  ;;  %4871 = vmatpush.bf16.msra.mxu0 %v8399_v43 }
 0x5a1   : > { %5258 = vmatpush.bf16.msra.mxu3 %v8783_v29 }
 0x5a2   : > { %v4305_v21 = vpop.f32.mrf.mxu3  ;;  %v4049_v23 = vpop.f32.mrf.mxu1 }
 0x5a3   : > { %v4176_v0 = vpop.f32.mrf.mxu2  ;;  %v3920_v36 = vpop.f32.mrf.mxu0 }
 0x5a4   : > { %v4177_v44 = vadd.f32 %v4176_v0, %v4048_v53  ;;  %v4050_v48 = vadd.f32 %v4049_v23, %v3920_v36 }
 0x5a6   : > { %v12233_v52 = vadd.f32 %v4305_v21, %v4177_v44  ;;  %v14974_v21 = vld [vmem:[#allocation116_spill] sm:$0xff] }
 0x5a8   : > { %14969 = vst [vmem:[#allocation148_spill] sm:$0xff] %v12233_v52 }
 0x5aa   : > { %v4307_v33 = vpop.f32.mrf.mxu3  ;;  %v4052_v13 = vpop.f32.mrf.mxu1 }
 0x5ab   : > { %v4178_v45 = vpop.f32.mrf.mxu2  ;;  %v3923_v25 = vpop.f32.mrf.mxu0 }
 0x5ac   : > { %v4179_v18 = vadd.f32 %v4178_v45, %v4050_v48  ;;  %v4053_v53 = vadd.f32 %v4052_v13, %v3923_v25  ;;  %v14977_v13 = vld [vmem:[#allocation117_spill] sm:$0xff] }
 0x5ad   : > { %4091 = vmatmul.bf16.gmra.mxu1 %v14972_v38 }
 0x5ae   : > { %v12237_v5 = vadd.f32 %v4307_v33, %v4179_v18  ;;  %3962 = vmatmul.bf16.gmra.mxu0 %v14971_v2  ;;  %v9430_v2 = vld [vmem:[%s10219_s3 + $0x3d4] sm:$0xf0] }
 0x5af   : > { %4349 = vmatmul.bf16.gmra.mxu3 %v14974_v21  ;;  %v14979_v21 = vld [vmem:[#allocation119_spill] sm:$0xff] }
 0x5b0   : > { %14970 = vst [vmem:[#allocation153_spill] sm:$0xff] %v12237_v5  ;;  %4220 = vmatmul.bf16.gmra.mxu2 %v14973_v60  ;;  %v14978_v60 = vld [vmem:[#allocation118_spill] sm:$0xff] }
 0x5b2   : > { %v4310_v58 = vpop.f32.mrf.mxu3  ;;  %v4054_v43 = vpop.f32.mrf.mxu1 }
 0x5b3   : > { %v4181_v23 = vpop.f32.mrf.mxu2  ;;  %v3925_v0 = vpop.f32.mrf.mxu0 }
 0x5b4   : > { %v4182_v36 = vadd.f32 %v4181_v23, %v4053_v53  ;;  %v4055_v48 = vadd.f32 %v4054_v43, %v3925_v0  ;;  %v14980_v53 = vld [vmem:[#allocation120_spill] sm:$0xff] }
 0x5b6   : > { %v12243_v45 = vadd.f32 %v4310_v58, %v4182_v36 }
 0x5b8   : > { %14975 = vst [vmem:[#allocation154_spill] sm:$0xff] %v12243_v45 }
 0x5ba   : > { %v4312_v18 = vpop.f32.mrf.mxu3  ;;  %v4057_v44 = vpop.f32.mrf.mxu1 }
 0x5bb   : > { %v4183_v29 = vpop.f32.mrf.mxu2  ;;  %v3928_v25 = vpop.f32.mrf.mxu0 }
 0x5bc   : > { %v4184_v33 = vadd.f32 %v4183_v29, %v4055_v48  ;;  %v4058_v34 = vadd.f32 %v4057_v44, %v3928_v25 }
 0x5bd   : > { %4492 = vmatmul.bf16.vlgmr.msrb.gmra.mxu1 %v14978_v60  ;;  %v14984_v60 = vld [vmem:[#allocation122_spill] sm:$0xff] }
 0x5be   : > { %v12245_v15 = vadd.f32 %v4312_v18, %v4184_v33  ;;  %4363 = vmatmul.bf16.vlgmr.msrb.gmra.mxu0 %v14977_v13  ;;  %v14985_v13 = vld [vmem:[#allocation123_spill] sm:$0xff] }
 0x5bf   : > { %4750 = vmatmul.bf16.vlgmr.msrb.gmra.mxu3 %v14980_v53 }
 0x5c0   : > { %14976 = vst [vmem:[#allocation159_spill] sm:$0xff] %v12245_v15  ;;  %4621 = vmatmul.bf16.vlgmr.msrb.gmra.mxu2 %v14979_v21 }
 0x5c2   : > { %v4315_v58 = vpop.f32.mrf.mxu3  ;;  %v4059_v43 = vpop.f32.mrf.mxu1 }
 0x5c3   : > { %v4186_v23 = vpop.f32.mrf.mxu2  ;;  %v3930_v0 = vpop.f32.mrf.mxu0 }
 0x5c4   : > { %v4187_v36 = vadd.f32 %v4186_v23, %v4058_v34  ;;  %v4060_v29 = vadd.f32 %v4059_v43, %v3930_v0  ;;  %v14983_v23 = vld [vmem:[#allocation121_spill] sm:$0xff]  ;;  %v9398_v0 = vld [vmem:[%s10219_s3 + $0x2d4] sm:$0xf0] }
 0x5c5   : > { %v8382_v43 = vld [vmem:[%s10219_s3 + $0xc8] sm:$0xf] }
 0x5c6   : > { %v12251_v48 = vadd.f32 %v4315_v58, %v4187_v36  ;;  %v14986_v36 = vld [vmem:[#allocation124_spill] sm:$0xff]  ;;  %v8638_v58 = vld [vmem:[%s10219_s3 + $0x2c8] sm:$0xf] }
 0x5c7   : > { %v8639_v38 = vor.u32 %v9398_v0, %v8638_v58  ;;  %v9366_v58 = vld [vmem:[%s10219_s3 + $0x1d4] sm:$0xf0] }
 0x5c8   : > { %14981 = vst [vmem:[#allocation160_spill] sm:$0xff] %v12251_v48  ;;  %v8510_v48 = vld [vmem:[%s10219_s3 + $0x1c8] sm:$0xf] }
 0x5c9   : > { %5130 = vmatpush.bf16.msra.mxu2 %v8639_v38  ;;  %v8511_v0 = vor.u32 %v9366_v58, %v8510_v48  ;;  %v14990_v38 = vld [vmem:[#allocation126_spill] sm:$0xff] }
 0x5ca   : > { %v4317_v25 = vpop.f32.mrf.mxu3  ;;  %v4062_v21 = vpop.f32.mrf.mxu1 }
 0x5cb   : > { %v4188_v33 = vpop.f32.mrf.mxu2  ;;  %v3933_v44 = vpop.f32.mrf.mxu0  ;;  %5001 = vmatpush.bf16.msra.mxu1 %v8511_v0 }
 0x5cc   : > { %v4189_v18 = vadd.f32 %v4188_v33, %v4060_v29  ;;  %v4063_v34 = vadd.f32 %v4062_v21, %v3933_v44  ;;  %v9334_v29 = vld [vmem:[%s10219_s3 + $0xd4] sm:$0xf0]  ;;  %v8766_v33 = vld [vmem:[%s10219_s3 + $0x3c8] sm:$0xf] }
 0x5cd   : > { %4497 = vmatmul.bf16.gmra.mxu1 %v14984_v60  ;;  %v8767_v21 = vor.u32 %v9430_v2, %v8766_v33  ;;  %v14991_v33 = vld [vmem:[#allocation127_spill] sm:$0xff] }
 0x5ce   : > { %v12253_v53 = vadd.f32 %v4317_v25, %v4189_v18  ;;  %4368 = vmatmul.bf16.gmra.mxu0 %v14983_v23  ;;  %v8383_v25 = vor.u32 %v9334_v29, %v8382_v43  ;;  %v14989_v29 = vld [vmem:[#allocation125_spill] sm:$0xff] }
 0x5cf   : > { %4755 = vmatmul.bf16.gmra.mxu3 %v14986_v36 }
 0x5d0   : > { %14982 = vst [vmem:[#allocation210_spill] sm:$0xff] %v12253_v53  ;;  %4626 = vmatmul.bf16.gmra.mxu2 %v14985_v13  ;;  %4872 = vmatpush.bf16.msra.mxu0 %v8383_v25 }
 0x5d1   : > { %5259 = vmatpush.bf16.msra.mxu3 %v8767_v21 }
 0x5d2   : > { %v4320_v23 = vpop.f32.mrf.mxu3  ;;  %v4064_v60 = vpop.f32.mrf.mxu1 }
 0x5d3   : > { %v4191_v18 = vpop.f32.mrf.mxu2  ;;  %v3935_v53 = vpop.f32.mrf.mxu0 }
 0x5d4   : > { %v4192_v44 = vadd.f32 %v4191_v18, %v4063_v34  ;;  %v4065_v13 = vadd.f32 %v4064_v60, %v3935_v53 }
 0x5d6   : > { %v12265_v36 = vadd.f32 %v4320_v23, %v4192_v44  ;;  %v14992_v23 = vld [vmem:[#allocation128_spill] sm:$0xff] }
 0x5d8   : > { %14987 = vst [vmem:[#allocation211_spill] sm:$0xff] %v12265_v36 }
 0x5da   : > { %v4322_v5 = vpop.f32.mrf.mxu3  ;;  %v4067_v43 = vpop.f32.mrf.mxu1 }
 0x5db   : > { %v4193_v15 = vpop.f32.mrf.mxu2  ;;  %v3938_v52 = vpop.f32.mrf.mxu0 }
 0x5dc   : > { %v4194_v45 = vadd.f32 %v4193_v15, %v4065_v13  ;;  %v4068_v34 = vadd.f32 %v4067_v43, %v3938_v52  ;;  %v14995_v43 = vld [vmem:[#allocation131_spill] sm:$0xff] }
 0x5dd   : > { %4502 = vmatmul.bf16.gmra.mxu1 %v14990_v38 }
 0x5de   : > { %v12269_v2 = vadd.f32 %v4322_v5, %v4194_v45  ;;  %4373 = vmatmul.bf16.gmra.mxu0 %v14989_v29  ;;  %v9426_v29 = vld [vmem:[%s10219_s3 + $0x3b4] sm:$0xf0] }
 0x5df   : > { %4760 = vmatmul.bf16.gmra.mxu3 %v14992_v23  ;;  %v14997_v23 = vld [vmem:[#allocation133_spill] sm:$0xff] }
 0x5e0   : > { %14988 = vst [vmem:[#allocation212_spill] sm:$0xff] %v12269_v2  ;;  %4631 = vmatmul.bf16.gmra.mxu2 %v14991_v33  ;;  %v14996_v33 = vld [vmem:[#allocation132_spill] sm:$0xff] }
 0x5e2   : > { %v4325_v48 = vpop.f32.mrf.mxu3  ;;  %v4069_v25 = vpop.f32.mrf.mxu1 }
 0x5e3   : > { %v4196_v60 = vpop.f32.mrf.mxu2  ;;  %v3940_v18 = vpop.f32.mrf.mxu0 }
 0x5e4   : > { %v4197_v53 = vadd.f32 %v4196_v60, %v4068_v34  ;;  %v4070_v13 = vadd.f32 %v4069_v25, %v3940_v18  ;;  %v14998_v34 = vld [vmem:[#allocation134_spill] sm:$0xff] }
 0x5e6   : > { %v12275_v15 = vadd.f32 %v4325_v48, %v4197_v53 }
 0x5e8   : > { %14993 = vst [vmem:[#allocation213_spill] sm:$0xff] %v12275_v15 }
 0x5ea   : > { %v4327_v45 = vpop.f32.mrf.mxu3  ;;  %v4072_v44 = vpop.f32.mrf.mxu1 }
 0x5eb   : > { %v4198_v21 = vpop.f32.mrf.mxu2  ;;  %v3943_v52 = vpop.f32.mrf.mxu0 }
 0x5ec   : > { %v4199_v5 = vadd.f32 %v4198_v21, %v4070_v13  ;;  %v4073_v0 = vadd.f32 %v4072_v44, %v3943_v52 }
 0x5ed   : > { %4507 = vmatmul.bf16.gmra.mxu1 %v14996_v33  ;;  %v15002_v33 = vld [vmem:[#allocation138_spill] sm:$0xff] }
 0x5ee   : > { %v12277_v58 = vadd.f32 %v4327_v45, %v4199_v5  ;;  %4378 = vmatmul.bf16.gmra.mxu0 %v14995_v43  ;;  %v15003_v43 = vld [vmem:[#allocation139_spill] sm:$0xff] }
 0x5ef   : > { %4765 = vmatmul.bf16.gmra.mxu3 %v14998_v34 }
 0x5f0   : > { %14994 = vst [vmem:[#allocation214_spill] sm:$0xff] %v12277_v58  ;;  %4636 = vmatmul.bf16.gmra.mxu2 %v14997_v23 }
 0x5f2   : > { %v4330_v48 = vpop.f32.mrf.mxu3  ;;  %v4074_v25 = vpop.f32.mrf.mxu1 }
 0x5f3   : > { %v4201_v60 = vpop.f32.mrf.mxu2  ;;  %v3945_v18 = vpop.f32.mrf.mxu0 }
 0x5f4   : > { %v4202_v53 = vadd.f32 %v4201_v60, %v4073_v0  ;;  %v4075_v21 = vadd.f32 %v4074_v25, %v3945_v18  ;;  %v15001_v60 = vld [vmem:[#allocation137_spill] sm:$0xff]  ;;  %v9394_v18 = vld [vmem:[%s10219_s3 + $0x2b4] sm:$0xf0] }
 0x5f5   : > { %v8366_v25 = vld [vmem:[%s10219_s3 + $0xa8] sm:$0xf] }
 0x5f6   : > { %v12283_v13 = vadd.f32 %v4330_v48, %v4202_v53  ;;  %v15004_v53 = vld [vmem:[#allocation140_spill] sm:$0xff]  ;;  %v8622_v48 = vld [vmem:[%s10219_s3 + $0x2a8] sm:$0xf] }
 0x5f7   : > { %v8623_v38 = vor.u32 %v9394_v18, %v8622_v48  ;;  %v9362_v48 = vld [vmem:[%s10219_s3 + $0x1b4] sm:$0xf0] }
 0x5f8   : > { %14999 = vst [vmem:[#allocation215_spill] sm:$0xff] %v12283_v13  ;;  %v8494_v13 = vld [vmem:[%s10219_s3 + $0x1a8] sm:$0xf] }
 0x5f9   : > { %5131 = vmatpush.bf16.msra.mxu2 %v8623_v38  ;;  %v8495_v18 = vor.u32 %v9362_v48, %v8494_v13  ;;  %v15008_v38 = vld [vmem:[#allocation144_spill] sm:$0xff] }
 0x5fa   : > { %v4332_v52 = vpop.f32.mrf.mxu3  ;;  %v4077_v23 = vpop.f32.mrf.mxu1 }
 0x5fb   : > { %v4203_v5 = vpop.f32.mrf.mxu2  ;;  %v3948_v44 = vpop.f32.mrf.mxu0  ;;  %5002 = vmatpush.bf16.msra.mxu1 %v8495_v18 }
 0x5fc   : > { %v4204_v45 = vadd.f32 %v4203_v5, %v4075_v21  ;;  %v4078_v0 = vadd.f32 %v4077_v23, %v3948_v44  ;;  %v9330_v21 = vld [vmem:[%s10219_s3 + $0xb4] sm:$0xf0]  ;;  %v8750_v5 = vld [vmem:[%s10219_s3 + $0x3a8] sm:$0xf] }
 0x5fd   : > { %4512 = vmatmul.bf16.gmra.mxu1 %v15002_v33  ;;  %v8751_v23 = vor.u32 %v9426_v29, %v8750_v5  ;;  %v15009_v5 = vld [vmem:[#allocation145_spill] sm:$0xff] }
 0x5fe   : > { %v12285_v34 = vadd.f32 %v4332_v52, %v4204_v45  ;;  %4383 = vmatmul.bf16.gmra.mxu0 %v15001_v60  ;;  %v8367_v52 = vor.u32 %v9330_v21, %v8366_v25  ;;  %v15007_v21 = vld [vmem:[#allocation143_spill] sm:$0xff] }
 0x5ff   : > { %4770 = vmatmul.bf16.gmra.mxu3 %v15004_v53 }
 0x600   : > { %15000 = vst [vmem:[#allocation216_spill] sm:$0xff] %v12285_v34  ;;  %4641 = vmatmul.bf16.gmra.mxu2 %v15003_v43  ;;  %4873 = vmatpush.bf16.msra.mxu0 %v8367_v52 }
 0x601   : > { %5260 = vmatpush.bf16.msra.mxu3 %v8751_v23 }
 0x602   : > { %v4335_v60 = vpop.f32.mrf.mxu3  ;;  %v4079_v33 = vpop.f32.mrf.mxu1 }
 0x603   : > { %v4206_v45 = vpop.f32.mrf.mxu2  ;;  %v3950_v34 = vpop.f32.mrf.mxu0 }
 0x604   : > { %v4207_v44 = vadd.f32 %v4206_v45, %v4078_v0  ;;  %v4080_v43 = vadd.f32 %v4079_v33, %v3950_v34 }
 0x606   : > { %v12297_v53 = vadd.f32 %v4335_v60, %v4207_v44  ;;  %v15010_v60 = vld [vmem:[#allocation146_spill] sm:$0xff] }
 0x608   : > { %15005 = vst [vmem:[#allocation217_spill] sm:$0xff] %v12297_v53 }
 0x60a   : > { %v4337_v2 = vpop.f32.mrf.mxu3  ;;  %v4082_v25 = vpop.f32.mrf.mxu1 }
 0x60b   : > { %v4208_v58 = vpop.f32.mrf.mxu2  ;;  %v3953_v36 = vpop.f32.mrf.mxu0 }
 0x60c   : > { %v4209_v15 = vadd.f32 %v4208_v58, %v4080_v43  ;;  %v4083_v0 = vadd.f32 %v4082_v25, %v3953_v36  ;;  %v15013_v25 = vld [vmem:[#allocation149_spill] sm:$0xff] }
 0x60d   : > { %4517 = vmatmul.bf16.gmra.mxu1 %v15008_v38  ;;  %v9326_v38 = vld [vmem:[%s10219_s3 + $0x94] sm:$0xf0] }
 0x60e   : > { %v12301_v29 = vadd.f32 %v4337_v2, %v4209_v15  ;;  %4388 = vmatmul.bf16.gmra.mxu0 %v15007_v21  ;;  %v8734_v21 = vld [vmem:[%s10219_s3 + $0x388] sm:$0xf] }
 0x60f   : > { %4775 = vmatmul.bf16.gmra.mxu3 %v15010_v60  ;;  %v15015_v60 = vld [vmem:[#allocation151_spill] sm:$0xff] }
 0x610   : > { %15006 = vst [vmem:[#allocation218_spill] sm:$0xff] %v12301_v29  ;;  %4646 = vmatmul.bf16.gmra.mxu2 %v15009_v5  ;;  %v15014_v5 = vld [vmem:[#allocation150_spill] sm:$0xff] }
 0x612   : > { %v4340_v13 = vpop.f32.mrf.mxu3  ;;  %v4084_v52 = vpop.f32.mrf.mxu1 }
 0x613   : > { %v4211_v33 = vpop.f32.mrf.mxu2  ;;  %v3955_v45 = vpop.f32.mrf.mxu0 }
 0x614   : > { %v4212_v34 = vadd.f32 %v4211_v33, %v4083_v0  ;;  %v4085_v43 = vadd.f32 %v4084_v52, %v3955_v45  ;;  %v15016_v0 = vld [vmem:[#allocation152_spill] sm:$0xff] }
 0x616   : > { %v12307_v58 = vadd.f32 %v4340_v13, %v4212_v34 }
 0x618   : > { %15011 = vst [vmem:[#allocation219_spill] sm:$0xff] %v12307_v58 }
 0x61a   : > { %v4342_v15 = vpop.f32.mrf.mxu3  ;;  %v4087_v44 = vpop.f32.mrf.mxu1 }
 0x61b   : > { %v4213_v23 = vpop.f32.mrf.mxu2  ;;  %v3958_v36 = vpop.f32.mrf.mxu0 }
 0x61c   : > { %v4214_v2 = vadd.f32 %v4213_v23, %v4085_v43  ;;  %v4088_v18 = vadd.f32 %v4087_v44, %v3958_v36 }
 0x61d   : > { %4522 = vmatmul.bf16.gmra.mxu1 %v15014_v5  ;;  %v15020_v5 = vld [vmem:[#allocation156_spill] sm:$0xff] }
 0x61e   : > { %v12309_v48 = vadd.f32 %v4342_v15, %v4214_v2  ;;  %4393 = vmatmul.bf16.gmra.mxu0 %v15013_v25  ;;  %v15021_v25 = vld [vmem:[#allocation157_spill] sm:$0xff] }
 0x61f   : > { %4780 = vmatmul.bf16.gmra.mxu3 %v15016_v0 }
 0x620   : > { %15012 = vst [vmem:[#allocation220_spill] sm:$0xff] %v12309_v48  ;;  %4651 = vmatmul.bf16.gmra.mxu2 %v15015_v60  ;;  %v9358_v48 = vld [vmem:[%s10219_s3 + $0x194] sm:$0xf0] }
 0x622   : > { %v4345_v13 = vpop.f32.mrf.mxu3  ;;  %v4089_v52 = vpop.f32.mrf.mxu1 }
 0x623   : > { %v4216_v33 = vpop.f32.mrf.mxu2  ;;  %v3960_v45 = vpop.f32.mrf.mxu0 }
 0x624   : > { %v4217_v34 = vadd.f32 %v4216_v33, %v4088_v18  ;;  %v4090_v23 = vadd.f32 %v4089_v52, %v3960_v45  ;;  %v15019_v33 = vld [vmem:[#allocation155_spill] sm:$0xff]  ;;  %v8350_v52 = vld [vmem:[%s10219_s3 + $0x88] sm:$0xf] }
 0x625   : > { %v9390_v45 = vld [vmem:[%s10219_s3 + $0x294] sm:$0xf0] }
 0x626   : > { %v12315_v43 = vadd.f32 %v4345_v13, %v4217_v34  ;;  %v15022_v34 = vld [vmem:[#allocation158_spill] sm:$0xff]  ;;  %v8606_v13 = vld [vmem:[%s10219_s3 + $0x288] sm:$0xf] }
 0x628   : > { %15017 = vst [vmem:[#allocation221_spill] sm:$0xff] %v12315_v43  ;;  %v8478_v43 = vld [vmem:[%s10219_s3 + $0x188] sm:$0xf] }
 0x62a   : > { %v4347_v36 = vpop.f32.mrf.mxu3  ;;  %v4092_v60 = vpop.f32.mrf.mxu1 }
 0x62b   : > { %v4218_v2 = vpop.f32.mrf.mxu2  ;;  %v3963_v44 = vpop.f32.mrf.mxu0 }
 0x62c   : > { %v4219_v15 = vadd.f32 %v4218_v2, %v4090_v23  ;;  %v4093_v18 = vadd.f32 %v4092_v60, %v3963_v44  ;;  %v8607_v2 = vor.u32 %v9390_v45, %v8606_v13  ;;  %v8479_v13 = vor.u32 %v9358_v48, %v8478_v43 }
 0x62d   : > { %4527 = vmatmul.bf16.gmra.mxu1 %v15020_v5 }
 0x62e   : > { %v12317_v0 = vadd.f32 %v4347_v36, %v4219_v15  ;;  %4398 = vmatmul.bf16.gmra.mxu0 %v15019_v33  ;;  %v9422_v15 = vld [vmem:[%s10219_s3 + $0x394] sm:$0xf0]  ;;  %v8351_v33 = vor.u32 %v9326_v38, %v8350_v52  ;;  %5132 = vmatpush.bf16.msra.mxu2 %v8607_v2  ;;  %v15023_v38 = vld [vmem:[#allocation161_spill] sm:$0xff] }
 0x62f   : > { %4785 = vmatmul.bf16.gmra.mxu3 %v15022_v34  ;;  %5003 = vmatpush.bf16.msra.mxu1 %v8479_v13  ;;  %v508_v13 = vld [vmem:[%s10236_s10 + $0x28] sm:$0xff] }
 0x630   : > { %15018 = vst [vmem:[#allocation222_spill] sm:$0xff] %v12317_v0  ;;  %4656 = vmatmul.bf16.gmra.mxu2 %v15021_v25  ;;  %v8735_v0 = vor.u32 %v9422_v15, %v8734_v21  ;;  %4874 = vmatpush.bf16.msra.mxu0 %v8351_v33 }
 0x632   : > { %v4350_v60 = vpop.f32.mrf.mxu3  ;;  %v4094_v5 = vpop.f32.mrf.mxu1  ;;  %5261 = vmatpush.bf16.msra.mxu3 %v8735_v0 }
 0x633   : > { %v4221_v23 = vpop.f32.mrf.mxu2  ;;  %v3965_v44 = vpop.f32.mrf.mxu0 }
 0x634   : > { %v4222_v36 = vadd.f32 %v4221_v23, %v4093_v18  ;;  %v4095_v34 = vadd.f32 %v4094_v5, %v3965_v44  ;;  %v15024_v5 = vld [vmem:[#allocation162_spill] sm:$0xff] }
 0x636   : > { %v12329_v25 = vadd.f32 %v4350_v60, %v4222_v36 }
 0x63a   : > { %v4352_v29 = vpop.f32.mrf.mxu3  ;;  %v4493_v18 = vpop.f32.mrf.mxu1 }
 0x63b   : > { %v4223_v58 = vpop.f32.mrf.mxu2  ;;  %v4364_v53 = vpop.f32.mrf.mxu0 }
 0x63c   : > { %v4224_v45 = vadd.f32 %v4223_v58, %v4095_v34  ;;  %v4365_v21 = vadd.f32 %v4364_v53, %v12083_v11  ;;  %v504_v34 = vld [vmem:[%s10236_s10 + $0x8] sm:$0xff] }
 0x63d   : > { %4532 = vmatmul.bf16.gmra.mxu1 %v11527_v22 }
 0x63e   : > { %v12333_v23 = vadd.f32 %v4352_v29, %v4224_v45  ;;  %4403 = vmatmul.bf16.gmra.mxu0 %v11525_v10  ;;  %v4494_v48 = vadd.f32 %v4493_v18, %v4365_v21 }
 0x63f   : > { %4790 = vmatmul.bf16.gmra.mxu3 %v15024_v5 }
 0x640   : > { %4661 = vmatmul.bf16.gmra.mxu2 %v15023_v38 }
 0x642   : > { %v4751_v43 = vpop.f32.mrf.mxu3  ;;  %v4495_v29 = vpop.f32.mrf.mxu1 }
 0x643   : > { %v4622_v58 = vpop.f32.mrf.mxu2  ;;  %v4366_v33 = vpop.f32.mrf.mxu0 }
 0x644   : > { %v4623_v0 = vadd.f32 %v4622_v58, %v4494_v48  ;;  %v4367_v2 = vadd.f32 %v4366_v33, %v12085_v14  ;;  %v15025_v14 = vld [vmem:[#allocation163_spill] sm:$0xff]  ;;  %v15026_v58 = vld [vmem:[#allocation164_spill] sm:$0xff] }
 0x646   : > { %v4752_v52 = vadd.f32 %v4751_v43, %v4623_v0  ;;  %v4496_v53 = vadd.f32 %v4495_v29, %v4367_v2 }
 0x648   : > { %v6936_v11 = vadd.f32 %v4752_v52, %v504_v34  ;;  %v512_v52 = vld [vmem:[%s10236_s10 + $0x48] sm:$0xff] }
 0x64a   : > { %7128 = vst [vmem:[%s10236_s10 + $0x8] sm:$0xff] %v6936_v11  ;;  %v4753_v60 = vpop.f32.mrf.mxu3  ;;  %v4498_v45 = vpop.f32.mrf.mxu1 }
 0x64b   : > { %v4624_v15 = vpop.f32.mrf.mxu2  ;;  %v4369_v44 = vpop.f32.mrf.mxu0 }
 0x64c   : > { %v4625_v36 = vadd.f32 %v4624_v15, %v4496_v53  ;;  %v4370_v21 = vadd.f32 %v4369_v44, %v12091_v57 }
 0x64d   : > { %4537 = vmatmul.bf16.gmra.mxu1 %v11553_v24 }
 0x64e   : > { %v4754_v18 = vadd.f32 %v4753_v60, %v4625_v36  ;;  %4408 = vmatmul.bf16.gmra.mxu0 %v11551_v27  ;;  %v4499_v0 = vadd.f32 %v4498_v45, %v4370_v21  ;;  %v516_v45 = vld [vmem:[%s10236_s10 + $0x68] sm:$0xff] }
 0x64f   : > { %4795 = vmatmul.bf16.gmra.mxu3 %v15026_v58  ;;  %v524_v58 = vld [vmem:[%s10236_s10 + $0xa8] sm:$0xff] }
 0x650   : > { %v6940_v48 = vadd.f32 %v4754_v18, %v508_v13  ;;  %4666 = vmatmul.bf16.gmra.mxu2 %v15025_v14 }
 0x652   : > { %7132 = vst [vmem:[%s10236_s10 + $0x28] sm:$0xff] %v6940_v48  ;;  %v4756_v34 = vpop.f32.mrf.mxu3  ;;  %v4500_v2 = vpop.f32.mrf.mxu1 }
 0x653   : > { %v4627_v43 = vpop.f32.mrf.mxu2  ;;  %v4371_v29 = vpop.f32.mrf.mxu0 }
 0x654   : > { %v4628_v33 = vadd.f32 %v4627_v43, %v4499_v0  ;;  %v4372_v11 = vadd.f32 %v4371_v29, %v12093_v37  ;;  %v15027_v0 = vld [vmem:[#allocation165_spill] sm:$0xff]  ;;  %v15028_v43 = vld [vmem:[#allocation166_spill] sm:$0xff] }
 0x656   : > { %v4757_v57 = vadd.f32 %v4756_v34, %v4628_v33  ;;  %v4501_v15 = vadd.f32 %v4500_v2, %v4372_v11  ;;  %v15029_v33 = vld [vmem:[#allocation167_spill] sm:$0xff]  ;;  %v15030_v34 = vld [vmem:[#allocation168_spill] sm:$0xff] }
 0x657   : > { %v9386_v2 = vld [vmem:[%s10219_s3 + $0x274] sm:$0xf0] }
 0x658   : > { %v6944_v53 = vadd.f32 %v4757_v57, %v512_v52  ;;  %v8590_v52 = vld [vmem:[%s10219_s3 + $0x268] sm:$0xf] }
 0x659   : > { %v8591_v11 = vor.u32 %v9386_v2, %v8590_v52 }
 0x65a   : > { %7136 = vst [vmem:[%s10236_s10 + $0x48] sm:$0xff] %v6944_v53  ;;  %v4758_v44 = vpop.f32.mrf.mxu3  ;;  %v4503_v18 = vpop.f32.mrf.mxu1  ;;  %v8334_v53 = vld [vmem:[%s10219_s3 + $0x68] sm:$0xf] }
 0x65b   : > { %v4629_v36 = vpop.f32.mrf.mxu2  ;;  %v4374_v13 = vpop.f32.mrf.mxu0  ;;  %5133 = vmatpush.bf16.msra.mxu2 %v8591_v11 }
 0x65c   : > { %v4630_v60 = vadd.f32 %v4629_v36, %v4501_v15  ;;  %v4375_v48 = vadd.f32 %v4374_v13, %v12105_v42  ;;  %v9322_v15 = vld [vmem:[%s10219_s3 + $0x74] sm:$0xf0]  ;;  %v8718_v42 = vld [vmem:[%s10219_s3 + $0x368] sm:$0xf] }
 0x65d   : > { %4542 = vmatmul.bf16.gmra.mxu1 %v15028_v43  ;;  %v8335_v13 = vor.u32 %v9322_v15, %v8334_v53 }
 0x65e   : > { %v4759_v21 = vadd.f32 %v4758_v44, %v4630_v60  ;;  %4413 = vmatmul.bf16.gmra.mxu0 %v15027_v0  ;;  %v4504_v29 = vadd.f32 %v4503_v18, %v4375_v48 }
 0x65f   : > { %4800 = vmatmul.bf16.gmra.mxu3 %v15030_v34  ;;  %4875 = vmatpush.bf16.msra.mxu0 %v8335_v13  ;;  %v528_v13 = vld [vmem:[%s10236_s10 + $0xc8] sm:$0xff] }
 0x660   : > { %v6948_v37 = vadd.f32 %v4759_v21, %v516_v45  ;;  %4671 = vmatmul.bf16.gmra.mxu2 %v15029_v33  ;;  %v9418_v45 = vld [vmem:[%s10219_s3 + $0x374] sm:$0xf0]  ;;  %v520_v21 = vld [vmem:[%s10236_s10 + $0x88] sm:$0xff] }
 0x661   : > { %v8719_v18 = vor.u32 %v9418_v45, %v8718_v42 }
 0x662   : > { %7140 = vst [vmem:[%s10236_s10 + $0x68] sm:$0xff] %v6948_v37  ;;  %v4761_v60 = vpop.f32.mrf.mxu3  ;;  %v4505_v33 = vpop.f32.mrf.mxu1 }
 0x663   : > { %v4632_v57 = vpop.f32.mrf.mxu2  ;;  %v4376_v44 = vpop.f32.mrf.mxu0  ;;  %5262 = vmatpush.bf16.msra.mxu3 %v8719_v18 }
 0x664   : > { %v4633_v36 = vadd.f32 %v4632_v57, %v4504_v29  ;;  %v4377_v37 = vadd.f32 %v4376_v44, %v12109_v55  ;;  %v8462_v29 = vld [vmem:[%s10219_s3 + $0x168] sm:$0xf]  ;;  %v9354_v57 = vld [vmem:[%s10219_s3 + $0x174] sm:$0xf0] }
 0x665   : > { %v8463_v43 = vor.u32 %v9354_v57, %v8462_v29 }
 0x666   : > { %v4762_v48 = vadd.f32 %v4761_v60, %v4633_v36  ;;  %v4506_v2 = vadd.f32 %v4505_v33, %v4377_v37 }
 0x667   : > { %5004 = vmatpush.bf16.msra.mxu1 %v8463_v43 }
 0x668   : > { %v6952_v52 = vadd.f32 %v4762_v48, %v520_v21 }
 0x66a   : > { %7144 = vst [vmem:[%s10236_s10 + $0x88] sm:$0xff] %v6952_v52  ;;  %v4763_v15 = vpop.f32.mrf.mxu3  ;;  %v4508_v11 = vpop.f32.mrf.mxu1 }
 0x66b   : > { %v4634_v34 = vpop.f32.mrf.mxu2  ;;  %v4379_v0 = vpop.f32.mrf.mxu0 }
 0x66c   : > { %v4635_v53 = vadd.f32 %v4634_v34, %v4506_v2  ;;  %v4380_v55 = vadd.f32 %v4379_v0, %v12115_v12  ;;  %v532_v2 = vld [vmem:[%s10236_s10 + $0xe8] sm:$0xff] }
 0x66d   : > { %4547 = vmatmul.bf16.gmra.mxu1 %v11613_v26 }
 0x66e   : > { %v4764_v42 = vadd.f32 %v4763_v15, %v4635_v53  ;;  %4418 = vmatmul.bf16.gmra.mxu0 %v11611_v40  ;;  %v4509_v33 = vadd.f32 %v4508_v11, %v4380_v55  ;;  %v15032_v11 = vld [vmem:[#allocation170_spill] sm:$0xff] }
 0x66f   : > { %4805 = vmatmul.bf16.gmra.mxu3 %v11618_v30 }
 0x670   : > { %v6956_v36 = vadd.f32 %v4764_v42, %v524_v58  ;;  %4676 = vmatmul.bf16.gmra.mxu2 %v11615_v62 }
 0x672   : > { %7148 = vst [vmem:[%s10236_s10 + $0xa8] sm:$0xff] %v6956_v36  ;;  %v4766_v44 = vpop.f32.mrf.mxu3  ;;  %v4510_v45 = vpop.f32.mrf.mxu1 }
 0x673   : > { %v4637_v34 = vpop.f32.mrf.mxu2  ;;  %v4381_v43 = vpop.f32.mrf.mxu0 }
 0x674   : > { %v4638_v60 = vadd.f32 %v4637_v34, %v4509_v33  ;;  %v4382_v0 = vadd.f32 %v4381_v43, %v12117_v35  ;;  %v15031_v35 = vld [vmem:[#allocation169_spill] sm:$0xff] }
 0x676   : > { %v4767_v12 = vadd.f32 %v4766_v44, %v4638_v60  ;;  %v4511_v58 = vadd.f32 %v4510_v45, %v4382_v0  ;;  %v536_v60 = vld [vmem:[%s10236_s10 + $0x108] sm:$0xff] }
 0x678   : > { %v6960_v21 = vadd.f32 %v4767_v12, %v528_v13 }
 0x67a   : > { %7152 = vst [vmem:[%s10236_s10 + $0xc8] sm:$0xff] %v6960_v21  ;;  %v4768_v37 = vpop.f32.mrf.mxu3  ;;  %v4513_v29 = vpop.f32.mrf.mxu1 }
 0x67b   : > { %v4639_v18 = vpop.f32.mrf.mxu2  ;;  %v4384_v52 = vpop.f32.mrf.mxu0 }
 0x67c   : > { %v4640_v48 = vadd.f32 %v4639_v18, %v4511_v58  ;;  %v4385_v53 = vadd.f32 %v4384_v52, %v12123_v59  ;;  %v540_v18 = vld [vmem:[%s10236_s10 + $0x128] sm:$0xff] }
 0x67d   : > { %4552 = vmatmul.bf16.gmra.mxu1 %v11639_v46 }
 0x67e   : > { %v4769_v57 = vadd.f32 %v4768_v37, %v4640_v48  ;;  %4423 = vmatmul.bf16.gmra.mxu0 %v11637_v4  ;;  %v4514_v42 = vadd.f32 %v4513_v29, %v4385_v53  ;;  %v15034_v29 = vld [vmem:[#allocation172_spill] sm:$0xff]  ;;  %v15036_v53 = vld [vmem:[#allocation174_spill] sm:$0xff] }
 0x67f   : > { %4810 = vmatmul.bf16.gmra.mxu3 %v15032_v11 }
 0x680   : > { %v6964_v15 = vadd.f32 %v4769_v57, %v532_v2  ;;  %4681 = vmatmul.bf16.gmra.mxu2 %v15031_v35  ;;  %v15033_v2 = vld [vmem:[#allocation171_spill] sm:$0xff]  ;;  %v15035_v57 = vld [vmem:[#allocation173_spill] sm:$0xff] }
 0x682   : > { %7156 = vst [vmem:[%s10236_s10 + $0xe8] sm:$0xff] %v6964_v15  ;;  %v4771_v33 = vpop.f32.mrf.mxu3  ;;  %v4515_v44 = vpop.f32.mrf.mxu1 }
 0x683   : > { %v4642_v55 = vpop.f32.mrf.mxu2  ;;  %v4386_v34 = vpop.f32.mrf.mxu0 }
 0x684   : > { %v4643_v36 = vadd.f32 %v4642_v55, %v4514_v42  ;;  %v4387_v43 = vadd.f32 %v4386_v34, %v12125_v19  ;;  %v8574_v42 = vld [vmem:[%s10219_s3 + $0x248] sm:$0xf]  ;;  %v9382_v55 = vld [vmem:[%s10219_s3 + $0x254] sm:$0xf0] }
 0x685   : > { %v8318_v34 = vld [vmem:[%s10219_s3 + $0x48] sm:$0xf] }
 0x686   : > { %v4772_v59 = vadd.f32 %v4771_v33, %v4643_v36  ;;  %v4516_v45 = vadd.f32 %v4515_v44, %v4387_v43  ;;  %v8575_v33 = vor.u32 %v9382_v55, %v8574_v42 }
 0x688   : > { %v6968_v13 = vadd.f32 %v4772_v59, %v536_v60  ;;  %v9318_v60 = vld [vmem:[%s10219_s3 + $0x54] sm:$0xf0]  ;;  %5134 = vmatpush.bf16.msra.mxu2 %v8575_v33 }
 0x68a   : > { %7160 = vst [vmem:[%s10236_s10 + $0x108] sm:$0xff] %v6968_v13  ;;  %v4773_v21 = vpop.f32.mrf.mxu3  ;;  %v4518_v48 = vpop.f32.mrf.mxu1  ;;  %v8319_v13 = vor.u32 %v9318_v60, %v8318_v34  ;;  %v548_v60 = vld [vmem:[%s10236_s10 + $0x168] sm:$0xff] }
 0x68b   : > { %v4644_v12 = vpop.f32.mrf.mxu2  ;;  %v4389_v58 = vpop.f32.mrf.mxu0 }
 0x68c   : > { %v4645_v0 = vadd.f32 %v4644_v12, %v4516_v45  ;;  %v4390_v52 = vadd.f32 %v4389_v58, %v12137_v31  ;;  %v8702_v31 = vld [vmem:[%s10219_s3 + $0x348] sm:$0xf]  ;;  %v9414_v45 = vld [vmem:[%s10219_s3 + $0x354] sm:$0xf0]  ;;  %v544_v12 = vld [vmem:[%s10236_s10 + $0x148] sm:$0xff]  ;;  %4876 = vmatpush.bf16.msra.mxu0 %v8319_v13 }
 0x68d   : > { %4557 = vmatmul.bf16.gmra.mxu1 %v15034_v29 }
 0x68e   : > { %v4774_v37 = vadd.f32 %v4773_v21, %v4645_v0  ;;  %4428 = vmatmul.bf16.gmra.mxu0 %v15033_v2  ;;  %v4519_v15 = vadd.f32 %v4518_v48, %v4390_v52  ;;  %v8703_v21 = vor.u32 %v9414_v45, %v8702_v31  ;;  %v8446_v52 = vld [vmem:[%s10219_s3 + $0x148] sm:$0xf] }
 0x68f   : > { %4815 = vmatmul.bf16.gmra.mxu3 %v15036_v53 }
 0x690   : > { %v6972_v19 = vadd.f32 %v4774_v37, %v540_v18  ;;  %4686 = vmatmul.bf16.gmra.mxu2 %v15035_v57  ;;  %5263 = vmatpush.bf16.msra.mxu3 %v8703_v21 }
 0x692   : > { %7164 = vst [vmem:[%s10236_s10 + $0x128] sm:$0xff] %v6972_v19  ;;  %v4776_v59 = vpop.f32.mrf.mxu3  ;;  %v4520_v0 = vpop.f32.mrf.mxu1  ;;  %v9350_v19 = vld [vmem:[%s10219_s3 + $0x154] sm:$0xf0] }
 0x693   : > { %v4647_v36 = vpop.f32.mrf.mxu2  ;;  %v4391_v43 = vpop.f32.mrf.mxu0  ;;  %v8447_v42 = vor.u32 %v9350_v19, %v8446_v52 }
 0x694   : > { %v4648_v44 = vadd.f32 %v4647_v36, %v4519_v15  ;;  %v4392_v18 = vadd.f32 %v4391_v43, %v12141_v17 }
 0x695   : > { %5005 = vmatpush.bf16.msra.mxu1 %v8447_v42  ;;  %v556_v42 = vld [vmem:[%s10236_s10 + $0x1a8] sm:$0xff] }
 0x696   : > { %v4777_v58 = vadd.f32 %v4776_v59, %v4648_v44  ;;  %v4521_v37 = vadd.f32 %v4520_v0, %v4392_v18  ;;  %v552_v0 = vld [vmem:[%s10236_s10 + $0x188] sm:$0xff] }
 0x698   : > { %v6976_v48 = vadd.f32 %v4777_v58, %v544_v12 }
 0x69a   : > { %7168 = vst [vmem:[%s10236_s10 + $0x148] sm:$0xff] %v6976_v48  ;;  %v4778_v36 = vpop.f32.mrf.mxu3  ;;  %v4523_v33 = vpop.f32.mrf.mxu1 }
 0x69b   : > { %v4649_v15 = vpop.f32.mrf.mxu2  ;;  %v4394_v34 = vpop.f32.mrf.mxu0 }
 0x69c   : > { %v4650_v55 = vadd.f32 %v4649_v15, %v4521_v37  ;;  %v4395_v17 = vadd.f32 %v4394_v34, %v12147_v54 }
 0x69d   : > { %4562 = vmatmul.bf16.gmra.mxu1 %v11699_v50 }
 0x69e   : > { %v4779_v31 = vadd.f32 %v4778_v36, %v4650_v55  ;;  %4433 = vmatmul.bf16.gmra.mxu0 %v11697_v41  ;;  %v4524_v59 = vadd.f32 %v4523_v33, %v4395_v17  ;;  %v15038_v33 = vld [vmem:[#allocation177_spill] sm:$0xff] }
 0x69f   : > { %4820 = vmatmul.bf16.gmra.mxu3 %v11704_v51 }
 0x6a0   : > { %v6980_v44 = vadd.f32 %v4779_v31, %v548_v60  ;;  %4691 = vmatmul.bf16.gmra.mxu2 %v11701_v3 }
 0x6a2   : > { %7172 = vst [vmem:[%s10236_s10 + $0x168] sm:$0xff] %v6980_v44  ;;  %v4781_v45 = vpop.f32.mrf.mxu3  ;;  %v4525_v21 = vpop.f32.mrf.mxu1 }
 0x6a3   : > { %v4652_v43 = vpop.f32.mrf.mxu2  ;;  %v4396_v12 = vpop.f32.mrf.mxu0 }
 0x6a4   : > { %v4653_v13 = vadd.f32 %v4652_v43, %v4524_v59  ;;  %v4397_v58 = vadd.f32 %v4396_v12, %v12149_v20  ;;  %v15037_v20 = vld [vmem:[#allocation176_spill] sm:$0xff] }
 0x6a6   : > { %v4782_v54 = vadd.f32 %v4781_v45, %v4653_v13  ;;  %v4526_v48 = vadd.f32 %v4525_v21, %v4397_v58  ;;  %v560_v13 = vld [vmem:[%s10236_s10 + $0x1c8] sm:$0xff] }
 0x6a8   : > { %v6984_v18 = vadd.f32 %v4782_v54, %v552_v0 }
 0x6aa   : > { %7176 = vst [vmem:[%s10236_s10 + $0x188] sm:$0xff] %v6984_v18  ;;  %v4783_v19 = vpop.f32.mrf.mxu3  ;;  %v4528_v55 = vpop.f32.mrf.mxu1 }
 0x6ab   : > { %v4654_v37 = vpop.f32.mrf.mxu2  ;;  %v4399_v15 = vpop.f32.mrf.mxu0 }
 0x6ac   : > { %v4655_v52 = vadd.f32 %v4654_v37, %v4526_v48  ;;  %v4400_v34 = vadd.f32 %v4399_v15, %v12155_v56  ;;  %v564_v37 = vld [vmem:[%s10236_s10 + $0x1e8] sm:$0xff] }
 0x6ad   : > { %4567 = vmatmul.bf16.gmra.mxu1 %v11725_v7 }
 0x6ae   : > { %v4784_v36 = vadd.f32 %v4783_v19, %v4655_v52  ;;  %4438 = vmatmul.bf16.gmra.mxu0 %v11723_v63  ;;  %v4529_v31 = vadd.f32 %v4528_v55, %v4400_v34  ;;  %v15040_v55 = vld [vmem:[#allocation179_spill] sm:$0xff]  ;;  %v15042_v34 = vld [vmem:[#allocation181_spill] sm:$0xff] }
 0x6af   : > { %4825 = vmatmul.bf16.gmra.mxu3 %v15038_v33 }
 0x6b0   : > { %v6988_v60 = vadd.f32 %v4784_v36, %v556_v42  ;;  %4696 = vmatmul.bf16.gmra.mxu2 %v15037_v20  ;;  %v15039_v42 = vld [vmem:[#allocation178_spill] sm:$0xff]  ;;  %v15041_v36 = vld [vmem:[#allocation180_spill] sm:$0xff] }
 0x6b2   : > { %7180 = vst [vmem:[%s10236_s10 + $0x1a8] sm:$0xff] %v6988_v60  ;;  %v4786_v59 = vpop.f32.mrf.mxu3  ;;  %v4530_v45 = vpop.f32.mrf.mxu1 }
 0x6b3   : > { %v4657_v17 = vpop.f32.mrf.mxu2  ;;  %v4401_v43 = vpop.f32.mrf.mxu0 }
 0x6b4   : > { %v4658_v44 = vadd.f32 %v4657_v17, %v4529_v31  ;;  %v4402_v12 = vadd.f32 %v4401_v43, %v12157_v9  ;;  %v8558_v31 = vld [vmem:[%s10219_s3 + $0x228] sm:$0xf]  ;;  %v9378_v17 = vld [vmem:[%s10219_s3 + $0x234] sm:$0xf0] }
 0x6b5   : > { %v8302_v43 = vld [vmem:[%s10219_s3 + $0x28] sm:$0xf] }
 0x6b6   : > { %v4787_v56 = vadd.f32 %v4786_v59, %v4658_v44  ;;  %v4531_v21 = vadd.f32 %v4530_v45, %v4402_v12  ;;  %v8559_v59 = vor.u32 %v9378_v17, %v8558_v31 }
 0x6b8   : > { %v6992_v0 = vadd.f32 %v4787_v56, %v560_v13  ;;  %v9314_v13 = vld [vmem:[%s10219_s3 + $0x34] sm:$0xf0]  ;;  %5135 = vmatpush.bf16.msra.mxu2 %v8559_v59 }
 0x6ba   : > { %7184 = vst [vmem:[%s10236_s10 + $0x1c8] sm:$0xff] %v6992_v0  ;;  %v4788_v18 = vpop.f32.mrf.mxu3  ;;  %v4533_v52 = vpop.f32.mrf.mxu1  ;;  %v8303_v0 = vor.u32 %v9314_v13, %v8302_v43  ;;  %v572_v13 = vld [vmem:[%s10236_s10 + $0x228] sm:$0xff] }
 0x6bb   : > { %v4659_v54 = vpop.f32.mrf.mxu2  ;;  %v4404_v48 = vpop.f32.mrf.mxu0 }
 0x6bc   : > { %v4660_v58 = vadd.f32 %v4659_v54, %v4531_v21  ;;  %v4405_v15 = vadd.f32 %v4404_v48, %v12169_v32  ;;  %v8686_v32 = vld [vmem:[%s10219_s3 + $0x328] sm:$0xf]  ;;  %v9410_v21 = vld [vmem:[%s10219_s3 + $0x334] sm:$0xf0]  ;;  %v568_v54 = vld [vmem:[%s10236_s10 + $0x208] sm:$0xff]  ;;  %4877 = vmatpush.bf16.msra.mxu0 %v8303_v0 }
 0x6bd   : > { %4572 = vmatmul.bf16.gmra.mxu1 %v15040_v55 }
 0x6be   : > { %v4789_v19 = vadd.f32 %v4788_v18, %v4660_v58  ;;  %4443 = vmatmul.bf16.gmra.mxu0 %v15039_v42  ;;  %v4534_v60 = vadd.f32 %v4533_v52, %v4405_v15  ;;  %v8687_v18 = vor.u32 %v9410_v21, %v8686_v32  ;;  %v8430_v15 = vld [vmem:[%s10219_s3 + $0x128] sm:$0xf] }
 0x6bf   : > { %4830 = vmatmul.bf16.gmra.mxu3 %v15042_v34  ;;  %v8942_v34 = vld [vmem:[%s10219_s3 + $0x528] sm:$0xf] }
 0x6c0   : > { %v6996_v9 = vadd.f32 %v4789_v19, %v564_v37  ;;  %4701 = vmatmul.bf16.gmra.mxu2 %v15041_v36  ;;  %5264 = vmatpush.bf16.msra.mxu3 %v8687_v18 }
 0x6c2   : > { %7188 = vst [vmem:[%s10236_s10 + $0x1e8] sm:$0xff] %v6996_v9  ;;  %v4791_v56 = vpop.f32.mrf.mxu3  ;;  %v4535_v58 = vpop.f32.mrf.mxu1  ;;  %v9346_v9 = vld [vmem:[%s10219_s3 + $0x134] sm:$0xf0] }
 0x6c3   : > { %v4662_v44 = vpop.f32.mrf.mxu2  ;;  %v4406_v12 = vpop.f32.mrf.mxu0  ;;  %v8431_v31 = vor.u32 %v9346_v9, %v8430_v15 }
 0x6c4   : > { %v4663_v45 = vadd.f32 %v4662_v44, %v4534_v60  ;;  %v4407_v37 = vadd.f32 %v4406_v12, %v12173_v39 }
 0x6c5   : > { %5006 = vmatpush.bf16.msra.mxu1 %v8431_v31  ;;  %v580_v31 = vld [vmem:[%s10236_s10 + $0x268] sm:$0xff] }
 0x6c6   : > { %v4792_v48 = vadd.f32 %v4791_v56, %v4663_v45  ;;  %v4536_v19 = vadd.f32 %v4535_v58, %v4407_v37  ;;  %v576_v58 = vld [vmem:[%s10236_s10 + $0x248] sm:$0xff] }
 0x6c8   : > { %v7000_v52 = vadd.f32 %v4792_v48, %v568_v54 }
 0x6ca   : > { %7192 = vst [vmem:[%s10236_s10 + $0x208] sm:$0xff] %v7000_v52  ;;  %v4793_v44 = vpop.f32.mrf.mxu3  ;;  %v4538_v59 = vpop.f32.mrf.mxu1 }
 0x6cb   : > { %v4664_v60 = vpop.f32.mrf.mxu2  ;;  %v4409_v43 = vpop.f32.mrf.mxu0 }
 0x6cc   : > { %v4665_v17 = vadd.f32 %v4664_v60, %v4536_v19  ;;  %v4410_v39 = vadd.f32 %v4409_v43, %v12179_v28 }
 0x6cd   : > { %4577 = vmatmul.bf16.gmra.mxu1 %v11785_v8 }
 0x6ce   : > { %v4794_v32 = vadd.f32 %v4793_v44, %v4665_v17  ;;  %4448 = vmatmul.bf16.gmra.mxu0 %v11783_v16  ;;  %v4539_v56 = vadd.f32 %v4538_v59, %v4410_v39  ;;  %v15043_v59 = vld [vmem:[#allocation187_spill] sm:$0xff] }
 0x6cf   : > { %4835 = vmatmul.bf16.gmra.mxu3 %v11790_v49 }
 0x6d0   : > { %v7004_v45 = vadd.f32 %v4794_v32, %v572_v13  ;;  %4706 = vmatmul.bf16.gmra.mxu2 %v11787_v47  ;;  %v15045_v32 = vld [vmem:[#allocation189_spill] sm:$0xff] }
 0x6d2   : > { %7196 = vst [vmem:[%s10236_s10 + $0x228] sm:$0xff] %v7004_v45  ;;  %v4796_v21 = vpop.f32.mrf.mxu3  ;;  %v4540_v18 = vpop.f32.mrf.mxu1 }
 0x6d3   : > { %v4667_v12 = vpop.f32.mrf.mxu2  ;;  %v4411_v54 = vpop.f32.mrf.mxu0 }
 0x6d4   : > { %v4668_v0 = vadd.f32 %v4667_v12, %v4539_v56  ;;  %v4412_v48 = vadd.f32 %v4411_v54, %v12181_v1  ;;  %v15044_v1 = vld [vmem:[#allocation188_spill] sm:$0xff] }
 0x6d6   : > { %v4797_v28 = vadd.f32 %v4796_v21, %v4668_v0  ;;  %v4541_v52 = vadd.f32 %v4540_v18, %v4412_v48  ;;  %v584_v21 = vld [vmem:[%s10236_s10 + $0x288] sm:$0xff] }
 0x6d8   : > { %v7008_v37 = vadd.f32 %v4797_v28, %v576_v58  ;;  %v15046_v58 = vld [vmem:[#allocation129_spill] sm:$0xff] }
 0x6da   : > { %7200 = vst [vmem:[%s10236_s10 + $0x248] sm:$0xff] %v7008_v37  ;;  %v4798_v9 = vpop.f32.mrf.mxu3  ;;  %v4543_v17 = vpop.f32.mrf.mxu1 }
 0x6db   : > { %v4669_v19 = vpop.f32.mrf.mxu2  ;;  %v4414_v60 = vpop.f32.mrf.mxu0 }
 0x6dc   : > { %v4670_v15 = vadd.f32 %v4669_v19, %v4541_v52  ;;  %v4415_v43 = vadd.f32 %v4414_v60, %v12187_v61 }
 0x6dd   : > { %4582 = vmatmul.bf16.gmra.mxu1 %v15043_v59  ;;  %v8958_v59 = vld [vmem:[%s10219_s3 + $0x548] sm:$0xf] }
 0x6de   : > { %v4799_v44 = vadd.f32 %v4798_v9, %v4670_v15  ;;  %4453 = vmatmul.bf16.gmra.mxu0 %v11809_v6  ;;  %v4544_v39 = vadd.f32 %v4543_v17, %v4415_v43  ;;  %v588_v9 = vld [vmem:[%s10236_s10 + $0x2a8] sm:$0xff] }
 0x6df   : > { %4840 = vmatmul.bf16.gmra.mxu3 %v15045_v32  ;;  %v15047_v17 = vld [vmem:[#allocation130_spill] sm:$0xff] }
 0x6e0   : > { %v7012_v13 = vadd.f32 %v4799_v44, %v580_v31  ;;  %4711 = vmatmul.bf16.gmra.mxu2 %v15044_v1  ;;  %v15048_v43 = vld [vmem:[#allocation190_spill] sm:$0xff] }
 0x6e2   : > { %7204 = vst [vmem:[%s10236_s10 + $0x268] sm:$0xff] %v7012_v13  ;;  %v4801_v12 = vpop.f32.mrf.mxu3  ;;  %v4545_v54 = vpop.f32.mrf.mxu1 }
 0x6e3   : > { %v4672_v45 = vpop.f32.mrf.mxu2  ;;  %v4416_v0 = vpop.f32.mrf.mxu0 }
 0x6e4   : > { %v4673_v56 = vadd.f32 %v4672_v45, %v4544_v39  ;;  %v4417_v18 = vadd.f32 %v4416_v0, %v15046_v58  ;;  %v15049_v39 = vld [vmem:[#allocation191_spill] sm:$0xff]  ;;  %v15050_v45 = vld [vmem:[#allocation192_spill] sm:$0xff]  ;;  %v8542_v0 = vld [vmem:[%s10219_s3 + $0x208] sm:$0xf] }
 0x6e5   : > { %v8286_v58 = vld [vmem:[%s10219_s3 + $0x8] sm:$0xf] }
 0x6e6   : > { %v4802_v61 = vadd.f32 %v4801_v12, %v4673_v56  ;;  %v4546_v48 = vadd.f32 %v4545_v54, %v4417_v18  ;;  %v15051_v56 = vld [vmem:[#allocation193_spill] sm:$0xff]  ;;  %v9310_v18 = vld [vmem:[%s10219_s3 + $0x14] sm:$0xf0] }
 0x6e8   : > { %v7016_v28 = vadd.f32 %v4802_v61, %v584_v21  ;;  %v9374_v21 = vld [vmem:[%s10219_s3 + $0x214] sm:$0xf0] }
 0x6e9   : > { %v8543_v61 = vor.u32 %v9374_v21, %v8542_v0 }
 0x6ea   : > { %7208 = vst [vmem:[%s10236_s10 + $0x288] sm:$0xff] %v7016_v28  ;;  %v4803_v19 = vpop.f32.mrf.mxu3  ;;  %v4548_v60 = vpop.f32.mrf.mxu1  ;;  %v8670_v28 = vld [vmem:[%s10219_s3 + $0x308] sm:$0xf] }
 0x6eb   : > { %v4674_v37 = vpop.f32.mrf.mxu2  ;;  %v4419_v15 = vpop.f32.mrf.mxu0  ;;  %5136 = vmatpush.bf16.msra.mxu2 %v8543_v61 }
 0x6ec   : > { %v4675_v52 = vadd.f32 %v4674_v37, %v4546_v48  ;;  %v4420_v44 = vadd.f32 %v4419_v15, %v15047_v17  ;;  %v9406_v15 = vld [vmem:[%s10219_s3 + $0x314] sm:$0xf0] }
 0x6ed   : > { %4587 = vmatmul.bf16.gmra.mxu1 %v15049_v39 }
 0x6ee   : > { %v4804_v31 = vadd.f32 %v4803_v19, %v4675_v52  ;;  %4458 = vmatmul.bf16.gmra.mxu0 %v15048_v43  ;;  %v4549_v12 = vadd.f32 %v4548_v60, %v4420_v44  ;;  %v8287_v19 = vor.u32 %v9310_v18, %v8286_v58  ;;  %v8671_v60 = vor.u32 %v9406_v15, %v8670_v28  ;;  %v15052_v44 = vld [vmem:[#allocation135_spill] sm:$0xff]  ;;  %v596_v43 = vld [vmem:[%s10236_s10 + $0x2e8] sm:$0xff] }
 0x6ef   : > { %4845 = vmatmul.bf16.gmra.mxu3 %v15051_v56  ;;  %v15055_v15 = vld [vmem:[#allocation195_spill] sm:$0xff] }
 0x6f0   : > { %v7020_v13 = vadd.f32 %v4804_v31, %v588_v9  ;;  %4716 = vmatmul.bf16.gmra.mxu2 %v15050_v45  ;;  %v592_v9 = vld [vmem:[%s10236_s10 + $0x2c8] sm:$0xff]  ;;  %4878 = vmatpush.bf16.msra.mxu0 %v8287_v19 }
 0x6f1   : > { %5265 = vmatpush.bf16.msra.mxu3 %v8671_v60 }
 0x6f2   : > { %7212 = vst [vmem:[%s10236_s10 + $0x2a8] sm:$0xff] %v7020_v13  ;;  %v4806_v37 = vpop.f32.mrf.mxu3  ;;  %v4550_v31 = vpop.f32.mrf.mxu1 }
 0x6f3   : > { %v4677_v54 = vpop.f32.mrf.mxu2  ;;  %v4421_v52 = vpop.f32.mrf.mxu0 }
 0x6f4   : > { %v4678_v48 = vadd.f32 %v4677_v54, %v4549_v12  ;;  %v4422_v13 = vadd.f32 %v4421_v52, %v15052_v44  ;;  %v8414_v12 = vld [vmem:[%s10219_s3 + $0x108] sm:$0xf]  ;;  %v9342_v54 = vld [vmem:[%s10219_s3 + $0x114] sm:$0xf0]  ;;  %v15054_v52 = vld [vmem:[#allocation194_spill] sm:$0xff] }
 0x6f5   : > { %v8415_v45 = vor.u32 %v9342_v54, %v8414_v12 }
 0x6f6   : > { %v4807_v17 = vadd.f32 %v4806_v37, %v4678_v48  ;;  %v4551_v21 = vadd.f32 %v4550_v31, %v4422_v13  ;;  %v15053_v48 = vld [vmem:[#allocation136_spill] sm:$0xff]  ;;  %v15057_v31 = vld [vmem:[#allocation197_spill] sm:$0xff]  ;;  %v600_v13 = vld [vmem:[%s10236_s10 + $0x308] sm:$0xff] }
 0x6f7   : > { %5007 = vmatpush.bf16.msra.mxu1 %v8415_v45 }
 0x6f8   : > { %v7024_v0 = vadd.f32 %v4807_v17, %v592_v9  ;;  %v15056_v9 = vld [vmem:[#allocation196_spill] sm:$0xff] }
 0x6fa   : > { %7216 = vst [vmem:[%s10236_s10 + $0x2c8] sm:$0xff] %v7024_v0  ;;  %v4808_v18 = vpop.f32.mrf.mxu3  ;;  %v4553_v61 = vpop.f32.mrf.mxu1 }
 0x6fb   : > { %v4679_v56 = vpop.f32.mrf.mxu2  ;;  %v4424_v39 = vpop.f32.mrf.mxu0 }
 0x6fc   : > { %v4680_v58 = vadd.f32 %v4679_v56, %v4551_v21  ;;  %v4425_v37 = vadd.f32 %v4424_v39, %v15053_v48  ;;  %v15058_v21 = vld [vmem:[#allocation141_spill] sm:$0xff] }
 0x6fd   : > { %4592 = vmatmul.bf16.gmra.mxu1 %v15055_v15 }
 0x6fe   : > { %v4809_v28 = vadd.f32 %v4808_v18, %v4680_v58  ;;  %4463 = vmatmul.bf16.gmra.mxu0 %v15054_v52  ;;  %v4554_v56 = vadd.f32 %v4553_v61, %v4425_v37  ;;  %v604_v61 = vld [vmem:[%s10236_s10 + $0x328] sm:$0xff] }
 0x6ff   : > { %4850 = vmatmul.bf16.gmra.mxu3 %v15057_v31  ;;  %v15060_v31 = vld [vmem:[#allocation198_spill] sm:$0xff] }
 0x700   : > { %v7028_v19 = vadd.f32 %v4809_v28, %v596_v43  ;;  %4721 = vmatmul.bf16.gmra.mxu2 %v15056_v9  ;;  %v620_v52 = vld [vmem:[%s10236_s10 + $0x3a8] sm:$0xff] }
 0x702   : > { %7220 = vst [vmem:[%s10236_s10 + $0x2e8] sm:$0xff] %v7028_v19  ;;  %v4811_v44 = vpop.f32.mrf.mxu3  ;;  %v4555_v0 = vpop.f32.mrf.mxu1 }
 0x703   : > { %v4682_v60 = vpop.f32.mrf.mxu2  ;;  %v4426_v45 = vpop.f32.mrf.mxu0 }
 0x704   : > { %v4683_v17 = vadd.f32 %v4682_v60, %v4554_v56  ;;  %v4427_v12 = vadd.f32 %v4426_v45, %v15058_v21  ;;  %v15059_v56 = vld [vmem:[#allocation142_spill] sm:$0xff]  ;;  %v15062_v45 = vld [vmem:[#allocation200_spill] sm:$0xff] }
 0x706   : > { %v4812_v39 = vadd.f32 %v4811_v44, %v4683_v17  ;;  %v4556_v43 = vadd.f32 %v4555_v0, %v4427_v12  ;;  %v15061_v44 = vld [vmem:[#allocation199_spill] sm:$0xff] }
 0x708   : > { %v7032_v54 = vadd.f32 %v4812_v39, %v600_v13  ;;  %v15063_v13 = vld [vmem:[#allocation201_spill] sm:$0xff] }
 0x70a   : > { %7224 = vst [vmem:[%s10236_s10 + $0x308] sm:$0xff] %v7032_v54  ;;  %v4813_v28 = vpop.f32.mrf.mxu3  ;;  %v4558_v37 = vpop.f32.mrf.mxu1 }
 0x70b   : > { %v4684_v58 = vpop.f32.mrf.mxu2  ;;  %v4429_v48 = vpop.f32.mrf.mxu0 }
 0x70c   : > { %v4685_v18 = vadd.f32 %v4684_v58, %v4556_v43  ;;  %v4430_v60 = vadd.f32 %v4429_v48, %v15059_v56  ;;  %v608_v43 = vld [vmem:[%s10236_s10 + $0x348] sm:$0xff] }
 0x70d   : > { %4597 = vmatmul.bf16.gmra.mxu1 %v15061_v44 }
 0x70e   : > { %v4814_v19 = vadd.f32 %v4813_v28, %v4685_v18  ;;  %4468 = vmatmul.bf16.gmra.mxu0 %v15060_v31  ;;  %v4559_v0 = vadd.f32 %v4558_v37, %v4430_v60  ;;  %v15064_v28 = vld [vmem:[#allocation147_spill] sm:$0xff]  ;;  %v612_v60 = vld [vmem:[%s10236_s10 + $0x368] sm:$0xff] }
 0x70f   : > { %4855 = vmatmul.bf16.gmra.mxu3 %v15063_v13 }
 0x710   : > { %v7036_v17 = vadd.f32 %v4814_v19, %v604_v61  ;;  %4726 = vmatmul.bf16.gmra.mxu2 %v15062_v45  ;;  %v15065_v45 = vld [vmem:[#allocation148_spill] sm:$0xff] }
 0x712   : > { %7228 = vst [vmem:[%s10236_s10 + $0x328] sm:$0xff] %v7036_v17  ;;  %v4816_v12 = vpop.f32.mrf.mxu3  ;;  %v4560_v58 = vpop.f32.mrf.mxu1 }
 0x713   : > { %v4687_v39 = vpop.f32.mrf.mxu2  ;;  %v4431_v54 = vpop.f32.mrf.mxu0 }
 0x714   : > { %v4688_v21 = vadd.f32 %v4687_v39, %v4559_v0  ;;  %v4432_v48 = vadd.f32 %v4431_v54, %v15064_v28 }
 0x716   : > { %v4817_v18 = vadd.f32 %v4816_v12, %v4688_v21  ;;  %v4561_v61 = vadd.f32 %v4560_v58, %v4432_v48  ;;  %v15066_v12 = vld [vmem:[#allocation202_spill] sm:$0xff]  ;;  %v15068_v58 = vld [vmem:[#allocation204_spill] sm:$0xff]  ;;  %v9166_v48 = vld [vmem:[%s10219_s3 + $0x6e8] sm:$0xf] }
 0x718   : > { %v7040_v56 = vadd.f32 %v4817_v18, %v608_v43  ;;  %v15067_v43 = vld [vmem:[#allocation203_spill] sm:$0xff]  ;;  %v15069_v18 = vld [vmem:[#allocation205_spill] sm:$0xff] }
 0x71a   : > { %7232 = vst [vmem:[%s10236_s10 + $0x348] sm:$0xff] %v7040_v56  ;;  %v4818_v17 = vpop.f32.mrf.mxu3  ;;  %v4563_v0 = vpop.f32.mrf.mxu1  ;;  %v9530_v56 = vld [vmem:[%s10219_s3 + $0x6f4] sm:$0xf0] }
 0x71b   : > { %v4689_v19 = vpop.f32.mrf.mxu2  ;;  %v4434_v37 = vpop.f32.mrf.mxu0 }
 0x71c   : > { %v4690_v13 = vadd.f32 %v4689_v19, %v4561_v61  ;;  %v4435_v21 = vadd.f32 %v4434_v37, %v15065_v45  ;;  %v9167_v19 = vor.u32 %v9530_v56, %v9166_v48  ;;  %v9294_v45 = vld [vmem:[%s10219_s3 + $0x7e8] sm:$0xf] }
 0x71d   : > { %4602 = vmatmul.bf16.gmra.mxu1 %v15067_v43 }
 0x71e   : > { %v4819_v39 = vadd.f32 %v4818_v17, %v4690_v13  ;;  %4473 = vmatmul.bf16.gmra.mxu0 %v15066_v12  ;;  %v4564_v28 = vadd.f32 %v4563_v0, %v4435_v21  ;;  %v8910_v13 = vld [vmem:[%s10219_s3 + $0x4e8] sm:$0xf]  ;;  %v9466_v17 = vld [vmem:[%s10219_s3 + $0x4f4] sm:$0xf0]  ;;  %v616_v12 = vld [vmem:[%s10236_s10 + $0x388] sm:$0xff]  ;;  %5645 = vmatpush.bf16.msrb.mxu2 %v9167_v19 }
 0x71f   : > { %4860 = vmatmul.bf16.gmra.mxu3 %v15069_v18  ;;  %v8911_v43 = vor.u32 %v9466_v17, %v8910_v13 }
 0x720   : > { %v7044_v54 = vadd.f32 %v4819_v39, %v612_v60  ;;  %4731 = vmatmul.bf16.gmra.mxu2 %v15068_v58  ;;  %v9562_v58 = vld [vmem:[%s10219_s3 + $0x7f4] sm:$0xf0] }
 0x721   : > { %v9295_v0 = vor.u32 %v9562_v58, %v9294_v45  ;;  %5387 = vmatpush.bf16.msrb.mxu0 %v8911_v43  ;;  %v15071_v45 = vld [vmem:[#allocation154_spill] sm:$0xff] }
 0x722   : > { %7236 = vst [vmem:[%s10236_s10 + $0x368] sm:$0xff] %v7044_v54  ;;  %v4821_v60 = vpop.f32.mrf.mxu3  ;;  %v4565_v44 = vpop.f32.mrf.mxu1  ;;  %v15070_v54 = vld [vmem:[#allocation153_spill] sm:$0xff]  ;;  %v15072_v43 = vld [vmem:[#allocation206_spill] sm:$0xff] }
 0x723   : > { %v4692_v61 = vpop.f32.mrf.mxu2  ;;  %v4436_v39 = vpop.f32.mrf.mxu0  ;;  %5774 = vmatpush.bf16.msrb.mxu3 %v9295_v0 }
 0x724   : > { %v4693_v37 = vadd.f32 %v4692_v61, %v4564_v28  ;;  %v4437_v18 = vadd.f32 %v4436_v39, %v15070_v54  ;;  %v9038_v28 = vld [vmem:[%s10219_s3 + $0x5e8] sm:$0xf]  ;;  %v9498_v61 = vld [vmem:[%s10219_s3 + $0x5f4] sm:$0xf0]  ;;  %v624_v54 = vld [vmem:[%s10236_s10 + $0x3c8] sm:$0xff] }
 0x725   : > { %v9039_v9 = vor.u32 %v9498_v61, %v9038_v28 }
 0x726   : > { %v4822_v21 = vadd.f32 %v4821_v60, %v4693_v37  ;;  %v4566_v56 = vadd.f32 %v4565_v44, %v4437_v18  ;;  %v15073_v44 = vld [vmem:[#allocation207_spill] sm:$0xff]  ;;  %v15074_v18 = vld [vmem:[#allocation208_spill] sm:$0xff]  ;;  %v15075_v60 = vld [vmem:[#allocation209_spill] sm:$0xff] }
 0x727   : > { %5516 = vmatpush.bf16.msrb.mxu1 %v9039_v9 }
 0x728   : > { %v7048_v48 = vadd.f32 %v4822_v21, %v616_v12 }
 0x72a   : > { %7240 = vst [vmem:[%s10236_s10 + $0x388] sm:$0xff] %v7048_v48  ;;  %v4823_v17 = vpop.f32.mrf.mxu3  ;;  %v4568_v19 = vpop.f32.mrf.mxu1 }
 0x72b   : > { %v4694_v31 = vpop.f32.mrf.mxu2  ;;  %v4439_v15 = vpop.f32.mrf.mxu0 }
 0x72c   : > { %v4695_v13 = vadd.f32 %v4694_v31, %v4566_v56  ;;  %v4440_v37 = vadd.f32 %v4439_v15, %v15071_v45  ;;  %v15076_v56 = vld [vmem:[#allocation159_spill] sm:$0xff] }
 0x72d   : > { %4607 = vmatmul.bf16.gmra.mxu1 %v15073_v44 }
 0x72e   : > { %v4824_v58 = vadd.f32 %v4823_v17, %v4695_v13  ;;  %4478 = vmatmul.bf16.gmra.mxu0 %v15072_v43  ;;  %v4569_v31 = vadd.f32 %v4568_v19, %v4440_v37  ;;  %v628_v19 = vld [vmem:[%s10236_s10 + $0x3e8] sm:$0xff] }
 0x72f   : > { %4865 = vmatmul.bf16.gmra.mxu3 %v15075_v60  ;;  %v15078_v60 = vld [vmem:[#allocation21_spill] sm:$0xff]  ;;  %v644_v43 = vld [vmem:[%s10236_s10 + $0x468] sm:$0xff] }
 0x730   : > { %v7052_v12 = vadd.f32 %v4824_v58, %v620_v52  ;;  %4736 = vmatmul.bf16.gmra.mxu2 %v15074_v18 }
 0x732   : > { %7244 = vst [vmem:[%s10236_s10 + $0x3a8] sm:$0xff] %v7052_v12  ;;  %v4826_v21 = vpop.f32.mrf.mxu3  ;;  %v4570_v48 = vpop.f32.mrf.mxu1 }
 0x733   : > { %v4697_v39 = vpop.f32.mrf.mxu2  ;;  %v4441_v9 = vpop.f32.mrf.mxu0 }
 0x734   : > { %v4698_v0 = vadd.f32 %v4697_v39, %v4569_v31  ;;  %v4442_v28 = vadd.f32 %v4441_v9, %v15076_v56  ;;  %v15077_v31 = vld [vmem:[#allocation160_spill] sm:$0xff]  ;;  %v15080_v9 = vld [vmem:[#allocation23_spill] sm:$0xff] }
 0x736   : > { %v4827_v15 = vadd.f32 %v4826_v21, %v4698_v0  ;;  %v4571_v52 = vadd.f32 %v4570_v48, %v4442_v28  ;;  %v15079_v21 = vld [vmem:[#allocation22_spill] sm:$0xff] }
 0x738   : > { %v7056_v61 = vadd.f32 %v4827_v15, %v624_v54  ;;  %v15081_v54 = vld [vmem:[#allocation24_spill] sm:$0xff] }
 0x73a   : > { %7248 = vst [vmem:[%s10236_s10 + $0x3c8] sm:$0xff] %v7056_v61  ;;  %v4828_v58 = vpop.f32.mrf.mxu3  ;;  %v4573_v37 = vpop.f32.mrf.mxu1 }
 0x73b   : > { %v4699_v13 = vpop.f32.mrf.mxu2  ;;  %v4444_v45 = vpop.f32.mrf.mxu0 }
 0x73c   : > { %v4700_v17 = vadd.f32 %v4699_v13, %v4571_v52  ;;  %v4445_v39 = vadd.f32 %v4444_v45, %v15077_v31  ;;  %v632_v52 = vld [vmem:[%s10236_s10 + $0x408] sm:$0xff] }
 0x73d   : > { %5008 = vmatmul.bf16.vlgmr.msra.gmra.mxu1 %v15079_v21 }
 0x73e   : > { %v4829_v12 = vadd.f32 %v4828_v58, %v4700_v17  ;;  %4879 = vmatmul.bf16.vlgmr.msra.gmra.mxu0 %v15078_v60  ;;  %v4574_v48 = vadd.f32 %v4573_v37, %v4445_v39  ;;  %v15082_v58 = vld [vmem:[#allocation210_spill] sm:$0xff] }
 0x73f   : > { %5266 = vmatmul.bf16.vlgmr.msra.gmra.mxu3 %v15081_v54  ;;  %v636_v39 = vld [vmem:[%s10236_s10 + $0x428] sm:$0xff] }
 0x740   : > { %v7060_v0 = vadd.f32 %v4829_v12, %v628_v19  ;;  %5137 = vmatmul.bf16.vlgmr.msra.gmra.mxu2 %v15080_v9  ;;  %v15083_v9 = vld [vmem:[#allocation211_spill] sm:$0xff] }
 0x742   : > { %7252 = vst [vmem:[%s10236_s10 + $0x3e8] sm:$0xff] %v7060_v0  ;;  %v4831_v28 = vpop.f32.mrf.mxu3  ;;  %v4575_v13 = vpop.f32.mrf.mxu1 }
 0x743   : > { %v4702_v15 = vpop.f32.mrf.mxu2  ;;  %v4446_v61 = vpop.f32.mrf.mxu0 }
 0x744   : > { %v4703_v56 = vadd.f32 %v4702_v15, %v4574_v48  ;;  %v4447_v45 = vadd.f32 %v4446_v61, %v15082_v58 }
 0x746   : > { %v4832_v17 = vadd.f32 %v4831_v28, %v4703_v56  ;;  %v4576_v19 = vadd.f32 %v4575_v13, %v4447_v45  ;;  %v15084_v28 = vld [vmem:[#allocation25_spill] sm:$0xff]  ;;  %v15086_v13 = vld [vmem:[#allocation27_spill] sm:$0xff] }
 0x747   : > { %v9150_v45 = vld [vmem:[%s10219_s3 + $0x6c8] sm:$0xf] }
 0x748   : > { %v7064_v31 = vadd.f32 %v4832_v17, %v632_v52  ;;  %v15085_v52 = vld [vmem:[#allocation26_spill] sm:$0xff]  ;;  %v15087_v17 = vld [vmem:[#allocation28_spill] sm:$0xff] }
 0x74a   : > { %7256 = vst [vmem:[%s10236_s10 + $0x408] sm:$0xff] %v7064_v31  ;;  %v4833_v0 = vpop.f32.mrf.mxu3  ;;  %v4578_v48 = vpop.f32.mrf.mxu1  ;;  %v9526_v31 = vld [vmem:[%s10219_s3 + $0x6d4] sm:$0xf0] }
 0x74b   : > { %v4704_v12 = vpop.f32.mrf.mxu2  ;;  %v4449_v37 = vpop.f32.mrf.mxu0 }
 0x74c   : > { %v4705_v54 = vadd.f32 %v4704_v12, %v4576_v19  ;;  %v4450_v56 = vadd.f32 %v4449_v37, %v15083_v9  ;;  %v9151_v12 = vor.u32 %v9526_v31, %v9150_v45  ;;  %v9278_v9 = vld [vmem:[%s10219_s3 + $0x7c8] sm:$0xf] }
 0x74d   : > { %5013 = vmatmul.bf16.gmra.mxu1 %v15085_v52 }
 0x74e   : > { %v4834_v15 = vadd.f32 %v4833_v0, %v4705_v54  ;;  %4884 = vmatmul.bf16.gmra.mxu0 %v15084_v28  ;;  %v4579_v58 = vadd.f32 %v4578_v48, %v4450_v56  ;;  %v8894_v54 = vld [vmem:[%s10219_s3 + $0x4c8] sm:$0xf]  ;;  %v9462_v0 = vld [vmem:[%s10219_s3 + $0x4d4] sm:$0xf0]  ;;  %v640_v28 = vld [vmem:[%s10236_s10 + $0x448] sm:$0xff]  ;;  %5646 = vmatpush.bf16.msrb.mxu2 %v9151_v12 }
 0x74f   : > { %5271 = vmatmul.bf16.gmra.mxu3 %v15087_v17  ;;  %v8895_v52 = vor.u32 %v9462_v0, %v8894_v54 }
 0x750   : > { %v7068_v61 = vadd.f32 %v4834_v15, %v636_v39  ;;  %5142 = vmatmul.bf16.gmra.mxu2 %v15086_v13  ;;  %v9558_v13 = vld [vmem:[%s10219_s3 + $0x7d4] sm:$0xf0] }
 0x751   : > { %v9279_v48 = vor.u32 %v9558_v13, %v9278_v9  ;;  %5388 = vmatpush.bf16.msrb.mxu0 %v8895_v52  ;;  %v15089_v9 = vld [vmem:[#allocation213_spill] sm:$0xff] }
 0x752   : > { %7260 = vst [vmem:[%s10236_s10 + $0x428] sm:$0xff] %v7068_v61  ;;  %v4836_v39 = vpop.f32.mrf.mxu3  ;;  %v4580_v21 = vpop.f32.mrf.mxu1  ;;  %v15088_v61 = vld [vmem:[#allocation212_spill] sm:$0xff]  ;;  %v15090_v52 = vld [vmem:[#allocation29_spill] sm:$0xff] }
 0x753   : > { %v4707_v19 = vpop.f32.mrf.mxu2  ;;  %v4451_v15 = vpop.f32.mrf.mxu0  ;;  %5775 = vmatpush.bf16.msrb.mxu3 %v9279_v48 }
 0x754   : > { %v4708_v37 = vadd.f32 %v4707_v19, %v4579_v58  ;;  %v4452_v17 = vadd.f32 %v4451_v15, %v15088_v61  ;;  %v9022_v58 = vld [vmem:[%s10219_s3 + $0x5c8] sm:$0xf]  ;;  %v9494_v19 = vld [vmem:[%s10219_s3 + $0x5d4] sm:$0xf0]  ;;  %v648_v61 = vld [vmem:[%s10236_s10 + $0x488] sm:$0xff] }
 0x755   : > { %v9023_v18 = vor.u32 %v9494_v19, %v9022_v58 }
 0x756   : > { %v4837_v56 = vadd.f32 %v4836_v39, %v4708_v37  ;;  %v4581_v31 = vadd.f32 %v4580_v21, %v4452_v17  ;;  %v15091_v21 = vld [vmem:[#allocation30_spill] sm:$0xff]  ;;  %v15092_v17 = vld [vmem:[#allocation31_spill] sm:$0xff]  ;;  %v15093_v39 = vld [vmem:[#allocation32_spill] sm:$0xff] }
 0x757   : > { %5517 = vmatpush.bf16.msrb.mxu1 %v9023_v18 }
 0x758   : > { %v7072_v45 = vadd.f32 %v4837_v56, %v640_v28 }
 0x75a   : > { %7264 = vst [vmem:[%s10236_s10 + $0x448] sm:$0xff] %v7072_v45  ;;  %v4838_v0 = vpop.f32.mrf.mxu3  ;;  %v4583_v12 = vpop.f32.mrf.mxu1 }
 0x75b   : > { %v4709_v60 = vpop.f32.mrf.mxu2  ;;  %v4454_v44 = vpop.f32.mrf.mxu0 }
 0x75c   : > { %v4710_v54 = vadd.f32 %v4709_v60, %v4581_v31  ;;  %v4455_v37 = vadd.f32 %v4454_v44, %v15089_v9  ;;  %v15094_v31 = vld [vmem:[#allocation214_spill] sm:$0xff] }
 0x75d   : > { %5018 = vmatmul.bf16.gmra.mxu1 %v15091_v21 }
 0x75e   : > { %v4839_v13 = vadd.f32 %v4838_v0, %v4710_v54  ;;  %4889 = vmatmul.bf16.gmra.mxu0 %v15090_v52  ;;  %v4584_v60 = vadd.f32 %v4583_v12, %v4455_v37  ;;  %v652_v12 = vld [vmem:[%s10236_s10 + $0x4a8] sm:$0xff] }
 0x75f   : > { %5276 = vmatmul.bf16.gmra.mxu3 %v15093_v39  ;;  %v15096_v39 = vld [vmem:[#allocation33_spill] sm:$0xff]  ;;  %v668_v52 = vld [vmem:[%s10236_s10 + $0x528] sm:$0xff] }
 0x760   : > { %v7076_v28 = vadd.f32 %v4839_v13, %v644_v43  ;;  %5147 = vmatmul.bf16.gmra.mxu2 %v15092_v17 }
 0x762   : > { %7268 = vst [vmem:[%s10236_s10 + $0x468] sm:$0xff] %v7076_v28  ;;  %v4841_v56 = vpop.f32.mrf.mxu3  ;;  %v4585_v45 = vpop.f32.mrf.mxu1 }
 0x763   : > { %v4712_v15 = vpop.f32.mrf.mxu2  ;;  %v4456_v18 = vpop.f32.mrf.mxu0 }
 0x764   : > { %v4713_v48 = vadd.f32 %v4712_v15, %v4584_v60  ;;  %v4457_v58 = vadd.f32 %v4456_v18, %v15094_v31  ;;  %v15095_v60 = vld [vmem:[#allocation215_spill] sm:$0xff] }
 0x765   : > { %v15098_v18 = vld [vmem:[#allocation35_spill] sm:$0xff] }
 0x766   : > { %v4842_v44 = vadd.f32 %v4841_v56, %v4713_v48  ;;  %v4586_v43 = vadd.f32 %v4585_v45, %v4457_v58  ;;  %v15097_v56 = vld [vmem:[#allocation34_spill] sm:$0xff] }
 0x768   : > { %v7080_v19 = vadd.f32 %v4842_v44, %v648_v61  ;;  %v15099_v61 = vld [vmem:[#allocation36_spill] sm:$0xff] }
 0x76a   : > { %7272 = vst [vmem:[%s10236_s10 + $0x488] sm:$0xff] %v7080_v19  ;;  %v4843_v13 = vpop.f32.mrf.mxu3  ;;  %v4588_v37 = vpop.f32.mrf.mxu1 }
 0x76b   : > { %v4714_v54 = vpop.f32.mrf.mxu2  ;;  %v4459_v9 = vpop.f32.mrf.mxu0 }
 0x76c   : > { %v4715_v0 = vadd.f32 %v4714_v54, %v4586_v43  ;;  %v4460_v15 = vadd.f32 %v4459_v9, %v15095_v60  ;;  %v656_v43 = vld [vmem:[%s10236_s10 + $0x4c8] sm:$0xff] }
 0x76d   : > { %5023 = vmatmul.bf16.gmra.mxu1 %v15097_v56 }
 0x76e   : > { %v4844_v28 = vadd.f32 %v4843_v13, %v4715_v0  ;;  %4894 = vmatmul.bf16.gmra.mxu0 %v15096_v39  ;;  %v4589_v45 = vadd.f32 %v4588_v37, %v4460_v15  ;;  %v15100_v13 = vld [vmem:[#allocation216_spill] sm:$0xff]  ;;  %v660_v15 = vld [vmem:[%s10236_s10 + $0x4e8] sm:$0xff] }
 0x76f   : > { %5281 = vmatmul.bf16.gmra.mxu3 %v15099_v61 }
 0x770   : > { %v7084_v48 = vadd.f32 %v4844_v28, %v652_v12  ;;  %5152 = vmatmul.bf16.gmra.mxu2 %v15098_v18  ;;  %v15101_v18 = vld [vmem:[#allocation217_spill] sm:$0xff] }
 0x772   : > { %7276 = vst [vmem:[%s10236_s10 + $0x4a8] sm:$0xff] %v7084_v48  ;;  %v4846_v58 = vpop.f32.mrf.mxu3  ;;  %v4590_v54 = vpop.f32.mrf.mxu1 }
 0x773   : > { %v4717_v44 = vpop.f32.mrf.mxu2  ;;  %v4461_v19 = vpop.f32.mrf.mxu0 }
 0x774   : > { %v4718_v31 = vadd.f32 %v4717_v44, %v4589_v45  ;;  %v4462_v9 = vadd.f32 %v4461_v19, %v15100_v13 }
 0x776   : > { %v4847_v0 = vadd.f32 %v4846_v58, %v4718_v31  ;;  %v4591_v12 = vadd.f32 %v4590_v54, %v4462_v9  ;;  %v15102_v58 = vld [vmem:[#allocation37_spill] sm:$0xff]  ;;  %v15104_v54 = vld [vmem:[#allocation39_spill] sm:$0xff] }
 0x777   : > { %v9134_v9 = vld [vmem:[%s10219_s3 + $0x6a8] sm:$0xf] }
 0x778   : > { %v7088_v60 = vadd.f32 %v4847_v0, %v656_v43  ;;  %v15103_v43 = vld [vmem:[#allocation38_spill] sm:$0xff]  ;;  %v15105_v0 = vld [vmem:[#allocation40_spill] sm:$0xff] }
 0x77a   : > { %7280 = vst [vmem:[%s10236_s10 + $0x4c8] sm:$0xff] %v7088_v60  ;;  %v4848_v48 = vpop.f32.mrf.mxu3  ;;  %v4593_v45 = vpop.f32.mrf.mxu1  ;;  %v9522_v60 = vld [vmem:[%s10219_s3 + $0x6b4] sm:$0xf0] }
 0x77b   : > { %v4719_v28 = vpop.f32.mrf.mxu2  ;;  %v4464_v37 = vpop.f32.mrf.mxu0 }
 0x77c   : > { %v4720_v61 = vadd.f32 %v4719_v28, %v4591_v12  ;;  %v4465_v31 = vadd.f32 %v4464_v37, %v15101_v18  ;;  %v9135_v28 = vor.u32 %v9522_v60, %v9134_v9  ;;  %v9262_v18 = vld [vmem:[%s10219_s3 + $0x7a8] sm:$0xf] }
 0x77d   : > { %5028 = vmatmul.bf16.gmra.mxu1 %v15103_v43 }
 0x77e   : > { %v4849_v44 = vadd.f32 %v4848_v48, %v4720_v61  ;;  %4899 = vmatmul.bf16.gmra.mxu0 %v15102_v58  ;;  %v4594_v13 = vadd.f32 %v4593_v45, %v4465_v31  ;;  %v8878_v61 = vld [vmem:[%s10219_s3 + $0x4a8] sm:$0xf]  ;;  %v9458_v48 = vld [vmem:[%s10219_s3 + $0x4b4] sm:$0xf0]  ;;  %v664_v58 = vld [vmem:[%s10236_s10 + $0x508] sm:$0xff]  ;;  %5647 = vmatpush.bf16.msrb.mxu2 %v9135_v28 }
 0x77f   : > { %5286 = vmatmul.bf16.gmra.mxu3 %v15105_v0  ;;  %v8879_v43 = vor.u32 %v9458_v48, %v8878_v61 }
 0x780   : > { %v7092_v19 = vadd.f32 %v4849_v44, %v660_v15  ;;  %5157 = vmatmul.bf16.gmra.mxu2 %v15104_v54  ;;  %v9554_v54 = vld [vmem:[%s10219_s3 + $0x7b4] sm:$0xf0] }
 0x781   : > { %v9263_v45 = vor.u32 %v9554_v54, %v9262_v18  ;;  %5389 = vmatpush.bf16.msrb.mxu0 %v8879_v43  ;;  %v15107_v18 = vld [vmem:[#allocation219_spill] sm:$0xff]  ;;  %v15108_v43 = vld [vmem:[#allocation41_spill] sm:$0xff] }
 0x782   : > { %7284 = vst [vmem:[%s10236_s10 + $0x4e8] sm:$0xff] %v7092_v19  ;;  %v4851_v15 = vpop.f32.mrf.mxu3  ;;  %v4595_v56 = vpop.f32.mrf.mxu1  ;;  %v15106_v19 = vld [vmem:[#allocation218_spill] sm:$0xff] }
 0x783   : > { %v4722_v12 = vpop.f32.mrf.mxu2  ;;  %v4466_v44 = vpop.f32.mrf.mxu0  ;;  %5776 = vmatpush.bf16.msrb.mxu3 %v9263_v45 }
 0x784   : > { %v4723_v37 = vadd.f32 %v4722_v12, %v4594_v13  ;;  %v4467_v0 = vadd.f32 %v4466_v44, %v15106_v19  ;;  %v9006_v13 = vld [vmem:[%s10219_s3 + $0x5a8] sm:$0xf]  ;;  %v9490_v12 = vld [vmem:[%s10219_s3 + $0x5b4] sm:$0xf0]  ;;  %v672_v19 = vld [vmem:[%s10236_s10 + $0x548] sm:$0xff] }
 0x785   : > { %v9007_v17 = vor.u32 %v9490_v12, %v9006_v13 }
 0x786   : > { %v4852_v31 = vadd.f32 %v4851_v15, %v4723_v37  ;;  %v4596_v60 = vadd.f32 %v4595_v56, %v4467_v0  ;;  %v15109_v56 = vld [vmem:[#allocation42_spill] sm:$0xff]  ;;  %v15110_v0 = vld [vmem:[#allocation43_spill] sm:$0xff]  ;;  %v15111_v15 = vld [vmem:[#allocation44_spill] sm:$0xff] }
 0x787   : > { %5518 = vmatpush.bf16.msrb.mxu1 %v9007_v17 }
 0x788   : > { %v7096_v9 = vadd.f32 %v4852_v31, %v664_v58 }
 0x78a   : > { %7288 = vst [vmem:[%s10236_s10 + $0x508] sm:$0xff] %v7096_v9  ;;  %v4853_v48 = vpop.f32.mrf.mxu3  ;;  %v4598_v28 = vpop.f32.mrf.mxu1 }
 0x78b   : > { %v4724_v39 = vpop.f32.mrf.mxu2  ;;  %v4469_v21 = vpop.f32.mrf.mxu0 }
 0x78c   : > { %v4725_v61 = vadd.f32 %v4724_v39, %v4596_v60  ;;  %v4470_v37 = vadd.f32 %v4469_v21, %v15107_v18  ;;  %v15112_v60 = vld [vmem:[#allocation220_spill] sm:$0xff] }
 0x78d   : > { %5033 = vmatmul.bf16.gmra.mxu1 %v15109_v56 }
 0x78e   : > { %v4854_v54 = vadd.f32 %v4853_v48, %v4725_v61  ;;  %4904 = vmatmul.bf16.gmra.mxu0 %v15108_v43  ;;  %v4599_v39 = vadd.f32 %v4598_v28, %v4470_v37  ;;  %v676_v28 = vld [vmem:[%s10236_s10 + $0x568] sm:$0xff] }
 0x78f   : > { %5291 = vmatmul.bf16.gmra.mxu3 %v15111_v15  ;;  %v15114_v15 = vld [vmem:[#allocation45_spill] sm:$0xff] }
 0x790   : > { %v7100_v58 = vadd.f32 %v4854_v54, %v668_v52  ;;  %5162 = vmatmul.bf16.gmra.mxu2 %v15110_v0 }
 0x792   : > { %7292 = vst [vmem:[%s10236_s10 + $0x528] sm:$0xff] %v7100_v58  ;;  %v4856_v31 = vpop.f32.mrf.mxu3  ;;  %v4600_v9 = vpop.f32.mrf.mxu1 }
 0x793   : > { %v4727_v44 = vpop.f32.mrf.mxu2  ;;  %v4471_v17 = vpop.f32.mrf.mxu0 }
 0x794   : > { %v4728_v45 = vadd.f32 %v4727_v44, %v4599_v39  ;;  %v4472_v13 = vadd.f32 %v4471_v17, %v15112_v60  ;;  %v15113_v39 = vld [vmem:[#allocation221_spill] sm:$0xff]  ;;  %v15116_v17 = vld [vmem:[#allocation47_spill] sm:$0xff] }
 0x796   : > { %v4857_v21 = vadd.f32 %v4856_v31, %v4728_v45  ;;  %v4601_v52 = vadd.f32 %v4600_v9, %v4472_v13  ;;  %v15115_v31 = vld [vmem:[#allocation46_spill] sm:$0xff] }
 0x798   : > { %v7104_v12 = vadd.f32 %v4857_v21, %v672_v19  ;;  %v15117_v19 = vld [vmem:[#allocation48_spill] sm:$0xff] }
 0x79a   : > { %7296 = vst [vmem:[%s10236_s10 + $0x548] sm:$0xff] %v7104_v12  ;;  %v4858_v54 = vpop.f32.mrf.mxu3  ;;  %v4603_v37 = vpop.f32.mrf.mxu1 }
 0x79b   : > { %v4729_v61 = vpop.f32.mrf.mxu2  ;;  %v4474_v18 = vpop.f32.mrf.mxu0 }
 0x79c   : > { %v4730_v48 = vadd.f32 %v4729_v61, %v4601_v52  ;;  %v4475_v44 = vadd.f32 %v4474_v18, %v15113_v39  ;;  %v680_v52 = vld [vmem:[%s10236_s10 + $0x588] sm:$0xff] }
 0x79d   : > { %5038 = vmatmul.bf16.gmra.mxu1 %v15115_v31 }
 0x79e   : > { %v4859_v58 = vadd.f32 %v4858_v54, %v4730_v48  ;;  %4909 = vmatmul.bf16.gmra.mxu0 %v15114_v15  ;;  %v4604_v9 = vadd.f32 %v4603_v37, %v4475_v44  ;;  %v15118_v54 = vld [vmem:[#allocation222_spill] sm:$0xff] }
 0x79f   : > { %5296 = vmatmul.bf16.gmra.mxu3 %v15117_v19 }
 0x7a0   : > { %v7108_v45 = vadd.f32 %v4859_v58, %v676_v28  ;;  %5167 = vmatmul.bf16.gmra.mxu2 %v15116_v17 }
 0x7a2   : > { %7300 = vst [vmem:[%s10236_s10 + $0x568] sm:$0xff] %v7108_v45  ;;  %v4861_v13 = vpop.f32.mrf.mxu3  ;;  %v4605_v61 = vpop.f32.mrf.mxu1 }
 0x7a3   : > { %v4732_v21 = vpop.f32.mrf.mxu2  ;;  %v4476_v12 = vpop.f32.mrf.mxu0 }
 0x7a4   : > { %v4733_v60 = vadd.f32 %v4732_v21, %v4604_v9  ;;  %v4477_v18 = vadd.f32 %v4476_v12, %v15118_v54  ;;  %v684_v9 = vld [vmem:[%s10236_s10 + $0x5a8] sm:$0xff]  ;;  %v9118_v54 = vld [vmem:[%s10219_s3 + $0x688] sm:$0xf] }
 0x7a6   : > { %v4862_v48 = vadd.f32 %v4861_v13, %v4733_v60  ;;  %v4606_v28 = vadd.f32 %v4605_v61, %v4477_v18  ;;  %v15119_v13 = vld [vmem:[#allocation49_spill] sm:$0xff]  ;;  %v15121_v61 = vld [vmem:[#allocation51_spill] sm:$0xff] }
 0x7a7   : > { %v9518_v18 = vld [vmem:[%s10219_s3 + $0x694] sm:$0xf0] }
 0x7a8   : > { %v7112_v39 = vadd.f32 %v4862_v48, %v680_v52  ;;  %v15120_v52 = vld [vmem:[#allocation50_spill] sm:$0xff]  ;;  %v15122_v48 = vld [vmem:[#allocation52_spill] sm:$0xff] }
 0x7aa   : > { %7304 = vst [vmem:[%s10236_s10 + $0x588] sm:$0xff] %v7112_v39  ;;  %v4863_v37 = vpop.f32.mrf.mxu3  ;;  %v4608_v21 = vpop.f32.mrf.mxu1  ;;  %v8862_v39 = vld [vmem:[%s10219_s3 + $0x488] sm:$0xf] }
 0x7ab   : > { %v4734_v58 = vpop.f32.mrf.mxu2  ;;  %v4479_v44 = vpop.f32.mrf.mxu0 }
 0x7ac   : > { %v4735_v45 = vadd.f32 %v4734_v58, %v4606_v28  ;;  %v4480_v60 = vadd.f32 %v4479_v44, %v12329_v25  ;;  %v9119_v58 = vor.u32 %v9518_v18, %v9118_v54  ;;  %v9246_v25 = vld [vmem:[%s10219_s3 + $0x788] sm:$0xf]  ;;  %v9486_v54 = vld [vmem:[%s10219_s3 + $0x594] sm:$0xf0] }
 0x7ad   : > { %5043 = vmatmul.bf16.gmra.mxu1 %v15120_v52 }
 0x7ae   : > { %v4864_v19 = vadd.f32 %v4863_v37, %v4735_v45  ;;  %4914 = vmatmul.bf16.gmra.mxu0 %v15119_v13  ;;  %v4609_v28 = vadd.f32 %v4608_v21, %v4480_v60  ;;  %v9454_v45 = vld [vmem:[%s10219_s3 + $0x494] sm:$0xf0]  ;;  %5648 = vmatpush.bf16.msrb.mxu2 %v9119_v58  ;;  %v688_v13 = vld [vmem:[%s10236_s10 + $0x5c8] sm:$0xff]  ;;  %v8990_v60 = vld [vmem:[%s10219_s3 + $0x588] sm:$0xf] }
 0x7af   : > { %5301 = vmatmul.bf16.gmra.mxu3 %v15122_v48  ;;  %v8863_v44 = vor.u32 %v9454_v45, %v8862_v39  ;;  %v8991_v18 = vor.u32 %v9486_v54, %v8990_v60 }
 0x7b0   : > { %v7116_v12 = vadd.f32 %v4864_v19, %v684_v9  ;;  %5172 = vmatmul.bf16.gmra.mxu2 %v15121_v61  ;;  %v9550_v19 = vld [vmem:[%s10219_s3 + $0x794] sm:$0xf0] }
 0x7b1   : > { %v9247_v48 = vor.u32 %v9550_v19, %v9246_v25  ;;  %5390 = vmatpush.bf16.msrb.mxu0 %v8863_v44  ;;  %5519 = vmatpush.bf16.msrb.mxu1 %v8991_v18 }
 0x7b2   : > { %7308 = vst [vmem:[%s10236_s10 + $0x5a8] sm:$0xff] %v7116_v12  ;;  %v4866_v52 = vpop.f32.mrf.mxu3  ;;  %v4610_v17 = vpop.f32.mrf.mxu1 }
 0x7b3   : > { %v4737_v37 = vpop.f32.mrf.mxu2  ;;  %v4481_v61 = vpop.f32.mrf.mxu0  ;;  %5777 = vmatpush.bf16.msrb.mxu3 %v9247_v48  ;;  %v15125_v48 = vld [vmem:[#allocation55_spill] sm:$0xff] }
 0x7b4   : > { %v4738_v9 = vadd.f32 %v4737_v37, %v4609_v28  ;;  %v4482_v21 = vadd.f32 %v4481_v61, %v12333_v23  ;;  %v692_v37 = vld [vmem:[%s10236_s10 + $0x5e8] sm:$0xff] }
 0x7b5   : > { %v15124_v61 = vld [vmem:[#allocation54_spill] sm:$0xff] }
 0x7b6   : > { %v4867_v12 = vadd.f32 %v4866_v52, %v4738_v9  ;;  %v4611_v39 = vadd.f32 %v4610_v17, %v4482_v21  ;;  %v15123_v52 = vld [vmem:[#allocation53_spill] sm:$0xff] }
 0x7b8   : > { %v7120_v31 = vadd.f32 %v4867_v12, %v688_v13  ;;  %v15126_v13 = vld [vmem:[#allocation56_spill] sm:$0xff] }
 0x7ba   : > { %7312 = vst [vmem:[%s10236_s10 + $0x5c8] sm:$0xff] %v7120_v31  ;;  %v4868_v58 = vpop.f32.mrf.mxu3  ;;  %v5009_v19 = vpop.f32.mrf.mxu1 }
 0x7bb   : > { %v4739_v28 = vpop.f32.mrf.mxu2  ;;  %v4880_v25 = vpop.f32.mrf.mxu0 }
 0x7bc   : > { %v4740_v45 = vadd.f32 %v4739_v28, %v4611_v39  ;;  %v5010_v44 = vadd.f32 %v5009_v19, %v4880_v25  ;;  %v15128_v19 = vld [vmem:[#allocation58_spill] sm:$0xff] }
 0x7bd   : > { %5048 = vmatmul.bf16.gmra.mxu1 %v15124_v61 }
 0x7be   : > { %v4869_v15 = vadd.f32 %v4868_v58, %v4740_v45  ;;  %4919 = vmatmul.bf16.gmra.mxu0 %v15123_v52  ;;  %v8974_v52 = vld [vmem:[%s10219_s3 + $0x568] sm:$0xf] }
 0x7bf   : > { %5306 = vmatmul.bf16.gmra.mxu3 %v15126_v13 }
 0x7c0   : > { %v7124_v23 = vadd.f32 %v4869_v15, %v692_v37  ;;  %5177 = vmatmul.bf16.gmra.mxu2 %v15125_v48  ;;  %v15127_v37 = vld [vmem:[#allocation57_spill] sm:$0xff]  ;;  %v9546_v48 = vld [vmem:[%s10219_s3 + $0x774] sm:$0xf0] }
 0x7c2   : > { %7316 = vst [vmem:[%s10236_s10 + $0x5e8] sm:$0xff] %v7124_v23  ;;  %v5267_v9 = vpop.f32.mrf.mxu3  ;;  %v5011_v21 = vpop.f32.mrf.mxu1  ;;  %v15129_v23 = vld [vmem:[#allocation59_spill] sm:$0xff] }
 0x7c3   : > { %v5138_v31 = vpop.f32.mrf.mxu2  ;;  %v4882_v12 = vpop.f32.mrf.mxu0 }
 0x7c4   : > { %v5139_v17 = vadd.f32 %v5138_v31, %v5010_v44  ;;  %v5012_v54 = vadd.f32 %v5011_v21, %v4882_v12  ;;  %v15130_v44 = vld [vmem:[#allocation60_spill] sm:$0xff] }
 0x7c6   : > { %v12643_v60 = vadd.f32 %v5267_v9, %v5139_v17 }
 0x7ca   : > { %v5269_v28 = vpop.f32.mrf.mxu3  ;;  %v5014_v15 = vpop.f32.mrf.mxu1 }
 0x7cb   : > { %v5140_v18 = vpop.f32.mrf.mxu2  ;;  %v4885_v45 = vpop.f32.mrf.mxu0 }
 0x7cc   : > { %v5141_v39 = vadd.f32 %v5140_v18, %v5012_v54  ;;  %v5015_v25 = vadd.f32 %v5014_v15, %v4885_v45 }
 0x7cd   : > { %5053 = vmatmul.bf16.gmra.mxu1 %v15128_v19  ;;  %v15132_v19 = vld [vmem:[#allocation62_spill] sm:$0xff] }
 0x7ce   : > { %v12645_v58 = vadd.f32 %v5269_v28, %v5141_v39  ;;  %4924 = vmatmul.bf16.gmra.mxu0 %v15127_v37  ;;  %v15133_v37 = vld [vmem:[#allocation63_spill] sm:$0xff] }
 0x7cf   : > { %5311 = vmatmul.bf16.gmra.mxu3 %v15130_v44 }
 0x7d0   : > { %5182 = vmatmul.bf16.gmra.mxu2 %v15129_v23 }
 0x7d2   : > { %v5272_v9 = vpop.f32.mrf.mxu3  ;;  %v5016_v21 = vpop.f32.mrf.mxu1 }
 0x7d3   : > { %v5143_v31 = vpop.f32.mrf.mxu2  ;;  %v4887_v12 = vpop.f32.mrf.mxu0 }
 0x7d4   : > { %v5144_v17 = vadd.f32 %v5143_v31, %v5015_v25  ;;  %v5017_v18 = vadd.f32 %v5016_v21, %v4887_v12  ;;  %v15131_v31 = vld [vmem:[#allocation61_spill] sm:$0xff]  ;;  %v9514_v12 = vld [vmem:[%s10219_s3 + $0x674] sm:$0xf0] }
 0x7d5   : > { %v8846_v21 = vld [vmem:[%s10219_s3 + $0x468] sm:$0xf] }
 0x7d6   : > { %v12651_v54 = vadd.f32 %v5272_v9, %v5144_v17  ;;  %v15134_v17 = vld [vmem:[#allocation64_spill] sm:$0xff]  ;;  %v9102_v9 = vld [vmem:[%s10219_s3 + $0x668] sm:$0xf] }
 0x7d7   : > { %v9103_v13 = vor.u32 %v9514_v12, %v9102_v9  ;;  %v9482_v9 = vld [vmem:[%s10219_s3 + $0x574] sm:$0xf0] }
 0x7d8   : > { %v8975_v12 = vor.u32 %v9482_v9, %v8974_v52 }
 0x7d9   : > { %5649 = vmatpush.bf16.msrb.mxu2 %v9103_v13  ;;  %v15136_v13 = vld [vmem:[#allocation66_spill] sm:$0xff] }
 0x7da   : > { %v5274_v45 = vpop.f32.mrf.mxu3  ;;  %v5019_v23 = vpop.f32.mrf.mxu1  ;;  %5520 = vmatpush.bf16.msrb.mxu1 %v8975_v12 }
 0x7db   : > { %v5145_v39 = vpop.f32.mrf.mxu2  ;;  %v4890_v15 = vpop.f32.mrf.mxu0 }
 0x7dc   : > { %v5146_v28 = vadd.f32 %v5145_v39, %v5017_v18  ;;  %v5020_v25 = vadd.f32 %v5019_v23, %v4890_v15  ;;  %v9450_v18 = vld [vmem:[%s10219_s3 + $0x474] sm:$0xf0]  ;;  %v9230_v39 = vld [vmem:[%s10219_s3 + $0x768] sm:$0xf] }
 0x7dd   : > { %5058 = vmatmul.bf16.gmra.mxu1 %v15132_v19  ;;  %v9231_v23 = vor.u32 %v9546_v48, %v9230_v39  ;;  %v15137_v39 = vld [vmem:[#allocation67_spill] sm:$0xff] }
 0x7de   : > { %v12653_v44 = vadd.f32 %v5274_v45, %v5146_v28  ;;  %4929 = vmatmul.bf16.gmra.mxu0 %v15131_v31  ;;  %v8847_v45 = vor.u32 %v9450_v18, %v8846_v21  ;;  %v15135_v18 = vld [vmem:[#allocation65_spill] sm:$0xff] }
 0x7df   : > { %5316 = vmatmul.bf16.gmra.mxu3 %v15134_v17 }
 0x7e0   : > { %5187 = vmatmul.bf16.gmra.mxu2 %v15133_v37  ;;  %5391 = vmatpush.bf16.msrb.mxu0 %v8847_v45 }
 0x7e1   : > { %5778 = vmatpush.bf16.msrb.mxu3 %v9231_v23 }
 0x7e2   : > { %v5277_v31 = vpop.f32.mrf.mxu3  ;;  %v5021_v19 = vpop.f32.mrf.mxu1 }
 0x7e3   : > { %v5148_v28 = vpop.f32.mrf.mxu2  ;;  %v4892_v61 = vpop.f32.mrf.mxu0 }
 0x7e4   : > { %v5149_v15 = vadd.f32 %v5148_v28, %v5020_v25  ;;  %v5022_v37 = vadd.f32 %v5021_v19, %v4892_v61 }
 0x7e6   : > { %v12665_v17 = vadd.f32 %v5277_v31, %v5149_v15  ;;  %v15138_v31 = vld [vmem:[#allocation68_spill] sm:$0xff] }
 0x7ea   : > { %v5279_v43 = vpop.f32.mrf.mxu3  ;;  %v5024_v21 = vpop.f32.mrf.mxu1 }
 0x7eb   : > { %v5150_v0 = vpop.f32.mrf.mxu2  ;;  %v4895_v32 = vpop.f32.mrf.mxu0 }
 0x7ec   : > { %v5151_v56 = vadd.f32 %v5150_v0, %v5022_v37  ;;  %v5025_v25 = vadd.f32 %v5024_v21, %v4895_v32  ;;  %v15139_v21 = vld [vmem:[#allocation69_spill] sm:$0xff] }
 0x7ed   : > { %5063 = vmatmul.bf16.gmra.mxu1 %v15136_v13 }
 0x7ee   : > { %v12669_v48 = vadd.f32 %v5279_v43, %v5151_v56  ;;  %4934 = vmatmul.bf16.gmra.mxu0 %v15135_v18  ;;  %v9542_v18 = vld [vmem:[%s10219_s3 + $0x754] sm:$0xf0] }
 0x7ef   : > { %5321 = vmatmul.bf16.gmra.mxu3 %v15138_v31  ;;  %v15141_v31 = vld [vmem:[#allocation71_spill] sm:$0xff] }
 0x7f0   : > { %5192 = vmatmul.bf16.gmra.mxu2 %v15137_v39  ;;  %v15140_v39 = vld [vmem:[#allocation70_spill] sm:$0xff] }
 0x7f2   : > { %v5282_v52 = vpop.f32.mrf.mxu3  ;;  %v5026_v45 = vpop.f32.mrf.mxu1 }
 0x7f3   : > { %v5153_v61 = vpop.f32.mrf.mxu2  ;;  %v4897_v28 = vpop.f32.mrf.mxu0 }
 0x7f4   : > { %v5154_v19 = vadd.f32 %v5153_v61, %v5025_v25  ;;  %v5027_v37 = vadd.f32 %v5026_v45, %v4897_v28  ;;  %v15142_v25 = vld [vmem:[#allocation72_spill] sm:$0xff] }
 0x7f6   : > { %v12675_v0 = vadd.f32 %v5282_v52, %v5154_v19 }
 0x7fa   : > { %v5284_v56 = vpop.f32.mrf.mxu3  ;;  %v5029_v15 = vpop.f32.mrf.mxu1 }
 0x7fb   : > { %v5155_v23 = vpop.f32.mrf.mxu2  ;;  %v4900_v32 = vpop.f32.mrf.mxu0 }
 0x7fc   : > { %v5156_v43 = vadd.f32 %v5155_v23, %v5027_v37  ;;  %v5030_v12 = vadd.f32 %v5029_v15, %v4900_v32 }
 0x7fd   : > { %5068 = vmatmul.bf16.gmra.mxu1 %v15140_v39  ;;  %v15144_v39 = vld [vmem:[#allocation74_spill] sm:$0xff] }
 0x7fe   : > { %v12677_v9 = vadd.f32 %v5284_v56, %v5156_v43  ;;  %4939 = vmatmul.bf16.gmra.mxu0 %v15139_v21  ;;  %v15145_v21 = vld [vmem:[#allocation75_spill] sm:$0xff] }
 0x7ff   : > { %5326 = vmatmul.bf16.gmra.mxu3 %v15142_v25 }
 0x800   : > { %5197 = vmatmul.bf16.gmra.mxu2 %v15141_v31 }
 0x802   : > { %v5287_v52 = vpop.f32.mrf.mxu3  ;;  %v5031_v45 = vpop.f32.mrf.mxu1 }
 0x803   : > { %v5158_v61 = vpop.f32.mrf.mxu2  ;;  %v4902_v28 = vpop.f32.mrf.mxu0 }
 0x804   : > { %v5159_v19 = vadd.f32 %v5158_v61, %v5030_v12  ;;  %v5032_v23 = vadd.f32 %v5031_v45, %v4902_v28  ;;  %v15143_v61 = vld [vmem:[#allocation73_spill] sm:$0xff]  ;;  %v9510_v28 = vld [vmem:[%s10219_s3 + $0x654] sm:$0xf0] }
 0x805   : > { %v8830_v45 = vld [vmem:[%s10219_s3 + $0x448] sm:$0xf] }
 0x806   : > { %v12683_v37 = vadd.f32 %v5287_v52, %v5159_v19  ;;  %v15146_v19 = vld [vmem:[#allocation76_spill] sm:$0xff]  ;;  %v9086_v52 = vld [vmem:[%s10219_s3 + $0x648] sm:$0xf] }
 0x807   : > { %v9087_v13 = vor.u32 %v9510_v28, %v9086_v52  ;;  %v9478_v52 = vld [vmem:[%s10219_s3 + $0x554] sm:$0xf0] }
 0x808   : > { %v8959_v28 = vor.u32 %v9478_v52, %v8958_v59 }
 0x809   : > { %5650 = vmatpush.bf16.msrb.mxu2 %v9087_v13  ;;  %v15148_v13 = vld [vmem:[#allocation78_spill] sm:$0xff] }
 0x80a   : > { %v5289_v32 = vpop.f32.mrf.mxu3  ;;  %v5034_v31 = vpop.f32.mrf.mxu1  ;;  %5521 = vmatpush.bf16.msrb.mxu1 %v8959_v28 }
 0x80b   : > { %v5160_v43 = vpop.f32.mrf.mxu2  ;;  %v4905_v15 = vpop.f32.mrf.mxu0 }
 0x80c   : > { %v5161_v56 = vadd.f32 %v5160_v43, %v5032_v23  ;;  %v5035_v12 = vadd.f32 %v5034_v31, %v4905_v15  ;;  %v9446_v23 = vld [vmem:[%s10219_s3 + $0x454] sm:$0xf0]  ;;  %v9214_v43 = vld [vmem:[%s10219_s3 + $0x748] sm:$0xf] }
 0x80d   : > { %5073 = vmatmul.bf16.gmra.mxu1 %v15144_v39  ;;  %v9215_v31 = vor.u32 %v9542_v18, %v9214_v43  ;;  %v15149_v43 = vld [vmem:[#allocation79_spill] sm:$0xff] }
 0x80e   : > { %v12685_v25 = vadd.f32 %v5289_v32, %v5161_v56  ;;  %4944 = vmatmul.bf16.gmra.mxu0 %v15143_v61  ;;  %v8831_v32 = vor.u32 %v9446_v23, %v8830_v45  ;;  %v15147_v23 = vld [vmem:[#allocation77_spill] sm:$0xff] }
 0x80f   : > { %5331 = vmatmul.bf16.gmra.mxu3 %v15146_v19 }
 0x810   : > { %5202 = vmatmul.bf16.gmra.mxu2 %v15145_v21  ;;  %5392 = vmatpush.bf16.msrb.mxu0 %v8831_v32 }
 0x811   : > { %5779 = vmatpush.bf16.msrb.mxu3 %v9215_v31 }
 0x812   : > { %v5292_v61 = vpop.f32.mrf.mxu3  ;;  %v5036_v39 = vpop.f32.mrf.mxu1 }
 0x813   : > { %v5163_v56 = vpop.f32.mrf.mxu2  ;;  %v4907_v1 = vpop.f32.mrf.mxu0 }
 0x814   : > { %v5164_v15 = vadd.f32 %v5163_v56, %v5035_v12  ;;  %v5037_v21 = vadd.f32 %v5036_v39, %v4907_v1 }
 0x816   : > { %v12697_v19 = vadd.f32 %v5292_v61, %v5164_v15  ;;  %v15150_v61 = vld [vmem:[#allocation80_spill] sm:$0xff] }
 0x81a   : > { %v5294_v47 = vpop.f32.mrf.mxu3  ;;  %v5039_v45 = vpop.f32.mrf.mxu1 }
 0x81b   : > { %v5165_v6 = vpop.f32.mrf.mxu2  ;;  %v4910_v8 = vpop.f32.mrf.mxu0 }
 0x81c   : > { %v5166_v49 = vadd.f32 %v5165_v6, %v5037_v21  ;;  %v5040_v12 = vadd.f32 %v5039_v45, %v4910_v8  ;;  %v15151_v45 = vld [vmem:[#allocation81_spill] sm:$0xff] }
 0x81d   : > { %5078 = vmatmul.bf16.gmra.mxu1 %v15148_v13 }
 0x81e   : > { %v12701_v18 = vadd.f32 %v5294_v47, %v5166_v49  ;;  %4949 = vmatmul.bf16.gmra.mxu0 %v15147_v23  ;;  %v9538_v23 = vld [vmem:[%s10219_s3 + $0x734] sm:$0xf0] }
 0x81f   : > { %5336 = vmatmul.bf16.gmra.mxu3 %v15150_v61  ;;  %v15153_v61 = vld [vmem:[#allocation83_spill] sm:$0xff] }
 0x820   : > { %5207 = vmatmul.bf16.gmra.mxu2 %v15149_v43  ;;  %v15152_v43 = vld [vmem:[#allocation82_spill] sm:$0xff] }
 0x822   : > { %v5297_v59 = vpop.f32.mrf.mxu3  ;;  %v5041_v32 = vpop.f32.mrf.mxu1 }
 0x823   : > { %v5168_v1 = vpop.f32.mrf.mxu2  ;;  %v4912_v56 = vpop.f32.mrf.mxu0 }
 0x824   : > { %v5169_v39 = vadd.f32 %v5168_v1, %v5040_v12  ;;  %v5042_v21 = vadd.f32 %v5041_v32, %v4912_v56  ;;  %v15154_v12 = vld [vmem:[#allocation84_spill] sm:$0xff] }
 0x826   : > { %v12707_v6 = vadd.f32 %v5297_v59, %v5169_v39 }
 0x82a   : > { %v5299_v49 = vpop.f32.mrf.mxu3  ;;  %v5044_v15 = vpop.f32.mrf.mxu1 }
 0x82b   : > { %v5170_v31 = vpop.f32.mrf.mxu2  ;;  %v4915_v8 = vpop.f32.mrf.mxu0 }
 0x82c   : > { %v5171_v47 = vadd.f32 %v5170_v31, %v5042_v21  ;;  %v5045_v28 = vadd.f32 %v5044_v15, %v4915_v8 }
 0x82d   : > { %5083 = vmatmul.bf16.gmra.mxu1 %v15152_v43  ;;  %v15157_v43 = vld [vmem:[#allocation86_spill] sm:$0xff] }
 0x82e   : > { %v12709_v52 = vadd.f32 %v5299_v49, %v5171_v47  ;;  %4954 = vmatmul.bf16.gmra.mxu0 %v15151_v45  ;;  %v15158_v45 = vld [vmem:[#allocation87_spill] sm:$0xff] }
 0x82f   : > { %5341 = vmatmul.bf16.gmra.mxu3 %v15154_v12 }
 0x830   : > { %5212 = vmatmul.bf16.gmra.mxu2 %v15153_v61 }
 0x832   : > { %v5302_v59 = vpop.f32.mrf.mxu3  ;;  %v5046_v32 = vpop.f32.mrf.mxu1 }
 0x833   : > { %v5173_v1 = vpop.f32.mrf.mxu2  ;;  %v4917_v56 = vpop.f32.mrf.mxu0 }
 0x834   : > { %v5174_v39 = vadd.f32 %v5173_v1, %v5045_v28  ;;  %v5047_v31 = vadd.f32 %v5046_v32, %v4917_v56  ;;  %v15156_v1 = vld [vmem:[#allocation85_spill] sm:$0xff]  ;;  %v9506_v56 = vld [vmem:[%s10219_s3 + $0x634] sm:$0xf0] }
 0x835   : > { %v8814_v32 = vld [vmem:[%s10219_s3 + $0x428] sm:$0xf] }
 0x836   : > { %v12715_v21 = vadd.f32 %v5302_v59, %v5174_v39  ;;  %v15159_v39 = vld [vmem:[#allocation88_spill] sm:$0xff]  ;;  %v9070_v59 = vld [vmem:[%s10219_s3 + $0x628] sm:$0xf] }
 0x837   : > { %v9071_v13 = vor.u32 %v9506_v56, %v9070_v59  ;;  %v9474_v59 = vld [vmem:[%s10219_s3 + $0x534] sm:$0xf0] }
 0x838   : > { %v8943_v56 = vor.u32 %v9474_v59, %v8942_v34 }
 0x839   : > { %5651 = vmatpush.bf16.msrb.mxu2 %v9071_v13  ;;  %v15163_v13 = vld [vmem:[#allocation90_spill] sm:$0xff] }
 0x83a   : > { %v5304_v8 = vpop.f32.mrf.mxu3  ;;  %v5049_v61 = vpop.f32.mrf.mxu1  ;;  %5522 = vmatpush.bf16.msrb.mxu1 %v8943_v56 }
 0x83b   : > { %v5175_v47 = vpop.f32.mrf.mxu2  ;;  %v4920_v15 = vpop.f32.mrf.mxu0 }
 0x83c   : > { %v5176_v49 = vadd.f32 %v5175_v47, %v5047_v31  ;;  %v5050_v28 = vadd.f32 %v5049_v61, %v4920_v15  ;;  %v9442_v31 = vld [vmem:[%s10219_s3 + $0x434] sm:$0xf0]  ;;  %v9198_v47 = vld [vmem:[%s10219_s3 + $0x728] sm:$0xf] }
 0x83d   : > { %5088 = vmatmul.bf16.gmra.mxu1 %v15157_v43  ;;  %v9199_v61 = vor.u32 %v9538_v23, %v9198_v47  ;;  %v15164_v47 = vld [vmem:[#allocation91_spill] sm:$0xff] }
 0x83e   : > { %v12717_v12 = vadd.f32 %v5304_v8, %v5176_v49  ;;  %4959 = vmatmul.bf16.gmra.mxu0 %v15156_v1  ;;  %v8815_v8 = vor.u32 %v9442_v31, %v8814_v32  ;;  %v15162_v31 = vld [vmem:[#allocation89_spill] sm:$0xff] }
 0x83f   : > { %5346 = vmatmul.bf16.gmra.mxu3 %v15159_v39 }
 0x840   : > { %15155 = vst [vmem:[#allocation161_spill] sm:$0xff] %v12717_v12  ;;  %5217 = vmatmul.bf16.gmra.mxu2 %v15158_v45  ;;  %5393 = vmatpush.bf16.msrb.mxu0 %v8815_v8 }
 0x841   : > { %5780 = vmatpush.bf16.msrb.mxu3 %v9199_v61 }
 0x842   : > { %v5307_v1 = vpop.f32.mrf.mxu3  ;;  %v5051_v43 = vpop.f32.mrf.mxu1 }
 0x843   : > { %v5178_v49 = vpop.f32.mrf.mxu2  ;;  %v4922_v16 = vpop.f32.mrf.mxu0 }
 0x844   : > { %v5179_v15 = vadd.f32 %v5178_v49, %v5050_v28  ;;  %v5052_v45 = vadd.f32 %v5051_v43, %v4922_v16 }
 0x846   : > { %v12729_v39 = vadd.f32 %v5307_v1, %v5179_v15  ;;  %v15165_v1 = vld [vmem:[#allocation92_spill] sm:$0xff] }
 0x848   : > { %15160 = vst [vmem:[#allocation162_spill] sm:$0xff] %v12729_v39 }
 0x84a   : > { %v5309_v42 = vpop.f32.mrf.mxu3  ;;  %v5054_v32 = vpop.f32.mrf.mxu1 }
 0x84b   : > { %v5180_v36 = vpop.f32.mrf.mxu2  ;;  %v4925_v12 = vpop.f32.mrf.mxu0 }
 0x84c   : > { %v5181_v55 = vadd.f32 %v5180_v36, %v5052_v45  ;;  %v5055_v28 = vadd.f32 %v5054_v32, %v4925_v12  ;;  %v15168_v32 = vld [vmem:[#allocation93_spill] sm:$0xff] }
 0x84d   : > { %5093 = vmatmul.bf16.gmra.mxu1 %v15163_v13 }
 0x84e   : > { %v12733_v23 = vadd.f32 %v5309_v42, %v5181_v55  ;;  %4964 = vmatmul.bf16.gmra.mxu0 %v15162_v31  ;;  %v9534_v31 = vld [vmem:[%s10219_s3 + $0x714] sm:$0xf0] }
 0x84f   : > { %5351 = vmatmul.bf16.gmra.mxu3 %v15165_v1  ;;  %v15170_v1 = vld [vmem:[#allocation95_spill] sm:$0xff] }
 0x850   : > { %15161 = vst [vmem:[#allocation163_spill] sm:$0xff] %v12733_v23  ;;  %5222 = vmatmul.bf16.gmra.mxu2 %v15164_v47  ;;  %v15169_v47 = vld [vmem:[#allocation94_spill] sm:$0xff] }
 0x852   : > { %v5312_v34 = vpop.f32.mrf.mxu3  ;;  %v5056_v8 = vpop.f32.mrf.mxu1 }
 0x853   : > { %v5183_v16 = vpop.f32.mrf.mxu2  ;;  %v4927_v49 = vpop.f32.mrf.mxu0 }
 0x854   : > { %v5184_v43 = vadd.f32 %v5183_v16, %v5055_v28  ;;  %v5057_v45 = vadd.f32 %v5056_v8, %v4927_v49  ;;  %v15171_v28 = vld [vmem:[#allocation96_spill] sm:$0xff] }
 0x856   : > { %v12739_v36 = vadd.f32 %v5312_v34, %v5184_v43 }
 0x858   : > { %15166 = vst [vmem:[#allocation169_spill] sm:$0xff] %v12739_v36 }
 0x85a   : > { %v5314_v55 = vpop.f32.mrf.mxu3  ;;  %v5059_v15 = vpop.f32.mrf.mxu1 }
 0x85b   : > { %v5185_v61 = vpop.f32.mrf.mxu2  ;;  %v4930_v12 = vpop.f32.mrf.mxu0 }
 0x85c   : > { %v5186_v42 = vadd.f32 %v5185_v61, %v5057_v45  ;;  %v5060_v56 = vadd.f32 %v5059_v15, %v4930_v12 }
 0x85d   : > { %5098 = vmatmul.bf16.gmra.mxu1 %v15169_v47  ;;  %v15175_v47 = vld [vmem:[#allocation98_spill] sm:$0xff] }
 0x85e   : > { %v12741_v59 = vadd.f32 %v5314_v55, %v5186_v42  ;;  %4969 = vmatmul.bf16.gmra.mxu0 %v15168_v32  ;;  %v15176_v32 = vld [vmem:[#allocation99_spill] sm:$0xff] }
 0x85f   : > { %5356 = vmatmul.bf16.gmra.mxu3 %v15171_v28 }
 0x860   : > { %15167 = vst [vmem:[#allocation170_spill] sm:$0xff] %v12741_v59  ;;  %5227 = vmatmul.bf16.gmra.mxu2 %v15170_v1 }
 0x862   : > { %v5317_v34 = vpop.f32.mrf.mxu3  ;;  %v5061_v8 = vpop.f32.mrf.mxu1 }
 0x863   : > { %v5188_v16 = vpop.f32.mrf.mxu2  ;;  %v4932_v49 = vpop.f32.mrf.mxu0 }
 0x864   : > { %v5189_v43 = vadd.f32 %v5188_v16, %v5060_v56  ;;  %v5062_v61 = vadd.f32 %v5061_v8, %v4932_v49  ;;  %v15174_v16 = vld [vmem:[#allocation97_spill] sm:$0xff]  ;;  %v9502_v49 = vld [vmem:[%s10219_s3 + $0x614] sm:$0xf0] }
 0x865   : > { %v8798_v8 = vld [vmem:[%s10219_s3 + $0x408] sm:$0xf] }
 0x866   : > { %v12747_v45 = vadd.f32 %v5317_v34, %v5189_v43  ;;  %v15177_v43 = vld [vmem:[#allocation100_spill] sm:$0xff]  ;;  %v9054_v34 = vld [vmem:[%s10219_s3 + $0x608] sm:$0xf] }
 0x867   : > { %v9055_v13 = vor.u32 %v9502_v49, %v9054_v34  ;;  %v9470_v34 = vld [vmem:[%s10219_s3 + $0x514] sm:$0xf0] }
 0x868   : > { %15172 = vst [vmem:[#allocation171_spill] sm:$0xff] %v12747_v45  ;;  %v8926_v45 = vld [vmem:[%s10219_s3 + $0x508] sm:$0xf] }
 0x869   : > { %5652 = vmatpush.bf16.msrb.mxu2 %v9055_v13  ;;  %v8927_v49 = vor.u32 %v9470_v34, %v8926_v45  ;;  %v15181_v13 = vld [vmem:[#allocation102_spill] sm:$0xff] }
 0x86a   : > { %v5319_v12 = vpop.f32.mrf.mxu3  ;;  %v5064_v1 = vpop.f32.mrf.mxu1 }
 0x86b   : > { %v5190_v42 = vpop.f32.mrf.mxu2  ;;  %v4935_v15 = vpop.f32.mrf.mxu0  ;;  %5523 = vmatpush.bf16.msrb.mxu1 %v8927_v49 }
 0x86c   : > { %v5191_v55 = vadd.f32 %v5190_v42, %v5062_v61  ;;  %v5065_v56 = vadd.f32 %v5064_v1, %v4935_v15  ;;  %v9438_v61 = vld [vmem:[%s10219_s3 + $0x414] sm:$0xf0]  ;;  %v9182_v42 = vld [vmem:[%s10219_s3 + $0x708] sm:$0xf] }
 0x86d   : > { %5103 = vmatmul.bf16.gmra.mxu1 %v15175_v47  ;;  %v9183_v1 = vor.u32 %v9534_v31, %v9182_v42  ;;  %v15182_v42 = vld [vmem:[#allocation103_spill] sm:$0xff] }
 0x86e   : > { %v12749_v28 = vadd.f32 %v5319_v12, %v5191_v55  ;;  %4974 = vmatmul.bf16.gmra.mxu0 %v15174_v16  ;;  %v8799_v12 = vor.u32 %v9438_v61, %v8798_v8  ;;  %v15180_v61 = vld [vmem:[#allocation101_spill] sm:$0xff] }
 0x86f   : > { %5361 = vmatmul.bf16.gmra.mxu3 %v15177_v43 }
 0x870   : > { %15173 = vst [vmem:[#allocation172_spill] sm:$0xff] %v12749_v28  ;;  %5232 = vmatmul.bf16.gmra.mxu2 %v15176_v32  ;;  %5394 = vmatpush.bf16.msrb.mxu0 %v8799_v12 }
 0x871   : > { %5781 = vmatpush.bf16.msrb.mxu3 %v9183_v1 }
 0x872   : > { %v5322_v16 = vpop.f32.mrf.mxu3  ;;  %v5066_v47 = vpop.f32.mrf.mxu1 }
 0x873   : > { %v5193_v55 = vpop.f32.mrf.mxu2  ;;  %v4937_v28 = vpop.f32.mrf.mxu0 }
 0x874   : > { %v5194_v15 = vadd.f32 %v5193_v55, %v5065_v56  ;;  %v5067_v32 = vadd.f32 %v5066_v47, %v4937_v28 }
 0x876   : > { %v12761_v43 = vadd.f32 %v5322_v16, %v5194_v15  ;;  %v15183_v16 = vld [vmem:[#allocation104_spill] sm:$0xff] }
 0x878   : > { %15178 = vst [vmem:[#allocation173_spill] sm:$0xff] %v12761_v43 }
 0x87a   : > { %v5324_v23 = vpop.f32.mrf.mxu3  ;;  %v5069_v8 = vpop.f32.mrf.mxu1 }
 0x87b   : > { %v5195_v59 = vpop.f32.mrf.mxu2  ;;  %v4940_v39 = vpop.f32.mrf.mxu0 }
 0x87c   : > { %v5196_v36 = vadd.f32 %v5195_v59, %v5067_v32  ;;  %v5070_v56 = vadd.f32 %v5069_v8, %v4940_v39  ;;  %v15186_v8 = vld [vmem:[#allocation105_spill] sm:$0xff] }
 0x87d   : > { %5108 = vmatmul.bf16.gmra.mxu1 %v15181_v13 }
 0x87e   : > { %v12765_v31 = vadd.f32 %v5324_v23, %v5196_v36  ;;  %4979 = vmatmul.bf16.gmra.mxu0 %v15180_v61  ;;  %v8784_v61 = vld [vmem:[%s10219_s3 + $0x3f8] sm:$0xf0] }
 0x87f   : > { %5366 = vmatmul.bf16.gmra.mxu3 %v15183_v16  ;;  %v15188_v16 = vld [vmem:[#allocation107_spill] sm:$0xff] }
 0x880   : > { %15179 = vst [vmem:[#allocation174_spill] sm:$0xff] %v12765_v31  ;;  %5237 = vmatmul.bf16.gmra.mxu2 %v15182_v42  ;;  %v15187_v42 = vld [vmem:[#allocation106_spill] sm:$0xff] }
 0x882   : > { %v5327_v45 = vpop.f32.mrf.mxu3  ;;  %v5071_v12 = vpop.f32.mrf.mxu1 }
 0x883   : > { %v5198_v47 = vpop.f32.mrf.mxu2  ;;  %v4942_v55 = vpop.f32.mrf.mxu0 }
 0x884   : > { %v5199_v28 = vadd.f32 %v5198_v47, %v5070_v56  ;;  %v5072_v32 = vadd.f32 %v5071_v12, %v4942_v55  ;;  %v15189_v56 = vld [vmem:[#allocation108_spill] sm:$0xff] }
 0x886   : > { %v12771_v59 = vadd.f32 %v5327_v45, %v5199_v28 }
 0x888   : > { %15184 = vst [vmem:[#allocation129_spill] sm:$0xff] %v12771_v59 }
 0x88a   : > { %v5329_v36 = vpop.f32.mrf.mxu3  ;;  %v5074_v15 = vpop.f32.mrf.mxu1 }
 0x88b   : > { %v5200_v1 = vpop.f32.mrf.mxu2  ;;  %v4945_v39 = vpop.f32.mrf.mxu0 }
 0x88c   : > { %v5201_v23 = vadd.f32 %v5200_v1, %v5072_v32  ;;  %v5075_v49 = vadd.f32 %v5074_v15, %v4945_v39 }
 0x88d   : > { %5113 = vmatmul.bf16.gmra.mxu1 %v15187_v42  ;;  %v15193_v42 = vld [vmem:[#allocation110_spill] sm:$0xff] }
 0x88e   : > { %v12773_v34 = vadd.f32 %v5329_v36, %v5201_v23  ;;  %4984 = vmatmul.bf16.gmra.mxu0 %v15186_v8  ;;  %v15194_v8 = vld [vmem:[#allocation111_spill] sm:$0xff] }
 0x88f   : > { %5371 = vmatmul.bf16.gmra.mxu3 %v15189_v56 }
 0x890   : > { %15185 = vst [vmem:[#allocation130_spill] sm:$0xff] %v12773_v34  ;;  %5242 = vmatmul.bf16.gmra.mxu2 %v15188_v16 }
 0x892   : > { %v5332_v45 = vpop.f32.mrf.mxu3  ;;  %v5076_v12 = vpop.f32.mrf.mxu1 }
 0x893   : > { %v5203_v47 = vpop.f32.mrf.mxu2  ;;  %v4947_v55 = vpop.f32.mrf.mxu0 }
 0x894   : > { %v5204_v28 = vadd.f32 %v5203_v47, %v5075_v49  ;;  %v5077_v1 = vadd.f32 %v5076_v12, %v4947_v55  ;;  %v15192_v47 = vld [vmem:[#allocation109_spill] sm:$0xff]  ;;  %v8656_v55 = vld [vmem:[%s10219_s3 + $0x2f8] sm:$0xf0] }
 0x895   : > { %v9336_v12 = vld [vmem:[%s10219_s3 + $0xec] sm:$0xf] }
 0x896   : > { %v12779_v32 = vadd.f32 %v5332_v45, %v5204_v28  ;;  %v15195_v28 = vld [vmem:[#allocation112_spill] sm:$0xff]  ;;  %v9400_v45 = vld [vmem:[%s10219_s3 + $0x2ec] sm:$0xf] }
 0x897   : > { %v8659_v13 = vor.u32 %v9400_v45, %v8656_v55  ;;  %v8528_v45 = vld [vmem:[%s10219_s3 + $0x1f8] sm:$0xf0] }
 0x898   : > { %15190 = vst [vmem:[#allocation135_spill] sm:$0xff] %v12779_v32  ;;  %v9368_v32 = vld [vmem:[%s10219_s3 + $0x1ec] sm:$0xf] }
 0x899   : > { %6161 = vmatpush.bf16.msra.mxu2 %v8659_v13  ;;  %v8531_v55 = vor.u32 %v9368_v32, %v8528_v45  ;;  %v15199_v13 = vld [vmem:[#allocation114_spill] sm:$0xff] }
 0x89a   : > { %v5334_v39 = vpop.f32.mrf.mxu3  ;;  %v5079_v16 = vpop.f32.mrf.mxu1 }
 0x89b   : > { %v5205_v23 = vpop.f32.mrf.mxu2  ;;  %v4950_v15 = vpop.f32.mrf.mxu0  ;;  %6032 = vmatpush.bf16.msra.mxu1 %v8531_v55 }
 0x89c   : > { %v5206_v36 = vadd.f32 %v5205_v23, %v5077_v1  ;;  %v5080_v49 = vadd.f32 %v5079_v16, %v4950_v15  ;;  %v8400_v1 = vld [vmem:[%s10219_s3 + $0xf8] sm:$0xf0]  ;;  %v9432_v23 = vld [vmem:[%s10219_s3 + $0x3ec] sm:$0xf] }
 0x89d   : > { %5118 = vmatmul.bf16.gmra.mxu1 %v15193_v42  ;;  %v8787_v16 = vor.u32 %v9432_v23, %v8784_v61  ;;  %v15200_v23 = vld [vmem:[#allocation115_spill] sm:$0xff] }
 0x89e   : > { %v12781_v56 = vadd.f32 %v5334_v39, %v5206_v36  ;;  %4989 = vmatmul.bf16.gmra.mxu0 %v15192_v47  ;;  %v8403_v39 = vor.u32 %v9336_v12, %v8400_v1  ;;  %v15198_v1 = vld [vmem:[#allocation113_spill] sm:$0xff] }
 0x89f   : > { %5376 = vmatmul.bf16.gmra.mxu3 %v15195_v28 }
 0x8a0   : > { %15191 = vst [vmem:[#allocation136_spill] sm:$0xff] %v12781_v56  ;;  %5247 = vmatmul.bf16.gmra.mxu2 %v15194_v8  ;;  %5903 = vmatpush.bf16.msra.mxu0 %v8403_v39 }
 0x8a1   : > { %6290 = vmatpush.bf16.msra.mxu3 %v8787_v16 }
 0x8a2   : > { %v5337_v47 = vpop.f32.mrf.mxu3  ;;  %v5081_v42 = vpop.f32.mrf.mxu1 }
 0x8a3   : > { %v5208_v36 = vpop.f32.mrf.mxu2  ;;  %v4952_v56 = vpop.f32.mrf.mxu0 }
 0x8a4   : > { %v5209_v15 = vadd.f32 %v5208_v36, %v5080_v49  ;;  %v5082_v8 = vadd.f32 %v5081_v42, %v4952_v56 }
 0x8a6   : > { %v12793_v28 = vadd.f32 %v5337_v47, %v5209_v15  ;;  %v15201_v47 = vld [vmem:[#allocation116_spill] sm:$0xff] }
 0x8a8   : > { %15196 = vst [vmem:[#allocation141_spill] sm:$0xff] %v12793_v28 }
 0x8aa   : > { %v5339_v31 = vpop.f32.mrf.mxu3  ;;  %v5084_v12 = vpop.f32.mrf.mxu1 }
 0x8ab   : > { %v5210_v34 = vpop.f32.mrf.mxu2  ;;  %v4955_v43 = vpop.f32.mrf.mxu0 }
 0x8ac   : > { %v5211_v59 = vadd.f32 %v5210_v34, %v5082_v8  ;;  %v5085_v49 = vadd.f32 %v5084_v12, %v4955_v43  ;;  %v15204_v12 = vld [vmem:[#allocation117_spill] sm:$0xff] }
 0x8ad   : > { %5123 = vmatmul.bf16.gmra.mxu1 %v15199_v13 }
 0x8ae   : > { %v12797_v61 = vadd.f32 %v5339_v31, %v5211_v59  ;;  %4994 = vmatmul.bf16.gmra.mxu0 %v15198_v1  ;;  %v8768_v1 = vld [vmem:[%s10219_s3 + $0x3d8] sm:$0xf0] }
 0x8af   : > { %5381 = vmatmul.bf16.gmra.mxu3 %v15201_v47  ;;  %v15206_v47 = vld [vmem:[#allocation119_spill] sm:$0xff] }
 0x8b0   : > { %15197 = vst [vmem:[#allocation142_spill] sm:$0xff] %v12797_v61  ;;  %5252 = vmatmul.bf16.gmra.mxu2 %v15200_v23  ;;  %v15205_v23 = vld [vmem:[#allocation118_spill] sm:$0xff] }
 0x8b2   : > { %v5342_v32 = vpop.f32.mrf.mxu3  ;;  %v5086_v39 = vpop.f32.mrf.mxu1 }
 0x8b3   : > { %v5213_v42 = vpop.f32.mrf.mxu2  ;;  %v4957_v36 = vpop.f32.mrf.mxu0 }
 0x8b4   : > { %v5214_v56 = vadd.f32 %v5213_v42, %v5085_v49  ;;  %v5087_v8 = vadd.f32 %v5086_v39, %v4957_v36  ;;  %v15207_v49 = vld [vmem:[#allocation120_spill] sm:$0xff] }
 0x8b6   : > { %v12803_v34 = vadd.f32 %v5342_v32, %v5214_v56 }
 0x8b8   : > { %15202 = vst [vmem:[#allocation147_spill] sm:$0xff] %v12803_v34 }
 0x8ba   : > { %v5344_v59 = vpop.f32.mrf.mxu3  ;;  %v5089_v15 = vpop.f32.mrf.mxu1 }
 0x8bb   : > { %v5215_v16 = vpop.f32.mrf.mxu2  ;;  %v4960_v43 = vpop.f32.mrf.mxu0 }
 0x8bc   : > { %v5216_v31 = vadd.f32 %v5215_v16, %v5087_v8  ;;  %v5090_v55 = vadd.f32 %v5089_v15, %v4960_v43 }
 0x8bd   : > { %5524 = vmatmul.bf16.vlgmr.msrb.gmra.mxu1 %v15205_v23  ;;  %v15211_v23 = vld [vmem:[#allocation122_spill] sm:$0xff] }
 0x8be   : > { %v12805_v45 = vadd.f32 %v5344_v59, %v5216_v31  ;;  %5395 = vmatmul.bf16.vlgmr.msrb.gmra.mxu0 %v15204_v12  ;;  %v15212_v12 = vld [vmem:[#allocation123_spill] sm:$0xff] }
 0x8bf   : > { %5782 = vmatmul.bf16.vlgmr.msrb.gmra.mxu3 %v15207_v49 }
 0x8c0   : > { %15203 = vst [vmem:[#allocation148_spill] sm:$0xff] %v12805_v45  ;;  %5653 = vmatmul.bf16.vlgmr.msrb.gmra.mxu2 %v15206_v47 }
 0x8c2   : > { %v5347_v32 = vpop.f32.mrf.mxu3  ;;  %v5091_v39 = vpop.f32.mrf.mxu1 }
 0x8c3   : > { %v5218_v42 = vpop.f32.mrf.mxu2  ;;  %v4962_v36 = vpop.f32.mrf.mxu0 }
 0x8c4   : > { %v5219_v56 = vadd.f32 %v5218_v42, %v5090_v55  ;;  %v5092_v16 = vadd.f32 %v5091_v39, %v4962_v36  ;;  %v15210_v42 = vld [vmem:[#allocation121_spill] sm:$0xff]  ;;  %v8640_v36 = vld [vmem:[%s10219_s3 + $0x2d8] sm:$0xf0] }
 0x8c5   : > { %v9332_v39 = vld [vmem:[%s10219_s3 + $0xcc] sm:$0xf] }
 0x8c6   : > { %v12811_v8 = vadd.f32 %v5347_v32, %v5219_v56  ;;  %v15213_v56 = vld [vmem:[#allocation124_spill] sm:$0xff]  ;;  %v9396_v32 = vld [vmem:[%s10219_s3 + $0x2cc] sm:$0xf] }
 0x8c7   : > { %v8643_v13 = vor.u32 %v9396_v32, %v8640_v36  ;;  %v8512_v32 = vld [vmem:[%s10219_s3 + $0x1d8] sm:$0xf0] }
 0x8c8   : > { %15208 = vst [vmem:[#allocation153_spill] sm:$0xff] %v12811_v8  ;;  %v9364_v8 = vld [vmem:[%s10219_s3 + $0x1cc] sm:$0xf] }
 0x8c9   : > { %6162 = vmatpush.bf16.msra.mxu2 %v8643_v13  ;;  %v8515_v36 = vor.u32 %v9364_v8, %v8512_v32  ;;  %v15217_v13 = vld [vmem:[#allocation126_spill] sm:$0xff] }
 0x8ca   : > { %v5349_v43 = vpop.f32.mrf.mxu3  ;;  %v5094_v47 = vpop.f32.mrf.mxu1 }
 0x8cb   : > { %v5220_v31 = vpop.f32.mrf.mxu2  ;;  %v4965_v15 = vpop.f32.mrf.mxu0  ;;  %6033 = vmatpush.bf16.msra.mxu1 %v8515_v36 }
 0x8cc   : > { %v5221_v59 = vadd.f32 %v5220_v31, %v5092_v16  ;;  %v5095_v55 = vadd.f32 %v5094_v47, %v4965_v15  ;;  %v8384_v16 = vld [vmem:[%s10219_s3 + $0xd8] sm:$0xf0]  ;;  %v9428_v31 = vld [vmem:[%s10219_s3 + $0x3cc] sm:$0xf] }
 0x8cd   : > { %5529 = vmatmul.bf16.gmra.mxu1 %v15211_v23  ;;  %v8771_v47 = vor.u32 %v9428_v31, %v8768_v1  ;;  %v15218_v31 = vld [vmem:[#allocation127_spill] sm:$0xff] }
 0x8ce   : > { %v12813_v49 = vadd.f32 %v5349_v43, %v5221_v59  ;;  %5400 = vmatmul.bf16.gmra.mxu0 %v15210_v42  ;;  %v8387_v43 = vor.u32 %v9332_v39, %v8384_v16  ;;  %v15216_v16 = vld [vmem:[#allocation125_spill] sm:$0xff] }
 0x8cf   : > { %5787 = vmatmul.bf16.gmra.mxu3 %v15213_v56 }
 0x8d0   : > { %15209 = vst [vmem:[#allocation154_spill] sm:$0xff] %v12813_v49  ;;  %5658 = vmatmul.bf16.gmra.mxu2 %v15212_v12  ;;  %5904 = vmatpush.bf16.msra.mxu0 %v8387_v43 }
 0x8d1   : > { %6291 = vmatpush.bf16.msra.mxu3 %v8771_v47 }
 0x8d2   : > { %v5352_v42 = vpop.f32.mrf.mxu3  ;;  %v5096_v23 = vpop.f32.mrf.mxu1 }
 0x8d3   : > { %v5223_v59 = vpop.f32.mrf.mxu2  ;;  %v4967_v49 = vpop.f32.mrf.mxu0 }
 0x8d4   : > { %v5224_v15 = vadd.f32 %v5223_v59, %v5095_v55  ;;  %v5097_v12 = vadd.f32 %v5096_v23, %v4967_v49 }
 0x8d6   : > { %v12825_v56 = vadd.f32 %v5352_v42, %v5224_v15  ;;  %v15219_v42 = vld [vmem:[#allocation128_spill] sm:$0xff] }
 0x8d8   : > { %15214 = vst [vmem:[#allocation159_spill] sm:$0xff] %v12825_v56 }
 0x8da   : > { %v5354_v61 = vpop.f32.mrf.mxu3  ;;  %v5099_v39 = vpop.f32.mrf.mxu1 }
 0x8db   : > { %v5225_v45 = vpop.f32.mrf.mxu2  ;;  %v4970_v28 = vpop.f32.mrf.mxu0 }
 0x8dc   : > { %v5226_v34 = vadd.f32 %v5225_v45, %v5097_v12  ;;  %v5100_v55 = vadd.f32 %v5099_v39, %v4970_v28  ;;  %v15222_v39 = vld [vmem:[#allocation131_spill] sm:$0xff] }
 0x8dd   : > { %5534 = vmatmul.bf16.gmra.mxu1 %v15217_v13 }
 0x8de   : > { %v12829_v1 = vadd.f32 %v5354_v61, %v5226_v34  ;;  %5405 = vmatmul.bf16.gmra.mxu0 %v15216_v16  ;;  %v8752_v16 = vld [vmem:[%s10219_s3 + $0x3b8] sm:$0xf0] }
 0x8df   : > { %5792 = vmatmul.bf16.gmra.mxu3 %v15219_v42  ;;  %v15224_v42 = vld [vmem:[#allocation133_spill] sm:$0xff] }
 0x8e0   : > { %15215 = vst [vmem:[#allocation160_spill] sm:$0xff] %v12829_v1  ;;  %5663 = vmatmul.bf16.gmra.mxu2 %v15218_v31  ;;  %v15223_v31 = vld [vmem:[#allocation132_spill] sm:$0xff] }
 0x8e2   : > { %v5357_v8 = vpop.f32.mrf.mxu3  ;;  %v5101_v43 = vpop.f32.mrf.mxu1 }
 0x8e3   : > { %v5228_v23 = vpop.f32.mrf.mxu2  ;;  %v4972_v59 = vpop.f32.mrf.mxu0 }
 0x8e4   : > { %v5229_v49 = vadd.f32 %v5228_v23, %v5100_v55  ;;  %v5102_v12 = vadd.f32 %v5101_v43, %v4972_v59  ;;  %v15225_v55 = vld [vmem:[#allocation134_spill] sm:$0xff] }
 0x8e6   : > { %v12835_v45 = vadd.f32 %v5357_v8, %v5229_v49 }
 0x8e8   : > { %15220 = vst [vmem:[#allocation210_spill] sm:$0xff] %v12835_v45 }
 0x8ea   : > { %v5359_v34 = vpop.f32.mrf.mxu3  ;;  %v5104_v15 = vpop.f32.mrf.mxu1 }
 0x8eb   : > { %v5230_v47 = vpop.f32.mrf.mxu2  ;;  %v4975_v28 = vpop.f32.mrf.mxu0 }
 0x8ec   : > { %v5231_v61 = vadd.f32 %v5230_v47, %v5102_v12  ;;  %v5105_v36 = vadd.f32 %v5104_v15, %v4975_v28 }
 0x8ed   : > { %5539 = vmatmul.bf16.gmra.mxu1 %v15223_v31  ;;  %v15229_v31 = vld [vmem:[#allocation138_spill] sm:$0xff] }
 0x8ee   : > { %v12837_v32 = vadd.f32 %v5359_v34, %v5231_v61  ;;  %5410 = vmatmul.bf16.gmra.mxu0 %v15222_v39  ;;  %v15230_v39 = vld [vmem:[#allocation139_spill] sm:$0xff] }
 0x8ef   : > { %5797 = vmatmul.bf16.gmra.mxu3 %v15225_v55 }
 0x8f0   : > { %15221 = vst [vmem:[#allocation211_spill] sm:$0xff] %v12837_v32  ;;  %5668 = vmatmul.bf16.gmra.mxu2 %v15224_v42 }
 0x8f2   : > { %v5362_v8 = vpop.f32.mrf.mxu3  ;;  %v5106_v43 = vpop.f32.mrf.mxu1 }
 0x8f3   : > { %v5233_v23 = vpop.f32.mrf.mxu2  ;;  %v4977_v59 = vpop.f32.mrf.mxu0 }
 0x8f4   : > { %v5234_v49 = vadd.f32 %v5233_v23, %v5105_v36  ;;  %v5107_v47 = vadd.f32 %v5106_v43, %v4977_v59  ;;  %v15228_v23 = vld [vmem:[#allocation137_spill] sm:$0xff]  ;;  %v8624_v59 = vld [vmem:[%s10219_s3 + $0x2b8] sm:$0xf0] }
 0x8f5   : > { %v9328_v43 = vld [vmem:[%s10219_s3 + $0xac] sm:$0xf] }
 0x8f6   : > { %v12843_v12 = vadd.f32 %v5362_v8, %v5234_v49  ;;  %v15231_v49 = vld [vmem:[#allocation140_spill] sm:$0xff]  ;;  %v9392_v8 = vld [vmem:[%s10219_s3 + $0x2ac] sm:$0xf] }
 0x8f7   : > { %v8627_v13 = vor.u32 %v9392_v8, %v8624_v59  ;;  %v8496_v8 = vld [vmem:[%s10219_s3 + $0x1b8] sm:$0xf0] }
 0x8f8   : > { %15226 = vst [vmem:[#allocation212_spill] sm:$0xff] %v12843_v12  ;;  %v9360_v12 = vld [vmem:[%s10219_s3 + $0x1ac] sm:$0xf] }
 0x8f9   : > { %6163 = vmatpush.bf16.msra.mxu2 %v8627_v13  ;;  %v8499_v59 = vor.u32 %v9360_v12, %v8496_v8  ;;  %v15235_v13 = vld [vmem:[#allocation144_spill] sm:$0xff] }
 0x8fa   : > { %v5364_v28 = vpop.f32.mrf.mxu3  ;;  %v5109_v42 = vpop.f32.mrf.mxu1 }
 0x8fb   : > { %v5235_v61 = vpop.f32.mrf.mxu2  ;;  %v4980_v15 = vpop.f32.mrf.mxu0  ;;  %6034 = vmatpush.bf16.msra.mxu1 %v8499_v59 }
 0x8fc   : > { %v5236_v34 = vadd.f32 %v5235_v61, %v5107_v47  ;;  %v5110_v36 = vadd.f32 %v5109_v42, %v4980_v15  ;;  %v8368_v47 = vld [vmem:[%s10219_s3 + $0xb8] sm:$0xf0]  ;;  %v9424_v61 = vld [vmem:[%s10219_s3 + $0x3ac] sm:$0xf] }
 0x8fd   : > { %5544 = vmatmul.bf16.gmra.mxu1 %v15229_v31  ;;  %v8755_v42 = vor.u32 %v9424_v61, %v8752_v16  ;;  %v15236_v61 = vld [vmem:[#allocation145_spill] sm:$0xff] }
 0x8fe   : > { %v12845_v55 = vadd.f32 %v5364_v28, %v5236_v34  ;;  %5415 = vmatmul.bf16.gmra.mxu0 %v15228_v23  ;;  %v8371_v28 = vor.u32 %v9328_v43, %v8368_v47  ;;  %v15234_v47 = vld [vmem:[#allocation143_spill] sm:$0xff] }
 0x8ff   : > { %5802 = vmatmul.bf16.gmra.mxu3 %v15231_v49 }
 0x900   : > { %15227 = vst [vmem:[#allocation213_spill] sm:$0xff] %v12845_v55  ;;  %5673 = vmatmul.bf16.gmra.mxu2 %v15230_v39  ;;  %5905 = vmatpush.bf16.msra.mxu0 %v8371_v28 }
 0x901   : > { %6292 = vmatpush.bf16.msra.mxu3 %v8755_v42 }
 0x902   : > { %v5367_v23 = vpop.f32.mrf.mxu3  ;;  %v5111_v31 = vpop.f32.mrf.mxu1 }
 0x903   : > { %v5238_v34 = vpop.f32.mrf.mxu2  ;;  %v4982_v55 = vpop.f32.mrf.mxu0 }
 0x904   : > { %v5239_v15 = vadd.f32 %v5238_v34, %v5110_v36  ;;  %v5112_v39 = vadd.f32 %v5111_v31, %v4982_v55 }
 0x906   : > { %v12857_v49 = vadd.f32 %v5367_v23, %v5239_v15  ;;  %v15237_v23 = vld [vmem:[#allocation146_spill] sm:$0xff] }
 0x908   : > { %15232 = vst [vmem:[#allocation214_spill] sm:$0xff] %v12857_v49 }
 0x90a   : > { %v5369_v1 = vpop.f32.mrf.mxu3  ;;  %v5114_v43 = vpop.f32.mrf.mxu1 }
 0x90b   : > { %v5240_v32 = vpop.f32.mrf.mxu2  ;;  %v4985_v56 = vpop.f32.mrf.mxu0 }
 0x90c   : > { %v5241_v45 = vadd.f32 %v5240_v32, %v5112_v39  ;;  %v5115_v36 = vadd.f32 %v5114_v43, %v4985_v56  ;;  %v15240_v43 = vld [vmem:[#allocation149_spill] sm:$0xff] }
 0x90d   : > { %5549 = vmatmul.bf16.gmra.mxu1 %v15235_v13  ;;  %v8352_v13 = vld [vmem:[%s10219_s3 + $0x98] sm:$0xf0] }
 0x90e   : > { %v12861_v16 = vadd.f32 %v5369_v1, %v5241_v45  ;;  %5420 = vmatmul.bf16.gmra.mxu0 %v15234_v47  ;;  %v9420_v47 = vld [vmem:[%s10219_s3 + $0x38c] sm:$0xf] }
 0x90f   : > { %5807 = vmatmul.bf16.gmra.mxu3 %v15237_v23  ;;  %v15242_v23 = vld [vmem:[#allocation151_spill] sm:$0xff] }
 0x910   : > { %15233 = vst [vmem:[#allocation215_spill] sm:$0xff] %v12861_v16  ;;  %5678 = vmatmul.bf16.gmra.mxu2 %v15236_v61  ;;  %v15241_v61 = vld [vmem:[#allocation150_spill] sm:$0xff] }
 0x912   : > { %v5372_v12 = vpop.f32.mrf.mxu3  ;;  %v5116_v28 = vpop.f32.mrf.mxu1 }
 0x913   : > { %v5243_v31 = vpop.f32.mrf.mxu2  ;;  %v4987_v34 = vpop.f32.mrf.mxu0 }
 0x914   : > { %v5244_v55 = vadd.f32 %v5243_v31, %v5115_v36  ;;  %v5117_v39 = vadd.f32 %v5116_v28, %v4987_v34  ;;  %v15243_v36 = vld [vmem:[#allocation152_spill] sm:$0xff] }
 0x916   : > { %v12867_v32 = vadd.f32 %v5372_v12, %v5244_v55 }
 0x918   : > { %15238 = vst [vmem:[#allocation216_spill] sm:$0xff] %v12867_v32 }
 0x91a   : > { %v5374_v45 = vpop.f32.mrf.mxu3  ;;  %v5119_v15 = vpop.f32.mrf.mxu1 }
 0x91b   : > { %v5245_v42 = vpop.f32.mrf.mxu2  ;;  %v4990_v56 = vpop.f32.mrf.mxu0 }
 0x91c   : > { %v5246_v1 = vadd.f32 %v5245_v42, %v5117_v39  ;;  %v5120_v59 = vadd.f32 %v5119_v15, %v4990_v56 }
 0x91d   : > { %5554 = vmatmul.bf16.gmra.mxu1 %v15241_v61  ;;  %v15247_v61 = vld [vmem:[#allocation156_spill] sm:$0xff] }
 0x91e   : > { %v12869_v8 = vadd.f32 %v5374_v45, %v5246_v1  ;;  %5425 = vmatmul.bf16.gmra.mxu0 %v15240_v43  ;;  %v15248_v43 = vld [vmem:[#allocation157_spill] sm:$0xff] }
 0x91f   : > { %5812 = vmatmul.bf16.gmra.mxu3 %v15243_v36 }
 0x920   : > { %15239 = vst [vmem:[#allocation217_spill] sm:$0xff] %v12869_v8  ;;  %5683 = vmatmul.bf16.gmra.mxu2 %v15242_v23  ;;  %v8480_v8 = vld [vmem:[%s10219_s3 + $0x198] sm:$0xf0] }
 0x922   : > { %v5377_v12 = vpop.f32.mrf.mxu3  ;;  %v5121_v28 = vpop.f32.mrf.mxu1 }
 0x923   : > { %v5248_v31 = vpop.f32.mrf.mxu2  ;;  %v4992_v34 = vpop.f32.mrf.mxu0 }
 0x924   : > { %v5249_v55 = vadd.f32 %v5248_v31, %v5120_v59  ;;  %v5122_v42 = vadd.f32 %v5121_v28, %v4992_v34  ;;  %v15246_v31 = vld [vmem:[#allocation155_spill] sm:$0xff]  ;;  %v9324_v28 = vld [vmem:[%s10219_s3 + $0x8c] sm:$0xf] }
 0x925   : > { %v8608_v34 = vld [vmem:[%s10219_s3 + $0x298] sm:$0xf0] }
 0x926   : > { %v12875_v39 = vadd.f32 %v5377_v12, %v5249_v55  ;;  %v15249_v55 = vld [vmem:[#allocation158_spill] sm:$0xff]  ;;  %v9388_v12 = vld [vmem:[%s10219_s3 + $0x28c] sm:$0xf] }
 0x928   : > { %15244 = vst [vmem:[#allocation218_spill] sm:$0xff] %v12875_v39  ;;  %v9356_v39 = vld [vmem:[%s10219_s3 + $0x18c] sm:$0xf] }
 0x92a   : > { %v5379_v56 = vpop.f32.mrf.mxu3  ;;  %v5124_v23 = vpop.f32.mrf.mxu1 }
 0x92b   : > { %v5250_v1 = vpop.f32.mrf.mxu2  ;;  %v4995_v15 = vpop.f32.mrf.mxu0 }
 0x92c   : > { %v5251_v45 = vadd.f32 %v5250_v1, %v5122_v42  ;;  %v5125_v59 = vadd.f32 %v5124_v23, %v4995_v15  ;;  %v8611_v1 = vor.u32 %v9388_v12, %v8608_v34  ;;  %v8483_v12 = vor.u32 %v9356_v39, %v8480_v8  ;;  %v505_v39 = vld [vmem:[%s10236_s10 + $0x10] sm:$0xff] }
 0x92d   : > { %5559 = vmatmul.bf16.gmra.mxu1 %v15247_v61 }
 0x92e   : > { %v12877_v36 = vadd.f32 %v5379_v56, %v5251_v45  ;;  %5430 = vmatmul.bf16.gmra.mxu0 %v15246_v31  ;;  %v8736_v45 = vld [vmem:[%s10219_s3 + $0x398] sm:$0xf0]  ;;  %v8355_v31 = vor.u32 %v9324_v28, %v8352_v13  ;;  %6164 = vmatpush.bf16.msra.mxu2 %v8611_v1 }
 0x92f   : > { %5817 = vmatmul.bf16.gmra.mxu3 %v15249_v55  ;;  %6035 = vmatpush.bf16.msra.mxu1 %v8483_v12 }
 0x930   : > { %15245 = vst [vmem:[#allocation219_spill] sm:$0xff] %v12877_v36  ;;  %5688 = vmatmul.bf16.gmra.mxu2 %v15248_v43  ;;  %v8739_v36 = vor.u32 %v9420_v47, %v8736_v45  ;;  %5906 = vmatpush.bf16.msra.mxu0 %v8355_v31 }
 0x932   : > { %v5382_v23 = vpop.f32.mrf.mxu3  ;;  %v5126_v61 = vpop.f32.mrf.mxu1  ;;  %6293 = vmatpush.bf16.msra.mxu3 %v8739_v36 }
 0x933   : > { %v5253_v42 = vpop.f32.mrf.mxu2  ;;  %v4997_v15 = vpop.f32.mrf.mxu0 }
 0x934   : > { %v5254_v56 = vadd.f32 %v5253_v42, %v5125_v59  ;;  %v5127_v55 = vadd.f32 %v5126_v61, %v4997_v15 }
 0x936   : > { %v12889_v43 = vadd.f32 %v5382_v23, %v5254_v56  ;;  %v509_v23 = vld [vmem:[%s10236_s10 + $0x30] sm:$0xff] }
 0x93a   : > { %v5384_v16 = vpop.f32.mrf.mxu3  ;;  %v5525_v59 = vpop.f32.mrf.mxu1 }
 0x93b   : > { %v5255_v32 = vpop.f32.mrf.mxu2  ;;  %v5396_v49 = vpop.f32.mrf.mxu0 }
 0x93c   : > { %v5256_v34 = vadd.f32 %v5255_v32, %v5127_v55  ;;  %v5397_v47 = vadd.f32 %v5396_v49, %v12643_v60 }
 0x93d   : > { %5564 = vmatmul.bf16.gmra.mxu1 %v11527_v22 }
 0x93e   : > { %v12893_v42 = vadd.f32 %v5384_v16, %v5256_v34  ;;  %5435 = vmatmul.bf16.gmra.mxu0 %v11525_v10  ;;  %v5526_v13 = vadd.f32 %v5525_v59, %v5397_v47 }
 0x93f   : > { %5822 = vmatmul.bf16.gmra.mxu3 %v15024_v5 }
 0x940   : > { %5693 = vmatmul.bf16.gmra.mxu2 %v15023_v38 }
 0x942   : > { %v5783_v8 = vpop.f32.mrf.mxu3  ;;  %v5527_v16 = vpop.f32.mrf.mxu1 }
 0x943   : > { %v5654_v61 = vpop.f32.mrf.mxu2  ;;  %v5398_v36 = vpop.f32.mrf.mxu0 }
 0x944   : > { %v5655_v32 = vadd.f32 %v5654_v61, %v5526_v13  ;;  %v5399_v55 = vadd.f32 %v5398_v36, %v12645_v58  ;;  %v15250_v58 = vld [vmem:[#allocation164_spill] sm:$0xff]  ;;  %v513_v36 = vld [vmem:[%s10236_s10 + $0x50] sm:$0xff] }
 0x946   : > { %v5784_v31 = vadd.f32 %v5783_v8, %v5655_v32  ;;  %v5528_v49 = vadd.f32 %v5527_v16, %v5399_v55 }
 0x948   : > { %v6937_v60 = vadd.f32 %v5784_v31, %v505_v39 }
 0x94a   : > { %7129 = vst [vmem:[%s10236_s10 + $0x10] sm:$0xff] %v6937_v60  ;;  %v5785_v45 = vpop.f32.mrf.mxu3  ;;  %v5530_v15 = vpop.f32.mrf.mxu1 }
 0x94b   : > { %v5656_v28 = vpop.f32.mrf.mxu2  ;;  %v5401_v56 = vpop.f32.mrf.mxu0 }
 0x94c   : > { %v5657_v1 = vadd.f32 %v5656_v28, %v5528_v49  ;;  %v5402_v34 = vadd.f32 %v5401_v56, %v12651_v54 }
 0x94d   : > { %5569 = vmatmul.bf16.gmra.mxu1 %v11553_v24 }
 0x94e   : > { %v5786_v12 = vadd.f32 %v5785_v45, %v5657_v1  ;;  %5440 = vmatmul.bf16.gmra.mxu0 %v11551_v27  ;;  %v5531_v47 = vadd.f32 %v5530_v15, %v5402_v34  ;;  %v517_v45 = vld [vmem:[%s10236_s10 + $0x70] sm:$0xff]  ;;  %v15252_v34 = vld [vmem:[#allocation166_spill] sm:$0xff] }
 0x94f   : > { %5827 = vmatmul.bf16.gmra.mxu3 %v15250_v58 }
 0x950   : > { %v6941_v59 = vadd.f32 %v5786_v12, %v509_v23  ;;  %5698 = vmatmul.bf16.gmra.mxu2 %v15025_v14  ;;  %v15251_v12 = vld [vmem:[#allocation165_spill] sm:$0xff] }
 0x952   : > { %7133 = vst [vmem:[%s10236_s10 + $0x30] sm:$0xff] %v6941_v59  ;;  %v5788_v32 = vpop.f32.mrf.mxu3  ;;  %v5532_v39 = vpop.f32.mrf.mxu1  ;;  %v15253_v59 = vld [vmem:[#allocation167_spill] sm:$0xff] }
 0x953   : > { %v5659_v13 = vpop.f32.mrf.mxu2  ;;  %v5403_v8 = vpop.f32.mrf.mxu0 }
 0x954   : > { %v5660_v61 = vadd.f32 %v5659_v13, %v5531_v47  ;;  %v5404_v16 = vadd.f32 %v5403_v8, %v12653_v44  ;;  %v15254_v47 = vld [vmem:[#allocation168_spill] sm:$0xff] }
 0x956   : > { %v5789_v54 = vadd.f32 %v5788_v32, %v5660_v61  ;;  %v5533_v55 = vadd.f32 %v5532_v39, %v5404_v16  ;;  %v9384_v61 = vld [vmem:[%s10219_s3 + $0x26c] sm:$0xf]  ;;  %v8592_v32 = vld [vmem:[%s10219_s3 + $0x278] sm:$0xf0] }
 0x957   : > { %v9320_v39 = vld [vmem:[%s10219_s3 + $0x6c] sm:$0xf] }
 0x958   : > { %v6945_v31 = vadd.f32 %v5789_v54, %v513_v36  ;;  %v8595_v36 = vor.u32 %v9384_v61, %v8592_v32  ;;  %v8336_v54 = vld [vmem:[%s10219_s3 + $0x78] sm:$0xf0] }
 0x959   : > { %v8464_v61 = vld [vmem:[%s10219_s3 + $0x178] sm:$0xf0] }
 0x95a   : > { %7137 = vst [vmem:[%s10236_s10 + $0x50] sm:$0xff] %v6945_v31  ;;  %v5790_v28 = vpop.f32.mrf.mxu3  ;;  %v5535_v56 = vpop.f32.mrf.mxu1  ;;  %6165 = vmatpush.bf16.msra.mxu2 %v8595_v36 }
 0x95b   : > { %v5661_v60 = vpop.f32.mrf.mxu2  ;;  %v5406_v1 = vpop.f32.mrf.mxu0 }
 0x95c   : > { %v5662_v49 = vadd.f32 %v5661_v60, %v5533_v55  ;;  %v5407_v15 = vadd.f32 %v5406_v1, %v12665_v17  ;;  %v9416_v17 = vld [vmem:[%s10219_s3 + $0x36c] sm:$0xf]  ;;  %v8339_v60 = vor.u32 %v9320_v39, %v8336_v54 }
 0x95d   : > { %5574 = vmatmul.bf16.gmra.mxu1 %v15252_v34 }
 0x95e   : > { %v5791_v23 = vadd.f32 %v5790_v28, %v5662_v49  ;;  %5445 = vmatmul.bf16.gmra.mxu0 %v15251_v12  ;;  %v5536_v13 = vadd.f32 %v5535_v56, %v5407_v15  ;;  %v8720_v49 = vld [vmem:[%s10219_s3 + $0x378] sm:$0xf0] }
 0x95f   : > { %5832 = vmatmul.bf16.gmra.mxu3 %v15254_v47  ;;  %v521_v28 = vld [vmem:[%s10236_s10 + $0x90] sm:$0xff]  ;;  %5907 = vmatpush.bf16.msra.mxu0 %v8339_v60 }
 0x960   : > { %v6949_v44 = vadd.f32 %v5791_v23, %v517_v45  ;;  %5703 = vmatmul.bf16.gmra.mxu2 %v15253_v59  ;;  %v8723_v45 = vor.u32 %v9416_v17, %v8720_v49  ;;  %v525_v59 = vld [vmem:[%s10236_s10 + $0xb0] sm:$0xff] }
 0x962   : > { %7141 = vst [vmem:[%s10236_s10 + $0x70] sm:$0xff] %v6949_v44  ;;  %v5793_v31 = vpop.f32.mrf.mxu3  ;;  %v5537_v1 = vpop.f32.mrf.mxu1  ;;  %6294 = vmatpush.bf16.msra.mxu3 %v8723_v45 }
 0x963   : > { %v5664_v8 = vpop.f32.mrf.mxu2  ;;  %v5408_v55 = vpop.f32.mrf.mxu0 }
 0x964   : > { %v5665_v16 = vadd.f32 %v5664_v8, %v5536_v13  ;;  %v5409_v23 = vadd.f32 %v5408_v55, %v12669_v48  ;;  %v9352_v13 = vld [vmem:[%s10219_s3 + $0x16c] sm:$0xf] }
 0x965   : > { %v8467_v8 = vor.u32 %v9352_v13, %v8464_v61  ;;  %v533_v61 = vld [vmem:[%s10236_s10 + $0xf0] sm:$0xff] }
 0x966   : > { %v5794_v56 = vadd.f32 %v5793_v31, %v5665_v16  ;;  %v5538_v44 = vadd.f32 %v5537_v1, %v5409_v23  ;;  %v529_v1 = vld [vmem:[%s10236_s10 + $0xd0] sm:$0xff] }
 0x967   : > { %6036 = vmatpush.bf16.msra.mxu1 %v8467_v8 }
 0x968   : > { %v6953_v15 = vadd.f32 %v5794_v56, %v521_v28 }
 0x96a   : > { %7145 = vst [vmem:[%s10236_s10 + $0x90] sm:$0xff] %v6953_v15  ;;  %v5795_v54 = vpop.f32.mrf.mxu3  ;;  %v5540_v36 = vpop.f32.mrf.mxu1 }
 0x96b   : > { %v5666_v32 = vpop.f32.mrf.mxu2  ;;  %v5411_v47 = vpop.f32.mrf.mxu0 }
 0x96c   : > { %v5667_v39 = vadd.f32 %v5666_v32, %v5538_v44  ;;  %v5412_v48 = vadd.f32 %v5411_v47, %v12675_v0 }
 0x96d   : > { %5579 = vmatmul.bf16.gmra.mxu1 %v11613_v26 }
 0x96e   : > { %v5796_v17 = vadd.f32 %v5795_v54, %v5667_v39  ;;  %5450 = vmatmul.bf16.gmra.mxu0 %v11611_v40  ;;  %v5541_v31 = vadd.f32 %v5540_v36, %v5412_v48 }
 0x96f   : > { %5837 = vmatmul.bf16.gmra.mxu3 %v11618_v30 }
 0x970   : > { %v6957_v16 = vadd.f32 %v5796_v17, %v525_v59  ;;  %5708 = vmatmul.bf16.gmra.mxu2 %v11615_v62 }
 0x972   : > { %7149 = vst [vmem:[%s10236_s10 + $0xb0] sm:$0xff] %v6957_v16  ;;  %v5798_v49 = vpop.f32.mrf.mxu3  ;;  %v5542_v45 = vpop.f32.mrf.mxu1 }
 0x973   : > { %v5669_v55 = vpop.f32.mrf.mxu2  ;;  %v5413_v28 = vpop.f32.mrf.mxu0 }
 0x974   : > { %v5670_v60 = vadd.f32 %v5669_v55, %v5541_v31  ;;  %v5414_v47 = vadd.f32 %v5413_v28, %v12677_v9  ;;  %v537_v31 = vld [vmem:[%s10236_s10 + $0x110] sm:$0xff] }
 0x976   : > { %v5799_v0 = vadd.f32 %v5798_v49, %v5670_v60  ;;  %v5543_v59 = vadd.f32 %v5542_v45, %v5414_v47 }
 0x978   : > { %v6961_v56 = vadd.f32 %v5799_v0, %v529_v1 }
 0x97a   : > { %7153 = vst [vmem:[%s10236_s10 + $0xd0] sm:$0xff] %v6961_v56  ;;  %v5800_v44 = vpop.f32.mrf.mxu3  ;;  %v5545_v32 = vpop.f32.mrf.mxu1  ;;  %v541_v56 = vld [vmem:[%s10236_s10 + $0x130] sm:$0xff] }
 0x97b   : > { %v5671_v23 = vpop.f32.mrf.mxu2  ;;  %v5416_v13 = vpop.f32.mrf.mxu0 }
 0x97c   : > { %v5672_v15 = vadd.f32 %v5671_v23, %v5543_v59  ;;  %v5417_v39 = vadd.f32 %v5416_v13, %v12683_v37  ;;  %v9380_v13 = vld [vmem:[%s10219_s3 + $0x24c] sm:$0xf] }
 0x97d   : > { %5584 = vmatmul.bf16.gmra.mxu1 %v11639_v46 }
 0x97e   : > { %v5801_v8 = vadd.f32 %v5800_v44, %v5672_v15  ;;  %5455 = vmatmul.bf16.gmra.mxu0 %v11637_v4  ;;  %v5546_v9 = vadd.f32 %v5545_v32, %v5417_v39  ;;  %v9316_v39 = vld [vmem:[%s10219_s3 + $0x4c] sm:$0xf] }
 0x97f   : > { %5842 = vmatmul.bf16.gmra.mxu3 %v15032_v11 }
 0x980   : > { %v6965_v54 = vadd.f32 %v5801_v8, %v533_v61  ;;  %5713 = vmatmul.bf16.gmra.mxu2 %v15031_v35  ;;  %v8576_v61 = vld [vmem:[%s10219_s3 + $0x258] sm:$0xf0] }
 0x981   : > { %v8579_v8 = vor.u32 %v9380_v13, %v8576_v61 }
 0x982   : > { %7157 = vst [vmem:[%s10236_s10 + $0xf0] sm:$0xff] %v6965_v54  ;;  %v5803_v48 = vpop.f32.mrf.mxu3  ;;  %v5547_v55 = vpop.f32.mrf.mxu1  ;;  %v8320_v54 = vld [vmem:[%s10219_s3 + $0x58] sm:$0xf0] }
 0x983   : > { %v5674_v36 = vpop.f32.mrf.mxu2  ;;  %v5418_v16 = vpop.f32.mrf.mxu0  ;;  %6166 = vmatpush.bf16.msra.mxu2 %v8579_v8 }
 0x984   : > { %v5675_v17 = vadd.f32 %v5674_v36, %v5546_v9  ;;  %v5419_v60 = vadd.f32 %v5418_v16, %v12685_v25  ;;  %v8704_v16 = vld [vmem:[%s10219_s3 + $0x358] sm:$0xf0] }
 0x986   : > { %v5804_v37 = vadd.f32 %v5803_v48, %v5675_v17  ;;  %v5548_v28 = vadd.f32 %v5547_v55, %v5419_v60  ;;  %v8323_v48 = vor.u32 %v9316_v39, %v8320_v54 }
 0x988   : > { %v6969_v49 = vadd.f32 %v5804_v37, %v537_v31  ;;  %v545_v31 = vld [vmem:[%s10236_s10 + $0x150] sm:$0xff]  ;;  %5908 = vmatpush.bf16.msra.mxu0 %v8323_v48 }
 0x98a   : > { %7161 = vst [vmem:[%s10236_s10 + $0x110] sm:$0xff] %v6969_v49  ;;  %v5805_v0 = vpop.f32.mrf.mxu3  ;;  %v5550_v59 = vpop.f32.mrf.mxu1 }
 0x98b   : > { %v5676_v1 = vpop.f32.mrf.mxu2  ;;  %v5421_v47 = vpop.f32.mrf.mxu0 }
 0x98c   : > { %v5677_v45 = vadd.f32 %v5676_v1, %v5548_v28  ;;  %v5422_v15 = vadd.f32 %v5421_v47, %v12697_v19  ;;  %v9412_v19 = vld [vmem:[%s10219_s3 + $0x34c] sm:$0xf] }
 0x98d   : > { %5589 = vmatmul.bf16.gmra.mxu1 %v15034_v29  ;;  %v8707_v37 = vor.u32 %v9412_v19, %v8704_v16 }
 0x98e   : > { %v5806_v23 = vadd.f32 %v5805_v0, %v5677_v45  ;;  %5460 = vmatmul.bf16.gmra.mxu0 %v15033_v2  ;;  %v5551_v44 = vadd.f32 %v5550_v59, %v5422_v15  ;;  %v9348_v45 = vld [vmem:[%s10219_s3 + $0x14c] sm:$0xf]  ;;  %v8448_v0 = vld [vmem:[%s10219_s3 + $0x158] sm:$0xf0] }
 0x98f   : > { %5847 = vmatmul.bf16.gmra.mxu3 %v15036_v53 }
 0x990   : > { %v6973_v25 = vadd.f32 %v5806_v23, %v541_v56  ;;  %5718 = vmatmul.bf16.gmra.mxu2 %v15035_v57  ;;  %6295 = vmatpush.bf16.msra.mxu3 %v8707_v37  ;;  %v8451_v56 = vor.u32 %v9348_v45, %v8448_v0 }
 0x992   : > { %7165 = vst [vmem:[%s10236_s10 + $0x130] sm:$0xff] %v6973_v25  ;;  %v5808_v36 = vpop.f32.mrf.mxu3  ;;  %v5552_v55 = vpop.f32.mrf.mxu1  ;;  %v549_v25 = vld [vmem:[%s10236_s10 + $0x170] sm:$0xff]  ;;  %6037 = vmatpush.bf16.msra.mxu1 %v8451_v56 }
 0x993   : > { %v5679_v32 = vpop.f32.mrf.mxu2  ;;  %v5423_v17 = vpop.f32.mrf.mxu0 }
 0x994   : > { %v5680_v9 = vadd.f32 %v5679_v32, %v5551_v44  ;;  %v5424_v49 = vadd.f32 %v5423_v17, %v12701_v18 }
 0x996   : > { %v5809_v60 = vadd.f32 %v5808_v36, %v5680_v9  ;;  %v5553_v1 = vadd.f32 %v5552_v55, %v5424_v49  ;;  %v553_v9 = vld [vmem:[%s10236_s10 + $0x190] sm:$0xff] }
 0x997   : > { %v557_v49 = vld [vmem:[%s10236_s10 + $0x1b0] sm:$0xff] }
 0x998   : > { %v6977_v28 = vadd.f32 %v5809_v60, %v545_v31 }
 0x99a   : > { %7169 = vst [vmem:[%s10236_s10 + $0x150] sm:$0xff] %v6977_v28  ;;  %v5810_v23 = vpop.f32.mrf.mxu3  ;;  %v5555_v44 = vpop.f32.mrf.mxu1 }
 0x99b   : > { %v5681_v47 = vpop.f32.mrf.mxu2  ;;  %v5426_v15 = vpop.f32.mrf.mxu0 }
 0x99c   : > { %v5682_v59 = vadd.f32 %v5681_v47, %v5553_v1  ;;  %v5427_v18 = vadd.f32 %v5426_v15, %v12707_v6  ;;  %v561_v15 = vld [vmem:[%s10236_s10 + $0x1d0] sm:$0xff] }
 0x99d   : > { %5594 = vmatmul.bf16.gmra.mxu1 %v11699_v50 }
 0x99e   : > { %v5811_v13 = vadd.f32 %v5810_v23, %v5682_v59  ;;  %5465 = vmatmul.bf16.gmra.mxu0 %v11697_v41  ;;  %v5556_v32 = vadd.f32 %v5555_v44, %v5427_v18  ;;  %v15255_v44 = vld [vmem:[#allocation161_spill] sm:$0xff] }
 0x99f   : > { %5852 = vmatmul.bf16.gmra.mxu3 %v11704_v51 }
 0x9a0   : > { %v6981_v61 = vadd.f32 %v5811_v13, %v549_v25  ;;  %5723 = vmatmul.bf16.gmra.mxu2 %v11701_v3 }
 0x9a2   : > { %7173 = vst [vmem:[%s10236_s10 + $0x170] sm:$0xff] %v6981_v61  ;;  %v5813_v54 = vpop.f32.mrf.mxu3  ;;  %v5557_v36 = vpop.f32.mrf.mxu1 }
 0x9a3   : > { %v5684_v8 = vpop.f32.mrf.mxu2  ;;  %v5428_v19 = vpop.f32.mrf.mxu0 }
 0x9a4   : > { %v5685_v39 = vadd.f32 %v5684_v8, %v5556_v32  ;;  %v5429_v17 = vadd.f32 %v5428_v19, %v12709_v52  ;;  %v565_v19 = vld [vmem:[%s10236_s10 + $0x1f0] sm:$0xff] }
 0x9a6   : > { %v5814_v6 = vadd.f32 %v5813_v54, %v5685_v39  ;;  %v5558_v16 = vadd.f32 %v5557_v36, %v5429_v17 }
 0x9a8   : > { %v6985_v48 = vadd.f32 %v5814_v6, %v553_v9  ;;  %v15256_v6 = vld [vmem:[#allocation162_spill] sm:$0xff] }
 0x9aa   : > { %7177 = vst [vmem:[%s10236_s10 + $0x190] sm:$0xff] %v6985_v48  ;;  %v5815_v37 = vpop.f32.mrf.mxu3  ;;  %v5560_v28 = vpop.f32.mrf.mxu1  ;;  %v15257_v48 = vld [vmem:[#allocation178_spill] sm:$0xff] }
 0x9ab   : > { %v5686_v31 = vpop.f32.mrf.mxu2  ;;  %v5431_v60 = vpop.f32.mrf.mxu0 }
 0x9ac   : > { %v5687_v55 = vadd.f32 %v5686_v31, %v5558_v16  ;;  %v5432_v45 = vadd.f32 %v5431_v60, %v12715_v21  ;;  %v15258_v31 = vld [vmem:[#allocation179_spill] sm:$0xff] }
 0x9ad   : > { %5599 = vmatmul.bf16.gmra.mxu1 %v11725_v7 }
 0x9ae   : > { %v5816_v1 = vadd.f32 %v5815_v37, %v5687_v55  ;;  %5470 = vmatmul.bf16.gmra.mxu0 %v11723_v63  ;;  %v5561_v52 = vadd.f32 %v5560_v28, %v5432_v45  ;;  %v15259_v55 = vld [vmem:[#allocation180_spill] sm:$0xff]  ;;  %v15260_v37 = vld [vmem:[#allocation181_spill] sm:$0xff]  ;;  %v8560_v28 = vld [vmem:[%s10219_s3 + $0x238] sm:$0xf0] }
 0x9af   : > { %5857 = vmatmul.bf16.gmra.mxu3 %v15038_v33 }
 0x9b0   : > { %v6989_v0 = vadd.f32 %v5816_v1, %v557_v49  ;;  %5728 = vmatmul.bf16.gmra.mxu2 %v15037_v20  ;;  %v9376_v49 = vld [vmem:[%s10219_s3 + $0x22c] sm:$0xf] }
 0x9b1   : > { %v8563_v45 = vor.u32 %v9376_v49, %v8560_v28 }
 0x9b2   : > { %7181 = vst [vmem:[%s10236_s10 + $0x1b0] sm:$0xff] %v6989_v0  ;;  %v5818_v59 = vpop.f32.mrf.mxu3  ;;  %v5562_v25 = vpop.f32.mrf.mxu1  ;;  %v9312_v0 = vld [vmem:[%s10219_s3 + $0x2c] sm:$0xf] }
 0x9b3   : > { %v5689_v47 = vpop.f32.mrf.mxu2  ;;  %v5433_v23 = vpop.f32.mrf.mxu0  ;;  %6167 = vmatpush.bf16.msra.mxu2 %v8563_v45 }
 0x9b4   : > { %v5690_v56 = vadd.f32 %v5689_v47, %v5561_v52  ;;  %v5434_v13 = vadd.f32 %v5433_v23, %v15255_v44  ;;  %v8304_v52 = vld [vmem:[%s10219_s3 + $0x38] sm:$0xf0]  ;;  %v9408_v47 = vld [vmem:[%s10219_s3 + $0x32c] sm:$0xf] }
 0x9b6   : > { %v5819_v21 = vadd.f32 %v5818_v59, %v5690_v56  ;;  %v5563_v61 = vadd.f32 %v5562_v25, %v5434_v13  ;;  %v8688_v25 = vld [vmem:[%s10219_s3 + $0x338] sm:$0xf0] }
 0x9b7   : > { %v8691_v13 = vor.u32 %v9408_v47, %v8688_v25  ;;  %v15264_v47 = vld [vmem:[#allocation183_spill] sm:$0xff] }
 0x9b8   : > { %v6993_v18 = vadd.f32 %v5819_v21, %v561_v15  ;;  %v8307_v15 = vor.u32 %v9312_v0, %v8304_v52  ;;  %v569_v21 = vld [vmem:[%s10236_s10 + $0x210] sm:$0xff]  ;;  %v15263_v0 = vld [vmem:[#allocation182_spill] sm:$0xff] }
 0x9b9   : > { %6296 = vmatpush.bf16.msra.mxu3 %v8691_v13  ;;  %v577_v13 = vld [vmem:[%s10236_s10 + $0x250] sm:$0xff] }
 0x9ba   : > { %7185 = vst [vmem:[%s10236_s10 + $0x1d0] sm:$0xff] %v6993_v18  ;;  %v5820_v39 = vpop.f32.mrf.mxu3  ;;  %v5565_v9 = vpop.f32.mrf.mxu1  ;;  %5909 = vmatpush.bf16.msra.mxu0 %v8307_v15 }
 0x9bb   : > { %v5691_v32 = vpop.f32.mrf.mxu2  ;;  %v5436_v54 = vpop.f32.mrf.mxu0 }
 0x9bc   : > { %v5692_v8 = vadd.f32 %v5691_v32, %v5563_v61  ;;  %v5437_v17 = vadd.f32 %v5436_v54, %v15256_v6  ;;  %v15261_v61 = vld [vmem:[#allocation163_spill] sm:$0xff]  ;;  %v9344_v54 = vld [vmem:[%s10219_s3 + $0x12c] sm:$0xf] }
 0x9bd   : > { %5604 = vmatmul.bf16.gmra.mxu1 %v15258_v31 }
 0x9be   : > { %v5821_v36 = vadd.f32 %v5820_v39, %v5692_v8  ;;  %5475 = vmatmul.bf16.gmra.mxu0 %v15257_v48  ;;  %v5566_v60 = vadd.f32 %v5565_v9, %v5437_v17  ;;  %v9472_v48 = vld [vmem:[%s10219_s3 + $0x52c] sm:$0xf] }
 0x9bf   : > { %5862 = vmatmul.bf16.gmra.mxu3 %v15260_v37 }
 0x9c0   : > { %v6997_v16 = vadd.f32 %v5821_v36, %v565_v19  ;;  %5733 = vmatmul.bf16.gmra.mxu2 %v15259_v55  ;;  %v8432_v19 = vld [vmem:[%s10219_s3 + $0x138] sm:$0xf0] }
 0x9c1   : > { %v8435_v36 = vor.u32 %v9344_v54, %v8432_v19 }
 0x9c2   : > { %7189 = vst [vmem:[%s10236_s10 + $0x1f0] sm:$0xff] %v6997_v16  ;;  %v5823_v59 = vpop.f32.mrf.mxu3  ;;  %v5567_v44 = vpop.f32.mrf.mxu1 }
 0x9c3   : > { %v5694_v1 = vpop.f32.mrf.mxu2  ;;  %v5438_v23 = vpop.f32.mrf.mxu0  ;;  %6038 = vmatpush.bf16.msra.mxu1 %v8435_v36 }
 0x9c4   : > { %v5695_v56 = vadd.f32 %v5694_v1, %v5566_v60  ;;  %v5439_v32 = vadd.f32 %v5438_v23, %v15261_v61  ;;  %v573_v60 = vld [vmem:[%s10236_s10 + $0x230] sm:$0xff]  ;;  %v15262_v1 = vld [vmem:[#allocation169_spill] sm:$0xff] }
 0x9c6   : > { %v5824_v18 = vadd.f32 %v5823_v59, %v5695_v56  ;;  %v5568_v39 = vadd.f32 %v5567_v44, %v5439_v32  ;;  %v15265_v56 = vld [vmem:[#allocation184_spill] sm:$0xff]  ;;  %v15266_v59 = vld [vmem:[#allocation185_spill] sm:$0xff]  ;;  %v15267_v32 = vld [vmem:[#allocation170_spill] sm:$0xff] }
 0x9c8   : > { %v7001_v8 = vadd.f32 %v5824_v18, %v569_v21 }
 0x9ca   : > { %7193 = vst [vmem:[%s10236_s10 + $0x210] sm:$0xff] %v7001_v8  ;;  %v5825_v17 = vpop.f32.mrf.mxu3  ;;  %v5570_v49 = vpop.f32.mrf.mxu1 }
 0x9cb   : > { %v5696_v9 = vpop.f32.mrf.mxu2  ;;  %v5441_v16 = vpop.f32.mrf.mxu0 }
 0x9cc   : > { %v5697_v6 = vadd.f32 %v5696_v9, %v5568_v39  ;;  %v5442_v45 = vadd.f32 %v5441_v16, %v15262_v1  ;;  %v15269_v1 = vld [vmem:[#allocation186_spill] sm:$0xff] }
 0x9cd   : > { %5609 = vmatmul.bf16.gmra.mxu1 %v15264_v47 }
 0x9ce   : > { %v5826_v28 = vadd.f32 %v5825_v17, %v5697_v6  ;;  %5480 = vmatmul.bf16.gmra.mxu0 %v15263_v0  ;;  %v5571_v23 = vadd.f32 %v5570_v49, %v5442_v45  ;;  %v581_v17 = vld [vmem:[%s10236_s10 + $0x270] sm:$0xff] }
 0x9cf   : > { %5867 = vmatmul.bf16.gmra.mxu3 %v15266_v59  ;;  %v15268_v49 = vld [vmem:[#allocation171_spill] sm:$0xff] }
 0x9d0   : > { %v7005_v52 = vadd.f32 %v5826_v28, %v573_v60  ;;  %5738 = vmatmul.bf16.gmra.mxu2 %v15265_v56  ;;  %v9476_v56 = vld [vmem:[%s10219_s3 + $0x54c] sm:$0xf] }
 0x9d2   : > { %7197 = vst [vmem:[%s10236_s10 + $0x230] sm:$0xff] %v7005_v52  ;;  %v5828_v21 = vpop.f32.mrf.mxu3  ;;  %v5572_v18 = vpop.f32.mrf.mxu1  ;;  %v15270_v52 = vld [vmem:[#allocation187_spill] sm:$0xff] }
 0x9d3   : > { %v5699_v15 = vpop.f32.mrf.mxu2  ;;  %v5443_v44 = vpop.f32.mrf.mxu0 }
 0x9d4   : > { %v5700_v25 = vadd.f32 %v5699_v15, %v5571_v23  ;;  %v5444_v8 = vadd.f32 %v5443_v44, %v15267_v32  ;;  %v15271_v23 = vld [vmem:[#allocation188_spill] sm:$0xff]  ;;  %v15272_v15 = vld [vmem:[#allocation189_spill] sm:$0xff] }
 0x9d6   : > { %v5829_v61 = vadd.f32 %v5828_v21, %v5700_v25  ;;  %v5573_v54 = vadd.f32 %v5572_v18, %v5444_v8 }
 0x9d8   : > { %v7009_v39 = vadd.f32 %v5829_v61, %v577_v13  ;;  %v585_v61 = vld [vmem:[%s10236_s10 + $0x290] sm:$0xff] }
 0x9da   : > { %7201 = vst [vmem:[%s10236_s10 + $0x250] sm:$0xff] %v7009_v39  ;;  %v5830_v36 = vpop.f32.mrf.mxu3  ;;  %v5575_v16 = vpop.f32.mrf.mxu1  ;;  %v15273_v39 = vld [vmem:[#allocation172_spill] sm:$0xff] }
 0x9db   : > { %v5701_v19 = vpop.f32.mrf.mxu2  ;;  %v5446_v6 = vpop.f32.mrf.mxu0 }
 0x9dc   : > { %v5702_v9 = vadd.f32 %v5701_v19, %v5573_v54  ;;  %v5447_v28 = vadd.f32 %v5446_v6, %v15268_v49 }
 0x9dd   : > { %5614 = vmatmul.bf16.gmra.mxu1 %v15270_v52  ;;  %v597_v52 = vld [vmem:[%s10236_s10 + $0x2f0] sm:$0xff] }
 0x9de   : > { %v5831_v60 = vadd.f32 %v5830_v36, %v5702_v9  ;;  %5485 = vmatmul.bf16.gmra.mxu0 %v15269_v1  ;;  %v5576_v25 = vadd.f32 %v5575_v16, %v5447_v28 }
 0x9df   : > { %5872 = vmatmul.bf16.gmra.mxu3 %v15272_v15 }
 0x9e0   : > { %v7013_v45 = vadd.f32 %v5831_v60, %v581_v17  ;;  %5743 = vmatmul.bf16.gmra.mxu2 %v15271_v23  ;;  %v589_v60 = vld [vmem:[%s10236_s10 + $0x2b0] sm:$0xff] }
 0x9e2   : > { %7205 = vst [vmem:[%s10236_s10 + $0x270] sm:$0xff] %v7013_v45  ;;  %v5833_v13 = vpop.f32.mrf.mxu3  ;;  %v5577_v32 = vpop.f32.mrf.mxu1  ;;  %v15274_v45 = vld [vmem:[#allocation173_spill] sm:$0xff] }
 0x9e3   : > { %v5704_v21 = vpop.f32.mrf.mxu2  ;;  %v5448_v18 = vpop.f32.mrf.mxu0 }
 0x9e4   : > { %v5705_v44 = vadd.f32 %v5704_v21, %v5576_v25  ;;  %v5449_v54 = vadd.f32 %v5448_v18, %v15273_v39  ;;  %v15275_v21 = vld [vmem:[#allocation190_spill] sm:$0xff]  ;;  %v15277_v18 = vld [vmem:[#allocation192_spill] sm:$0xff]  ;;  %v8544_v39 = vld [vmem:[%s10219_s3 + $0x218] sm:$0xf0] }
 0x9e6   : > { %v5834_v8 = vadd.f32 %v5833_v13, %v5705_v44  ;;  %v5578_v9 = vadd.f32 %v5577_v32, %v5449_v54  ;;  %v15276_v13 = vld [vmem:[#allocation191_spill] sm:$0xff] }
 0x9e8   : > { %v7017_v19 = vadd.f32 %v5834_v8, %v585_v61  ;;  %v15278_v61 = vld [vmem:[#allocation193_spill] sm:$0xff] }
 0x9e9   : > { %v9372_v8 = vld [vmem:[%s10219_s3 + $0x20c] sm:$0xf] }
 0x9ea   : > { %7209 = vst [vmem:[%s10236_s10 + $0x290] sm:$0xff] %v7017_v19  ;;  %v5835_v17 = vpop.f32.mrf.mxu3  ;;  %v5580_v49 = vpop.f32.mrf.mxu1  ;;  %v8547_v19 = vor.u32 %v9372_v8, %v8544_v39 }
 0x9eb   : > { %v5706_v36 = vpop.f32.mrf.mxu2  ;;  %v5451_v16 = vpop.f32.mrf.mxu0 }
 0x9ec   : > { %v5707_v6 = vadd.f32 %v5706_v36, %v5578_v9  ;;  %v5452_v25 = vadd.f32 %v5451_v16, %v15274_v45  ;;  %v9308_v9 = vld [vmem:[%s10219_s3 + $0xc] sm:$0xf]  ;;  %v8288_v36 = vld [vmem:[%s10219_s3 + $0x18] sm:$0xf0]  ;;  %6168 = vmatpush.bf16.msra.mxu2 %v8547_v19 }
 0x9ed   : > { %5619 = vmatmul.bf16.gmra.mxu1 %v15276_v13  ;;  %v8672_v45 = vld [vmem:[%s10219_s3 + $0x318] sm:$0xf0] }
 0x9ee   : > { %v5836_v28 = vadd.f32 %v5835_v17, %v5707_v6  ;;  %5490 = vmatmul.bf16.gmra.mxu0 %v15275_v21  ;;  %v5581_v32 = vadd.f32 %v5580_v49, %v5452_v25  ;;  %v9404_v6 = vld [vmem:[%s10219_s3 + $0x30c] sm:$0xf] }
 0x9ef   : > { %5877 = vmatmul.bf16.gmra.mxu3 %v15278_v61  ;;  %v8675_v49 = vor.u32 %v9404_v6, %v8672_v45 }
 0x9f0   : > { %v7021_v44 = vadd.f32 %v5836_v28, %v589_v60  ;;  %5748 = vmatmul.bf16.gmra.mxu2 %v15277_v18  ;;  %v8291_v28 = vor.u32 %v9308_v9, %v8288_v36  ;;  %v593_v18 = vld [vmem:[%s10236_s10 + $0x2d0] sm:$0xff] }
 0x9f1   : > { %6297 = vmatpush.bf16.msra.mxu3 %v8675_v49 }
 0x9f2   : > { %7213 = vst [vmem:[%s10236_s10 + $0x2b0] sm:$0xff] %v7021_v44  ;;  %v5838_v16 = vpop.f32.mrf.mxu3  ;;  %v5582_v13 = vpop.f32.mrf.mxu1  ;;  %v15279_v44 = vld [vmem:[#allocation174_spill] sm:$0xff]  ;;  %5910 = vmatpush.bf16.msra.mxu0 %v8291_v28  ;;  %v15284_v28 = vld [vmem:[#allocation197_spill] sm:$0xff] }
 0x9f3   : > { %v5709_v54 = vpop.f32.mrf.mxu2  ;;  %v5453_v60 = vpop.f32.mrf.mxu0 }
 0x9f4   : > { %v5710_v17 = vadd.f32 %v5709_v54, %v5581_v32  ;;  %v5454_v61 = vadd.f32 %v5453_v60, %v15279_v44  ;;  %v9340_v32 = vld [vmem:[%s10219_s3 + $0x10c] sm:$0xf]  ;;  %v8416_v54 = vld [vmem:[%s10219_s3 + $0x118] sm:$0xf0]  ;;  %v15281_v60 = vld [vmem:[#allocation194_spill] sm:$0xff] }
 0x9f5   : > { %v8419_v15 = vor.u32 %v9340_v32, %v8416_v54  ;;  %v601_v44 = vld [vmem:[%s10236_s10 + $0x310] sm:$0xff] }
 0x9f6   : > { %v5839_v25 = vadd.f32 %v5838_v16, %v5710_v17  ;;  %v5583_v39 = vadd.f32 %v5582_v13, %v5454_v61  ;;  %v15280_v17 = vld [vmem:[#allocation129_spill] sm:$0xff]  ;;  %v15282_v13 = vld [vmem:[#allocation195_spill] sm:$0xff]  ;;  %v15283_v61 = vld [vmem:[#allocation196_spill] sm:$0xff] }
 0x9f7   : > { %6039 = vmatpush.bf16.msra.mxu1 %v8419_v15 }
 0x9f8   : > { %v7025_v8 = vadd.f32 %v5839_v25, %v593_v18 }
 0x9fa   : > { %7217 = vst [vmem:[%s10236_s10 + $0x2d0] sm:$0xff] %v7025_v8  ;;  %v5840_v36 = vpop.f32.mrf.mxu3  ;;  %v5585_v19 = vpop.f32.mrf.mxu1 }
 0x9fb   : > { %v5711_v21 = vpop.f32.mrf.mxu2  ;;  %v5456_v23 = vpop.f32.mrf.mxu0 }
 0x9fc   : > { %v5712_v9 = vadd.f32 %v5711_v21, %v5583_v39  ;;  %v5457_v16 = vadd.f32 %v5456_v23, %v15280_v17  ;;  %v15285_v39 = vld [vmem:[#allocation130_spill] sm:$0xff] }
 0x9fd   : > { %5624 = vmatmul.bf16.gmra.mxu1 %v15282_v13 }
 0x9fe   : > { %v5841_v6 = vadd.f32 %v5840_v36, %v5712_v9  ;;  %5495 = vmatmul.bf16.gmra.mxu0 %v15281_v60  ;;  %v5586_v21 = vadd.f32 %v5585_v19, %v5457_v16  ;;  %v605_v19 = vld [vmem:[%s10236_s10 + $0x330] sm:$0xff] }
 0x9ff   : > { %5882 = vmatmul.bf16.gmra.mxu3 %v15284_v28  ;;  %v15287_v28 = vld [vmem:[#allocation198_spill] sm:$0xff]  ;;  %v621_v60 = vld [vmem:[%s10236_s10 + $0x3b0] sm:$0xff] }
 0xa00   : > { %v7029_v18 = vadd.f32 %v5841_v6, %v597_v52  ;;  %5753 = vmatmul.bf16.gmra.mxu2 %v15283_v61 }
 0xa02   : > { %7221 = vst [vmem:[%s10236_s10 + $0x2f0] sm:$0xff] %v7029_v18  ;;  %v5843_v25 = vpop.f32.mrf.mxu3  ;;  %v5587_v8 = vpop.f32.mrf.mxu1 }
 0xa03   : > { %v5714_v45 = vpop.f32.mrf.mxu2  ;;  %v5458_v15 = vpop.f32.mrf.mxu0 }
 0xa04   : > { %v5715_v49 = vadd.f32 %v5714_v45, %v5586_v21  ;;  %v5459_v32 = vadd.f32 %v5458_v15, %v15285_v39  ;;  %v15286_v21 = vld [vmem:[#allocation135_spill] sm:$0xff]  ;;  %v15289_v15 = vld [vmem:[#allocation200_spill] sm:$0xff] }
 0xa06   : > { %v5844_v23 = vadd.f32 %v5843_v25, %v5715_v49  ;;  %v5588_v52 = vadd.f32 %v5587_v8, %v5459_v32  ;;  %v15288_v25 = vld [vmem:[#allocation199_spill] sm:$0xff] }
 0xa08   : > { %v7033_v54 = vadd.f32 %v5844_v23, %v601_v44  ;;  %v15290_v44 = vld [vmem:[#allocation201_spill] sm:$0xff] }
 0xa0a   : > { %7225 = vst [vmem:[%s10236_s10 + $0x310] sm:$0xff] %v7033_v54  ;;  %v5845_v6 = vpop.f32.mrf.mxu3  ;;  %v5590_v16 = vpop.f32.mrf.mxu1 }
 0xa0b   : > { %v5716_v9 = vpop.f32.mrf.mxu2  ;;  %v5461_v17 = vpop.f32.mrf.mxu0 }
 0xa0c   : > { %v5717_v36 = vadd.f32 %v5716_v9, %v5588_v52  ;;  %v5462_v45 = vadd.f32 %v5461_v17, %v15286_v21  ;;  %v609_v52 = vld [vmem:[%s10236_s10 + $0x350] sm:$0xff] }
 0xa0d   : > { %5629 = vmatmul.bf16.gmra.mxu1 %v15288_v25 }
 0xa0e   : > { %v5846_v18 = vadd.f32 %v5845_v6, %v5717_v36  ;;  %5500 = vmatmul.bf16.gmra.mxu0 %v15287_v28  ;;  %v5591_v8 = vadd.f32 %v5590_v16, %v5462_v45  ;;  %v15291_v6 = vld [vmem:[#allocation136_spill] sm:$0xff]  ;;  %v613_v45 = vld [vmem:[%s10236_s10 + $0x370] sm:$0xff] }
 0xa0f   : > { %5887 = vmatmul.bf16.gmra.mxu3 %v15290_v44 }
 0xa10   : > { %v7037_v49 = vadd.f32 %v5846_v18, %v605_v19  ;;  %5758 = vmatmul.bf16.gmra.mxu2 %v15289_v15  ;;  %v15292_v15 = vld [vmem:[#allocation141_spill] sm:$0xff] }
 0xa12   : > { %7229 = vst [vmem:[%s10236_s10 + $0x330] sm:$0xff] %v7037_v49  ;;  %v5848_v32 = vpop.f32.mrf.mxu3  ;;  %v5592_v9 = vpop.f32.mrf.mxu1 }
 0xa13   : > { %v5719_v23 = vpop.f32.mrf.mxu2  ;;  %v5463_v54 = vpop.f32.mrf.mxu0 }
 0xa14   : > { %v5720_v39 = vadd.f32 %v5719_v23, %v5591_v8  ;;  %v5464_v17 = vadd.f32 %v5463_v54, %v15291_v6 }
 0xa16   : > { %v5849_v36 = vadd.f32 %v5848_v32, %v5720_v39  ;;  %v5593_v19 = vadd.f32 %v5592_v9, %v5464_v17  ;;  %v15293_v32 = vld [vmem:[#allocation202_spill] sm:$0xff]  ;;  %v15295_v9 = vld [vmem:[#allocation204_spill] sm:$0xff]  ;;  %v9528_v17 = vld [vmem:[%s10219_s3 + $0x6ec] sm:$0xf] }
 0xa18   : > { %v7041_v21 = vadd.f32 %v5849_v36, %v609_v52  ;;  %v15294_v52 = vld [vmem:[#allocation203_spill] sm:$0xff]  ;;  %v15296_v36 = vld [vmem:[#allocation205_spill] sm:$0xff] }
 0xa1a   : > { %7233 = vst [vmem:[%s10236_s10 + $0x350] sm:$0xff] %v7041_v21  ;;  %v5850_v49 = vpop.f32.mrf.mxu3  ;;  %v5595_v8 = vpop.f32.mrf.mxu1  ;;  %v9168_v21 = vld [vmem:[%s10219_s3 + $0x6f8] sm:$0xf0] }
 0xa1b   : > { %v5721_v18 = vpop.f32.mrf.mxu2  ;;  %v5466_v16 = vpop.f32.mrf.mxu0 }
 0xa1c   : > { %v5722_v44 = vadd.f32 %v5721_v18, %v5593_v19  ;;  %v5467_v39 = vadd.f32 %v5466_v16, %v15292_v15  ;;  %v9171_v18 = vor.u32 %v9528_v17, %v9168_v21  ;;  %v9560_v15 = vld [vmem:[%s10219_s3 + $0x7ec] sm:$0xf] }
 0xa1d   : > { %5634 = vmatmul.bf16.gmra.mxu1 %v15294_v52 }
 0xa1e   : > { %v5851_v23 = vadd.f32 %v5850_v49, %v5722_v44  ;;  %5505 = vmatmul.bf16.gmra.mxu0 %v15293_v32  ;;  %v5596_v6 = vadd.f32 %v5595_v8, %v5467_v39  ;;  %v9464_v44 = vld [vmem:[%s10219_s3 + $0x4ec] sm:$0xf]  ;;  %v8912_v49 = vld [vmem:[%s10219_s3 + $0x4f8] sm:$0xf0]  ;;  %6677 = vmatpush.bf16.msrb.mxu2 %v9171_v18 }
 0xa1f   : > { %5892 = vmatmul.bf16.gmra.mxu3 %v15296_v36  ;;  %v8915_v52 = vor.u32 %v9464_v44, %v8912_v49  ;;  %v617_v32 = vld [vmem:[%s10236_s10 + $0x390] sm:$0xff] }
 0xa20   : > { %v7045_v54 = vadd.f32 %v5851_v23, %v613_v45  ;;  %5763 = vmatmul.bf16.gmra.mxu2 %v15295_v9  ;;  %v9296_v9 = vld [vmem:[%s10219_s3 + $0x7f8] sm:$0xf0] }
 0xa21   : > { %v9299_v8 = vor.u32 %v9560_v15, %v9296_v9  ;;  %6419 = vmatpush.bf16.msrb.mxu0 %v8915_v52  ;;  %v15298_v15 = vld [vmem:[#allocation147_spill] sm:$0xff]  ;;  %v15299_v52 = vld [vmem:[#allocation206_spill] sm:$0xff] }
 0xa22   : > { %7237 = vst [vmem:[%s10236_s10 + $0x370] sm:$0xff] %v7045_v54  ;;  %v5853_v45 = vpop.f32.mrf.mxu3  ;;  %v5597_v25 = vpop.f32.mrf.mxu1  ;;  %v15297_v54 = vld [vmem:[#allocation142_spill] sm:$0xff] }
 0xa23   : > { %v5724_v19 = vpop.f32.mrf.mxu2  ;;  %v5468_v23 = vpop.f32.mrf.mxu0  ;;  %6806 = vmatpush.bf16.msrb.mxu3 %v9299_v8 }
 0xa24   : > { %v5725_v16 = vadd.f32 %v5724_v19, %v5596_v6  ;;  %v5469_v36 = vadd.f32 %v5468_v23, %v15297_v54  ;;  %v9496_v6 = vld [vmem:[%s10219_s3 + $0x5ec] sm:$0xf]  ;;  %v9040_v19 = vld [vmem:[%s10219_s3 + $0x5f8] sm:$0xf0] }
 0xa25   : > { %v9043_v61 = vor.u32 %v9496_v6, %v9040_v19  ;;  %v625_v54 = vld [vmem:[%s10236_s10 + $0x3d0] sm:$0xff] }
 0xa26   : > { %v5854_v39 = vadd.f32 %v5853_v45, %v5725_v16  ;;  %v5598_v21 = vadd.f32 %v5597_v25, %v5469_v36  ;;  %v15300_v25 = vld [vmem:[#allocation207_spill] sm:$0xff]  ;;  %v15301_v36 = vld [vmem:[#allocation208_spill] sm:$0xff]  ;;  %v15302_v45 = vld [vmem:[#allocation209_spill] sm:$0xff] }
 0xa27   : > { %6548 = vmatpush.bf16.msrb.mxu1 %v9043_v61 }
 0xa28   : > { %v7049_v17 = vadd.f32 %v5854_v39, %v617_v32 }
 0xa2a   : > { %7241 = vst [vmem:[%s10236_s10 + $0x390] sm:$0xff] %v7049_v17  ;;  %v5855_v49 = vpop.f32.mrf.mxu3  ;;  %v5600_v18 = vpop.f32.mrf.mxu1 }
 0xa2b   : > { %v5726_v28 = vpop.f32.mrf.mxu2  ;;  %v5471_v13 = vpop.f32.mrf.mxu0 }
 0xa2c   : > { %v5727_v44 = vadd.f32 %v5726_v28, %v5598_v21  ;;  %v5472_v16 = vadd.f32 %v5471_v13, %v15298_v15  ;;  %v15303_v21 = vld [vmem:[#allocation148_spill] sm:$0xff] }
 0xa2d   : > { %5639 = vmatmul.bf16.gmra.mxu1 %v15300_v25 }
 0xa2e   : > { %v5856_v9 = vadd.f32 %v5855_v49, %v5727_v44  ;;  %5510 = vmatmul.bf16.gmra.mxu0 %v15299_v52  ;;  %v5601_v28 = vadd.f32 %v5600_v18, %v5472_v16  ;;  %v629_v18 = vld [vmem:[%s10236_s10 + $0x3f0] sm:$0xff] }
 0xa2f   : > { %5897 = vmatmul.bf16.gmra.mxu3 %v15302_v45  ;;  %v15305_v45 = vld [vmem:[#allocation21_spill] sm:$0xff]  ;;  %v645_v52 = vld [vmem:[%s10236_s10 + $0x470] sm:$0xff] }
 0xa30   : > { %v7053_v32 = vadd.f32 %v5856_v9, %v621_v60  ;;  %5768 = vmatmul.bf16.gmra.mxu2 %v15301_v36 }
 0xa32   : > { %7245 = vst [vmem:[%s10236_s10 + $0x3b0] sm:$0xff] %v7053_v32  ;;  %v5858_v39 = vpop.f32.mrf.mxu3  ;;  %v5602_v17 = vpop.f32.mrf.mxu1 }
 0xa33   : > { %v5729_v23 = vpop.f32.mrf.mxu2  ;;  %v5473_v61 = vpop.f32.mrf.mxu0 }
 0xa34   : > { %v5730_v8 = vadd.f32 %v5729_v23, %v5601_v28  ;;  %v5474_v6 = vadd.f32 %v5473_v61, %v15303_v21  ;;  %v15304_v28 = vld [vmem:[#allocation153_spill] sm:$0xff]  ;;  %v15307_v61 = vld [vmem:[#allocation23_spill] sm:$0xff] }
 0xa36   : > { %v5859_v13 = vadd.f32 %v5858_v39, %v5730_v8  ;;  %v5603_v60 = vadd.f32 %v5602_v17, %v5474_v6  ;;  %v15306_v39 = vld [vmem:[#allocation22_spill] sm:$0xff] }
 0xa38   : > { %v7057_v19 = vadd.f32 %v5859_v13, %v625_v54  ;;  %v15308_v54 = vld [vmem:[#allocation24_spill] sm:$0xff] }
 0xa3a   : > { %7249 = vst [vmem:[%s10236_s10 + $0x3d0] sm:$0xff] %v7057_v19  ;;  %v5860_v9 = vpop.f32.mrf.mxu3  ;;  %v5605_v16 = vpop.f32.mrf.mxu1 }
 0xa3b   : > { %v5731_v44 = vpop.f32.mrf.mxu2  ;;  %v5476_v15 = vpop.f32.mrf.mxu0 }
 0xa3c   : > { %v5732_v49 = vadd.f32 %v5731_v44, %v5603_v60  ;;  %v5477_v23 = vadd.f32 %v5476_v15, %v15304_v28  ;;  %v633_v60 = vld [vmem:[%s10236_s10 + $0x410] sm:$0xff] }
 0xa3d   : > { %6040 = vmatmul.bf16.vlgmr.msra.gmra.mxu1 %v15306_v39 }
 0xa3e   : > { %v5861_v32 = vadd.f32 %v5860_v9, %v5732_v49  ;;  %5911 = vmatmul.bf16.vlgmr.msra.gmra.mxu0 %v15305_v45  ;;  %v5606_v17 = vadd.f32 %v5605_v16, %v5477_v23  ;;  %v15309_v9 = vld [vmem:[#allocation154_spill] sm:$0xff]  ;;  %v637_v23 = vld [vmem:[%s10236_s10 + $0x430] sm:$0xff] }
 0xa3f   : > { %6298 = vmatmul.bf16.vlgmr.msra.gmra.mxu3 %v15308_v54  ;;  %v15310_v54 = vld [vmem:[#allocation159_spill] sm:$0xff] }
 0xa40   : > { %v7061_v8 = vadd.f32 %v5861_v32, %v629_v18  ;;  %6169 = vmatmul.bf16.vlgmr.msra.gmra.mxu2 %v15307_v61 }
 0xa42   : > { %7253 = vst [vmem:[%s10236_s10 + $0x3f0] sm:$0xff] %v7061_v8  ;;  %v5863_v6 = vpop.f32.mrf.mxu3  ;;  %v5607_v44 = vpop.f32.mrf.mxu1 }
 0xa43   : > { %v5734_v13 = vpop.f32.mrf.mxu2  ;;  %v5478_v19 = vpop.f32.mrf.mxu0 }
 0xa44   : > { %v5735_v21 = vadd.f32 %v5734_v13, %v5606_v17  ;;  %v5479_v45 = vadd.f32 %v5478_v19, %v15309_v9  ;;  %v15311_v13 = vld [vmem:[#allocation25_spill] sm:$0xff]  ;;  %v15313_v19 = vld [vmem:[#allocation27_spill] sm:$0xff] }
 0xa45   : > { %v9152_v9 = vld [vmem:[%s10219_s3 + $0x6d8] sm:$0xf0] }
 0xa46   : > { %v5864_v49 = vadd.f32 %v5863_v6, %v5735_v21  ;;  %v5608_v18 = vadd.f32 %v5607_v44, %v5479_v45  ;;  %v15312_v6 = vld [vmem:[#allocation26_spill] sm:$0xff] }
 0xa48   : > { %v7065_v15 = vadd.f32 %v5864_v49, %v633_v60  ;;  %v15314_v60 = vld [vmem:[#allocation28_spill] sm:$0xff]  ;;  %v9524_v49 = vld [vmem:[%s10219_s3 + $0x6cc] sm:$0xf] }
 0xa4a   : > { %7257 = vst [vmem:[%s10236_s10 + $0x410] sm:$0xff] %v7065_v15  ;;  %v5865_v8 = vpop.f32.mrf.mxu3  ;;  %v5610_v39 = vpop.f32.mrf.mxu1  ;;  %v9155_v15 = vor.u32 %v9524_v49, %v9152_v9  ;;  %v9024_v9 = vld [vmem:[%s10219_s3 + $0x5d8] sm:$0xf0] }
 0xa4b   : > { %v5736_v32 = vpop.f32.mrf.mxu2  ;;  %v5481_v16 = vpop.f32.mrf.mxu0 }
 0xa4c   : > { %v5737_v28 = vadd.f32 %v5736_v32, %v5608_v18  ;;  %v5482_v17 = vadd.f32 %v5481_v16, %v15310_v54  ;;  %v9460_v18 = vld [vmem:[%s10219_s3 + $0x4cc] sm:$0xf]  ;;  %v8896_v32 = vld [vmem:[%s10219_s3 + $0x4d8] sm:$0xf0]  ;;  %6678 = vmatpush.bf16.msrb.mxu2 %v9155_v15 }
 0xa4d   : > { %6045 = vmatmul.bf16.gmra.mxu1 %v15312_v6  ;;  %v9280_v54 = vld [vmem:[%s10219_s3 + $0x7d8] sm:$0xf0] }
 0xa4e   : > { %v5866_v61 = vadd.f32 %v5865_v8, %v5737_v28  ;;  %5916 = vmatmul.bf16.gmra.mxu0 %v15311_v13  ;;  %v5611_v44 = vadd.f32 %v5610_v39, %v5482_v17  ;;  %v9556_v28 = vld [vmem:[%s10219_s3 + $0x7cc] sm:$0xf]  ;;  %v641_v13 = vld [vmem:[%s10236_s10 + $0x450] sm:$0xff] }
 0xa4f   : > { %6303 = vmatmul.bf16.gmra.mxu3 %v15314_v60  ;;  %v9283_v39 = vor.u32 %v9556_v28, %v9280_v54  ;;  %v15318_v54 = vld [vmem:[#allocation30_spill] sm:$0xff] }
 0xa50   : > { %v7069_v21 = vadd.f32 %v5866_v61, %v637_v23  ;;  %6174 = vmatmul.bf16.gmra.mxu2 %v15313_v19  ;;  %v8899_v61 = vor.u32 %v9460_v18, %v8896_v32 }
 0xa51   : > { %6807 = vmatpush.bf16.msrb.mxu3 %v9283_v39 }
 0xa52   : > { %7261 = vst [vmem:[%s10236_s10 + $0x430] sm:$0xff] %v7069_v21  ;;  %v5868_v16 = vpop.f32.mrf.mxu3  ;;  %v5612_v6 = vpop.f32.mrf.mxu1  ;;  %v15315_v21 = vld [vmem:[#allocation160_spill] sm:$0xff]  ;;  %6420 = vmatpush.bf16.msrb.mxu0 %v8899_v61 }
 0xa53   : > { %v5739_v45 = vpop.f32.mrf.mxu2  ;;  %v5483_v23 = vpop.f32.mrf.mxu0 }
 0xa54   : > { %v5740_v8 = vadd.f32 %v5739_v45, %v5611_v44  ;;  %v5484_v19 = vadd.f32 %v5483_v23, %v15315_v21  ;;  %v9492_v44 = vld [vmem:[%s10219_s3 + $0x5cc] sm:$0xf] }
 0xa55   : > { %v9027_v36 = vor.u32 %v9492_v44, %v9024_v9  ;;  %v15317_v23 = vld [vmem:[#allocation29_spill] sm:$0xff]  ;;  %v15321_v44 = vld [vmem:[#allocation211_spill] sm:$0xff] }
 0xa56   : > { %v5869_v17 = vadd.f32 %v5868_v16, %v5740_v8  ;;  %v5613_v49 = vadd.f32 %v5612_v6, %v5484_v19  ;;  %v15316_v8 = vld [vmem:[#allocation210_spill] sm:$0xff]  ;;  %v15320_v6 = vld [vmem:[#allocation32_spill] sm:$0xff] }
 0xa57   : > { %6549 = vmatpush.bf16.msrb.mxu1 %v9027_v36 }
 0xa58   : > { %v7073_v60 = vadd.f32 %v5869_v17, %v641_v13  ;;  %v15319_v13 = vld [vmem:[#allocation31_spill] sm:$0xff] }
 0xa5a   : > { %7265 = vst [vmem:[%s10236_s10 + $0x450] sm:$0xff] %v7073_v60  ;;  %v5870_v32 = vpop.f32.mrf.mxu3  ;;  %v5615_v15 = vpop.f32.mrf.mxu1  ;;  %v649_v60 = vld [vmem:[%s10236_s10 + $0x490] sm:$0xff] }
 0xa5b   : > { %v5741_v45 = vpop.f32.mrf.mxu2  ;;  %v5486_v25 = vpop.f32.mrf.mxu0 }
 0xa5c   : > { %v5742_v18 = vadd.f32 %v5741_v45, %v5613_v49  ;;  %v5487_v16 = vadd.f32 %v5486_v25, %v15316_v8 }
 0xa5d   : > { %6050 = vmatmul.bf16.gmra.mxu1 %v15318_v54 }
 0xa5e   : > { %v5871_v28 = vadd.f32 %v5870_v32, %v5742_v18  ;;  %5921 = vmatmul.bf16.gmra.mxu0 %v15317_v23  ;;  %v5616_v39 = vadd.f32 %v5615_v15, %v5487_v16  ;;  %v653_v15 = vld [vmem:[%s10236_s10 + $0x4b0] sm:$0xff] }
 0xa5f   : > { %6308 = vmatmul.bf16.gmra.mxu3 %v15320_v6 }
 0xa60   : > { %v7077_v61 = vadd.f32 %v5871_v28, %v645_v52  ;;  %6179 = vmatmul.bf16.gmra.mxu2 %v15319_v13  ;;  %v15323_v13 = vld [vmem:[#allocation33_spill] sm:$0xff] }
 0xa62   : > { %7269 = vst [vmem:[%s10236_s10 + $0x470] sm:$0xff] %v7077_v61  ;;  %v5873_v19 = vpop.f32.mrf.mxu3  ;;  %v5617_v49 = vpop.f32.mrf.mxu1  ;;  %v15322_v61 = vld [vmem:[#allocation212_spill] sm:$0xff] }
 0xa63   : > { %v5744_v17 = vpop.f32.mrf.mxu2  ;;  %v5488_v36 = vpop.f32.mrf.mxu0 }
 0xa64   : > { %v5745_v21 = vadd.f32 %v5744_v17, %v5616_v39  ;;  %v5489_v9 = vadd.f32 %v5488_v36, %v15321_v44  ;;  %v15324_v39 = vld [vmem:[#allocation34_spill] sm:$0xff]  ;;  %v15325_v17 = vld [vmem:[#allocation35_spill] sm:$0xff] }
 0xa65   : > { %v657_v44 = vld [vmem:[%s10236_s10 + $0x4d0] sm:$0xff] }
 0xa66   : > { %v5874_v25 = vadd.f32 %v5873_v19, %v5745_v21  ;;  %v5618_v52 = vadd.f32 %v5617_v49, %v5489_v9  ;;  %v15326_v21 = vld [vmem:[#allocation36_spill] sm:$0xff] }
 0xa68   : > { %v7081_v45 = vadd.f32 %v5874_v25, %v649_v60 }
 0xa6a   : > { %7273 = vst [vmem:[%s10236_s10 + $0x490] sm:$0xff] %v7081_v45  ;;  %v5875_v28 = vpop.f32.mrf.mxu3  ;;  %v5620_v16 = vpop.f32.mrf.mxu1 }
 0xa6b   : > { %v5746_v18 = vpop.f32.mrf.mxu2  ;;  %v5491_v8 = vpop.f32.mrf.mxu0 }
 0xa6c   : > { %v5747_v32 = vadd.f32 %v5746_v18, %v5618_v52  ;;  %v5492_v54 = vadd.f32 %v5491_v8, %v15322_v61  ;;  %v15327_v52 = vld [vmem:[#allocation213_spill] sm:$0xff]  ;;  %v661_v61 = vld [vmem:[%s10236_s10 + $0x4f0] sm:$0xff] }
 0xa6d   : > { %6055 = vmatmul.bf16.gmra.mxu1 %v15324_v39 }
 0xa6e   : > { %v5876_v23 = vadd.f32 %v5875_v28, %v5747_v32  ;;  %5926 = vmatmul.bf16.gmra.mxu0 %v15323_v13  ;;  %v5621_v19 = vadd.f32 %v5620_v16, %v5492_v54 }
 0xa6f   : > { %6313 = vmatmul.bf16.gmra.mxu3 %v15326_v21 }
 0xa70   : > { %v7085_v6 = vadd.f32 %v5876_v23, %v653_v15  ;;  %6184 = vmatmul.bf16.gmra.mxu2 %v15325_v17  ;;  %v15329_v17 = vld [vmem:[#allocation37_spill] sm:$0xff] }
 0xa72   : > { %7277 = vst [vmem:[%s10236_s10 + $0x4b0] sm:$0xff] %v7085_v6  ;;  %v5878_v49 = vpop.f32.mrf.mxu3  ;;  %v5622_v9 = vpop.f32.mrf.mxu1  ;;  %v15328_v6 = vld [vmem:[#allocation214_spill] sm:$0xff] }
 0xa73   : > { %v5749_v36 = vpop.f32.mrf.mxu2  ;;  %v5493_v25 = vpop.f32.mrf.mxu0 }
 0xa74   : > { %v5750_v60 = vadd.f32 %v5749_v36, %v5621_v19  ;;  %v5494_v18 = vadd.f32 %v5493_v25, %v15327_v52  ;;  %v15330_v19 = vld [vmem:[#allocation38_spill] sm:$0xff]  ;;  %v15331_v36 = vld [vmem:[#allocation39_spill] sm:$0xff]  ;;  %v9520_v25 = vld [vmem:[%s10219_s3 + $0x6ac] sm:$0xf] }
 0xa75   : > { %v9456_v52 = vld [vmem:[%s10219_s3 + $0x4ac] sm:$0xf] }
 0xa76   : > { %v5879_v45 = vadd.f32 %v5878_v49, %v5750_v60  ;;  %v5623_v28 = vadd.f32 %v5622_v9, %v5494_v18  ;;  %v15332_v60 = vld [vmem:[#allocation40_spill] sm:$0xff]  ;;  %v8880_v18 = vld [vmem:[%s10219_s3 + $0x4b8] sm:$0xf0] }
 0xa78   : > { %v7089_v32 = vadd.f32 %v5879_v45, %v657_v44  ;;  %v9136_v44 = vld [vmem:[%s10219_s3 + $0x6b8] sm:$0xf0] }
 0xa79   : > { %v9139_v45 = vor.u32 %v9520_v25, %v9136_v44 }
 0xa7a   : > { %7281 = vst [vmem:[%s10236_s10 + $0x4d0] sm:$0xff] %v7089_v32  ;;  %v5880_v23 = vpop.f32.mrf.mxu3  ;;  %v5625_v54 = vpop.f32.mrf.mxu1  ;;  %v9552_v32 = vld [vmem:[%s10219_s3 + $0x7ac] sm:$0xf] }
 0xa7b   : > { %v5751_v8 = vpop.f32.mrf.mxu2  ;;  %v5496_v16 = vpop.f32.mrf.mxu0  ;;  %6679 = vmatpush.bf16.msrb.mxu2 %v9139_v45 }
 0xa7c   : > { %v5752_v15 = vadd.f32 %v5751_v8, %v5623_v28  ;;  %v5497_v39 = vadd.f32 %v5496_v16, %v15328_v6  ;;  %v9264_v16 = vld [vmem:[%s10219_s3 + $0x7b8] sm:$0xf0] }
 0xa7d   : > { %6060 = vmatmul.bf16.gmra.mxu1 %v15330_v19 }
 0xa7e   : > { %v5881_v13 = vadd.f32 %v5880_v23, %v5752_v15  ;;  %5931 = vmatmul.bf16.gmra.mxu0 %v15329_v17  ;;  %v5626_v49 = vadd.f32 %v5625_v54, %v5497_v39  ;;  %v8883_v23 = vor.u32 %v9456_v52, %v8880_v18  ;;  %v9267_v54 = vor.u32 %v9552_v32, %v9264_v16  ;;  %v15333_v39 = vld [vmem:[#allocation215_spill] sm:$0xff]  ;;  %v15336_v16 = vld [vmem:[#allocation42_spill] sm:$0xff] }
 0xa7f   : > { %6318 = vmatmul.bf16.gmra.mxu3 %v15332_v60  ;;  %v9008_v60 = vld [vmem:[%s10219_s3 + $0x5b8] sm:$0xf0] }
 0xa80   : > { %v7093_v21 = vadd.f32 %v5881_v13, %v661_v61  ;;  %6189 = vmatmul.bf16.gmra.mxu2 %v15331_v36  ;;  %v665_v61 = vld [vmem:[%s10236_s10 + $0x510] sm:$0xff]  ;;  %6421 = vmatpush.bf16.msrb.mxu0 %v8883_v23  ;;  %v9488_v36 = vld [vmem:[%s10219_s3 + $0x5ac] sm:$0xf] }
 0xa81   : > { %6808 = vmatpush.bf16.msrb.mxu3 %v9267_v54  ;;  %v9011_v25 = vor.u32 %v9488_v36, %v9008_v60  ;;  %v669_v18 = vld [vmem:[%s10236_s10 + $0x530] sm:$0xff] }
 0xa82   : > { %7285 = vst [vmem:[%s10236_s10 + $0x4f0] sm:$0xff] %v7093_v21  ;;  %v5883_v8 = vpop.f32.mrf.mxu3  ;;  %v5627_v13 = vpop.f32.mrf.mxu1 }
 0xa83   : > { %v5754_v9 = vpop.f32.mrf.mxu2  ;;  %v5498_v15 = vpop.f32.mrf.mxu0  ;;  %6550 = vmatpush.bf16.msrb.mxu1 %v9011_v25 }
 0xa84   : > { %v5755_v28 = vadd.f32 %v5754_v9, %v5626_v49  ;;  %v5499_v17 = vadd.f32 %v5498_v15, %v15333_v39  ;;  %v15335_v15 = vld [vmem:[#allocation41_spill] sm:$0xff] }
 0xa86   : > { %v5884_v6 = vadd.f32 %v5883_v8, %v5755_v28  ;;  %v5628_v19 = vadd.f32 %v5627_v13, %v5499_v17  ;;  %v15334_v28 = vld [vmem:[#allocation216_spill] sm:$0xff] }
 0xa87   : > { %v15338_v13 = vld [vmem:[#allocation44_spill] sm:$0xff] }
 0xa88   : > { %v7097_v21 = vadd.f32 %v5884_v6, %v665_v61  ;;  %v15337_v61 = vld [vmem:[#allocation43_spill] sm:$0xff] }
 0xa8a   : > { %7289 = vst [vmem:[%s10236_s10 + $0x510] sm:$0xff] %v7097_v21  ;;  %v5885_v9 = vpop.f32.mrf.mxu3  ;;  %v5630_v45 = vpop.f32.mrf.mxu1 }
 0xa8b   : > { %v5756_v49 = vpop.f32.mrf.mxu2  ;;  %v5501_v52 = vpop.f32.mrf.mxu0 }
 0xa8c   : > { %v5757_v44 = vadd.f32 %v5756_v49, %v5628_v19  ;;  %v5502_v8 = vadd.f32 %v5501_v52, %v15334_v28  ;;  %v673_v19 = vld [vmem:[%s10236_s10 + $0x550] sm:$0xff]  ;;  %v15339_v49 = vld [vmem:[#allocation217_spill] sm:$0xff] }
 0xa8d   : > { %6065 = vmatmul.bf16.gmra.mxu1 %v15336_v16 }
 0xa8e   : > { %v5886_v32 = vadd.f32 %v5885_v9, %v5757_v44  ;;  %5936 = vmatmul.bf16.gmra.mxu0 %v15335_v15  ;;  %v5631_v54 = vadd.f32 %v5630_v45, %v5502_v8  ;;  %v677_v45 = vld [vmem:[%s10236_s10 + $0x570] sm:$0xff] }
 0xa8f   : > { %6323 = vmatmul.bf16.gmra.mxu3 %v15338_v13 }
 0xa90   : > { %v7101_v23 = vadd.f32 %v5886_v32, %v669_v18  ;;  %6194 = vmatmul.bf16.gmra.mxu2 %v15337_v61  ;;  %v15341_v61 = vld [vmem:[#allocation45_spill] sm:$0xff] }
 0xa92   : > { %7293 = vst [vmem:[%s10236_s10 + $0x530] sm:$0xff] %v7101_v23  ;;  %v5888_v17 = vpop.f32.mrf.mxu3  ;;  %v5632_v36 = vpop.f32.mrf.mxu1  ;;  %v15340_v23 = vld [vmem:[#allocation218_spill] sm:$0xff] }
 0xa93   : > { %v5759_v6 = vpop.f32.mrf.mxu2  ;;  %v5503_v21 = vpop.f32.mrf.mxu0 }
 0xa94   : > { %v5760_v39 = vadd.f32 %v5759_v6, %v5631_v54  ;;  %v5504_v25 = vadd.f32 %v5503_v21, %v15339_v49  ;;  %v15342_v54 = vld [vmem:[#allocation46_spill] sm:$0xff]  ;;  %v15343_v6 = vld [vmem:[#allocation47_spill] sm:$0xff] }
 0xa95   : > { %v681_v49 = vld [vmem:[%s10236_s10 + $0x590] sm:$0xff] }
 0xa96   : > { %v5889_v60 = vadd.f32 %v5888_v17, %v5760_v39  ;;  %v5633_v9 = vadd.f32 %v5632_v36, %v5504_v25  ;;  %v15344_v39 = vld [vmem:[#allocation48_spill] sm:$0xff] }
 0xa98   : > { %v7105_v44 = vadd.f32 %v5889_v60, %v673_v19 }
 0xa9a   : > { %7297 = vst [vmem:[%s10236_s10 + $0x550] sm:$0xff] %v7105_v44  ;;  %v5890_v32 = vpop.f32.mrf.mxu3  ;;  %v5635_v8 = vpop.f32.mrf.mxu1 }
 0xa9b   : > { %v5761_v52 = vpop.f32.mrf.mxu2  ;;  %v5506_v28 = vpop.f32.mrf.mxu0 }
 0xa9c   : > { %v5762_v18 = vadd.f32 %v5761_v52, %v5633_v9  ;;  %v5507_v16 = vadd.f32 %v5506_v28, %v15340_v23  ;;  %v15345_v9 = vld [vmem:[#allocation219_spill] sm:$0xff] }
 0xa9d   : > { %6070 = vmatmul.bf16.gmra.mxu1 %v15342_v54  ;;  %v685_v23 = vld [vmem:[%s10236_s10 + $0x5b0] sm:$0xff]  ;;  %v15346_v54 = vld [vmem:[#allocation49_spill] sm:$0xff] }
 0xa9e   : > { %v5891_v15 = vadd.f32 %v5890_v32, %v5762_v18  ;;  %5941 = vmatmul.bf16.gmra.mxu0 %v15341_v61  ;;  %v5636_v17 = vadd.f32 %v5635_v8, %v5507_v16 }
 0xa9f   : > { %6328 = vmatmul.bf16.gmra.mxu3 %v15344_v39  ;;  %v15347_v39 = vld [vmem:[#allocation50_spill] sm:$0xff] }
 0xaa0   : > { %v7109_v13 = vadd.f32 %v5891_v15, %v677_v45  ;;  %6199 = vmatmul.bf16.gmra.mxu2 %v15343_v6 }
 0xaa2   : > { %7301 = vst [vmem:[%s10236_s10 + $0x570] sm:$0xff] %v7109_v13  ;;  %v5893_v36 = vpop.f32.mrf.mxu3  ;;  %v5637_v25 = vpop.f32.mrf.mxu1 }
 0xaa3   : > { %v5764_v21 = vpop.f32.mrf.mxu2  ;;  %v5508_v60 = vpop.f32.mrf.mxu0 }
 0xaa4   : > { %v5765_v19 = vadd.f32 %v5764_v21, %v5636_v17  ;;  %v5509_v52 = vadd.f32 %v5508_v60, %v15345_v9  ;;  %v15348_v17 = vld [vmem:[#allocation51_spill] sm:$0xff]  ;;  %v15349_v21 = vld [vmem:[#allocation52_spill] sm:$0xff]  ;;  %v9452_v60 = vld [vmem:[%s10219_s3 + $0x48c] sm:$0xf] }
 0xaa6   : > { %v5894_v44 = vadd.f32 %v5893_v36, %v5765_v19  ;;  %v5638_v32 = vadd.f32 %v5637_v25, %v5509_v52  ;;  %v9516_v19 = vld [vmem:[%s10219_s3 + $0x68c] sm:$0xf]  ;;  %v9120_v36 = vld [vmem:[%s10219_s3 + $0x698] sm:$0xf0] }
 0xaa7   : > { %v9123_v25 = vor.u32 %v9516_v19, %v9120_v36 }
 0xaa8   : > { %v7113_v18 = vadd.f32 %v5894_v44, %v681_v49  ;;  %v8864_v44 = vld [vmem:[%s10219_s3 + $0x498] sm:$0xf0] }
 0xaa9   : > { %v8867_v52 = vor.u32 %v9452_v60, %v8864_v44  ;;  %6680 = vmatpush.bf16.msrb.mxu2 %v9123_v25 }
 0xaaa   : > { %7305 = vst [vmem:[%s10236_s10 + $0x590] sm:$0xff] %v7113_v18  ;;  %v5895_v8 = vpop.f32.mrf.mxu3  ;;  %v5640_v16 = vpop.f32.mrf.mxu1  ;;  %v9248_v18 = vld [vmem:[%s10219_s3 + $0x798] sm:$0xf0] }
 0xaab   : > { %v5766_v28 = vpop.f32.mrf.mxu2  ;;  %v5511_v15 = vpop.f32.mrf.mxu0  ;;  %6422 = vmatpush.bf16.msrb.mxu0 %v8867_v52  ;;  %v15351_v52 = vld [vmem:[#allocation54_spill] sm:$0xff] }
 0xaac   : > { %v5767_v45 = vadd.f32 %v5766_v28, %v5638_v32  ;;  %v5512_v13 = vadd.f32 %v5511_v15, %v12889_v43  ;;  %v9548_v43 = vld [vmem:[%s10219_s3 + $0x78c] sm:$0xf]  ;;  %v689_v15 = vld [vmem:[%s10236_s10 + $0x5d0] sm:$0xff] }
 0xaad   : > { %6075 = vmatmul.bf16.gmra.mxu1 %v15347_v39 }
 0xaae   : > { %v5896_v61 = vadd.f32 %v5895_v8, %v5767_v45  ;;  %5946 = vmatmul.bf16.gmra.mxu0 %v15346_v54  ;;  %v5641_v49 = vadd.f32 %v5640_v16, %v5512_v13  ;;  %v9251_v8 = vor.u32 %v9548_v43, %v9248_v18  ;;  %v9484_v13 = vld [vmem:[%s10219_s3 + $0x58c] sm:$0xf]  ;;  %v8992_v54 = vld [vmem:[%s10219_s3 + $0x598] sm:$0xf0] }
 0xaaf   : > { %6333 = vmatmul.bf16.gmra.mxu3 %v15349_v21  ;;  %v15352_v18 = vld [vmem:[#allocation55_spill] sm:$0xff] }
 0xab0   : > { %v7117_v6 = vadd.f32 %v5896_v61, %v685_v23  ;;  %6204 = vmatmul.bf16.gmra.mxu2 %v15348_v17  ;;  %6809 = vmatpush.bf16.msrb.mxu3 %v9251_v8 }
 0xab2   : > { %7309 = vst [vmem:[%s10236_s10 + $0x5b0] sm:$0xff] %v7117_v6  ;;  %v5898_v28 = vpop.f32.mrf.mxu3  ;;  %v5642_v23 = vpop.f32.mrf.mxu1  ;;  %v8995_v6 = vor.u32 %v9484_v13, %v8992_v54 }
 0xab3   : > { %v5769_v9 = vpop.f32.mrf.mxu2  ;;  %v5513_v45 = vpop.f32.mrf.mxu0 }
 0xab4   : > { %v5770_v32 = vadd.f32 %v5769_v9, %v5641_v49  ;;  %v5514_v16 = vadd.f32 %v5513_v45, %v12893_v42  ;;  %6551 = vmatpush.bf16.msrb.mxu1 %v8995_v6  ;;  %v693_v49 = vld [vmem:[%s10236_s10 + $0x5f0] sm:$0xff]  ;;  %v15350_v9 = vld [vmem:[#allocation53_spill] sm:$0xff] }
 0xab6   : > { %v5899_v61 = vadd.f32 %v5898_v28, %v5770_v32  ;;  %v5643_v17 = vadd.f32 %v5642_v23, %v5514_v16  ;;  %v15353_v32 = vld [vmem:[#allocation56_spill] sm:$0xff] }
 0xab8   : > { %v7121_v39 = vadd.f32 %v5899_v61, %v689_v15 }
 0xaba   : > { %7313 = vst [vmem:[%s10236_s10 + $0x5d0] sm:$0xff] %v7121_v39  ;;  %v5900_v36 = vpop.f32.mrf.mxu3  ;;  %v6041_v25 = vpop.f32.mrf.mxu1 }
 0xabb   : > { %v5771_v21 = vpop.f32.mrf.mxu2  ;;  %v5912_v60 = vpop.f32.mrf.mxu0 }
 0xabc   : > { %v5772_v19 = vadd.f32 %v5771_v21, %v5643_v17  ;;  %v6042_v43 = vadd.f32 %v6041_v25, %v5912_v60  ;;  %v15355_v60 = vld [vmem:[#allocation58_spill] sm:$0xff]  ;;  %v15357_v25 = vld [vmem:[#allocation60_spill] sm:$0xff] }
 0xabd   : > { %6080 = vmatmul.bf16.gmra.mxu1 %v15351_v52 }
 0xabe   : > { %v5901_v44 = vadd.f32 %v5900_v36, %v5772_v19  ;;  %5951 = vmatmul.bf16.gmra.mxu0 %v15350_v9  ;;  %v15354_v36 = vld [vmem:[#allocation57_spill] sm:$0xff] }
 0xabf   : > { %6338 = vmatmul.bf16.gmra.mxu3 %v15353_v32 }
 0xac0   : > { %v7125_v42 = vadd.f32 %v5901_v44, %v693_v49  ;;  %6209 = vmatmul.bf16.gmra.mxu2 %v15352_v18  ;;  %v15356_v49 = vld [vmem:[#allocation59_spill] sm:$0xff] }
 0xac2   : > { %7317 = vst [vmem:[%s10236_s10 + $0x5f0] sm:$0xff] %v7125_v42  ;;  %v6299_v8 = vpop.f32.mrf.mxu3  ;;  %v6043_v23 = vpop.f32.mrf.mxu1 }
 0xac3   : > { %v6170_v28 = vpop.f32.mrf.mxu2  ;;  %v5914_v15 = vpop.f32.mrf.mxu0 }
 0xac4   : > { %v6171_v45 = vadd.f32 %v6170_v28, %v6042_v43  ;;  %v6044_v16 = vadd.f32 %v6043_v23, %v5914_v15 }
 0xac6   : > { %v13203_v61 = vadd.f32 %v6299_v8, %v6171_v45 }
 0xaca   : > { %v6301_v6 = vpop.f32.mrf.mxu3  ;;  %v6046_v17 = vpop.f32.mrf.mxu1 }
 0xacb   : > { %v6172_v13 = vpop.f32.mrf.mxu2  ;;  %v5917_v39 = vpop.f32.mrf.mxu0 }
 0xacc   : > { %v6173_v54 = vadd.f32 %v6172_v13, %v6044_v16  ;;  %v6047_v19 = vadd.f32 %v6046_v17, %v5917_v39  ;;  %v15360_v39 = vld [vmem:[#allocation63_spill] sm:$0xff]  ;;  %v15361_v17 = vld [vmem:[#allocation64_spill] sm:$0xff] }
 0xacd   : > { %6085 = vmatmul.bf16.gmra.mxu1 %v15355_v60  ;;  %v9448_v60 = vld [vmem:[%s10219_s3 + $0x46c] sm:$0xf] }
 0xace   : > { %v13205_v21 = vadd.f32 %v6301_v6, %v6173_v54  ;;  %5956 = vmatmul.bf16.gmra.mxu0 %v15354_v36  ;;  %v15358_v54 = vld [vmem:[#allocation61_spill] sm:$0xff]  ;;  %v15359_v6 = vld [vmem:[#allocation62_spill] sm:$0xff]  ;;  %v9104_v36 = vld [vmem:[%s10219_s3 + $0x678] sm:$0xf0] }
 0xacf   : > { %6343 = vmatmul.bf16.gmra.mxu3 %v15357_v25  ;;  %v8848_v25 = vld [vmem:[%s10219_s3 + $0x478] sm:$0xf0] }
 0xad0   : > { %6214 = vmatmul.bf16.gmra.mxu2 %v15356_v49 }
 0xad2   : > { %v6304_v9 = vpop.f32.mrf.mxu3  ;;  %v6048_v52 = vpop.f32.mrf.mxu1 }
 0xad3   : > { %v6175_v44 = vpop.f32.mrf.mxu2  ;;  %v5919_v42 = vpop.f32.mrf.mxu0 }
 0xad4   : > { %v6176_v43 = vadd.f32 %v6175_v44, %v6047_v19  ;;  %v6049_v32 = vadd.f32 %v6048_v52, %v5919_v42  ;;  %v9512_v19 = vld [vmem:[%s10219_s3 + $0x66c] sm:$0xf]  ;;  %v8851_v42 = vor.u32 %v9448_v60, %v8848_v25 }
 0xad5   : > { %v9107_v49 = vor.u32 %v9512_v19, %v9104_v36  ;;  %v9544_v44 = vld [vmem:[%s10219_s3 + $0x76c] sm:$0xf] }
 0xad6   : > { %v13211_v18 = vadd.f32 %v6304_v9, %v6176_v43  ;;  %v9232_v43 = vld [vmem:[%s10219_s3 + $0x778] sm:$0xf0]  ;;  %6423 = vmatpush.bf16.msrb.mxu0 %v8851_v42 }
 0xad7   : > { %v9235_v52 = vor.u32 %v9544_v44, %v9232_v43  ;;  %6681 = vmatpush.bf16.msrb.mxu2 %v9107_v49  ;;  %v15362_v44 = vld [vmem:[#allocation65_spill] sm:$0xff]  ;;  %v15363_v49 = vld [vmem:[#allocation66_spill] sm:$0xff]  ;;  %v15364_v43 = vld [vmem:[#allocation67_spill] sm:$0xff] }
 0xad9   : > { %6810 = vmatpush.bf16.msrb.mxu3 %v9235_v52 }
 0xada   : > { %v6306_v8 = vpop.f32.mrf.mxu3  ;;  %v6051_v23 = vpop.f32.mrf.mxu1 }
 0xadb   : > { %v6177_v28 = vpop.f32.mrf.mxu2  ;;  %v5922_v15 = vpop.f32.mrf.mxu0 }
 0xadc   : > { %v6178_v45 = vadd.f32 %v6177_v28, %v6049_v32  ;;  %v6052_v13 = vadd.f32 %v6051_v23, %v5922_v15 }
 0xadd   : > { %6090 = vmatmul.bf16.gmra.mxu1 %v15359_v6  ;;  %v8976_v6 = vld [vmem:[%s10219_s3 + $0x578] sm:$0xf0] }
 0xade   : > { %v13213_v16 = vadd.f32 %v6306_v8, %v6178_v45  ;;  %5961 = vmatmul.bf16.gmra.mxu0 %v15358_v54  ;;  %v9480_v54 = vld [vmem:[%s10219_s3 + $0x56c] sm:$0xf] }
 0xadf   : > { %6348 = vmatmul.bf16.gmra.mxu3 %v15361_v17 }
 0xae0   : > { %6219 = vmatmul.bf16.gmra.mxu2 %v15360_v39  ;;  %v8979_v39 = vor.u32 %v9480_v54, %v8976_v6 }
 0xae2   : > { %v6309_v28 = vpop.f32.mrf.mxu3  ;;  %v6053_v8 = vpop.f32.mrf.mxu1  ;;  %6552 = vmatpush.bf16.msrb.mxu1 %v8979_v39 }
 0xae3   : > { %v6180_v9 = vpop.f32.mrf.mxu2  ;;  %v5924_v45 = vpop.f32.mrf.mxu0 }
 0xae4   : > { %v6181_v32 = vadd.f32 %v6180_v9, %v6052_v13  ;;  %v6054_v23 = vadd.f32 %v6053_v8, %v5924_v45  ;;  %v15365_v9 = vld [vmem:[#allocation68_spill] sm:$0xff] }
 0xae6   : > { %v13225_v15 = vadd.f32 %v6309_v28, %v6181_v32 }
 0xaea   : > { %v6311_v36 = vpop.f32.mrf.mxu3  ;;  %v6056_v60 = vpop.f32.mrf.mxu1 }
 0xaeb   : > { %v6182_v17 = vpop.f32.mrf.mxu2  ;;  %v5927_v1 = vpop.f32.mrf.mxu0 }
 0xaec   : > { %v6183_v19 = vadd.f32 %v6182_v17, %v6054_v23  ;;  %v6057_v13 = vadd.f32 %v6056_v60, %v5927_v1  ;;  %v15366_v60 = vld [vmem:[#allocation69_spill] sm:$0xff] }
 0xaed   : > { %6095 = vmatmul.bf16.gmra.mxu1 %v15363_v49  ;;  %v15368_v49 = vld [vmem:[#allocation71_spill] sm:$0xff] }
 0xaee   : > { %v13229_v25 = vadd.f32 %v6311_v36, %v6183_v19  ;;  %5966 = vmatmul.bf16.gmra.mxu0 %v15362_v44  ;;  %v15367_v44 = vld [vmem:[#allocation70_spill] sm:$0xff] }
 0xaef   : > { %6353 = vmatmul.bf16.gmra.mxu3 %v15365_v9 }
 0xaf0   : > { %6224 = vmatmul.bf16.gmra.mxu2 %v15364_v43 }
 0xaf2   : > { %v6314_v32 = vpop.f32.mrf.mxu3  ;;  %v6058_v45 = vpop.f32.mrf.mxu1 }
 0xaf3   : > { %v6185_v42 = vpop.f32.mrf.mxu2  ;;  %v5929_v28 = vpop.f32.mrf.mxu0 }
 0xaf4   : > { %v6186_v52 = vadd.f32 %v6185_v42, %v6057_v13  ;;  %v6059_v23 = vadd.f32 %v6058_v45, %v5929_v28  ;;  %v15369_v13 = vld [vmem:[#allocation72_spill] sm:$0xff] }
 0xaf6   : > { %v13235_v8 = vadd.f32 %v6314_v32, %v6186_v52 }
 0xafa   : > { %v6316_v39 = vpop.f32.mrf.mxu3  ;;  %v6061_v17 = vpop.f32.mrf.mxu1 }
 0xafb   : > { %v6187_v54 = vpop.f32.mrf.mxu2  ;;  %v5932_v1 = vpop.f32.mrf.mxu0 }
 0xafc   : > { %v6188_v6 = vadd.f32 %v6187_v54, %v6059_v23  ;;  %v6062_v36 = vadd.f32 %v6061_v17, %v5932_v1 }
 0xafd   : > { %6100 = vmatmul.bf16.gmra.mxu1 %v15367_v44  ;;  %v15371_v44 = vld [vmem:[#allocation74_spill] sm:$0xff] }
 0xafe   : > { %v13237_v19 = vadd.f32 %v6316_v39, %v6188_v6  ;;  %5971 = vmatmul.bf16.gmra.mxu0 %v15366_v60  ;;  %v15370_v60 = vld [vmem:[#allocation73_spill] sm:$0xff] }
 0xaff   : > { %6358 = vmatmul.bf16.gmra.mxu3 %v15369_v13  ;;  %v15373_v13 = vld [vmem:[#allocation76_spill] sm:$0xff] }
 0xb00   : > { %6229 = vmatmul.bf16.gmra.mxu2 %v15368_v49  ;;  %v15372_v49 = vld [vmem:[#allocation75_spill] sm:$0xff] }
 0xb02   : > { %v6319_v42 = vpop.f32.mrf.mxu3  ;;  %v6063_v32 = vpop.f32.mrf.mxu1 }
 0xb03   : > { %v6190_v43 = vpop.f32.mrf.mxu2  ;;  %v5934_v52 = vpop.f32.mrf.mxu0 }
 0xb04   : > { %v6191_v9 = vadd.f32 %v6190_v43, %v6062_v36  ;;  %v6064_v45 = vadd.f32 %v6063_v32, %v5934_v52  ;;  %v9508_v43 = vld [vmem:[%s10219_s3 + $0x64c] sm:$0xf]  ;;  %v8832_v32 = vld [vmem:[%s10219_s3 + $0x458] sm:$0xf0] }
 0xb06   : > { %v13243_v28 = vadd.f32 %v6319_v42, %v6191_v9  ;;  %v9088_v9 = vld [vmem:[%s10219_s3 + $0x658] sm:$0xf0]  ;;  %v9444_v42 = vld [vmem:[%s10219_s3 + $0x44c] sm:$0xf] }
 0xb07   : > { %v9091_v52 = vor.u32 %v9508_v43, %v9088_v9  ;;  %v8960_v43 = vld [vmem:[%s10219_s3 + $0x558] sm:$0xf0] }
 0xb08   : > { %v8963_v9 = vor.u32 %v9476_v56, %v8960_v43 }
 0xb09   : > { %6682 = vmatpush.bf16.msrb.mxu2 %v9091_v52  ;;  %v15375_v52 = vld [vmem:[#allocation78_spill] sm:$0xff] }
 0xb0a   : > { %v6321_v6 = vpop.f32.mrf.mxu3  ;;  %v6066_v1 = vpop.f32.mrf.mxu1  ;;  %6553 = vmatpush.bf16.msrb.mxu1 %v8963_v9 }
 0xb0b   : > { %v6192_v23 = vpop.f32.mrf.mxu2  ;;  %v5937_v39 = vpop.f32.mrf.mxu0 }
 0xb0c   : > { %v6193_v54 = vadd.f32 %v6192_v23, %v6064_v45  ;;  %v6067_v36 = vadd.f32 %v6066_v1, %v5937_v39  ;;  %v9540_v45 = vld [vmem:[%s10219_s3 + $0x74c] sm:$0xf]  ;;  %v9216_v23 = vld [vmem:[%s10219_s3 + $0x758] sm:$0xf0] }
 0xb0d   : > { %6105 = vmatmul.bf16.gmra.mxu1 %v15371_v44  ;;  %v9219_v39 = vor.u32 %v9540_v45, %v9216_v23  ;;  %v15374_v45 = vld [vmem:[#allocation77_spill] sm:$0xff]  ;;  %v15376_v23 = vld [vmem:[#allocation79_spill] sm:$0xff] }
 0xb0e   : > { %v13245_v17 = vadd.f32 %v6321_v6, %v6193_v54  ;;  %5976 = vmatmul.bf16.gmra.mxu0 %v15370_v60  ;;  %v8835_v6 = vor.u32 %v9444_v42, %v8832_v32 }
 0xb0f   : > { %6363 = vmatmul.bf16.gmra.mxu3 %v15373_v13 }
 0xb10   : > { %6234 = vmatmul.bf16.gmra.mxu2 %v15372_v49  ;;  %6424 = vmatpush.bf16.msrb.mxu0 %v8835_v6 }
 0xb11   : > { %6811 = vmatpush.bf16.msrb.mxu3 %v9219_v39 }
 0xb12   : > { %v6324_v60 = vpop.f32.mrf.mxu3  ;;  %v6068_v44 = vpop.f32.mrf.mxu1 }
 0xb13   : > { %v6195_v54 = vpop.f32.mrf.mxu2  ;;  %v5939_v59 = vpop.f32.mrf.mxu0 }
 0xb14   : > { %v6196_v1 = vadd.f32 %v6195_v54, %v6067_v36  ;;  %v6069_v13 = vadd.f32 %v6068_v44, %v5939_v59  ;;  %v15377_v54 = vld [vmem:[#allocation80_spill] sm:$0xff] }
 0xb16   : > { %v13257_v49 = vadd.f32 %v6324_v60, %v6196_v1 }
 0xb1a   : > { %v6326_v37 = vpop.f32.mrf.mxu3  ;;  %v6071_v42 = vpop.f32.mrf.mxu1 }
 0xb1b   : > { %v6197_v47 = vpop.f32.mrf.mxu2  ;;  %v5942_v55 = vpop.f32.mrf.mxu0 }
 0xb1c   : > { %v6198_v0 = vadd.f32 %v6197_v47, %v6069_v13  ;;  %v6072_v36 = vadd.f32 %v6071_v42, %v5942_v55  ;;  %v15378_v42 = vld [vmem:[#allocation81_spill] sm:$0xff] }
 0xb1d   : > { %6110 = vmatmul.bf16.gmra.mxu1 %v15375_v52  ;;  %v15380_v52 = vld [vmem:[#allocation83_spill] sm:$0xff] }
 0xb1e   : > { %v13261_v32 = vadd.f32 %v6326_v37, %v6198_v0  ;;  %5981 = vmatmul.bf16.gmra.mxu0 %v15374_v45  ;;  %v15379_v45 = vld [vmem:[#allocation82_spill] sm:$0xff] }
 0xb1f   : > { %6368 = vmatmul.bf16.gmra.mxu3 %v15377_v54 }
 0xb20   : > { %6239 = vmatmul.bf16.gmra.mxu2 %v15376_v23 }
 0xb22   : > { %v6329_v56 = vpop.f32.mrf.mxu3  ;;  %v6073_v1 = vpop.f32.mrf.mxu1 }
 0xb23   : > { %v6200_v59 = vpop.f32.mrf.mxu2  ;;  %v5944_v39 = vpop.f32.mrf.mxu0 }
 0xb24   : > { %v6201_v6 = vadd.f32 %v6200_v59, %v6072_v36  ;;  %v6074_v60 = vadd.f32 %v6073_v1, %v5944_v39  ;;  %v15381_v36 = vld [vmem:[#allocation84_spill] sm:$0xff] }
 0xb26   : > { %v13267_v47 = vadd.f32 %v6329_v56, %v6201_v6 }
 0xb2a   : > { %v6331_v0 = vpop.f32.mrf.mxu3  ;;  %v6076_v13 = vpop.f32.mrf.mxu1 }
 0xb2b   : > { %v6202_v44 = vpop.f32.mrf.mxu2  ;;  %v5947_v55 = vpop.f32.mrf.mxu0 }
 0xb2c   : > { %v6203_v37 = vadd.f32 %v6202_v44, %v6074_v60  ;;  %v6077_v9 = vadd.f32 %v6076_v13, %v5947_v55 }
 0xb2d   : > { %6115 = vmatmul.bf16.gmra.mxu1 %v15379_v45  ;;  %v15384_v45 = vld [vmem:[#allocation86_spill] sm:$0xff] }
 0xb2e   : > { %v13269_v43 = vadd.f32 %v6331_v0, %v6203_v37  ;;  %5986 = vmatmul.bf16.gmra.mxu0 %v15378_v42  ;;  %v15383_v42 = vld [vmem:[#allocation85_spill] sm:$0xff] }
 0xb2f   : > { %6373 = vmatmul.bf16.gmra.mxu3 %v15381_v36  ;;  %v15386_v36 = vld [vmem:[#allocation88_spill] sm:$0xff] }
 0xb30   : > { %6244 = vmatmul.bf16.gmra.mxu2 %v15380_v52  ;;  %v15385_v52 = vld [vmem:[#allocation87_spill] sm:$0xff] }
 0xb32   : > { %v6334_v59 = vpop.f32.mrf.mxu3  ;;  %v6078_v56 = vpop.f32.mrf.mxu1 }
 0xb33   : > { %v6205_v23 = vpop.f32.mrf.mxu2  ;;  %v5949_v6 = vpop.f32.mrf.mxu0 }
 0xb34   : > { %v6206_v54 = vadd.f32 %v6205_v23, %v6077_v9  ;;  %v6079_v1 = vadd.f32 %v6078_v56, %v5949_v6  ;;  %v9504_v23 = vld [vmem:[%s10219_s3 + $0x62c] sm:$0xf]  ;;  %v8816_v56 = vld [vmem:[%s10219_s3 + $0x438] sm:$0xf0] }
 0xb36   : > { %v13275_v39 = vadd.f32 %v6334_v59, %v6206_v54  ;;  %v9072_v54 = vld [vmem:[%s10219_s3 + $0x638] sm:$0xf0]  ;;  %v9440_v59 = vld [vmem:[%s10219_s3 + $0x42c] sm:$0xf] }
 0xb37   : > { %v9075_v6 = vor.u32 %v9504_v23, %v9072_v54  ;;  %v8944_v23 = vld [vmem:[%s10219_s3 + $0x538] sm:$0xf0] }
 0xb38   : > { %v8947_v54 = vor.u32 %v9472_v48, %v8944_v23 }
 0xb39   : > { %6683 = vmatpush.bf16.msrb.mxu2 %v9075_v6  ;;  %v15390_v6 = vld [vmem:[#allocation90_spill] sm:$0xff] }
 0xb3a   : > { %v6336_v37 = vpop.f32.mrf.mxu3  ;;  %v6081_v55 = vpop.f32.mrf.mxu1  ;;  %6554 = vmatpush.bf16.msrb.mxu1 %v8947_v54 }
 0xb3b   : > { %v6207_v60 = vpop.f32.mrf.mxu2  ;;  %v5952_v0 = vpop.f32.mrf.mxu0 }
 0xb3c   : > { %v6208_v44 = vadd.f32 %v6207_v60, %v6079_v1  ;;  %v6082_v9 = vadd.f32 %v6081_v55, %v5952_v0  ;;  %v9536_v1 = vld [vmem:[%s10219_s3 + $0x72c] sm:$0xf]  ;;  %v9200_v60 = vld [vmem:[%s10219_s3 + $0x738] sm:$0xf0] }
 0xb3d   : > { %6120 = vmatmul.bf16.gmra.mxu1 %v15384_v45  ;;  %v9203_v0 = vor.u32 %v9536_v1, %v9200_v60  ;;  %v15389_v1 = vld [vmem:[#allocation89_spill] sm:$0xff]  ;;  %v15391_v60 = vld [vmem:[#allocation91_spill] sm:$0xff] }
 0xb3e   : > { %v13277_v13 = vadd.f32 %v6336_v37, %v6208_v44  ;;  %5991 = vmatmul.bf16.gmra.mxu0 %v15383_v42  ;;  %v8819_v37 = vor.u32 %v9440_v59, %v8816_v56 }
 0xb3f   : > { %6378 = vmatmul.bf16.gmra.mxu3 %v15386_v36 }
 0xb40   : > { %15382 = vst [vmem:[#allocation220_spill] sm:$0xff] %v13277_v13  ;;  %6249 = vmatmul.bf16.gmra.mxu2 %v15385_v52  ;;  %6425 = vmatpush.bf16.msrb.mxu0 %v8819_v37 }
 0xb41   : > { %6812 = vmatpush.bf16.msrb.mxu3 %v9203_v0 }
 0xb42   : > { %v6339_v42 = vpop.f32.mrf.mxu3  ;;  %v6083_v45 = vpop.f32.mrf.mxu1 }
 0xb43   : > { %v6210_v44 = vpop.f32.mrf.mxu2  ;;  %v5954_v31 = vpop.f32.mrf.mxu0 }
 0xb44   : > { %v6211_v55 = vadd.f32 %v6210_v44, %v6082_v9  ;;  %v6084_v36 = vadd.f32 %v6083_v45, %v5954_v31  ;;  %v15392_v44 = vld [vmem:[#allocation92_spill] sm:$0xff] }
 0xb46   : > { %v13289_v52 = vadd.f32 %v6339_v42, %v6211_v55 }
 0xb48   : > { %15387 = vst [vmem:[#allocation221_spill] sm:$0xff] %v13289_v52 }
 0xb4a   : > { %v6341_v20 = vpop.f32.mrf.mxu3  ;;  %v6086_v59 = vpop.f32.mrf.mxu1 }
 0xb4b   : > { %v6212_v13 = vpop.f32.mrf.mxu2  ;;  %v5957_v7 = vpop.f32.mrf.mxu0 }
 0xb4c   : > { %v6213_v33 = vadd.f32 %v6212_v13, %v6084_v36  ;;  %v6087_v9 = vadd.f32 %v6086_v59, %v5957_v7  ;;  %v15395_v59 = vld [vmem:[#allocation93_spill] sm:$0xff] }
 0xb4d   : > { %6125 = vmatmul.bf16.gmra.mxu1 %v15390_v6  ;;  %v15397_v6 = vld [vmem:[#allocation95_spill] sm:$0xff] }
 0xb4e   : > { %v13293_v56 = vadd.f32 %v6341_v20, %v6213_v33  ;;  %5996 = vmatmul.bf16.gmra.mxu0 %v15389_v1  ;;  %v15396_v1 = vld [vmem:[#allocation94_spill] sm:$0xff] }
 0xb4f   : > { %6383 = vmatmul.bf16.gmra.mxu3 %v15392_v44 }
 0xb50   : > { %15388 = vst [vmem:[#allocation222_spill] sm:$0xff] %v13293_v56  ;;  %6254 = vmatmul.bf16.gmra.mxu2 %v15391_v60 }
 0xb52   : > { %v6344_v48 = vpop.f32.mrf.mxu3  ;;  %v6088_v55 = vpop.f32.mrf.mxu1 }
 0xb53   : > { %v6215_v31 = vpop.f32.mrf.mxu2  ;;  %v5959_v0 = vpop.f32.mrf.mxu0 }
 0xb54   : > { %v6216_v37 = vadd.f32 %v6215_v31, %v6087_v9  ;;  %v6089_v42 = vadd.f32 %v6088_v55, %v5959_v0  ;;  %v15398_v9 = vld [vmem:[#allocation96_spill] sm:$0xff] }
 0xb56   : > { %v13299_v13 = vadd.f32 %v6344_v48, %v6216_v37 }
 0xb58   : > { %15393 = vst [vmem:[#allocation164_spill] sm:$0xff] %v13299_v13 }
 0xb5a   : > { %v6346_v33 = vpop.f32.mrf.mxu3  ;;  %v6091_v36 = vpop.f32.mrf.mxu1 }
 0xb5b   : > { %v6217_v45 = vpop.f32.mrf.mxu2  ;;  %v5962_v7 = vpop.f32.mrf.mxu0 }
 0xb5c   : > { %v6218_v20 = vadd.f32 %v6217_v45, %v6089_v42  ;;  %v6092_v54 = vadd.f32 %v6091_v36, %v5962_v7 }
 0xb5d   : > { %6130 = vmatmul.bf16.gmra.mxu1 %v15396_v1  ;;  %v15402_v1 = vld [vmem:[#allocation98_spill] sm:$0xff] }
 0xb5e   : > { %v13301_v23 = vadd.f32 %v6346_v33, %v6218_v20  ;;  %6001 = vmatmul.bf16.gmra.mxu0 %v15395_v59  ;;  %v15401_v59 = vld [vmem:[#allocation97_spill] sm:$0xff] }
 0xb5f   : > { %6388 = vmatmul.bf16.gmra.mxu3 %v15398_v9  ;;  %v15404_v9 = vld [vmem:[#allocation100_spill] sm:$0xff] }
 0xb60   : > { %15394 = vst [vmem:[#allocation165_spill] sm:$0xff] %v13301_v23  ;;  %6259 = vmatmul.bf16.gmra.mxu2 %v15397_v6  ;;  %v15403_v6 = vld [vmem:[#allocation99_spill] sm:$0xff] }
 0xb62   : > { %v6349_v31 = vpop.f32.mrf.mxu3  ;;  %v6093_v48 = vpop.f32.mrf.mxu1 }
 0xb63   : > { %v6220_v60 = vpop.f32.mrf.mxu2  ;;  %v5964_v37 = vpop.f32.mrf.mxu0 }
 0xb64   : > { %v6221_v44 = vadd.f32 %v6220_v60, %v6092_v54  ;;  %v6094_v55 = vadd.f32 %v6093_v48, %v5964_v37  ;;  %v9500_v60 = vld [vmem:[%s10219_s3 + $0x60c] sm:$0xf]  ;;  %v8800_v48 = vld [vmem:[%s10219_s3 + $0x418] sm:$0xf0] }
 0xb66   : > { %v13307_v0 = vadd.f32 %v6349_v31, %v6221_v44  ;;  %v9056_v44 = vld [vmem:[%s10219_s3 + $0x618] sm:$0xf0]  ;;  %v9436_v31 = vld [vmem:[%s10219_s3 + $0x40c] sm:$0xf] }
 0xb67   : > { %v9059_v37 = vor.u32 %v9500_v60, %v9056_v44  ;;  %v8928_v60 = vld [vmem:[%s10219_s3 + $0x518] sm:$0xf0] }
 0xb68   : > { %15399 = vst [vmem:[#allocation166_spill] sm:$0xff] %v13307_v0  ;;  %v9468_v0 = vld [vmem:[%s10219_s3 + $0x50c] sm:$0xf] }
 0xb69   : > { %6684 = vmatpush.bf16.msrb.mxu2 %v9059_v37  ;;  %v8931_v44 = vor.u32 %v9468_v0, %v8928_v60  ;;  %v15406_v37 = vld [vmem:[#allocation102_spill] sm:$0xff] }
 0xb6a   : > { %v6351_v20 = vpop.f32.mrf.mxu3  ;;  %v6096_v7 = vpop.f32.mrf.mxu1 }
 0xb6b   : > { %v6222_v42 = vpop.f32.mrf.mxu2  ;;  %v5967_v33 = vpop.f32.mrf.mxu0  ;;  %6555 = vmatpush.bf16.msrb.mxu1 %v8931_v44 }
 0xb6c   : > { %v6223_v45 = vadd.f32 %v6222_v42, %v6094_v55  ;;  %v6097_v54 = vadd.f32 %v6096_v7, %v5967_v33  ;;  %v9532_v55 = vld [vmem:[%s10219_s3 + $0x70c] sm:$0xf]  ;;  %v9184_v42 = vld [vmem:[%s10219_s3 + $0x718] sm:$0xf0] }
 0xb6d   : > { %6135 = vmatmul.bf16.gmra.mxu1 %v15402_v1  ;;  %v9187_v33 = vor.u32 %v9532_v55, %v9184_v42  ;;  %v15405_v55 = vld [vmem:[#allocation101_spill] sm:$0xff]  ;;  %v15407_v42 = vld [vmem:[#allocation103_spill] sm:$0xff] }
 0xb6e   : > { %v13309_v36 = vadd.f32 %v6351_v20, %v6223_v45  ;;  %6006 = vmatmul.bf16.gmra.mxu0 %v15401_v59  ;;  %v8803_v20 = vor.u32 %v9436_v31, %v8800_v48 }
 0xb6f   : > { %6393 = vmatmul.bf16.gmra.mxu3 %v15404_v9 }
 0xb70   : > { %15400 = vst [vmem:[#allocation161_spill] sm:$0xff] %v13309_v36  ;;  %6264 = vmatmul.bf16.gmra.mxu2 %v15403_v6  ;;  %6426 = vmatpush.bf16.msrb.mxu0 %v8803_v20 }
 0xb71   : > { %6813 = vmatpush.bf16.msrb.mxu3 %v9187_v33 }
 0xb72   : > { %v6354_v59 = vpop.f32.mrf.mxu3  ;;  %v6098_v1 = vpop.f32.mrf.mxu1 }
 0xb73   : > { %v6225_v45 = vpop.f32.mrf.mxu2  ;;  %v5969_v36 = vpop.f32.mrf.mxu0 }
 0xb74   : > { %v6226_v7 = vadd.f32 %v6225_v45, %v6097_v54  ;;  %v6099_v9 = vadd.f32 %v6098_v1, %v5969_v36  ;;  %v15408_v45 = vld [vmem:[#allocation104_spill] sm:$0xff] }
 0xb76   : > { %v13321_v6 = vadd.f32 %v6354_v59, %v6226_v7 }
 0xb7a   : > { %v6356_v56 = vpop.f32.mrf.mxu3  ;;  %v6101_v31 = vpop.f32.mrf.mxu1 }
 0xb7b   : > { %v6227_v23 = vpop.f32.mrf.mxu2  ;;  %v5972_v52 = vpop.f32.mrf.mxu0 }
 0xb7c   : > { %v6228_v13 = vadd.f32 %v6227_v23, %v6099_v9  ;;  %v6102_v54 = vadd.f32 %v6101_v31, %v5972_v52  ;;  %v15409_v31 = vld [vmem:[#allocation105_spill] sm:$0xff] }
 0xb7d   : > { %6140 = vmatmul.bf16.gmra.mxu1 %v15406_v37  ;;  %v15411_v37 = vld [vmem:[#allocation107_spill] sm:$0xff] }
 0xb7e   : > { %v13325_v48 = vadd.f32 %v6356_v56, %v6228_v13  ;;  %6011 = vmatmul.bf16.gmra.mxu0 %v15405_v55  ;;  %v15410_v55 = vld [vmem:[#allocation106_spill] sm:$0xff] }
 0xb7f   : > { %6398 = vmatmul.bf16.gmra.mxu3 %v15408_v45 }
 0xb80   : > { %6269 = vmatmul.bf16.gmra.mxu2 %v15407_v42 }
 0xb82   : > { %v6359_v0 = vpop.f32.mrf.mxu3  ;;  %v6103_v7 = vpop.f32.mrf.mxu1 }
 0xb83   : > { %v6230_v36 = vpop.f32.mrf.mxu2  ;;  %v5974_v33 = vpop.f32.mrf.mxu0 }
 0xb84   : > { %v6231_v20 = vadd.f32 %v6230_v36, %v6102_v54  ;;  %v6104_v59 = vadd.f32 %v6103_v7, %v5974_v33  ;;  %v15412_v54 = vld [vmem:[#allocation108_spill] sm:$0xff] }
 0xb86   : > { %v13331_v23 = vadd.f32 %v6359_v0, %v6231_v20 }
 0xb8a   : > { %v6361_v13 = vpop.f32.mrf.mxu3  ;;  %v6106_v9 = vpop.f32.mrf.mxu1 }
 0xb8b   : > { %v6232_v1 = vpop.f32.mrf.mxu2  ;;  %v5977_v52 = vpop.f32.mrf.mxu0 }
 0xb8c   : > { %v6233_v56 = vadd.f32 %v6232_v1, %v6104_v59  ;;  %v6107_v44 = vadd.f32 %v6106_v9, %v5977_v52 }
 0xb8d   : > { %6145 = vmatmul.bf16.gmra.mxu1 %v15410_v55  ;;  %v15415_v55 = vld [vmem:[#allocation109_spill] sm:$0xff] }
 0xb8e   : > { %v13333_v60 = vadd.f32 %v6361_v13, %v6233_v56  ;;  %6016 = vmatmul.bf16.gmra.mxu0 %v15409_v31 }
 0xb8f   : > { %6403 = vmatmul.bf16.gmra.mxu3 %v15412_v54  ;;  %v15417_v54 = vld [vmem:[#allocation111_spill] sm:$0xff] }
 0xb90   : > { %6274 = vmatmul.bf16.gmra.mxu2 %v15411_v37  ;;  %v15416_v37 = vld [vmem:[#allocation110_spill] sm:$0xff] }
 0xb92   : > { %v6364_v36 = vpop.f32.mrf.mxu3  ;;  %v6108_v0 = vpop.f32.mrf.mxu1 }
 0xb93   : > { %v6235_v42 = vpop.f32.mrf.mxu2  ;;  %v5979_v20 = vpop.f32.mrf.mxu0 }
 0xb94   : > { %v6236_v45 = vadd.f32 %v6235_v42, %v6107_v44  ;;  %v6109_v7 = vadd.f32 %v6108_v0, %v5979_v20  ;;  %v15418_v44 = vld [vmem:[#allocation112_spill] sm:$0xff] }
 0xb96   : > { %v13339_v33 = vadd.f32 %v6364_v36, %v6236_v45 }
 0xb98   : > { %15413 = vst [vmem:[#allocation162_spill] sm:$0xff] %v13339_v33 }
 0xb9a   : > { %v6366_v56 = vpop.f32.mrf.mxu3  ;;  %v6111_v52 = vpop.f32.mrf.mxu1 }
 0xb9b   : > { %v6237_v59 = vpop.f32.mrf.mxu2  ;;  %v5982_v13 = vpop.f32.mrf.mxu0 }
 0xb9c   : > { %v6238_v1 = vadd.f32 %v6237_v59, %v6109_v7  ;;  %v6112_v31 = vadd.f32 %v6111_v52, %v5982_v13 }
 0xb9d   : > { %6150 = vmatmul.bf16.gmra.mxu1 %v15416_v37 }
 0xb9e   : > { %v13341_v9 = vadd.f32 %v6366_v56, %v6238_v1  ;;  %6021 = vmatmul.bf16.gmra.mxu0 %v15415_v55 }
 0xb9f   : > { %6408 = vmatmul.bf16.gmra.mxu3 %v15418_v44  ;;  %v15423_v44 = vld [vmem:[#allocation115_spill] sm:$0xff] }
 0xba0   : > { %15414 = vst [vmem:[#allocation163_spill] sm:$0xff] %v13341_v9  ;;  %6279 = vmatmul.bf16.gmra.mxu2 %v15417_v54  ;;  %v15421_v9 = vld [vmem:[#allocation113_spill] sm:$0xff]  ;;  %v15422_v54 = vld [vmem:[#allocation114_spill] sm:$0xff] }
 0xba2   : > { %v6369_v36 = vpop.f32.mrf.mxu3  ;;  %v6113_v0 = vpop.f32.mrf.mxu1 }
 0xba3   : > { %v6240_v42 = vpop.f32.mrf.mxu2  ;;  %v5984_v20 = vpop.f32.mrf.mxu0 }
 0xba4   : > { %v6241_v45 = vadd.f32 %v6240_v42, %v6112_v31  ;;  %v6114_v59 = vadd.f32 %v6113_v0, %v5984_v20  ;;  %v15424_v31 = vld [vmem:[#allocation116_spill] sm:$0xff] }
 0xba6   : > { %v13347_v7 = vadd.f32 %v6369_v36, %v6241_v45 }
 0xba8   : > { %15419 = vst [vmem:[#allocation169_spill] sm:$0xff] %v13347_v7 }
 0xbaa   : > { %v6371_v56 = vpop.f32.mrf.mxu3  ;;  %v6116_v52 = vpop.f32.mrf.mxu1 }
 0xbab   : > { %v6242_v33 = vpop.f32.mrf.mxu2  ;;  %v5987_v13 = vpop.f32.mrf.mxu0 }
 0xbac   : > { %v6243_v1 = vadd.f32 %v6242_v33, %v6114_v59  ;;  %v6117_v37 = vadd.f32 %v6116_v52, %v5987_v13 }
 0xbad   : > { %6155 = vmatmul.bf16.gmra.mxu1 %v15422_v54 }
 0xbae   : > { %v13349_v55 = vadd.f32 %v6371_v56, %v6243_v1  ;;  %6026 = vmatmul.bf16.gmra.mxu0 %v15421_v9 }
 0xbaf   : > { %6413 = vmatmul.bf16.gmra.mxu3 %v15424_v31  ;;  %v15429_v31 = vld [vmem:[#allocation119_spill] sm:$0xff] }
 0xbb0   : > { %15420 = vst [vmem:[#allocation170_spill] sm:$0xff] %v13349_v55  ;;  %6284 = vmatmul.bf16.gmra.mxu2 %v15423_v44  ;;  %v15427_v55 = vld [vmem:[#allocation117_spill] sm:$0xff]  ;;  %v15428_v44 = vld [vmem:[#allocation118_spill] sm:$0xff] }
 0xbb2   : > { %v6374_v36 = vpop.f32.mrf.mxu3  ;;  %v6118_v0 = vpop.f32.mrf.mxu1 }
 0xbb3   : > { %v6245_v42 = vpop.f32.mrf.mxu2  ;;  %v5989_v20 = vpop.f32.mrf.mxu0 }
 0xbb4   : > { %v6246_v45 = vadd.f32 %v6245_v42, %v6117_v37  ;;  %v6119_v59 = vadd.f32 %v6118_v0, %v5989_v20  ;;  %v15430_v37 = vld [vmem:[#allocation120_spill] sm:$0xff] }
 0xbb6   : > { %v13355_v33 = vadd.f32 %v6374_v36, %v6246_v45 }
 0xbb8   : > { %15425 = vst [vmem:[#allocation171_spill] sm:$0xff] %v13355_v33 }
 0xbba   : > { %v6376_v56 = vpop.f32.mrf.mxu3  ;;  %v6121_v52 = vpop.f32.mrf.mxu1 }
 0xbbb   : > { %v6247_v7 = vpop.f32.mrf.mxu2  ;;  %v5992_v13 = vpop.f32.mrf.mxu0 }
 0xbbc   : > { %v6248_v1 = vadd.f32 %v6247_v7, %v6119_v59  ;;  %v6122_v54 = vadd.f32 %v6121_v52, %v5992_v13 }
 0xbbd   : > { %6556 = vmatmul.bf16.vlgmr.msrb.gmra.mxu1 %v15428_v44 }
 0xbbe   : > { %v13357_v9 = vadd.f32 %v6376_v56, %v6248_v1  ;;  %6427 = vmatmul.bf16.vlgmr.msrb.gmra.mxu0 %v15427_v55 }
 0xbbf   : > { %6814 = vmatmul.bf16.vlgmr.msrb.gmra.mxu3 %v15430_v37  ;;  %v15435_v37 = vld [vmem:[#allocation123_spill] sm:$0xff] }
 0xbc0   : > { %15426 = vst [vmem:[#allocation172_spill] sm:$0xff] %v13357_v9  ;;  %6685 = vmatmul.bf16.vlgmr.msrb.gmra.mxu2 %v15429_v31  ;;  %v15433_v9 = vld [vmem:[#allocation121_spill] sm:$0xff]  ;;  %v15434_v31 = vld [vmem:[#allocation122_spill] sm:$0xff] }
 0xbc2   : > { %v6379_v36 = vpop.f32.mrf.mxu3  ;;  %v6123_v0 = vpop.f32.mrf.mxu1 }
 0xbc3   : > { %v6250_v42 = vpop.f32.mrf.mxu2  ;;  %v5994_v20 = vpop.f32.mrf.mxu0 }
 0xbc4   : > { %v6251_v45 = vadd.f32 %v6250_v42, %v6122_v54  ;;  %v6124_v59 = vadd.f32 %v6123_v0, %v5994_v20  ;;  %v15436_v54 = vld [vmem:[#allocation124_spill] sm:$0xff] }
 0xbc6   : > { %v13363_v7 = vadd.f32 %v6379_v36, %v6251_v45 }
 0xbc8   : > { %15431 = vst [vmem:[#allocation173_spill] sm:$0xff] %v13363_v7 }
 0xbca   : > { %v6381_v56 = vpop.f32.mrf.mxu3  ;;  %v6126_v52 = vpop.f32.mrf.mxu1 }
 0xbcb   : > { %v6252_v33 = vpop.f32.mrf.mxu2  ;;  %v5997_v13 = vpop.f32.mrf.mxu0 }
 0xbcc   : > { %v6253_v1 = vadd.f32 %v6252_v33, %v6124_v59  ;;  %v6127_v44 = vadd.f32 %v6126_v52, %v5997_v13 }
 0xbcd   : > { %6561 = vmatmul.bf16.gmra.mxu1 %v15434_v31 }
 0xbce   : > { %v13365_v55 = vadd.f32 %v6381_v56, %v6253_v1  ;;  %6432 = vmatmul.bf16.gmra.mxu0 %v15433_v9 }
 0xbcf   : > { %6819 = vmatmul.bf16.gmra.mxu3 %v15436_v54  ;;  %v15441_v54 = vld [vmem:[#allocation127_spill] sm:$0xff] }
 0xbd0   : > { %15432 = vst [vmem:[#allocation174_spill] sm:$0xff] %v13365_v55  ;;  %6690 = vmatmul.bf16.gmra.mxu2 %v15435_v37  ;;  %v15439_v55 = vld [vmem:[#allocation125_spill] sm:$0xff]  ;;  %v15440_v37 = vld [vmem:[#allocation126_spill] sm:$0xff] }
 0xbd2   : > { %v6384_v36 = vpop.f32.mrf.mxu3  ;;  %v6128_v0 = vpop.f32.mrf.mxu1 }
 0xbd3   : > { %v6255_v42 = vpop.f32.mrf.mxu2  ;;  %v5999_v20 = vpop.f32.mrf.mxu0 }
 0xbd4   : > { %v6256_v45 = vadd.f32 %v6255_v42, %v6127_v44  ;;  %v6129_v59 = vadd.f32 %v6128_v0, %v5999_v20  ;;  %v15442_v44 = vld [vmem:[#allocation128_spill] sm:$0xff] }
 0xbd6   : > { %v13371_v33 = vadd.f32 %v6384_v36, %v6256_v45 }
 0xbd8   : > { %15437 = vst [vmem:[#allocation129_spill] sm:$0xff] %v13371_v33 }
 0xbda   : > { %v6386_v56 = vpop.f32.mrf.mxu3  ;;  %v6131_v52 = vpop.f32.mrf.mxu1 }
 0xbdb   : > { %v6257_v7 = vpop.f32.mrf.mxu2  ;;  %v6002_v13 = vpop.f32.mrf.mxu0 }
 0xbdc   : > { %v6258_v1 = vadd.f32 %v6257_v7, %v6129_v59  ;;  %v6132_v31 = vadd.f32 %v6131_v52, %v6002_v13 }
 0xbdd   : > { %6566 = vmatmul.bf16.gmra.mxu1 %v15440_v37 }
 0xbde   : > { %v13373_v9 = vadd.f32 %v6386_v56, %v6258_v1  ;;  %6437 = vmatmul.bf16.gmra.mxu0 %v15439_v55 }
 0xbdf   : > { %6824 = vmatmul.bf16.gmra.mxu3 %v15442_v44  ;;  %v15447_v44 = vld [vmem:[#allocation133_spill] sm:$0xff] }
 0xbe0   : > { %15438 = vst [vmem:[#allocation130_spill] sm:$0xff] %v13373_v9  ;;  %6695 = vmatmul.bf16.gmra.mxu2 %v15441_v54  ;;  %v15445_v9 = vld [vmem:[#allocation131_spill] sm:$0xff]  ;;  %v15446_v54 = vld [vmem:[#allocation132_spill] sm:$0xff] }
 0xbe2   : > { %v6389_v36 = vpop.f32.mrf.mxu3  ;;  %v6133_v0 = vpop.f32.mrf.mxu1 }
 0xbe3   : > { %v6260_v42 = vpop.f32.mrf.mxu2  ;;  %v6004_v20 = vpop.f32.mrf.mxu0 }
 0xbe4   : > { %v6261_v45 = vadd.f32 %v6260_v42, %v6132_v31  ;;  %v6134_v59 = vadd.f32 %v6133_v0, %v6004_v20  ;;  %v15448_v31 = vld [vmem:[#allocation134_spill] sm:$0xff] }
 0xbe6   : > { %v13379_v7 = vadd.f32 %v6389_v36, %v6261_v45 }
 0xbe8   : > { %15443 = vst [vmem:[#allocation135_spill] sm:$0xff] %v13379_v7 }
 0xbea   : > { %v6391_v56 = vpop.f32.mrf.mxu3  ;;  %v6136_v52 = vpop.f32.mrf.mxu1 }
 0xbeb   : > { %v6262_v33 = vpop.f32.mrf.mxu2  ;;  %v6007_v13 = vpop.f32.mrf.mxu0 }
 0xbec   : > { %v6263_v1 = vadd.f32 %v6262_v33, %v6134_v59  ;;  %v6137_v37 = vadd.f32 %v6136_v52, %v6007_v13 }
 0xbed   : > { %6571 = vmatmul.bf16.gmra.mxu1 %v15446_v54 }
 0xbee   : > { %v13381_v55 = vadd.f32 %v6391_v56, %v6263_v1  ;;  %6442 = vmatmul.bf16.gmra.mxu0 %v15445_v9 }
 0xbef   : > { %6829 = vmatmul.bf16.gmra.mxu3 %v15448_v31  ;;  %v15453_v31 = vld [vmem:[#allocation139_spill] sm:$0xff] }
 0xbf0   : > { %15444 = vst [vmem:[#allocation136_spill] sm:$0xff] %v13381_v55  ;;  %6700 = vmatmul.bf16.gmra.mxu2 %v15447_v44  ;;  %v15451_v55 = vld [vmem:[#allocation137_spill] sm:$0xff]  ;;  %v15452_v44 = vld [vmem:[#allocation138_spill] sm:$0xff] }
 0xbf2   : > { %v6394_v36 = vpop.f32.mrf.mxu3  ;;  %v6138_v0 = vpop.f32.mrf.mxu1 }
 0xbf3   : > { %v6265_v42 = vpop.f32.mrf.mxu2  ;;  %v6009_v20 = vpop.f32.mrf.mxu0 }
 0xbf4   : > { %v6266_v45 = vadd.f32 %v6265_v42, %v6137_v37  ;;  %v6139_v59 = vadd.f32 %v6138_v0, %v6009_v20  ;;  %v15454_v37 = vld [vmem:[#allocation140_spill] sm:$0xff] }
 0xbf6   : > { %v13387_v33 = vadd.f32 %v6394_v36, %v6266_v45 }
 0xbf8   : > { %15449 = vst [vmem:[#allocation141_spill] sm:$0xff] %v13387_v33 }
 0xbfa   : > { %v6396_v56 = vpop.f32.mrf.mxu3  ;;  %v6141_v52 = vpop.f32.mrf.mxu1 }
 0xbfb   : > { %v6267_v7 = vpop.f32.mrf.mxu2  ;;  %v6012_v13 = vpop.f32.mrf.mxu0 }
 0xbfc   : > { %v6268_v1 = vadd.f32 %v6267_v7, %v6139_v59  ;;  %v6142_v54 = vadd.f32 %v6141_v52, %v6012_v13 }
 0xbfd   : > { %6576 = vmatmul.bf16.gmra.mxu1 %v15452_v44 }
 0xbfe   : > { %v13389_v9 = vadd.f32 %v6396_v56, %v6268_v1  ;;  %6447 = vmatmul.bf16.gmra.mxu0 %v15451_v55 }
 0xbff   : > { %6834 = vmatmul.bf16.gmra.mxu3 %v15454_v37  ;;  %v15459_v37 = vld [vmem:[#allocation145_spill] sm:$0xff] }
 0xc00   : > { %15450 = vst [vmem:[#allocation142_spill] sm:$0xff] %v13389_v9  ;;  %6705 = vmatmul.bf16.gmra.mxu2 %v15453_v31  ;;  %v15457_v9 = vld [vmem:[#allocation143_spill] sm:$0xff]  ;;  %v15458_v31 = vld [vmem:[#allocation144_spill] sm:$0xff] }
 0xc02   : > { %v6399_v36 = vpop.f32.mrf.mxu3  ;;  %v6143_v0 = vpop.f32.mrf.mxu1 }
 0xc03   : > { %v6270_v42 = vpop.f32.mrf.mxu2  ;;  %v6014_v20 = vpop.f32.mrf.mxu0 }
 0xc04   : > { %v6271_v45 = vadd.f32 %v6270_v42, %v6142_v54  ;;  %v6144_v59 = vadd.f32 %v6143_v0, %v6014_v20  ;;  %v15460_v54 = vld [vmem:[#allocation146_spill] sm:$0xff] }
 0xc06   : > { %v13395_v7 = vadd.f32 %v6399_v36, %v6271_v45 }
 0xc08   : > { %15455 = vst [vmem:[#allocation147_spill] sm:$0xff] %v13395_v7 }
 0xc0a   : > { %v6401_v56 = vpop.f32.mrf.mxu3  ;;  %v6146_v52 = vpop.f32.mrf.mxu1 }
 0xc0b   : > { %v6272_v33 = vpop.f32.mrf.mxu2  ;;  %v6017_v13 = vpop.f32.mrf.mxu0 }
 0xc0c   : > { %v6273_v1 = vadd.f32 %v6272_v33, %v6144_v59  ;;  %v6147_v44 = vadd.f32 %v6146_v52, %v6017_v13 }
 0xc0d   : > { %6581 = vmatmul.bf16.gmra.mxu1 %v15458_v31 }
 0xc0e   : > { %v13397_v55 = vadd.f32 %v6401_v56, %v6273_v1  ;;  %6452 = vmatmul.bf16.gmra.mxu0 %v15457_v9 }
 0xc0f   : > { %6839 = vmatmul.bf16.gmra.mxu3 %v15460_v54  ;;  %v15465_v54 = vld [vmem:[#allocation151_spill] sm:$0xff] }
 0xc10   : > { %15456 = vst [vmem:[#allocation148_spill] sm:$0xff] %v13397_v55  ;;  %6710 = vmatmul.bf16.gmra.mxu2 %v15459_v37  ;;  %v15463_v55 = vld [vmem:[#allocation149_spill] sm:$0xff]  ;;  %v15464_v37 = vld [vmem:[#allocation150_spill] sm:$0xff] }
 0xc12   : > { %v6404_v36 = vpop.f32.mrf.mxu3  ;;  %v6148_v0 = vpop.f32.mrf.mxu1 }
 0xc13   : > { %v6275_v42 = vpop.f32.mrf.mxu2  ;;  %v6019_v20 = vpop.f32.mrf.mxu0 }
 0xc14   : > { %v6276_v45 = vadd.f32 %v6275_v42, %v6147_v44  ;;  %v6149_v59 = vadd.f32 %v6148_v0, %v6019_v20  ;;  %v15466_v44 = vld [vmem:[#allocation152_spill] sm:$0xff] }
 0xc16   : > { %v13403_v33 = vadd.f32 %v6404_v36, %v6276_v45 }
 0xc18   : > { %15461 = vst [vmem:[#allocation153_spill] sm:$0xff] %v13403_v33 }
 0xc1a   : > { %v6406_v56 = vpop.f32.mrf.mxu3  ;;  %v6151_v52 = vpop.f32.mrf.mxu1 }
 0xc1b   : > { %v6277_v7 = vpop.f32.mrf.mxu2  ;;  %v6022_v13 = vpop.f32.mrf.mxu0 }
 0xc1c   : > { %v6278_v1 = vadd.f32 %v6277_v7, %v6149_v59  ;;  %v6152_v31 = vadd.f32 %v6151_v52, %v6022_v13 }
 0xc1d   : > { %6586 = vmatmul.bf16.gmra.mxu1 %v15464_v37 }
 0xc1e   : > { %v13405_v9 = vadd.f32 %v6406_v56, %v6278_v1  ;;  %6457 = vmatmul.bf16.gmra.mxu0 %v15463_v55 }
 0xc1f   : > { %6844 = vmatmul.bf16.gmra.mxu3 %v15466_v44  ;;  %v15470_v44 = vld [vmem:[#allocation157_spill] sm:$0xff] }
 0xc20   : > { %15462 = vst [vmem:[#allocation21_spill] sm:$0xff] %v13405_v9  ;;  %6715 = vmatmul.bf16.gmra.mxu2 %v15465_v54  ;;  %v15468_v9 = vld [vmem:[#allocation155_spill] sm:$0xff]  ;;  %v15469_v54 = vld [vmem:[#allocation156_spill] sm:$0xff] }
 0xc22   : > { %v6409_v36 = vpop.f32.mrf.mxu3  ;;  %v6153_v0 = vpop.f32.mrf.mxu1 }
 0xc23   : > { %v6280_v42 = vpop.f32.mrf.mxu2  ;;  %v6024_v20 = vpop.f32.mrf.mxu0 }
 0xc24   : > { %v6281_v45 = vadd.f32 %v6280_v42, %v6152_v31  ;;  %v6154_v59 = vadd.f32 %v6153_v0, %v6024_v20  ;;  %v15471_v31 = vld [vmem:[#allocation158_spill] sm:$0xff] }
 0xc26   : > { %v13411_v7 = vadd.f32 %v6409_v36, %v6281_v45 }
 0xc28   : > { %15467 = vst [vmem:[#allocation22_spill] sm:$0xff] %v13411_v7 }
 0xc2a   : > { %v6411_v56 = vpop.f32.mrf.mxu3  ;;  %v6156_v52 = vpop.f32.mrf.mxu1 }
 0xc2b   : > { %v6282_v33 = vpop.f32.mrf.mxu2  ;;  %v6027_v13 = vpop.f32.mrf.mxu0 }
 0xc2c   : > { %v6283_v1 = vadd.f32 %v6282_v33, %v6154_v59  ;;  %v6157_v37 = vadd.f32 %v6156_v52, %v6027_v13 }
 0xc2d   : > { %6591 = vmatmul.bf16.gmra.mxu1 %v15469_v54 }
 0xc2e   : > { %v13413_v55 = vadd.f32 %v6411_v56, %v6283_v1  ;;  %6462 = vmatmul.bf16.gmra.mxu0 %v15468_v9 }
 0xc2f   : > { %6849 = vmatmul.bf16.gmra.mxu3 %v15471_v31 }
 0xc30   : > { %6720 = vmatmul.bf16.gmra.mxu2 %v15470_v44 }
 0xc32   : > { %v6414_v36 = vpop.f32.mrf.mxu3  ;;  %v6158_v0 = vpop.f32.mrf.mxu1 }
 0xc33   : > { %v6285_v42 = vpop.f32.mrf.mxu2  ;;  %v6029_v20 = vpop.f32.mrf.mxu0 }
 0xc34   : > { %v6286_v45 = vadd.f32 %v6285_v42, %v6157_v37  ;;  %v6159_v59 = vadd.f32 %v6158_v0, %v6029_v20 }
 0xc36   : > { %v13419_v33 = vadd.f32 %v6414_v36, %v6286_v45  ;;  %v506_v45 = vld [vmem:[%s10236_s10 + $0x18] sm:$0xff] }
 0xc3a   : > { %v6416_v56 = vpop.f32.mrf.mxu3  ;;  %v6557_v9 = vpop.f32.mrf.mxu1 }
 0xc3b   : > { %v6287_v7 = vpop.f32.mrf.mxu2  ;;  %v6428_v13 = vpop.f32.mrf.mxu0 }
 0xc3c   : > { %v6288_v1 = vadd.f32 %v6287_v7, %v6159_v59  ;;  %v6429_v54 = vadd.f32 %v6428_v13, %v13203_v61 }
 0xc3d   : > { %6596 = vmatmul.bf16.gmra.mxu1 %v11527_v22 }
 0xc3e   : > { %v13421_v52 = vadd.f32 %v6416_v56, %v6288_v1  ;;  %6467 = vmatmul.bf16.gmra.mxu0 %v11525_v10  ;;  %v6558_v37 = vadd.f32 %v6557_v9, %v6429_v54 }
 0xc3f   : > { %6854 = vmatmul.bf16.gmra.mxu3 %v15024_v5  ;;  %v510_v5 = vld [vmem:[%s10236_s10 + $0x38] sm:$0xff] }
 0xc40   : > { %6725 = vmatmul.bf16.gmra.mxu2 %v15023_v38 }
 0xc42   : > { %v6815_v31 = vpop.f32.mrf.mxu3  ;;  %v6559_v36 = vpop.f32.mrf.mxu1 }
 0xc43   : > { %v6686_v44 = vpop.f32.mrf.mxu2  ;;  %v6430_v42 = vpop.f32.mrf.mxu0 }
 0xc44   : > { %v6687_v7 = vadd.f32 %v6686_v44, %v6558_v37  ;;  %v6431_v0 = vadd.f32 %v6430_v42, %v13205_v21  ;;  %v514_v42 = vld [vmem:[%s10236_s10 + $0x58] sm:$0xff] }
 0xc46   : > { %v6816_v20 = vadd.f32 %v6815_v31, %v6687_v7  ;;  %v6560_v10 = vadd.f32 %v6559_v36, %v6431_v0 }
 0xc48   : > { %v6938_v61 = vadd.f32 %v6816_v20, %v506_v45 }
 0xc4a   : > { %7130 = vst [vmem:[%s10236_s10 + $0x18] sm:$0xff] %v6938_v61  ;;  %v6817_v38 = vpop.f32.mrf.mxu3  ;;  %v6562_v56 = vpop.f32.mrf.mxu1  ;;  %v518_v61 = vld [vmem:[%s10236_s10 + $0x78] sm:$0xff] }
 0xc4b   : > { %v6688_v22 = vpop.f32.mrf.mxu2  ;;  %v6433_v1 = vpop.f32.mrf.mxu0 }
 0xc4c   : > { %v6689_v59 = vadd.f32 %v6688_v22, %v6560_v10  ;;  %v6434_v9 = vadd.f32 %v6433_v1, %v13211_v18  ;;  %v15473_v1 = vld [vmem:[#allocation168_spill] sm:$0xff] }
 0xc4d   : > { %6601 = vmatmul.bf16.gmra.mxu1 %v11553_v24 }
 0xc4e   : > { %v6818_v13 = vadd.f32 %v6817_v38, %v6689_v59  ;;  %6472 = vmatmul.bf16.gmra.mxu0 %v11551_v27  ;;  %v6563_v21 = vadd.f32 %v6562_v56, %v6434_v9 }
 0xc4f   : > { %6859 = vmatmul.bf16.gmra.mxu3 %v15250_v58 }
 0xc50   : > { %v6942_v54 = vadd.f32 %v6818_v13, %v510_v5  ;;  %6730 = vmatmul.bf16.gmra.mxu2 %v15025_v14 }
 0xc52   : > { %7134 = vst [vmem:[%s10236_s10 + $0x38] sm:$0xff] %v6942_v54  ;;  %v6820_v7 = vpop.f32.mrf.mxu3  ;;  %v6564_v45 = vpop.f32.mrf.mxu1 }
 0xc53   : > { %v6691_v37 = vpop.f32.mrf.mxu2  ;;  %v6435_v31 = vpop.f32.mrf.mxu0 }
 0xc54   : > { %v6692_v44 = vadd.f32 %v6691_v37, %v6563_v21  ;;  %v6436_v27 = vadd.f32 %v6435_v31, %v13213_v16  ;;  %v15472_v16 = vld [vmem:[#allocation167_spill] sm:$0xff]  ;;  %v522_v21 = vld [vmem:[%s10236_s10 + $0x98] sm:$0xff] }
 0xc56   : > { %v6821_v18 = vadd.f32 %v6820_v7, %v6692_v44  ;;  %v6565_v24 = vadd.f32 %v6564_v45, %v6436_v27 }
 0xc58   : > { %v6946_v36 = vadd.f32 %v6821_v18, %v514_v42  ;;  %v526_v18 = vld [vmem:[%s10236_s10 + $0xb8] sm:$0xff] }
 0xc5a   : > { %7138 = vst [vmem:[%s10236_s10 + $0x58] sm:$0xff] %v6946_v36  ;;  %v6822_v0 = vpop.f32.mrf.mxu3  ;;  %v6567_v10 = vpop.f32.mrf.mxu1 }
 0xc5b   : > { %v6693_v20 = vpop.f32.mrf.mxu2  ;;  %v6438_v58 = vpop.f32.mrf.mxu0 }
 0xc5c   : > { %v6694_v14 = vadd.f32 %v6693_v20, %v6565_v24  ;;  %v6439_v59 = vadd.f32 %v6438_v58, %v13225_v15 }
 0xc5d   : > { %6606 = vmatmul.bf16.gmra.mxu1 %v15252_v34 }
 0xc5e   : > { %v6823_v22 = vadd.f32 %v6822_v0, %v6694_v14  ;;  %6477 = vmatmul.bf16.gmra.mxu0 %v15251_v12  ;;  %v6568_v5 = vadd.f32 %v6567_v10, %v6439_v59  ;;  %v530_v10 = vld [vmem:[%s10236_s10 + $0xd8] sm:$0xff] }
 0xc5f   : > { %6864 = vmatmul.bf16.gmra.mxu3 %v15473_v1  ;;  %v534_v1 = vld [vmem:[%s10236_s10 + $0xf8] sm:$0xff] }
 0xc60   : > { %v6950_v38 = vadd.f32 %v6823_v22, %v518_v61  ;;  %6735 = vmatmul.bf16.gmra.mxu2 %v15472_v16 }
 0xc62   : > { %7142 = vst [vmem:[%s10236_s10 + $0x78] sm:$0xff] %v6950_v38  ;;  %v6825_v9 = vpop.f32.mrf.mxu3  ;;  %v6569_v37 = vpop.f32.mrf.mxu1 }
 0xc63   : > { %v6696_v56 = vpop.f32.mrf.mxu2  ;;  %v6440_v54 = vpop.f32.mrf.mxu0 }
 0xc64   : > { %v6697_v13 = vadd.f32 %v6696_v56, %v6568_v5  ;;  %v6441_v12 = vadd.f32 %v6440_v54, %v13229_v25 }
 0xc66   : > { %v6826_v15 = vadd.f32 %v6825_v9, %v6697_v13  ;;  %v6570_v34 = vadd.f32 %v6569_v37, %v6441_v12  ;;  %v538_v12 = vld [vmem:[%s10236_s10 + $0x118] sm:$0xff] }
 0xc68   : > { %v6954_v44 = vadd.f32 %v6826_v15, %v522_v21 }
 0xc6a   : > { %7146 = vst [vmem:[%s10236_s10 + $0x98] sm:$0xff] %v6954_v44  ;;  %v6827_v42 = vpop.f32.mrf.mxu3  ;;  %v6572_v27 = vpop.f32.mrf.mxu1 }
 0xc6b   : > { %v6698_v7 = vpop.f32.mrf.mxu2  ;;  %v6443_v45 = vpop.f32.mrf.mxu0 }
 0xc6c   : > { %v6699_v31 = vadd.f32 %v6698_v7, %v6570_v34  ;;  %v6444_v24 = vadd.f32 %v6443_v45, %v13235_v8 }
 0xc6d   : > { %6611 = vmatmul.bf16.gmra.mxu1 %v11613_v26 }
 0xc6e   : > { %v6828_v36 = vadd.f32 %v6827_v42, %v6699_v31  ;;  %6482 = vmatmul.bf16.gmra.mxu0 %v11611_v40  ;;  %v6573_v25 = vadd.f32 %v6572_v27, %v6444_v24  ;;  %v542_v42 = vld [vmem:[%s10236_s10 + $0x138] sm:$0xff] }
 0xc6f   : > { %6869 = vmatmul.bf16.gmra.mxu3 %v11618_v30 }
 0xc70   : > { %v6958_v20 = vadd.f32 %v6828_v36, %v526_v18  ;;  %6740 = vmatmul.bf16.gmra.mxu2 %v11615_v62 }
 0xc72   : > { %7150 = vst [vmem:[%s10236_s10 + $0xb8] sm:$0xff] %v6958_v20  ;;  %v6830_v58 = vpop.f32.mrf.mxu3  ;;  %v6574_v22 = vpop.f32.mrf.mxu1 }
 0xc73   : > { %v6701_v14 = vpop.f32.mrf.mxu2  ;;  %v6445_v61 = vpop.f32.mrf.mxu0 }
 0xc74   : > { %v6702_v0 = vadd.f32 %v6701_v14, %v6573_v25  ;;  %v6446_v40 = vadd.f32 %v6445_v61, %v13237_v19 }
 0xc76   : > { %v6831_v8 = vadd.f32 %v6830_v58, %v6702_v0  ;;  %v6575_v26 = vadd.f32 %v6574_v22, %v6446_v40  ;;  %v546_v0 = vld [vmem:[%s10236_s10 + $0x158] sm:$0xff] }
 0xc78   : > { %v6962_v59 = vadd.f32 %v6831_v8, %v530_v10  ;;  %v550_v8 = vld [vmem:[%s10236_s10 + $0x178] sm:$0xff] }
 0xc7a   : > { %7154 = vst [vmem:[%s10236_s10 + $0xd8] sm:$0xff] %v6962_v59  ;;  %v6832_v16 = vpop.f32.mrf.mxu3  ;;  %v6577_v5 = vpop.f32.mrf.mxu1 }
 0xc7b   : > { %v6703_v38 = vpop.f32.mrf.mxu2  ;;  %v6448_v30 = vpop.f32.mrf.mxu0 }
 0xc7c   : > { %v6704_v62 = vadd.f32 %v6703_v38, %v6575_v26  ;;  %v6449_v13 = vadd.f32 %v6448_v30, %v13243_v28 }
 0xc7d   : > { %6616 = vmatmul.bf16.gmra.mxu1 %v11639_v46 }
 0xc7e   : > { %v6833_v56 = vadd.f32 %v6832_v16, %v6704_v62  ;;  %6487 = vmatmul.bf16.gmra.mxu0 %v11637_v4  ;;  %v6578_v19 = vadd.f32 %v6577_v5, %v6449_v13  ;;  %v554_v5 = vld [vmem:[%s10236_s10 + $0x198] sm:$0xff] }
 0xc7f   : > { %6874 = vmatmul.bf16.gmra.mxu3 %v15032_v11 }
 0xc80   : > { %v6966_v9 = vadd.f32 %v6833_v56, %v534_v1  ;;  %6745 = vmatmul.bf16.gmra.mxu2 %v15031_v35 }
 0xc82   : > { %7158 = vst [vmem:[%s10236_s10 + $0xf8] sm:$0xff] %v6966_v9  ;;  %v6835_v37 = vpop.f32.mrf.mxu3  ;;  %v6579_v44 = vpop.f32.mrf.mxu1 }
 0xc83   : > { %v6706_v54 = vpop.f32.mrf.mxu2  ;;  %v6450_v15 = vpop.f32.mrf.mxu0 }
 0xc84   : > { %v6707_v21 = vadd.f32 %v6706_v54, %v6578_v19  ;;  %v6451_v4 = vadd.f32 %v6450_v15, %v13245_v17  ;;  %v558_v54 = vld [vmem:[%s10236_s10 + $0x1b8] sm:$0xff] }
 0xc86   : > { %v6836_v28 = vadd.f32 %v6835_v37, %v6707_v21  ;;  %v6580_v46 = vadd.f32 %v6579_v44, %v6451_v4  ;;  %v15474_v44 = vld [vmem:[#allocation175_spill] sm:$0xff] }
 0xc88   : > { %v6970_v34 = vadd.f32 %v6836_v28, %v538_v12  ;;  %v15476_v28 = vld [vmem:[#allocation177_spill] sm:$0xff] }
 0xc8a   : > { %7162 = vst [vmem:[%s10236_s10 + $0x118] sm:$0xff] %v6970_v34  ;;  %v6837_v31 = vpop.f32.mrf.mxu3  ;;  %v6582_v45 = vpop.f32.mrf.mxu1 }
 0xc8b   : > { %v6708_v7 = vpop.f32.mrf.mxu2  ;;  %v6453_v11 = vpop.f32.mrf.mxu0 }
 0xc8c   : > { %v6709_v35 = vadd.f32 %v6708_v7, %v6580_v46  ;;  %v6454_v27 = vadd.f32 %v6453_v11, %v13257_v49 }
 0xc8d   : > { %6621 = vmatmul.bf16.gmra.mxu1 %v15034_v29 }
 0xc8e   : > { %v6838_v18 = vadd.f32 %v6837_v31, %v6709_v35  ;;  %6492 = vmatmul.bf16.gmra.mxu0 %v15033_v2  ;;  %v6583_v17 = vadd.f32 %v6582_v45, %v6454_v27  ;;  %v562_v31 = vld [vmem:[%s10236_s10 + $0x1d8] sm:$0xff] }
 0xc8f   : > { %6879 = vmatmul.bf16.gmra.mxu3 %v15036_v53 }
 0xc90   : > { %v6974_v36 = vadd.f32 %v6838_v18, %v542_v42  ;;  %6750 = vmatmul.bf16.gmra.mxu2 %v15035_v57  ;;  %v15477_v42 = vld [vmem:[#allocation220_spill] sm:$0xff] }
 0xc92   : > { %7166 = vst [vmem:[%s10236_s10 + $0x138] sm:$0xff] %v6974_v36  ;;  %v6840_v25 = vpop.f32.mrf.mxu3  ;;  %v6584_v58 = vpop.f32.mrf.mxu1 }
 0xc93   : > { %v6711_v24 = vpop.f32.mrf.mxu2  ;;  %v6455_v14 = vpop.f32.mrf.mxu0 }
 0xc94   : > { %v6712_v20 = vadd.f32 %v6711_v24, %v6583_v17  ;;  %v6456_v2 = vadd.f32 %v6455_v14, %v13261_v32 }
 0xc96   : > { %v6841_v49 = vadd.f32 %v6840_v25, %v6712_v20  ;;  %v6585_v29 = vadd.f32 %v6584_v58, %v6456_v2  ;;  %v566_v20 = vld [vmem:[%s10236_s10 + $0x1f8] sm:$0xff] }
 0xc98   : > { %v6978_v61 = vadd.f32 %v6841_v49, %v546_v0  ;;  %v15478_v0 = vld [vmem:[#allocation221_spill] sm:$0xff]  ;;  %v15479_v49 = vld [vmem:[#allocation178_spill] sm:$0xff] }
 0xc9a   : > { %7170 = vst [vmem:[%s10236_s10 + $0x158] sm:$0xff] %v6978_v61  ;;  %v6842_v22 = vpop.f32.mrf.mxu3  ;;  %v6587_v40 = vpop.f32.mrf.mxu1  ;;  %v15480_v61 = vld [vmem:[#allocation179_spill] sm:$0xff] }
 0xc9b   : > { %v6713_v10 = vpop.f32.mrf.mxu2  ;;  %v6458_v53 = vpop.f32.mrf.mxu0 }
 0xc9c   : > { %v6714_v57 = vadd.f32 %v6713_v10, %v6585_v29  ;;  %v6459_v26 = vadd.f32 %v6458_v53, %v13267_v47  ;;  %v15481_v29 = vld [vmem:[#allocation180_spill] sm:$0xff]  ;;  %v15482_v10 = vld [vmem:[#allocation181_spill] sm:$0xff] }
 0xc9d   : > { %6626 = vmatmul.bf16.gmra.mxu1 %v11699_v50 }
 0xc9e   : > { %v6843_v59 = vadd.f32 %v6842_v22, %v6714_v57  ;;  %6497 = vmatmul.bf16.gmra.mxu0 %v11697_v41  ;;  %v6588_v32 = vadd.f32 %v6587_v40, %v6459_v26 }
 0xc9f   : > { %6884 = vmatmul.bf16.gmra.mxu3 %v11704_v51 }
 0xca0   : > { %v6982_v38 = vadd.f32 %v6843_v59, %v550_v8  ;;  %6755 = vmatmul.bf16.gmra.mxu2 %v11701_v3  ;;  %v570_v59 = vld [vmem:[%s10236_s10 + $0x218] sm:$0xff] }
 0xca2   : > { %7174 = vst [vmem:[%s10236_s10 + $0x178] sm:$0xff] %v6982_v38  ;;  %v6845_v30 = vpop.f32.mrf.mxu3  ;;  %v6589_v56 = vpop.f32.mrf.mxu1 }
 0xca3   : > { %v6716_v62 = vpop.f32.mrf.mxu2  ;;  %v6460_v1 = vpop.f32.mrf.mxu0 }
 0xca4   : > { %v6717_v16 = vadd.f32 %v6716_v62, %v6588_v32  ;;  %v6461_v41 = vadd.f32 %v6460_v1, %v13269_v43  ;;  %v15475_v43 = vld [vmem:[#allocation176_spill] sm:$0xff]  ;;  %v15483_v32 = vld [vmem:[#allocation222_spill] sm:$0xff] }
 0xca6   : > { %v6846_v47 = vadd.f32 %v6845_v30, %v6717_v16  ;;  %v6590_v50 = vadd.f32 %v6589_v56, %v6461_v41  ;;  %v574_v41 = vld [vmem:[%s10236_s10 + $0x238] sm:$0xff] }
 0xca8   : > { %v6986_v13 = vadd.f32 %v6846_v47, %v554_v5 }
 0xcaa   : > { %7178 = vst [vmem:[%s10236_s10 + $0x198] sm:$0xff] %v6986_v13  ;;  %v6847_v19 = vpop.f32.mrf.mxu3  ;;  %v6592_v21 = vpop.f32.mrf.mxu1 }
 0xcab   : > { %v6718_v9 = vpop.f32.mrf.mxu2  ;;  %v6463_v51 = vpop.f32.mrf.mxu0 }
 0xcac   : > { %v6719_v3 = vadd.f32 %v6718_v9, %v6590_v50  ;;  %v6464_v15 = vadd.f32 %v6463_v51, %v13275_v39  ;;  %v15484_v9 = vld [vmem:[#allocation164_spill] sm:$0xff] }
 0xcad   : > { %6631 = vmatmul.bf16.gmra.mxu1 %v15474_v44 }
 0xcae   : > { %v6848_v37 = vadd.f32 %v6847_v19, %v6719_v3  ;;  %6502 = vmatmul.bf16.gmra.mxu0 %v11723_v63  ;;  %v6593_v4 = vadd.f32 %v6592_v21, %v6464_v15  ;;  %v15485_v19 = vld [vmem:[#allocation182_spill] sm:$0xff]  ;;  %v15487_v21 = vld [vmem:[#allocation184_spill] sm:$0xff] }
 0xcaf   : > { %6889 = vmatmul.bf16.gmra.mxu3 %v15476_v28 }
 0xcb0   : > { %v6990_v12 = vadd.f32 %v6848_v37, %v558_v54  ;;  %6760 = vmatmul.bf16.gmra.mxu2 %v15475_v43  ;;  %v15486_v54 = vld [vmem:[#allocation183_spill] sm:$0xff]  ;;  %v15488_v37 = vld [vmem:[#allocation185_spill] sm:$0xff] }
 0xcb2   : > { %7182 = vst [vmem:[%s10236_s10 + $0x1b8] sm:$0xff] %v6990_v12  ;;  %v6850_v7 = vpop.f32.mrf.mxu3  ;;  %v6594_v11 = vpop.f32.mrf.mxu1 }
 0xcb3   : > { %v6721_v34 = vpop.f32.mrf.mxu2  ;;  %v6465_v35 = vpop.f32.mrf.mxu0 }
 0xcb4   : > { %v6722_v46 = vadd.f32 %v6721_v34, %v6593_v4  ;;  %v6466_v63 = vadd.f32 %v6465_v35, %v15477_v42  ;;  %v578_v4 = vld [vmem:[%s10236_s10 + $0x258] sm:$0xff] }
 0xcb6   : > { %v6851_v39 = vadd.f32 %v6850_v7, %v6722_v46  ;;  %v6595_v18 = vadd.f32 %v6594_v11, %v6466_v63  ;;  %v15489_v7 = vld [vmem:[#allocation165_spill] sm:$0xff] }
 0xcb8   : > { %v6994_v45 = vadd.f32 %v6851_v39, %v562_v31 }
 0xcba   : > { %7186 = vst [vmem:[%s10236_s10 + $0x1d8] sm:$0xff] %v6994_v45  ;;  %v6852_v17 = vpop.f32.mrf.mxu3  ;;  %v6597_v25 = vpop.f32.mrf.mxu1 }
 0xcbb   : > { %v6723_v27 = vpop.f32.mrf.mxu2  ;;  %v6468_v24 = vpop.f32.mrf.mxu0 }
 0xcbc   : > { %v6724_v36 = vadd.f32 %v6723_v27, %v6595_v18  ;;  %v6469_v58 = vadd.f32 %v6468_v24, %v15478_v0  ;;  %v582_v18 = vld [vmem:[%s10236_s10 + $0x278] sm:$0xff] }
 0xcbd   : > { %6636 = vmatmul.bf16.gmra.mxu1 %v15480_v61  ;;  %v15493_v0 = vld [vmem:[#allocation188_spill] sm:$0xff] }
 0xcbe   : > { %v6853_v14 = vadd.f32 %v6852_v17, %v6724_v36  ;;  %6507 = vmatmul.bf16.gmra.mxu0 %v15479_v49  ;;  %v6598_v57 = vadd.f32 %v6597_v25, %v6469_v58  ;;  %v15490_v17 = vld [vmem:[#allocation166_spill] sm:$0xff]  ;;  %v15494_v58 = vld [vmem:[#allocation189_spill] sm:$0xff] }
 0xcbf   : > { %6894 = vmatmul.bf16.gmra.mxu3 %v15482_v10 }
 0xcc0   : > { %v6998_v2 = vadd.f32 %v6853_v14, %v566_v20  ;;  %6765 = vmatmul.bf16.gmra.mxu2 %v15481_v29  ;;  %v15491_v20 = vld [vmem:[#allocation186_spill] sm:$0xff]  ;;  %v15492_v14 = vld [vmem:[#allocation187_spill] sm:$0xff] }
 0xcc2   : > { %7190 = vst [vmem:[%s10236_s10 + $0x1f8] sm:$0xff] %v6998_v2  ;;  %v6855_v8 = vpop.f32.mrf.mxu3  ;;  %v6599_v26 = vpop.f32.mrf.mxu1 }
 0xcc3   : > { %v6726_v22 = vpop.f32.mrf.mxu2  ;;  %v6470_v40 = vpop.f32.mrf.mxu0 }
 0xcc4   : > { %v6727_v53 = vadd.f32 %v6726_v22, %v6598_v57  ;;  %v6471_v62 = vadd.f32 %v6470_v40, %v15483_v32  ;;  %v586_v57 = vld [vmem:[%s10236_s10 + $0x298] sm:$0xff] }
 0xcc6   : > { %v6856_v38 = vadd.f32 %v6855_v8, %v6727_v53  ;;  %v6600_v30 = vadd.f32 %v6599_v26, %v6471_v62  ;;  %v15495_v8 = vld [vmem:[#allocation161_spill] sm:$0xff] }
 0xcc8   : > { %v7002_v16 = vadd.f32 %v6856_v38, %v570_v59 }
 0xcca   : > { %7194 = vst [vmem:[%s10236_s10 + $0x218] sm:$0xff] %v7002_v16  ;;  %v6857_v56 = vpop.f32.mrf.mxu3  ;;  %v6602_v13 = vpop.f32.mrf.mxu1 }
 0xccb   : > { %v6728_v1 = vpop.f32.mrf.mxu2  ;;  %v6473_v47 = vpop.f32.mrf.mxu0 }
 0xccc   : > { %v6729_v5 = vadd.f32 %v6728_v1, %v6600_v30  ;;  %v6474_v3 = vadd.f32 %v6473_v47, %v15484_v9  ;;  %v590_v30 = vld [vmem:[%s10236_s10 + $0x2b8] sm:$0xff]  ;;  %v15496_v47 = vld [vmem:[#allocation190_spill] sm:$0xff]  ;;  %v15499_v9 = vld [vmem:[#allocation193_spill] sm:$0xff] }
 0xccd   : > { %6641 = vmatmul.bf16.gmra.mxu1 %v15486_v54 }
 0xcce   : > { %v6858_v50 = vadd.f32 %v6857_v56, %v6729_v5  ;;  %6512 = vmatmul.bf16.gmra.mxu0 %v15485_v19  ;;  %v6603_v15 = vadd.f32 %v6602_v13, %v6474_v3  ;;  %v15497_v13 = vld [vmem:[#allocation191_spill] sm:$0xff] }
 0xccf   : > { %6899 = vmatmul.bf16.gmra.mxu3 %v15488_v37  ;;  %v594_v37 = vld [vmem:[%s10236_s10 + $0x2d8] sm:$0xff] }
 0xcd0   : > { %v7006_v51 = vadd.f32 %v6858_v50, %v574_v41  ;;  %6770 = vmatmul.bf16.gmra.mxu2 %v15487_v21  ;;  %v15498_v50 = vld [vmem:[#allocation192_spill] sm:$0xff] }
 0xcd2   : > { %7198 = vst [vmem:[%s10236_s10 + $0x238] sm:$0xff] %v7006_v51  ;;  %v6860_v43 = vpop.f32.mrf.mxu3  ;;  %v6604_v34 = vpop.f32.mrf.mxu1 }
 0xcd3   : > { %v6731_v12 = vpop.f32.mrf.mxu2  ;;  %v6475_v28 = vpop.f32.mrf.mxu0 }
 0xcd4   : > { %v6732_v44 = vadd.f32 %v6731_v12, %v6603_v15  ;;  %v6476_v35 = vadd.f32 %v6475_v28, %v15489_v7  ;;  %v598_v7 = vld [vmem:[%s10236_s10 + $0x2f8] sm:$0xff] }
 0xcd6   : > { %v6861_v46 = vadd.f32 %v6860_v43, %v6732_v44  ;;  %v6605_v11 = vadd.f32 %v6604_v34, %v6476_v35 }
 0xcd8   : > { %v7010_v31 = vadd.f32 %v6861_v46, %v578_v4 }
 0xcda   : > { %7202 = vst [vmem:[%s10236_s10 + $0x258] sm:$0xff] %v7010_v31  ;;  %v6862_v63 = vpop.f32.mrf.mxu3  ;;  %v6607_v27 = vpop.f32.mrf.mxu1 }
 0xcdb   : > { %v6733_v39 = vpop.f32.mrf.mxu2  ;;  %v6478_v45 = vpop.f32.mrf.mxu0 }
 0xcdc   : > { %v6734_v42 = vadd.f32 %v6733_v39, %v6605_v11  ;;  %v6479_v24 = vadd.f32 %v6478_v45, %v15490_v17  ;;  %v15500_v39 = vld [vmem:[#allocation194_spill] sm:$0xff]  ;;  %v15503_v45 = vld [vmem:[#allocation197_spill] sm:$0xff] }
 0xcdd   : > { %6646 = vmatmul.bf16.gmra.mxu1 %v15492_v14 }
 0xcde   : > { %v6863_v36 = vadd.f32 %v6862_v63, %v6734_v42  ;;  %6517 = vmatmul.bf16.gmra.mxu0 %v15491_v20  ;;  %v6608_v49 = vadd.f32 %v6607_v27, %v6479_v24  ;;  %v15501_v63 = vld [vmem:[#allocation195_spill] sm:$0xff]  ;;  %v602_v20 = vld [vmem:[%s10236_s10 + $0x318] sm:$0xff] }
 0xcdf   : > { %6904 = vmatmul.bf16.gmra.mxu3 %v15494_v58 }
 0xce0   : > { %v7014_v25 = vadd.f32 %v6863_v36, %v582_v18  ;;  %6775 = vmatmul.bf16.gmra.mxu2 %v15493_v0 }
 0xce2   : > { %7206 = vst [vmem:[%s10236_s10 + $0x278] sm:$0xff] %v7014_v25  ;;  %v6865_v29 = vpop.f32.mrf.mxu3  ;;  %v6609_v22 = vpop.f32.mrf.mxu1 }
 0xce3   : > { %v6736_v2 = vpop.f32.mrf.mxu2  ;;  %v6480_v10 = vpop.f32.mrf.mxu0 }
 0xce4   : > { %v6737_v61 = vadd.f32 %v6736_v2, %v6608_v49  ;;  %v6481_v40 = vadd.f32 %v6480_v10, %v15495_v8  ;;  %v606_v10 = vld [vmem:[%s10236_s10 + $0x338] sm:$0xff] }
 0xce6   : > { %v6866_v53 = vadd.f32 %v6865_v29, %v6737_v61  ;;  %v6610_v26 = vadd.f32 %v6609_v22, %v6481_v40  ;;  %v15505_v40 = vld [vmem:[#allocation198_spill] sm:$0xff] }
 0xce8   : > { %v7018_v59 = vadd.f32 %v6866_v53, %v586_v57  ;;  %v15504_v53 = vld [vmem:[#allocation162_spill] sm:$0xff] }
 0xcea   : > { %7210 = vst [vmem:[%s10236_s10 + $0x298] sm:$0xff] %v7018_v59  ;;  %v6867_v62 = vpop.f32.mrf.mxu3  ;;  %v6612_v1 = vpop.f32.mrf.mxu1 }
 0xceb   : > { %v6738_v38 = vpop.f32.mrf.mxu2  ;;  %v6483_v16 = vpop.f32.mrf.mxu0 }
 0xcec   : > { %v6739_v32 = vadd.f32 %v6738_v38, %v6610_v26  ;;  %v6484_v56 = vadd.f32 %v6483_v16, %v13321_v6  ;;  %v15506_v26 = vld [vmem:[#allocation199_spill] sm:$0xff]  ;;  %v15508_v38 = vld [vmem:[#allocation201_spill] sm:$0xff] }
 0xced   : > { %6651 = vmatmul.bf16.gmra.mxu1 %v15497_v13 }
 0xcee   : > { %v6868_v5 = vadd.f32 %v6867_v62, %v6739_v32  ;;  %6522 = vmatmul.bf16.gmra.mxu0 %v15496_v47  ;;  %v6613_v3 = vadd.f32 %v6612_v1, %v6484_v56 }
 0xcef   : > { %6909 = vmatmul.bf16.gmra.mxu3 %v15499_v9 }
 0xcf0   : > { %v7022_v41 = vadd.f32 %v6868_v5, %v590_v30  ;;  %6780 = vmatmul.bf16.gmra.mxu2 %v15498_v50  ;;  %v610_v5 = vld [vmem:[%s10236_s10 + $0x358] sm:$0xff] }
 0xcf2   : > { %7214 = vst [vmem:[%s10236_s10 + $0x2b8] sm:$0xff] %v7022_v41  ;;  %v6870_v54 = vpop.f32.mrf.mxu3  ;;  %v6614_v15 = vpop.f32.mrf.mxu1  ;;  %v15509_v41 = vld [vmem:[#allocation163_spill] sm:$0xff] }
 0xcf3   : > { %v6741_v19 = vpop.f32.mrf.mxu2  ;;  %v6485_v21 = vpop.f32.mrf.mxu0 }
 0xcf4   : > { %v6742_v51 = vadd.f32 %v6741_v19, %v6613_v3  ;;  %v6486_v12 = vadd.f32 %v6485_v21, %v13325_v48  ;;  %v15502_v48 = vld [vmem:[#allocation196_spill] sm:$0xff] }
 0xcf5   : > { %v614_v21 = vld [vmem:[%s10236_s10 + $0x378] sm:$0xff] }
 0xcf6   : > { %v6871_v6 = vadd.f32 %v6870_v54, %v6742_v51  ;;  %v6615_v43 = vadd.f32 %v6614_v15, %v6486_v12 }
 0xcf8   : > { %v7026_v44 = vadd.f32 %v6871_v6, %v594_v37  ;;  %v15510_v6 = vld [vmem:[#allocation169_spill] sm:$0xff] }
 0xcfa   : > { %7218 = vst [vmem:[%s10236_s10 + $0x2d8] sm:$0xff] %v7026_v44  ;;  %v6872_v34 = vpop.f32.mrf.mxu3  ;;  %v6617_v35 = vpop.f32.mrf.mxu1  ;;  %v15511_v44 = vld [vmem:[#allocation202_spill] sm:$0xff] }
 0xcfb   : > { %v6743_v28 = vpop.f32.mrf.mxu2  ;;  %v6488_v46 = vpop.f32.mrf.mxu0 }
 0xcfc   : > { %v6744_v4 = vadd.f32 %v6743_v28, %v6615_v43  ;;  %v6489_v11 = vadd.f32 %v6488_v46, %v13331_v23  ;;  %v15512_v28 = vld [vmem:[#allocation203_spill] sm:$0xff] }
 0xcfd   : > { %6656 = vmatmul.bf16.gmra.mxu1 %v15501_v63 }
 0xcfe   : > { %v6873_v31 = vadd.f32 %v6872_v34, %v6744_v4  ;;  %6527 = vmatmul.bf16.gmra.mxu0 %v15500_v39  ;;  %v6618_v18 = vadd.f32 %v6617_v35, %v6489_v11  ;;  %v15513_v4 = vld [vmem:[#allocation204_spill] sm:$0xff]  ;;  %v15514_v34 = vld [vmem:[#allocation205_spill] sm:$0xff] }
 0xcff   : > { %6914 = vmatmul.bf16.gmra.mxu3 %v15503_v45  ;;  %v618_v39 = vld [vmem:[%s10236_s10 + $0x398] sm:$0xff] }
 0xd00   : > { %v7030_v42 = vadd.f32 %v6873_v31, %v598_v7  ;;  %6785 = vmatmul.bf16.gmra.mxu2 %v15502_v48  ;;  %v15515_v48 = vld [vmem:[#allocation170_spill] sm:$0xff] }
 0xd02   : > { %7222 = vst [vmem:[%s10236_s10 + $0x2f8] sm:$0xff] %v7030_v42  ;;  %v6875_v17 = vpop.f32.mrf.mxu3  ;;  %v6619_v25 = vpop.f32.mrf.mxu1 }
 0xd03   : > { %v6746_v27 = vpop.f32.mrf.mxu2  ;;  %v6490_v24 = vpop.f32.mrf.mxu0 }
 0xd04   : > { %v6747_v36 = vadd.f32 %v6746_v27, %v6618_v18  ;;  %v6491_v14 = vadd.f32 %v6490_v24, %v13333_v60  ;;  %v15507_v60 = vld [vmem:[#allocation200_spill] sm:$0xff] }
 0xd06   : > { %v6876_v23 = vadd.f32 %v6875_v17, %v6747_v36  ;;  %v6620_v58 = vadd.f32 %v6619_v25, %v6491_v14  ;;  %v622_v25 = vld [vmem:[%s10236_s10 + $0x3b8] sm:$0xff] }
 0xd08   : > { %v7034_v0 = vadd.f32 %v6876_v23, %v602_v20 }
 0xd0a   : > { %7226 = vst [vmem:[%s10236_s10 + $0x318] sm:$0xff] %v7034_v0  ;;  %v6877_v61 = vpop.f32.mrf.mxu3  ;;  %v6622_v57 = vpop.f32.mrf.mxu1  ;;  %v15516_v0 = vld [vmem:[#allocation171_spill] sm:$0xff] }
 0xd0b   : > { %v6748_v49 = vpop.f32.mrf.mxu2  ;;  %v6493_v29 = vpop.f32.mrf.mxu0 }
 0xd0c   : > { %v6749_v2 = vadd.f32 %v6748_v49, %v6620_v58  ;;  %v6494_v8 = vadd.f32 %v6493_v29, %v15504_v53  ;;  %v15517_v49 = vld [vmem:[#allocation206_spill] sm:$0xff]  ;;  %v15519_v29 = vld [vmem:[#allocation208_spill] sm:$0xff] }
 0xd0d   : > { %6661 = vmatmul.bf16.gmra.mxu1 %v15506_v26 }
 0xd0e   : > { %v6878_v22 = vadd.f32 %v6877_v61, %v6749_v2  ;;  %6532 = vmatmul.bf16.gmra.mxu0 %v15505_v40  ;;  %v6623_v32 = vadd.f32 %v6622_v57, %v6494_v8  ;;  %v15518_v61 = vld [vmem:[#allocation207_spill] sm:$0xff] }
 0xd0f   : > { %6919 = vmatmul.bf16.gmra.mxu3 %v15508_v38  ;;  %v15521_v38 = vld [vmem:[#allocation172_spill] sm:$0xff] }
 0xd10   : > { %v7038_v59 = vadd.f32 %v6878_v22, %v606_v10  ;;  %6790 = vmatmul.bf16.gmra.mxu2 %v15507_v60  ;;  %v15520_v10 = vld [vmem:[#allocation209_spill] sm:$0xff] }
 0xd12   : > { %7230 = vst [vmem:[%s10236_s10 + $0x338] sm:$0xff] %v7038_v59  ;;  %v6880_v30 = vpop.f32.mrf.mxu3  ;;  %v6624_v56 = vpop.f32.mrf.mxu1  ;;  %v626_v59 = vld [vmem:[%s10236_s10 + $0x3d8] sm:$0xff] }
 0xd13   : > { %v6751_v62 = vpop.f32.mrf.mxu2  ;;  %v6495_v1 = vpop.f32.mrf.mxu0 }
 0xd14   : > { %v6752_v16 = vadd.f32 %v6751_v62, %v6623_v32  ;;  %v6496_v13 = vadd.f32 %v6495_v1, %v15509_v41 }
 0xd16   : > { %v6881_v47 = vadd.f32 %v6880_v30, %v6752_v16  ;;  %v6625_v9 = vadd.f32 %v6624_v56, %v6496_v13 }
 0xd18   : > { %v7042_v50 = vadd.f32 %v6881_v47, %v610_v5  ;;  %v630_v47 = vld [vmem:[%s10236_s10 + $0x3f8] sm:$0xff] }
 0xd1a   : > { %7234 = vst [vmem:[%s10236_s10 + $0x358] sm:$0xff] %v7042_v50  ;;  %v6882_v51 = vpop.f32.mrf.mxu3  ;;  %v6627_v37 = vpop.f32.mrf.mxu1  ;;  %v15522_v50 = vld [vmem:[#allocation173_spill] sm:$0xff] }
 0xd1b   : > { %v6753_v3 = vpop.f32.mrf.mxu2  ;;  %v6498_v54 = vpop.f32.mrf.mxu0 }
 0xd1c   : > { %v6754_v19 = vadd.f32 %v6753_v3, %v6625_v9  ;;  %v6499_v12 = vadd.f32 %v6498_v54, %v15510_v6 }
 0xd1d   : > { %6666 = vmatmul.bf16.gmra.mxu1 %v15512_v28 }
 0xd1e   : > { %v6883_v15 = vadd.f32 %v6882_v51, %v6754_v19  ;;  %6537 = vmatmul.bf16.gmra.mxu0 %v15511_v44  ;;  %v6628_v46 = vadd.f32 %v6627_v37, %v6499_v12  ;;  %v15523_v44 = vld [vmem:[#allocation174_spill] sm:$0xff] }
 0xd1f   : > { %6924 = vmatmul.bf16.gmra.mxu3 %v15514_v34 }
 0xd20   : > { %v7046_v43 = vadd.f32 %v6883_v15, %v614_v21  ;;  %6795 = vmatmul.bf16.gmra.mxu2 %v15513_v4  ;;  %v634_v15 = vld [vmem:[%s10236_s10 + $0x418] sm:$0xff] }
 0xd22   : > { %7238 = vst [vmem:[%s10236_s10 + $0x378] sm:$0xff] %v7046_v43  ;;  %v6885_v31 = vpop.f32.mrf.mxu3  ;;  %v6629_v42 = vpop.f32.mrf.mxu1 }
 0xd23   : > { %v6756_v7 = vpop.f32.mrf.mxu2  ;;  %v6500_v11 = vpop.f32.mrf.mxu0 }
 0xd24   : > { %v6757_v35 = vadd.f32 %v6756_v7, %v6628_v46  ;;  %v6501_v45 = vadd.f32 %v6500_v11, %v15515_v48 }
 0xd26   : > { %v6886_v63 = vadd.f32 %v6885_v31, %v6757_v35  ;;  %v6630_v27 = vadd.f32 %v6629_v42, %v6501_v45  ;;  %v638_v31 = vld [vmem:[%s10236_s10 + $0x438] sm:$0xff]  ;;  %v15524_v42 = vld [vmem:[#allocation129_spill] sm:$0xff] }
 0xd28   : > { %v7050_v18 = vadd.f32 %v6886_v63, %v618_v39 }
 0xd2a   : > { %7242 = vst [vmem:[%s10236_s10 + $0x398] sm:$0xff] %v7050_v18  ;;  %v6887_v24 = vpop.f32.mrf.mxu3  ;;  %v6632_v23 = vpop.f32.mrf.mxu1 }
 0xd2b   : > { %v6758_v36 = vpop.f32.mrf.mxu2  ;;  %v6503_v20 = vpop.f32.mrf.mxu0 }
 0xd2c   : > { %v6759_v17 = vadd.f32 %v6758_v36, %v6630_v27  ;;  %v6504_v58 = vadd.f32 %v6503_v20, %v15516_v0 }
 0xd2d   : > { %6671 = vmatmul.bf16.gmra.mxu1 %v15518_v61 }
 0xd2e   : > { %v6888_v14 = vadd.f32 %v6887_v24, %v6759_v17  ;;  %6542 = vmatmul.bf16.gmra.mxu0 %v15517_v49  ;;  %v6633_v57 = vadd.f32 %v6632_v23, %v6504_v58  ;;  %v642_v24 = vld [vmem:[%s10236_s10 + $0x458] sm:$0xff]  ;;  %v15525_v23 = vld [vmem:[#allocation130_spill] sm:$0xff] }
 0xd2f   : > { %6929 = vmatmul.bf16.gmra.mxu3 %v15520_v10  ;;  %v646_v10 = vld [vmem:[%s10236_s10 + $0x478] sm:$0xff] }
 0xd30   : > { %v7054_v2 = vadd.f32 %v6888_v14, %v622_v25  ;;  %6800 = vmatmul.bf16.gmra.mxu2 %v15519_v29 }
 0xd32   : > { %7246 = vst [vmem:[%s10236_s10 + $0x3b8] sm:$0xff] %v7054_v2  ;;  %v6890_v8 = vpop.f32.mrf.mxu3  ;;  %v6634_v26 = vpop.f32.mrf.mxu1 }
 0xd33   : > { %v6761_v22 = vpop.f32.mrf.mxu2  ;;  %v6505_v40 = vpop.f32.mrf.mxu0 }
 0xd34   : > { %v6762_v53 = vadd.f32 %v6761_v22, %v6633_v57  ;;  %v6506_v32 = vadd.f32 %v6505_v40, %v15521_v38 }
 0xd36   : > { %v6891_v60 = vadd.f32 %v6890_v8, %v6762_v53  ;;  %v6635_v16 = vadd.f32 %v6634_v26, %v6506_v32  ;;  %v15526_v53 = vld [vmem:[#allocation135_spill] sm:$0xff] }
 0xd38   : > { %v7058_v62 = vadd.f32 %v6891_v60, %v626_v59 }
 0xd3a   : > { %7250 = vst [vmem:[%s10236_s10 + $0x3d8] sm:$0xff] %v7058_v62  ;;  %v6892_v5 = vpop.f32.mrf.mxu3  ;;  %v6637_v41 = vpop.f32.mrf.mxu1  ;;  %v650_v62 = vld [vmem:[%s10236_s10 + $0x498] sm:$0xff] }
 0xd3b   : > { %v6763_v30 = vpop.f32.mrf.mxu2  ;;  %v6508_v56 = vpop.f32.mrf.mxu0 }
 0xd3c   : > { %v6764_v1 = vadd.f32 %v6763_v30, %v6635_v16  ;;  %v6509_v9 = vadd.f32 %v6508_v56, %v15522_v50 }
 0xd3e   : > { %v6893_v13 = vadd.f32 %v6892_v5, %v6764_v1  ;;  %v6638_v19 = vadd.f32 %v6637_v41, %v6509_v9  ;;  %v15527_v1 = vld [vmem:[#allocation136_spill] sm:$0xff] }
 0xd40   : > { %v7062_v3 = vadd.f32 %v6893_v13, %v630_v47 }
 0xd42   : > { %7254 = vst [vmem:[%s10236_s10 + $0x3f8] sm:$0xff] %v7062_v3  ;;  %v6895_v21 = vpop.f32.mrf.mxu3  ;;  %v6639_v6 = vpop.f32.mrf.mxu1  ;;  %v654_v3 = vld [vmem:[%s10236_s10 + $0x4b8] sm:$0xff] }
 0xd43   : > { %v6766_v51 = vpop.f32.mrf.mxu2  ;;  %v6510_v37 = vpop.f32.mrf.mxu0 }
 0xd44   : > { %v6767_v54 = vadd.f32 %v6766_v51, %v6638_v19  ;;  %v6511_v43 = vadd.f32 %v6510_v37, %v15523_v44 }
 0xd46   : > { %v6896_v12 = vadd.f32 %v6895_v21, %v6767_v54  ;;  %v6640_v4 = vadd.f32 %v6639_v6, %v6511_v43  ;;  %v15528_v54 = vld [vmem:[#allocation141_spill] sm:$0xff] }
 0xd48   : > { %v7066_v28 = vadd.f32 %v6896_v12, %v634_v15 }
 0xd4a   : > { %7258 = vst [vmem:[%s10236_s10 + $0x418] sm:$0xff] %v7066_v28  ;;  %v6897_v7 = vpop.f32.mrf.mxu3  ;;  %v6642_v11 = vpop.f32.mrf.mxu1  ;;  %v658_v28 = vld [vmem:[%s10236_s10 + $0x4d8] sm:$0xff] }
 0xd4b   : > { %v6768_v34 = vpop.f32.mrf.mxu2  ;;  %v6513_v35 = vpop.f32.mrf.mxu0 }
 0xd4c   : > { %v6769_v46 = vadd.f32 %v6768_v34, %v6640_v4  ;;  %v6514_v63 = vadd.f32 %v6513_v35, %v15524_v42 }
 0xd4e   : > { %v6898_v39 = vadd.f32 %v6897_v7, %v6769_v46  ;;  %v6643_v45 = vadd.f32 %v6642_v11, %v6514_v63  ;;  %v15529_v46 = vld [vmem:[#allocation142_spill] sm:$0xff] }
 0xd50   : > { %v7070_v48 = vadd.f32 %v6898_v39, %v638_v31 }
 0xd52   : > { %7262 = vst [vmem:[%s10236_s10 + $0x438] sm:$0xff] %v7070_v48  ;;  %v6900_v36 = vpop.f32.mrf.mxu3  ;;  %v6644_v20 = vpop.f32.mrf.mxu1  ;;  %v662_v48 = vld [vmem:[%s10236_s10 + $0x4f8] sm:$0xff] }
 0xd53   : > { %v6771_v18 = vpop.f32.mrf.mxu2  ;;  %v6515_v17 = vpop.f32.mrf.mxu0 }
 0xd54   : > { %v6772_v27 = vadd.f32 %v6771_v18, %v6643_v45  ;;  %v6516_v14 = vadd.f32 %v6515_v17, %v15525_v23 }
 0xd56   : > { %v6901_v25 = vadd.f32 %v6900_v36, %v6772_v27  ;;  %v6645_v58 = vadd.f32 %v6644_v20, %v6516_v14  ;;  %v15530_v27 = vld [vmem:[#allocation147_spill] sm:$0xff] }
 0xd58   : > { %v7074_v0 = vadd.f32 %v6901_v25, %v642_v24 }
 0xd5a   : > { %7266 = vst [vmem:[%s10236_s10 + $0x458] sm:$0xff] %v7074_v0  ;;  %v6902_v61 = vpop.f32.mrf.mxu3  ;;  %v6647_v57 = vpop.f32.mrf.mxu1  ;;  %v666_v0 = vld [vmem:[%s10236_s10 + $0x518] sm:$0xff] }
 0xd5b   : > { %v6773_v49 = vpop.f32.mrf.mxu2  ;;  %v6518_v29 = vpop.f32.mrf.mxu0 }
 0xd5c   : > { %v6774_v2 = vadd.f32 %v6773_v49, %v6645_v58  ;;  %v6519_v8 = vadd.f32 %v6518_v29, %v15526_v53 }
 0xd5e   : > { %v6903_v22 = vadd.f32 %v6902_v61, %v6774_v2  ;;  %v6648_v59 = vadd.f32 %v6647_v57, %v6519_v8  ;;  %v15531_v2 = vld [vmem:[#allocation148_spill] sm:$0xff] }
 0xd60   : > { %v7078_v40 = vadd.f32 %v6903_v22, %v646_v10 }
 0xd62   : > { %7270 = vst [vmem:[%s10236_s10 + $0x478] sm:$0xff] %v7078_v40  ;;  %v6905_v38 = vpop.f32.mrf.mxu3  ;;  %v6649_v16 = vpop.f32.mrf.mxu1  ;;  %v670_v40 = vld [vmem:[%s10236_s10 + $0x538] sm:$0xff] }
 0xd63   : > { %v6776_v26 = vpop.f32.mrf.mxu2  ;;  %v6520_v32 = vpop.f32.mrf.mxu0 }
 0xd64   : > { %v6777_v60 = vadd.f32 %v6776_v26, %v6648_v59  ;;  %v6521_v5 = vadd.f32 %v6520_v32, %v15527_v1 }
 0xd66   : > { %v6906_v30 = vadd.f32 %v6905_v38, %v6777_v60  ;;  %v6650_v47 = vadd.f32 %v6649_v16, %v6521_v5  ;;  %v15532_v60 = vld [vmem:[#allocation153_spill] sm:$0xff] }
 0xd68   : > { %v7082_v56 = vadd.f32 %v6906_v30, %v650_v62 }
 0xd6a   : > { %7274 = vst [vmem:[%s10236_s10 + $0x498] sm:$0xff] %v7082_v56  ;;  %v6907_v50 = vpop.f32.mrf.mxu3  ;;  %v6652_v19 = vpop.f32.mrf.mxu1  ;;  %v674_v56 = vld [vmem:[%s10236_s10 + $0x558] sm:$0xff] }
 0xd6b   : > { %v6778_v41 = vpop.f32.mrf.mxu2  ;;  %v6523_v9 = vpop.f32.mrf.mxu0 }
 0xd6c   : > { %v6779_v13 = vadd.f32 %v6778_v41, %v6650_v47  ;;  %v6524_v21 = vadd.f32 %v6523_v9, %v15528_v54 }
 0xd6e   : > { %v6908_v51 = vadd.f32 %v6907_v50, %v6779_v13  ;;  %v6653_v15 = vadd.f32 %v6652_v19, %v6524_v21  ;;  %v15533_v13 = vld [vmem:[#allocation21_spill] sm:$0xff] }
 0xd70   : > { %v7086_v37 = vadd.f32 %v6908_v51, %v654_v3 }
 0xd72   : > { %7278 = vst [vmem:[%s10236_s10 + $0x4b8] sm:$0xff] %v7086_v37  ;;  %v6910_v44 = vpop.f32.mrf.mxu3  ;;  %v6654_v4 = vpop.f32.mrf.mxu1  ;;  %v678_v37 = vld [vmem:[%s10236_s10 + $0x578] sm:$0xff] }
 0xd73   : > { %v6781_v6 = vpop.f32.mrf.mxu2  ;;  %v6525_v43 = vpop.f32.mrf.mxu0 }
 0xd74   : > { %v6782_v12 = vadd.f32 %v6781_v6, %v6653_v15  ;;  %v6526_v7 = vadd.f32 %v6525_v43, %v15529_v46 }
 0xd76   : > { %v6911_v34 = vadd.f32 %v6910_v44, %v6782_v12  ;;  %v6655_v31 = vadd.f32 %v6654_v4, %v6526_v7  ;;  %v15534_v12 = vld [vmem:[#allocation22_spill] sm:$0xff] }
 0xd78   : > { %v7090_v35 = vadd.f32 %v6911_v34, %v658_v28 }
 0xd7a   : > { %7282 = vst [vmem:[%s10236_s10 + $0x4d8] sm:$0xff] %v7090_v35  ;;  %v6912_v42 = vpop.f32.mrf.mxu3  ;;  %v6657_v45 = vpop.f32.mrf.mxu1  ;;  %v682_v35 = vld [vmem:[%s10236_s10 + $0x598] sm:$0xff] }
 0xd7b   : > { %v6783_v11 = vpop.f32.mrf.mxu2  ;;  %v6528_v63 = vpop.f32.mrf.mxu0 }
 0xd7c   : > { %v6784_v39 = vadd.f32 %v6783_v11, %v6655_v31  ;;  %v6529_v36 = vadd.f32 %v6528_v63, %v15530_v27 }
 0xd7e   : > { %v6913_v18 = vadd.f32 %v6912_v42, %v6784_v39  ;;  %v6658_v24 = vadd.f32 %v6657_v45, %v6529_v36  ;;  %v686_v36 = vld [vmem:[%s10236_s10 + $0x5b8] sm:$0xff] }
 0xd80   : > { %v7094_v17 = vadd.f32 %v6913_v18, %v662_v48 }
 0xd82   : > { %7286 = vst [vmem:[%s10236_s10 + $0x4f8] sm:$0xff] %v7094_v17  ;;  %v6915_v23 = vpop.f32.mrf.mxu3  ;;  %v6659_v58 = vpop.f32.mrf.mxu1 }
 0xd83   : > { %v6786_v20 = vpop.f32.mrf.mxu2  ;;  %v6530_v14 = vpop.f32.mrf.mxu0 }
 0xd84   : > { %v6787_v25 = vadd.f32 %v6786_v20, %v6658_v24  ;;  %v6531_v61 = vadd.f32 %v6530_v14, %v15531_v2 }
 0xd86   : > { %v6916_v49 = vadd.f32 %v6915_v23, %v6787_v25  ;;  %v6660_v10 = vadd.f32 %v6659_v58, %v6531_v61 }
 0xd88   : > { %v7098_v29 = vadd.f32 %v6916_v49, %v666_v0  ;;  %v690_v49 = vld [vmem:[%s10236_s10 + $0x5d8] sm:$0xff] }
 0xd8a   : > { %7290 = vst [vmem:[%s10236_s10 + $0x518] sm:$0xff] %v7098_v29  ;;  %v6917_v53 = vpop.f32.mrf.mxu3  ;;  %v6662_v59 = vpop.f32.mrf.mxu1 }
 0xd8b   : > { %v6788_v57 = vpop.f32.mrf.mxu2  ;;  %v6533_v8 = vpop.f32.mrf.mxu0 }
 0xd8c   : > { %v6789_v22 = vadd.f32 %v6788_v57, %v6660_v10  ;;  %v6534_v38 = vadd.f32 %v6533_v8, %v15532_v60 }
 0xd8e   : > { %v6918_v26 = vadd.f32 %v6917_v53, %v6789_v22  ;;  %v6663_v62 = vadd.f32 %v6662_v59, %v6534_v38  ;;  %v694_v53 = vld [vmem:[%s10236_s10 + $0x5f8] sm:$0xff] }
 0xd90   : > { %v7102_v32 = vadd.f32 %v6918_v26, %v670_v40 }
 0xd92   : > { %7294 = vst [vmem:[%s10236_s10 + $0x538] sm:$0xff] %v7102_v32  ;;  %v6920_v1 = vpop.f32.mrf.mxu3  ;;  %v6664_v47 = vpop.f32.mrf.mxu1 }
 0xd93   : > { %v6791_v16 = vpop.f32.mrf.mxu2  ;;  %v6535_v5 = vpop.f32.mrf.mxu0 }
 0xd94   : > { %v6792_v30 = vadd.f32 %v6791_v16, %v6663_v62  ;;  %v6536_v50 = vadd.f32 %v6535_v5, %v15533_v13 }
 0xd96   : > { %v6921_v41 = vadd.f32 %v6920_v1, %v6792_v30  ;;  %v6665_v3 = vadd.f32 %v6664_v47, %v6536_v50 }
 0xd98   : > { %v7106_v9 = vadd.f32 %v6921_v41, %v674_v56 }
 0xd9a   : > { %7298 = vst [vmem:[%s10236_s10 + $0x558] sm:$0xff] %v7106_v9  ;;  %v6922_v54 = vpop.f32.mrf.mxu3  ;;  %v6667_v15 = vpop.f32.mrf.mxu1 }
 0xd9b   : > { %v6793_v19 = vpop.f32.mrf.mxu2  ;;  %v6538_v21 = vpop.f32.mrf.mxu0 }
 0xd9c   : > { %v6794_v51 = vadd.f32 %v6793_v19, %v6665_v3  ;;  %v6539_v44 = vadd.f32 %v6538_v21, %v15534_v12 }
 0xd9e   : > { %v6923_v6 = vadd.f32 %v6922_v54, %v6794_v51  ;;  %v6668_v28 = vadd.f32 %v6667_v15, %v6539_v44 }
 0xda0   : > { %v7110_v43 = vadd.f32 %v6923_v6, %v678_v37 }
 0xda2   : > { %7302 = vst [vmem:[%s10236_s10 + $0x578] sm:$0xff] %v7110_v43  ;;  %v6925_v46 = vpop.f32.mrf.mxu3  ;;  %v6669_v31 = vpop.f32.mrf.mxu1 }
 0xda3   : > { %v6796_v4 = vpop.f32.mrf.mxu2  ;;  %v6540_v7 = vpop.f32.mrf.mxu0 }
 0xda4   : > { %v6797_v34 = vadd.f32 %v6796_v4, %v6668_v28  ;;  %v6541_v39 = vadd.f32 %v6540_v7, %v13413_v55 }
 0xda6   : > { %v6926_v11 = vadd.f32 %v6925_v46, %v6797_v34  ;;  %v6670_v63 = vadd.f32 %v6669_v31, %v6541_v39 }
 0xda8   : > { %v7114_v42 = vadd.f32 %v6926_v11, %v682_v35 }
 0xdaa   : > { %7306 = vst [vmem:[%s10236_s10 + $0x598] sm:$0xff] %v7114_v42  ;;  %v6927_v18 = vpop.f32.mrf.mxu3  ;;  %v6672_v20 = vpop.f32.mrf.mxu1 }
 0xdab   : > { %v6798_v48 = vpop.f32.mrf.mxu2  ;;  %v6543_v27 = vpop.f32.mrf.mxu0 }
 0xdac   : > { %v6799_v45 = vadd.f32 %v6798_v48, %v6670_v63  ;;  %v6544_v24 = vadd.f32 %v6543_v27, %v13419_v33 }
 0xdae   : > { %v6928_v17 = vadd.f32 %v6927_v18, %v6799_v45  ;;  %v6673_v23 = vadd.f32 %v6672_v20, %v6544_v24 }
 0xdb0   : > { %v7118_v25 = vadd.f32 %v6928_v17, %v686_v36 }
 0xdb2   : > { %7310 = vst [vmem:[%s10236_s10 + $0x5b8] sm:$0xff] %v7118_v25  ;;  %v6930_v0 = vpop.f32.mrf.mxu3  ;;  %v6674_v10 = vpop.f32.mrf.mxu1 }
 0xdb3   : > { %v6801_v14 = vpop.f32.mrf.mxu2  ;;  %v6545_v58 = vpop.f32.mrf.mxu0 }
 0xdb4   : > { %v6802_v55 = vadd.f32 %v6801_v14, %v6673_v23  ;;  %v6546_v61 = vadd.f32 %v6545_v58, %v13421_v52 }
 0xdb6   : > { %v6931_v2 = vadd.f32 %v6930_v0, %v6802_v55  ;;  %v6675_v57 = vadd.f32 %v6674_v10, %v6546_v61 }
 0xdb8   : > { %v7122_v29 = vadd.f32 %v6931_v2, %v690_v49 }
 0xdba   : > { %7314 = vst [vmem:[%s10236_s10 + $0x5d8] sm:$0xff] %v7122_v29  ;;  %v6932_v8 = vpop.f32.mrf.mxu3 }
 0xdbb   : > { %v6803_v22 = vpop.f32.mrf.mxu2 }
 0xdbc   : > { %v6804_v33 = vadd.f32 %v6803_v22, %v6675_v57 }
 0xdbe   : > { %v6933_v40 = vadd.f32 %v6932_v8, %v6804_v33  ;;  %7322 = sbr.rel (%p9300_p11) target bundleno = 3722 (0xe8a), region = 52 }
 0xdc0   : > { %v7126_v59 = vadd.f32 %v6933_v40, %v694_v53 }
 0xdc2   : > { %7318 = vst [vmem:[%s10236_s10 + $0x5f8] sm:$0xff] %v7126_v59 }
 0xdc3   : > { %v7323_v52 = vld [vmem:[%s10236_s10] sm:$0xff]  ;;  %v7515_v26 = vld [vmem:[%s10229_s23] sm:$0xf]  ;;  %v7324_v60 = vld [vmem:[%s10236_s10 + $0x8] sm:$0xff] }
 0xdc4   : > { %v13635_v38 = vperm.slane %v7515_v26, 0  ;;  %v13637_v32 = vperm.slane %v7515_v26, 1  ;;  %v7325_v62 = vld [vmem:[%s10236_s10 + $0x10] sm:$0xff]  ;;  %v13640_v16 = vperm.slane %v7515_v26, 2  ;;  %v7326_v30 = vld [vmem:[%s10236_s10 + $0x18] sm:$0xff]  ;;  %v13643_v1 = vperm.slane %v7515_v26, 3 }
 0xdc5   : > { %v7327_v5 = vld [vmem:[%s10236_s10 + $0x20] sm:$0xff]  ;;  %v7328_v56 = vld [vmem:[%s10236_s10 + $0x28] sm:$0xff]  ;;  %v7329_v47 = vld [vmem:[%s10236_s10 + $0x30] sm:$0xff] }
 0xdc6   : > { %v7525_v41 = vadd.f32 %v13635_v38, %v7323_v52  ;;  %v7526_v13 = vadd.f32 %v13637_v32, %v7324_v60  ;;  %v7527_v50 = vadd.f32 %v13640_v16, %v7325_v62  ;;  %v7528_v9 = vadd.f32 %v13643_v1, %v7326_v30  ;;  %v7330_v3 = vld [vmem:[%s10236_s10 + $0x38] sm:$0xff]  ;;  %v7331_v54 = vld [vmem:[%s10236_s10 + $0x40] sm:$0xff]  ;;  %v7332_v12 = vld [vmem:[%s10236_s10 + $0x48] sm:$0xff] }
 0xdc7   : > { %v7529_v19 = vadd.f32 %v13635_v38, %v7327_v5  ;;  %v7530_v51 = vadd.f32 %v13637_v32, %v7328_v56  ;;  %v7531_v6 = vadd.f32 %v13640_v16, %v7329_v47  ;;  %v7532_v43 = vadd.f32 %v13643_v1, %v7330_v3  ;;  %v7333_v28 = vld [vmem:[%s10236_s10 + $0x50] sm:$0xff]  ;;  %v7334_v46 = vld [vmem:[%s10236_s10 + $0x58] sm:$0xff]  ;;  %v7335_v31 = vld [vmem:[%s10236_s10 + $0x60] sm:$0xff] }
 0xdc8   : > { %v7717_v21 = vmax.f32 %v7525_v41, 0.0  ;;  %v7718_v37 = vmax.f32 %v7526_v13, 0.0  ;;  %v7719_v15 = vmax.f32 %v7527_v50, 0.0  ;;  %v7720_v44 = vmax.f32 %v7528_v9, 0.0  ;;  %v7336_v42 = vld [vmem:[%s10236_s10 + $0x68] sm:$0xff]  ;;  %v7337_v45 = vld [vmem:[%s10236_s10 + $0x70] sm:$0xff] }
 0xdc9   : > { %v7721_v4 = vmax.f32 %v7529_v19, 0.0  ;;  %v7533_v34 = vadd.f32 %v13635_v38, %v7331_v54  ;;  %v7722_v7 = vmax.f32 %v7530_v51, 0.0  ;;  %v7534_v35 = vadd.f32 %v13637_v32, %v7332_v12  ;;  %v7338_v36 = vld [vmem:[%s10236_s10 + $0x78] sm:$0xff]  ;;  %v7339_v20 = vld [vmem:[%s10236_s10 + $0x80] sm:$0xff]  ;;  %v7340_v14 = vld [vmem:[%s10236_s10 + $0x88] sm:$0xff] }
 0xdca   : > { %7909 = vst [vmem:[%s10236_s10] sm:$0xff] %v7717_v21  ;;  %v7723_v11 = vmax.f32 %v7531_v6, 0.0  ;;  %v7535_v39 = vadd.f32 %v13640_v16, %v7333_v28  ;;  %v7724_v63 = vmax.f32 %v7532_v43, 0.0  ;;  %v7536_v48 = vadd.f32 %v13643_v1, %v7334_v46  ;;  %v7341_v58 = vld [vmem:[%s10236_s10 + $0x90] sm:$0xff]  ;;  %v7342_v61 = vld [vmem:[%s10236_s10 + $0x98] sm:$0xff]  ;;  %v7343_v57 = vld [vmem:[%s10236_s10 + $0xa0] sm:$0xff] }
 0xdcb   : > { %7910 = vst [vmem:[%s10236_s10 + $0x8] sm:$0xff] %v7718_v37  ;;  %v7725_v18 = vmax.f32 %v7533_v34, 0.0  ;;  %v7537_v27 = vadd.f32 %v13635_v38, %v7335_v31  ;;  %v7726_v17 = vmax.f32 %v7534_v35, 0.0  ;;  %v7538_v24 = vadd.f32 %v13637_v32, %v7336_v42  ;;  %v7344_v53 = vld [vmem:[%s10236_s10 + $0xa8] sm:$0xff]  ;;  %v7345_v59 = vld [vmem:[%s10236_s10 + $0xb0] sm:$0xff]  ;;  %v7346_v60 = vld [vmem:[%s10236_s10 + $0xb8] sm:$0xff] }
 0xdcc   : > { %7911 = vst [vmem:[%s10236_s10 + $0x10] sm:$0xff] %v7719_v15  ;;  %v7727_v25 = vmax.f32 %v7535_v39, 0.0  ;;  %v7539_v23 = vadd.f32 %v13640_v16, %v7337_v45  ;;  %v7728_v55 = vmax.f32 %v7536_v48, 0.0  ;;  %v7540_v0 = vadd.f32 %v13643_v1, %v7338_v36  ;;  %v7347_v5 = vld [vmem:[%s10236_s10 + $0xc0] sm:$0xff]  ;;  %v7348_v41 = vld [vmem:[%s10236_s10 + $0xc8] sm:$0xff]  ;;  %v7349_v9 = vld [vmem:[%s10236_s10 + $0xd0] sm:$0xff] }
 0xdcd   : > { %7912 = vst [vmem:[%s10236_s10 + $0x18] sm:$0xff] %v7720_v44  ;;  %v7729_v49 = vmax.f32 %v7537_v27, 0.0  ;;  %v7541_v2 = vadd.f32 %v13635_v38, %v7339_v20  ;;  %v7730_v29 = vmax.f32 %v7538_v24, 0.0  ;;  %v7542_v10 = vadd.f32 %v13637_v32, %v7340_v14  ;;  %v7350_v51 = vld [vmem:[%s10236_s10 + $0xd8] sm:$0xff]  ;;  %v7351_v37 = vld [vmem:[%s10236_s10 + $0xe0] sm:$0xff]  ;;  %v7352_v12 = vld [vmem:[%s10236_s10 + $0xe8] sm:$0xff] }
 0xdce   : > { %7913 = vst [vmem:[%s10236_s10 + $0x20] sm:$0xff] %v7721_v4  ;;  %v7731_v22 = vmax.f32 %v7539_v23, 0.0  ;;  %v7543_v33 = vadd.f32 %v13640_v16, %v7341_v58  ;;  %v7732_v8 = vmax.f32 %v7540_v0, 0.0  ;;  %v7544_v40 = vadd.f32 %v13643_v1, %v7342_v61  ;;  %v7353_v28 = vld [vmem:[%s10236_s10 + $0xf0] sm:$0xff]  ;;  %v7354_v46 = vld [vmem:[%s10236_s10 + $0xf8] sm:$0xff]  ;;  %v7355_v31 = vld [vmem:[%s10236_s10 + $0x100] sm:$0xff] }
 0xdcf   : > { %7914 = vst [vmem:[%s10236_s10 + $0x28] sm:$0xff] %v7722_v7  ;;  %v7733_v52 = vmax.f32 %v7541_v2, 0.0  ;;  %v7545_v26 = vadd.f32 %v13635_v38, %v7343_v57  ;;  %v7734_v62 = vmax.f32 %v7542_v10, 0.0  ;;  %v7546_v30 = vadd.f32 %v13637_v32, %v7344_v53  ;;  %v7356_v42 = vld [vmem:[%s10236_s10 + $0x108] sm:$0xff]  ;;  %v7357_v45 = vld [vmem:[%s10236_s10 + $0x110] sm:$0xff]  ;;  %v7358_v36 = vld [vmem:[%s10236_s10 + $0x118] sm:$0xff] }
 0xdd0   : > { %7915 = vst [vmem:[%s10236_s10 + $0x30] sm:$0xff] %v7723_v11  ;;  %v7735_v56 = vmax.f32 %v7543_v33, 0.0  ;;  %v7547_v47 = vadd.f32 %v13640_v16, %v7345_v59  ;;  %v7736_v13 = vmax.f32 %v7544_v40, 0.0  ;;  %v7548_v50 = vadd.f32 %v13643_v1, %v7346_v60  ;;  %v7359_v20 = vld [vmem:[%s10236_s10 + $0x120] sm:$0xff]  ;;  %v7360_v14 = vld [vmem:[%s10236_s10 + $0x128] sm:$0xff]  ;;  %v7361_v58 = vld [vmem:[%s10236_s10 + $0x130] sm:$0xff] }
 0xdd1   : > { %7916 = vst [vmem:[%s10236_s10 + $0x38] sm:$0xff] %v7724_v63  ;;  %v7737_v3 = vmax.f32 %v7545_v26, 0.0  ;;  %v7549_v19 = vadd.f32 %v13635_v38, %v7347_v5  ;;  %v7738_v54 = vmax.f32 %v7546_v30, 0.0  ;;  %v7550_v21 = vadd.f32 %v13637_v32, %v7348_v41  ;;  %v7362_v61 = vld [vmem:[%s10236_s10 + $0x138] sm:$0xff]  ;;  %v7363_v57 = vld [vmem:[%s10236_s10 + $0x140] sm:$0xff]  ;;  %v7364_v53 = vld [vmem:[%s10236_s10 + $0x148] sm:$0xff] }
 0xdd2   : > { %7917 = vst [vmem:[%s10236_s10 + $0x40] sm:$0xff] %v7725_v18  ;;  %v7739_v15 = vmax.f32 %v7547_v47, 0.0  ;;  %v7551_v6 = vadd.f32 %v13640_v16, %v7349_v9  ;;  %v7740_v44 = vmax.f32 %v7548_v50, 0.0  ;;  %v7552_v43 = vadd.f32 %v13643_v1, %v7350_v51  ;;  %v7365_v59 = vld [vmem:[%s10236_s10 + $0x150] sm:$0xff]  ;;  %v7366_v60 = vld [vmem:[%s10236_s10 + $0x158] sm:$0xff]  ;;  %v7367_v5 = vld [vmem:[%s10236_s10 + $0x160] sm:$0xff] }
 0xdd3   : > { %7918 = vst [vmem:[%s10236_s10 + $0x48] sm:$0xff] %v7726_v17  ;;  %v7741_v4 = vmax.f32 %v7549_v19, 0.0  ;;  %v7553_v34 = vadd.f32 %v13635_v38, %v7351_v37  ;;  %v7742_v7 = vmax.f32 %v7550_v21, 0.0  ;;  %v7554_v35 = vadd.f32 %v13637_v32, %v7352_v12  ;;  %v7368_v41 = vld [vmem:[%s10236_s10 + $0x168] sm:$0xff]  ;;  %v7369_v9 = vld [vmem:[%s10236_s10 + $0x170] sm:$0xff]  ;;  %v7370_v51 = vld [vmem:[%s10236_s10 + $0x178] sm:$0xff] }
 0xdd4   : > { %7919 = vst [vmem:[%s10236_s10 + $0x50] sm:$0xff] %v7727_v25  ;;  %v7743_v11 = vmax.f32 %v7551_v6, 0.0  ;;  %v7555_v39 = vadd.f32 %v13640_v16, %v7353_v28  ;;  %v7744_v63 = vmax.f32 %v7552_v43, 0.0  ;;  %v7556_v48 = vadd.f32 %v13643_v1, %v7354_v46  ;;  %v7371_v37 = vld [vmem:[%s10236_s10 + $0x180] sm:$0xff]  ;;  %v7372_v12 = vld [vmem:[%s10236_s10 + $0x188] sm:$0xff]  ;;  %v7373_v28 = vld [vmem:[%s10236_s10 + $0x190] sm:$0xff] }
 0xdd5   : > { %7920 = vst [vmem:[%s10236_s10 + $0x58] sm:$0xff] %v7728_v55  ;;  %v7745_v18 = vmax.f32 %v7553_v34, 0.0  ;;  %v7557_v27 = vadd.f32 %v13635_v38, %v7355_v31  ;;  %v7746_v17 = vmax.f32 %v7554_v35, 0.0  ;;  %v7558_v24 = vadd.f32 %v13637_v32, %v7356_v42  ;;  %v7374_v46 = vld [vmem:[%s10236_s10 + $0x198] sm:$0xff]  ;;  %v7375_v31 = vld [vmem:[%s10236_s10 + $0x1a0] sm:$0xff]  ;;  %v7376_v42 = vld [vmem:[%s10236_s10 + $0x1a8] sm:$0xff] }
 0xdd6   : > { %7921 = vst [vmem:[%s10236_s10 + $0x60] sm:$0xff] %v7729_v49  ;;  %v7747_v25 = vmax.f32 %v7555_v39, 0.0  ;;  %v7559_v23 = vadd.f32 %v13640_v16, %v7357_v45  ;;  %v7748_v55 = vmax.f32 %v7556_v48, 0.0  ;;  %v7560_v0 = vadd.f32 %v13643_v1, %v7358_v36  ;;  %v7377_v45 = vld [vmem:[%s10236_s10 + $0x1b0] sm:$0xff]  ;;  %v7378_v36 = vld [vmem:[%s10236_s10 + $0x1b8] sm:$0xff] }
 0xdd7   : > { %7922 = vst [vmem:[%s10236_s10 + $0x68] sm:$0xff] %v7730_v29  ;;  %v7749_v49 = vmax.f32 %v7557_v27, 0.0  ;;  %v7561_v2 = vadd.f32 %v13635_v38, %v7359_v20  ;;  %v7750_v29 = vmax.f32 %v7558_v24, 0.0  ;;  %v7562_v10 = vadd.f32 %v13637_v32, %v7360_v14  ;;  %v7379_v20 = vld [vmem:[%s10236_s10 + $0x1c0] sm:$0xff]  ;;  %v7380_v14 = vld [vmem:[%s10236_s10 + $0x1c8] sm:$0xff] }
 0xdd8   : > { %7923 = vst [vmem:[%s10236_s10 + $0x70] sm:$0xff] %v7731_v22  ;;  %v7751_v22 = vmax.f32 %v7559_v23, 0.0  ;;  %v7563_v33 = vadd.f32 %v13640_v16, %v7361_v58  ;;  %v7564_v40 = vadd.f32 %v13643_v1, %v7362_v61  ;;  %v7565_v26 = vadd.f32 %v13635_v38, %v7363_v57  ;;  %v7381_v58 = vld [vmem:[%s10236_s10 + $0x1d0] sm:$0xff]  ;;  %v7382_v61 = vld [vmem:[%s10236_s10 + $0x1d8] sm:$0xff]  ;;  %v7383_v57 = vld [vmem:[%s10236_s10 + $0x1e0] sm:$0xff] }
 0xdd9   : > { %7924 = vst [vmem:[%s10236_s10 + $0x78] sm:$0xff] %v7732_v8  ;;  %v7752_v8 = vmax.f32 %v7560_v0, 0.0  ;;  %v7566_v30 = vadd.f32 %v13637_v32, %v7364_v53  ;;  %v7567_v47 = vadd.f32 %v13640_v16, %v7365_v59  ;;  %v7568_v50 = vadd.f32 %v13643_v1, %v7366_v60  ;;  %v7384_v53 = vld [vmem:[%s10236_s10 + $0x1e8] sm:$0xff]  ;;  %v7385_v59 = vld [vmem:[%s10236_s10 + $0x1f0] sm:$0xff]  ;;  %v7386_v60 = vld [vmem:[%s10236_s10 + $0x1f8] sm:$0xff] }
 0xdda   : > { %7925 = vst [vmem:[%s10236_s10 + $0x80] sm:$0xff] %v7733_v52  ;;  %v7753_v52 = vmax.f32 %v7561_v2, 0.0  ;;  %v7569_v19 = vadd.f32 %v13635_v38, %v7367_v5  ;;  %v7570_v21 = vadd.f32 %v13637_v32, %v7368_v41  ;;  %v7571_v6 = vadd.f32 %v13640_v16, %v7369_v9  ;;  %v7387_v5 = vld [vmem:[%s10236_s10 + $0x200] sm:$0xff]  ;;  %v7388_v41 = vld [vmem:[%s10236_s10 + $0x208] sm:$0xff]  ;;  %v7389_v9 = vld [vmem:[%s10236_s10 + $0x210] sm:$0xff] }
 0xddb   : > { %7926 = vst [vmem:[%s10236_s10 + $0x88] sm:$0xff] %v7734_v62  ;;  %v7754_v62 = vmax.f32 %v7562_v10, 0.0  ;;  %v7572_v43 = vadd.f32 %v13643_v1, %v7370_v51  ;;  %v7573_v34 = vadd.f32 %v13635_v38, %v7371_v37  ;;  %v7574_v35 = vadd.f32 %v13637_v32, %v7372_v12  ;;  %v7390_v51 = vld [vmem:[%s10236_s10 + $0x218] sm:$0xff]  ;;  %v7391_v37 = vld [vmem:[%s10236_s10 + $0x220] sm:$0xff]  ;;  %v7392_v12 = vld [vmem:[%s10236_s10 + $0x228] sm:$0xff] }
 0xddc   : > { %7927 = vst [vmem:[%s10236_s10 + $0x90] sm:$0xff] %v7735_v56  ;;  %v7755_v56 = vmax.f32 %v7563_v33, 0.0  ;;  %v7575_v39 = vadd.f32 %v13640_v16, %v7373_v28  ;;  %v7576_v48 = vadd.f32 %v13643_v1, %v7374_v46  ;;  %v7577_v27 = vadd.f32 %v13635_v38, %v7375_v31  ;;  %v7393_v28 = vld [vmem:[%s10236_s10 + $0x230] sm:$0xff]  ;;  %v7394_v46 = vld [vmem:[%s10236_s10 + $0x238] sm:$0xff]  ;;  %v7395_v31 = vld [vmem:[%s10236_s10 + $0x240] sm:$0xff] }
 0xddd   : > { %7928 = vst [vmem:[%s10236_s10 + $0x98] sm:$0xff] %v7736_v13  ;;  %v7756_v13 = vmax.f32 %v7564_v40, 0.0  ;;  %v7578_v24 = vadd.f32 %v13637_v32, %v7376_v42  ;;  %v7579_v23 = vadd.f32 %v13640_v16, %v7377_v45  ;;  %v7580_v0 = vadd.f32 %v13643_v1, %v7378_v36  ;;  %v7396_v42 = vld [vmem:[%s10236_s10 + $0x248] sm:$0xff]  ;;  %v7397_v45 = vld [vmem:[%s10236_s10 + $0x250] sm:$0xff]  ;;  %v7398_v36 = vld [vmem:[%s10236_s10 + $0x258] sm:$0xff] }
 0xdde   : > { %7929 = vst [vmem:[%s10236_s10 + $0xa0] sm:$0xff] %v7737_v3  ;;  %v7757_v3 = vmax.f32 %v7565_v26, 0.0  ;;  %v7581_v2 = vadd.f32 %v13635_v38, %v7379_v20  ;;  %v7582_v10 = vadd.f32 %v13637_v32, %v7380_v14  ;;  %v7583_v33 = vadd.f32 %v13640_v16, %v7381_v58  ;;  %v7399_v20 = vld [vmem:[%s10236_s10 + $0x260] sm:$0xff]  ;;  %v7400_v14 = vld [vmem:[%s10236_s10 + $0x268] sm:$0xff]  ;;  %v7401_v58 = vld [vmem:[%s10236_s10 + $0x270] sm:$0xff] }
 0xddf   : > { %7930 = vst [vmem:[%s10236_s10 + $0xa8] sm:$0xff] %v7738_v54  ;;  %v7758_v54 = vmax.f32 %v7566_v30, 0.0  ;;  %v7584_v40 = vadd.f32 %v13643_v1, %v7382_v61  ;;  %v7585_v26 = vadd.f32 %v13635_v38, %v7383_v57  ;;  %v7586_v30 = vadd.f32 %v13637_v32, %v7384_v53  ;;  %v7402_v61 = vld [vmem:[%s10236_s10 + $0x278] sm:$0xff]  ;;  %v7403_v57 = vld [vmem:[%s10236_s10 + $0x280] sm:$0xff]  ;;  %v7404_v53 = vld [vmem:[%s10236_s10 + $0x288] sm:$0xff] }
 0xde0   : > { %7931 = vst [vmem:[%s10236_s10 + $0xb0] sm:$0xff] %v7739_v15  ;;  %v7759_v15 = vmax.f32 %v7567_v47, 0.0  ;;  %v7587_v47 = vadd.f32 %v13640_v16, %v7385_v59  ;;  %v7405_v59 = vld [vmem:[%s10236_s10 + $0x290] sm:$0xff] }
 0xde1   : > { %7932 = vst [vmem:[%s10236_s10 + $0xb8] sm:$0xff] %v7740_v44  ;;  %v7760_v44 = vmax.f32 %v7568_v50, 0.0  ;;  %v7588_v50 = vadd.f32 %v13643_v1, %v7386_v60  ;;  %v7406_v60 = vld [vmem:[%s10236_s10 + $0x298] sm:$0xff] }
 0xde2   : > { %7933 = vst [vmem:[%s10236_s10 + $0xc0] sm:$0xff] %v7741_v4  ;;  %v7761_v4 = vmax.f32 %v7569_v19, 0.0  ;;  %v7589_v19 = vadd.f32 %v13635_v38, %v7387_v5  ;;  %v7407_v5 = vld [vmem:[%s10236_s10 + $0x2a0] sm:$0xff] }
 0xde3   : > { %7934 = vst [vmem:[%s10236_s10 + $0xc8] sm:$0xff] %v7742_v7  ;;  %v7762_v7 = vmax.f32 %v7570_v21, 0.0  ;;  %v7590_v21 = vadd.f32 %v13637_v32, %v7388_v41  ;;  %v7408_v41 = vld [vmem:[%s10236_s10 + $0x2a8] sm:$0xff] }
 0xde4   : > { %7935 = vst [vmem:[%s10236_s10 + $0xd0] sm:$0xff] %v7743_v11  ;;  %v7763_v11 = vmax.f32 %v7571_v6, 0.0  ;;  %v7591_v6 = vadd.f32 %v13640_v16, %v7389_v9  ;;  %v7409_v9 = vld [vmem:[%s10236_s10 + $0x2b0] sm:$0xff] }
 0xde5   : > { %7936 = vst [vmem:[%s10236_s10 + $0xd8] sm:$0xff] %v7744_v63  ;;  %v7764_v63 = vmax.f32 %v7572_v43, 0.0  ;;  %v7592_v43 = vadd.f32 %v13643_v1, %v7390_v51  ;;  %v7410_v51 = vld [vmem:[%s10236_s10 + $0x2b8] sm:$0xff] }
 0xde6   : > { %7937 = vst [vmem:[%s10236_s10 + $0xe0] sm:$0xff] %v7745_v18  ;;  %v7765_v18 = vmax.f32 %v7573_v34, 0.0  ;;  %v7593_v34 = vadd.f32 %v13635_v38, %v7391_v37  ;;  %v7411_v37 = vld [vmem:[%s10236_s10 + $0x2c0] sm:$0xff] }
 0xde7   : > { %7938 = vst [vmem:[%s10236_s10 + $0xe8] sm:$0xff] %v7746_v17  ;;  %v7766_v17 = vmax.f32 %v7574_v35, 0.0  ;;  %v7594_v35 = vadd.f32 %v13637_v32, %v7392_v12  ;;  %v7412_v12 = vld [vmem:[%s10236_s10 + $0x2c8] sm:$0xff] }
 0xde8   : > { %7939 = vst [vmem:[%s10236_s10 + $0xf0] sm:$0xff] %v7747_v25  ;;  %v7767_v25 = vmax.f32 %v7575_v39, 0.0  ;;  %v7595_v39 = vadd.f32 %v13640_v16, %v7393_v28  ;;  %v7413_v28 = vld [vmem:[%s10236_s10 + $0x2d0] sm:$0xff] }
 0xde9   : > { %7940 = vst [vmem:[%s10236_s10 + $0xf8] sm:$0xff] %v7748_v55  ;;  %v7768_v55 = vmax.f32 %v7576_v48, 0.0  ;;  %v7596_v48 = vadd.f32 %v13643_v1, %v7394_v46  ;;  %v7414_v46 = vld [vmem:[%s10236_s10 + $0x2d8] sm:$0xff] }
 0xdea   : > { %7941 = vst [vmem:[%s10236_s10 + $0x100] sm:$0xff] %v7749_v49  ;;  %v7769_v49 = vmax.f32 %v7577_v27, 0.0  ;;  %v7597_v27 = vadd.f32 %v13635_v38, %v7395_v31  ;;  %v7415_v31 = vld [vmem:[%s10236_s10 + $0x2e0] sm:$0xff] }
 0xdeb   : > { %7942 = vst [vmem:[%s10236_s10 + $0x108] sm:$0xff] %v7750_v29  ;;  %v7770_v29 = vmax.f32 %v7578_v24, 0.0  ;;  %v7598_v24 = vadd.f32 %v13637_v32, %v7396_v42  ;;  %v7416_v42 = vld [vmem:[%s10236_s10 + $0x2e8] sm:$0xff] }
 0xdec   : > { %7943 = vst [vmem:[%s10236_s10 + $0x110] sm:$0xff] %v7751_v22  ;;  %v7771_v22 = vmax.f32 %v7579_v23, 0.0  ;;  %v7599_v23 = vadd.f32 %v13640_v16, %v7397_v45  ;;  %v7417_v45 = vld [vmem:[%s10236_s10 + $0x2f0] sm:$0xff] }
 0xded   : > { %7944 = vst [vmem:[%s10236_s10 + $0x118] sm:$0xff] %v7752_v8  ;;  %v7772_v8 = vmax.f32 %v7580_v0, 0.0  ;;  %v7600_v0 = vadd.f32 %v13643_v1, %v7398_v36  ;;  %v7418_v36 = vld [vmem:[%s10236_s10 + $0x2f8] sm:$0xff] }
 0xdee   : > { %7945 = vst [vmem:[%s10236_s10 + $0x120] sm:$0xff] %v7753_v52  ;;  %v7773_v52 = vmax.f32 %v7581_v2, 0.0  ;;  %v7601_v2 = vadd.f32 %v13635_v38, %v7399_v20  ;;  %v7419_v20 = vld [vmem:[%s10236_s10 + $0x300] sm:$0xff] }
 0xdef   : > { %7946 = vst [vmem:[%s10236_s10 + $0x128] sm:$0xff] %v7754_v62  ;;  %v7774_v62 = vmax.f32 %v7582_v10, 0.0  ;;  %v7602_v10 = vadd.f32 %v13637_v32, %v7400_v14  ;;  %v7420_v14 = vld [vmem:[%s10236_s10 + $0x308] sm:$0xff] }
 0xdf0   : > { %7947 = vst [vmem:[%s10236_s10 + $0x130] sm:$0xff] %v7755_v56  ;;  %v7775_v56 = vmax.f32 %v7583_v33, 0.0  ;;  %v7603_v33 = vadd.f32 %v13640_v16, %v7401_v58  ;;  %v7421_v58 = vld [vmem:[%s10236_s10 + $0x310] sm:$0xff] }
 0xdf1   : > { %7948 = vst [vmem:[%s10236_s10 + $0x138] sm:$0xff] %v7756_v13  ;;  %v7776_v13 = vmax.f32 %v7584_v40, 0.0  ;;  %v7604_v40 = vadd.f32 %v13643_v1, %v7402_v61  ;;  %v7422_v61 = vld [vmem:[%s10236_s10 + $0x318] sm:$0xff] }
 0xdf2   : > { %7949 = vst [vmem:[%s10236_s10 + $0x140] sm:$0xff] %v7757_v3  ;;  %v7777_v3 = vmax.f32 %v7585_v26, 0.0  ;;  %v7605_v26 = vadd.f32 %v13635_v38, %v7403_v57  ;;  %v7423_v57 = vld [vmem:[%s10236_s10 + $0x320] sm:$0xff] }
 0xdf3   : > { %7950 = vst [vmem:[%s10236_s10 + $0x148] sm:$0xff] %v7758_v54  ;;  %v7778_v54 = vmax.f32 %v7586_v30, 0.0  ;;  %v7606_v30 = vadd.f32 %v13637_v32, %v7404_v53  ;;  %v7424_v53 = vld [vmem:[%s10236_s10 + $0x328] sm:$0xff] }
 0xdf4   : > { %7951 = vst [vmem:[%s10236_s10 + $0x150] sm:$0xff] %v7759_v15  ;;  %v7779_v15 = vmax.f32 %v7587_v47, 0.0  ;;  %v7607_v47 = vadd.f32 %v13640_v16, %v7405_v59  ;;  %v7425_v59 = vld [vmem:[%s10236_s10 + $0x330] sm:$0xff] }
 0xdf5   : > { %7952 = vst [vmem:[%s10236_s10 + $0x158] sm:$0xff] %v7760_v44  ;;  %v7780_v44 = vmax.f32 %v7588_v50, 0.0  ;;  %v7608_v50 = vadd.f32 %v13643_v1, %v7406_v60  ;;  %v7426_v60 = vld [vmem:[%s10236_s10 + $0x338] sm:$0xff] }
 0xdf6   : > { %7953 = vst [vmem:[%s10236_s10 + $0x160] sm:$0xff] %v7761_v4  ;;  %v7781_v4 = vmax.f32 %v7589_v19, 0.0  ;;  %v7609_v19 = vadd.f32 %v13635_v38, %v7407_v5  ;;  %v7427_v5 = vld [vmem:[%s10236_s10 + $0x340] sm:$0xff] }
 0xdf7   : > { %7954 = vst [vmem:[%s10236_s10 + $0x168] sm:$0xff] %v7762_v7  ;;  %v7782_v7 = vmax.f32 %v7590_v21, 0.0  ;;  %v7610_v21 = vadd.f32 %v13637_v32, %v7408_v41  ;;  %v7428_v41 = vld [vmem:[%s10236_s10 + $0x348] sm:$0xff] }
 0xdf8   : > { %7955 = vst [vmem:[%s10236_s10 + $0x170] sm:$0xff] %v7763_v11  ;;  %v7783_v11 = vmax.f32 %v7591_v6, 0.0  ;;  %v7611_v6 = vadd.f32 %v13640_v16, %v7409_v9  ;;  %v7429_v9 = vld [vmem:[%s10236_s10 + $0x350] sm:$0xff] }
 0xdf9   : > { %7956 = vst [vmem:[%s10236_s10 + $0x178] sm:$0xff] %v7764_v63  ;;  %v7784_v63 = vmax.f32 %v7592_v43, 0.0  ;;  %v7612_v43 = vadd.f32 %v13643_v1, %v7410_v51  ;;  %v7430_v51 = vld [vmem:[%s10236_s10 + $0x358] sm:$0xff] }
 0xdfa   : > { %7957 = vst [vmem:[%s10236_s10 + $0x180] sm:$0xff] %v7765_v18  ;;  %v7785_v18 = vmax.f32 %v7593_v34, 0.0  ;;  %v7613_v34 = vadd.f32 %v13635_v38, %v7411_v37  ;;  %v7431_v37 = vld [vmem:[%s10236_s10 + $0x360] sm:$0xff] }
 0xdfb   : > { %7958 = vst [vmem:[%s10236_s10 + $0x188] sm:$0xff] %v7766_v17  ;;  %v7786_v17 = vmax.f32 %v7594_v35, 0.0  ;;  %v7614_v35 = vadd.f32 %v13637_v32, %v7412_v12  ;;  %v7432_v12 = vld [vmem:[%s10236_s10 + $0x368] sm:$0xff] }
 0xdfc   : > { %7959 = vst [vmem:[%s10236_s10 + $0x190] sm:$0xff] %v7767_v25  ;;  %v7787_v25 = vmax.f32 %v7595_v39, 0.0  ;;  %v7615_v39 = vadd.f32 %v13640_v16, %v7413_v28  ;;  %v7433_v28 = vld [vmem:[%s10236_s10 + $0x370] sm:$0xff] }
 0xdfd   : > { %7960 = vst [vmem:[%s10236_s10 + $0x198] sm:$0xff] %v7768_v55  ;;  %v7788_v55 = vmax.f32 %v7596_v48, 0.0  ;;  %v7616_v48 = vadd.f32 %v13643_v1, %v7414_v46  ;;  %v7434_v46 = vld [vmem:[%s10236_s10 + $0x378] sm:$0xff] }
 0xdfe   : > { %7961 = vst [vmem:[%s10236_s10 + $0x1a0] sm:$0xff] %v7769_v49  ;;  %v7789_v49 = vmax.f32 %v7597_v27, 0.0  ;;  %v7617_v27 = vadd.f32 %v13635_v38, %v7415_v31  ;;  %v7435_v31 = vld [vmem:[%s10236_s10 + $0x380] sm:$0xff] }
 0xdff   : > { %7962 = vst [vmem:[%s10236_s10 + $0x1a8] sm:$0xff] %v7770_v29  ;;  %v7790_v29 = vmax.f32 %v7598_v24, 0.0  ;;  %v7618_v24 = vadd.f32 %v13637_v32, %v7416_v42  ;;  %v7436_v42 = vld [vmem:[%s10236_s10 + $0x388] sm:$0xff] }
 0xe00   : > { %7963 = vst [vmem:[%s10236_s10 + $0x1b0] sm:$0xff] %v7771_v22  ;;  %v7791_v22 = vmax.f32 %v7599_v23, 0.0  ;;  %v7619_v23 = vadd.f32 %v13640_v16, %v7417_v45  ;;  %v7437_v45 = vld [vmem:[%s10236_s10 + $0x390] sm:$0xff] }
 0xe01   : > { %7964 = vst [vmem:[%s10236_s10 + $0x1b8] sm:$0xff] %v7772_v8  ;;  %v7792_v8 = vmax.f32 %v7600_v0, 0.0  ;;  %v7620_v0 = vadd.f32 %v13643_v1, %v7418_v36  ;;  %v7438_v36 = vld [vmem:[%s10236_s10 + $0x398] sm:$0xff] }
 0xe02   : > { %7965 = vst [vmem:[%s10236_s10 + $0x1c0] sm:$0xff] %v7773_v52  ;;  %v7793_v52 = vmax.f32 %v7601_v2, 0.0  ;;  %v7621_v2 = vadd.f32 %v13635_v38, %v7419_v20  ;;  %v7439_v20 = vld [vmem:[%s10236_s10 + $0x3a0] sm:$0xff] }
 0xe03   : > { %7966 = vst [vmem:[%s10236_s10 + $0x1c8] sm:$0xff] %v7774_v62  ;;  %v7794_v62 = vmax.f32 %v7602_v10, 0.0  ;;  %v7622_v10 = vadd.f32 %v13637_v32, %v7420_v14  ;;  %v7440_v14 = vld [vmem:[%s10236_s10 + $0x3a8] sm:$0xff] }
 0xe04   : > { %7967 = vst [vmem:[%s10236_s10 + $0x1d0] sm:$0xff] %v7775_v56  ;;  %v7795_v56 = vmax.f32 %v7603_v33, 0.0  ;;  %v7623_v33 = vadd.f32 %v13640_v16, %v7421_v58  ;;  %v7441_v58 = vld [vmem:[%s10236_s10 + $0x3b0] sm:$0xff] }
 0xe05   : > { %7968 = vst [vmem:[%s10236_s10 + $0x1d8] sm:$0xff] %v7776_v13  ;;  %v7796_v13 = vmax.f32 %v7604_v40, 0.0  ;;  %v7624_v40 = vadd.f32 %v13643_v1, %v7422_v61  ;;  %v7442_v61 = vld [vmem:[%s10236_s10 + $0x3b8] sm:$0xff] }
 0xe06   : > { %7969 = vst [vmem:[%s10236_s10 + $0x1e0] sm:$0xff] %v7777_v3  ;;  %v7797_v3 = vmax.f32 %v7605_v26, 0.0  ;;  %v7625_v26 = vadd.f32 %v13635_v38, %v7423_v57  ;;  %v7443_v57 = vld [vmem:[%s10236_s10 + $0x3c0] sm:$0xff] }
 0xe07   : > { %7970 = vst [vmem:[%s10236_s10 + $0x1e8] sm:$0xff] %v7778_v54  ;;  %v7798_v54 = vmax.f32 %v7606_v30, 0.0  ;;  %v7626_v30 = vadd.f32 %v13637_v32, %v7424_v53  ;;  %v7444_v53 = vld [vmem:[%s10236_s10 + $0x3c8] sm:$0xff] }
 0xe08   : > { %7971 = vst [vmem:[%s10236_s10 + $0x1f0] sm:$0xff] %v7779_v15  ;;  %v7799_v15 = vmax.f32 %v7607_v47, 0.0  ;;  %v7627_v47 = vadd.f32 %v13640_v16, %v7425_v59  ;;  %v7445_v59 = vld [vmem:[%s10236_s10 + $0x3d0] sm:$0xff] }
 0xe09   : > { %7972 = vst [vmem:[%s10236_s10 + $0x1f8] sm:$0xff] %v7780_v44  ;;  %v7800_v44 = vmax.f32 %v7608_v50, 0.0  ;;  %v7628_v50 = vadd.f32 %v13643_v1, %v7426_v60  ;;  %v7446_v60 = vld [vmem:[%s10236_s10 + $0x3d8] sm:$0xff] }
 0xe0a   : > { %7973 = vst [vmem:[%s10236_s10 + $0x200] sm:$0xff] %v7781_v4  ;;  %v7801_v4 = vmax.f32 %v7609_v19, 0.0  ;;  %v7629_v19 = vadd.f32 %v13635_v38, %v7427_v5  ;;  %v7447_v5 = vld [vmem:[%s10236_s10 + $0x3e0] sm:$0xff] }
 0xe0b   : > { %7974 = vst [vmem:[%s10236_s10 + $0x208] sm:$0xff] %v7782_v7  ;;  %v7802_v7 = vmax.f32 %v7610_v21, 0.0  ;;  %v7630_v21 = vadd.f32 %v13637_v32, %v7428_v41  ;;  %v7448_v41 = vld [vmem:[%s10236_s10 + $0x3e8] sm:$0xff] }
 0xe0c   : > { %7975 = vst [vmem:[%s10236_s10 + $0x210] sm:$0xff] %v7783_v11  ;;  %v7803_v11 = vmax.f32 %v7611_v6, 0.0  ;;  %v7631_v6 = vadd.f32 %v13640_v16, %v7429_v9  ;;  %v7449_v9 = vld [vmem:[%s10236_s10 + $0x3f0] sm:$0xff] }
 0xe0d   : > { %7976 = vst [vmem:[%s10236_s10 + $0x218] sm:$0xff] %v7784_v63  ;;  %v7804_v63 = vmax.f32 %v7612_v43, 0.0  ;;  %v7632_v43 = vadd.f32 %v13643_v1, %v7430_v51  ;;  %v7450_v51 = vld [vmem:[%s10236_s10 + $0x3f8] sm:$0xff] }
 0xe0e   : > { %7977 = vst [vmem:[%s10236_s10 + $0x220] sm:$0xff] %v7785_v18  ;;  %v7805_v18 = vmax.f32 %v7613_v34, 0.0  ;;  %v7633_v34 = vadd.f32 %v13635_v38, %v7431_v37  ;;  %v7451_v37 = vld [vmem:[%s10236_s10 + $0x400] sm:$0xff] }
 0xe0f   : > { %7978 = vst [vmem:[%s10236_s10 + $0x228] sm:$0xff] %v7786_v17  ;;  %v7806_v17 = vmax.f32 %v7614_v35, 0.0  ;;  %v7634_v35 = vadd.f32 %v13637_v32, %v7432_v12  ;;  %v7452_v12 = vld [vmem:[%s10236_s10 + $0x408] sm:$0xff] }
 0xe10   : > { %7979 = vst [vmem:[%s10236_s10 + $0x230] sm:$0xff] %v7787_v25  ;;  %v7807_v25 = vmax.f32 %v7615_v39, 0.0  ;;  %v7635_v39 = vadd.f32 %v13640_v16, %v7433_v28  ;;  %v7453_v28 = vld [vmem:[%s10236_s10 + $0x410] sm:$0xff] }
 0xe11   : > { %7980 = vst [vmem:[%s10236_s10 + $0x238] sm:$0xff] %v7788_v55  ;;  %v7808_v55 = vmax.f32 %v7616_v48, 0.0  ;;  %v7636_v48 = vadd.f32 %v13643_v1, %v7434_v46  ;;  %v7454_v46 = vld [vmem:[%s10236_s10 + $0x418] sm:$0xff] }
 0xe12   : > { %7981 = vst [vmem:[%s10236_s10 + $0x240] sm:$0xff] %v7789_v49  ;;  %v7809_v49 = vmax.f32 %v7617_v27, 0.0  ;;  %v7637_v27 = vadd.f32 %v13635_v38, %v7435_v31  ;;  %v7455_v31 = vld [vmem:[%s10236_s10 + $0x420] sm:$0xff] }
 0xe13   : > { %7982 = vst [vmem:[%s10236_s10 + $0x248] sm:$0xff] %v7790_v29  ;;  %v7810_v29 = vmax.f32 %v7618_v24, 0.0  ;;  %v7638_v24 = vadd.f32 %v13637_v32, %v7436_v42  ;;  %v7456_v42 = vld [vmem:[%s10236_s10 + $0x428] sm:$0xff] }
 0xe14   : > { %7983 = vst [vmem:[%s10236_s10 + $0x250] sm:$0xff] %v7791_v22  ;;  %v7811_v22 = vmax.f32 %v7619_v23, 0.0  ;;  %v7639_v23 = vadd.f32 %v13640_v16, %v7437_v45  ;;  %v7457_v45 = vld [vmem:[%s10236_s10 + $0x430] sm:$0xff] }
 0xe15   : > { %7984 = vst [vmem:[%s10236_s10 + $0x258] sm:$0xff] %v7792_v8  ;;  %v7812_v8 = vmax.f32 %v7620_v0, 0.0  ;;  %v7640_v0 = vadd.f32 %v13643_v1, %v7438_v36  ;;  %v7458_v36 = vld [vmem:[%s10236_s10 + $0x438] sm:$0xff] }
 0xe16   : > { %7985 = vst [vmem:[%s10236_s10 + $0x260] sm:$0xff] %v7793_v52  ;;  %v7813_v52 = vmax.f32 %v7621_v2, 0.0  ;;  %v7641_v2 = vadd.f32 %v13635_v38, %v7439_v20  ;;  %v7459_v20 = vld [vmem:[%s10236_s10 + $0x440] sm:$0xff] }
 0xe17   : > { %7986 = vst [vmem:[%s10236_s10 + $0x268] sm:$0xff] %v7794_v62  ;;  %v7814_v62 = vmax.f32 %v7622_v10, 0.0  ;;  %v7642_v10 = vadd.f32 %v13637_v32, %v7440_v14  ;;  %v7460_v14 = vld [vmem:[%s10236_s10 + $0x448] sm:$0xff] }
 0xe18   : > { %7987 = vst [vmem:[%s10236_s10 + $0x270] sm:$0xff] %v7795_v56  ;;  %v7815_v56 = vmax.f32 %v7623_v33, 0.0  ;;  %v7643_v33 = vadd.f32 %v13640_v16, %v7441_v58  ;;  %v7461_v58 = vld [vmem:[%s10236_s10 + $0x450] sm:$0xff] }
 0xe19   : > { %7988 = vst [vmem:[%s10236_s10 + $0x278] sm:$0xff] %v7796_v13  ;;  %v7816_v13 = vmax.f32 %v7624_v40, 0.0  ;;  %v7644_v40 = vadd.f32 %v13643_v1, %v7442_v61  ;;  %v7462_v61 = vld [vmem:[%s10236_s10 + $0x458] sm:$0xff] }
 0xe1a   : > { %7989 = vst [vmem:[%s10236_s10 + $0x280] sm:$0xff] %v7797_v3  ;;  %v7817_v3 = vmax.f32 %v7625_v26, 0.0  ;;  %v7645_v26 = vadd.f32 %v13635_v38, %v7443_v57  ;;  %v7463_v57 = vld [vmem:[%s10236_s10 + $0x460] sm:$0xff] }
 0xe1b   : > { %7990 = vst [vmem:[%s10236_s10 + $0x288] sm:$0xff] %v7798_v54  ;;  %v7818_v54 = vmax.f32 %v7626_v30, 0.0  ;;  %v7646_v30 = vadd.f32 %v13637_v32, %v7444_v53  ;;  %v7464_v53 = vld [vmem:[%s10236_s10 + $0x468] sm:$0xff] }
 0xe1c   : > { %7991 = vst [vmem:[%s10236_s10 + $0x290] sm:$0xff] %v7799_v15  ;;  %v7819_v15 = vmax.f32 %v7627_v47, 0.0  ;;  %v7647_v47 = vadd.f32 %v13640_v16, %v7445_v59  ;;  %v7465_v59 = vld [vmem:[%s10236_s10 + $0x470] sm:$0xff] }
 0xe1d   : > { %7992 = vst [vmem:[%s10236_s10 + $0x298] sm:$0xff] %v7800_v44  ;;  %v7820_v44 = vmax.f32 %v7628_v50, 0.0  ;;  %v7648_v50 = vadd.f32 %v13643_v1, %v7446_v60  ;;  %v7466_v60 = vld [vmem:[%s10236_s10 + $0x478] sm:$0xff] }
 0xe1e   : > { %7993 = vst [vmem:[%s10236_s10 + $0x2a0] sm:$0xff] %v7801_v4  ;;  %v7821_v4 = vmax.f32 %v7629_v19, 0.0  ;;  %v7649_v19 = vadd.f32 %v13635_v38, %v7447_v5  ;;  %v7467_v5 = vld [vmem:[%s10236_s10 + $0x480] sm:$0xff] }
 0xe1f   : > { %7994 = vst [vmem:[%s10236_s10 + $0x2a8] sm:$0xff] %v7802_v7  ;;  %v7822_v7 = vmax.f32 %v7630_v21, 0.0  ;;  %v7650_v21 = vadd.f32 %v13637_v32, %v7448_v41  ;;  %v7468_v41 = vld [vmem:[%s10236_s10 + $0x488] sm:$0xff] }
 0xe20   : > { %7995 = vst [vmem:[%s10236_s10 + $0x2b0] sm:$0xff] %v7803_v11  ;;  %v7823_v11 = vmax.f32 %v7631_v6, 0.0  ;;  %v7651_v6 = vadd.f32 %v13640_v16, %v7449_v9  ;;  %v7469_v9 = vld [vmem:[%s10236_s10 + $0x490] sm:$0xff] }
 0xe21   : > { %7996 = vst [vmem:[%s10236_s10 + $0x2b8] sm:$0xff] %v7804_v63  ;;  %v7824_v63 = vmax.f32 %v7632_v43, 0.0  ;;  %v7652_v43 = vadd.f32 %v13643_v1, %v7450_v51  ;;  %v7470_v51 = vld [vmem:[%s10236_s10 + $0x498] sm:$0xff] }
 0xe22   : > { %7997 = vst [vmem:[%s10236_s10 + $0x2c0] sm:$0xff] %v7805_v18  ;;  %v7825_v18 = vmax.f32 %v7633_v34, 0.0  ;;  %v7653_v34 = vadd.f32 %v13635_v38, %v7451_v37  ;;  %v7471_v37 = vld [vmem:[%s10236_s10 + $0x4a0] sm:$0xff] }
 0xe23   : > { %7998 = vst [vmem:[%s10236_s10 + $0x2c8] sm:$0xff] %v7806_v17  ;;  %v7826_v17 = vmax.f32 %v7634_v35, 0.0  ;;  %v7654_v35 = vadd.f32 %v13637_v32, %v7452_v12  ;;  %v7472_v12 = vld [vmem:[%s10236_s10 + $0x4a8] sm:$0xff] }
 0xe24   : > { %7999 = vst [vmem:[%s10236_s10 + $0x2d0] sm:$0xff] %v7807_v25  ;;  %v7827_v25 = vmax.f32 %v7635_v39, 0.0  ;;  %v7655_v39 = vadd.f32 %v13640_v16, %v7453_v28  ;;  %v7473_v28 = vld [vmem:[%s10236_s10 + $0x4b0] sm:$0xff] }
 0xe25   : > { %8000 = vst [vmem:[%s10236_s10 + $0x2d8] sm:$0xff] %v7808_v55  ;;  %v7828_v55 = vmax.f32 %v7636_v48, 0.0  ;;  %v7656_v48 = vadd.f32 %v13643_v1, %v7454_v46  ;;  %v7474_v46 = vld [vmem:[%s10236_s10 + $0x4b8] sm:$0xff] }
 0xe26   : > { %8001 = vst [vmem:[%s10236_s10 + $0x2e0] sm:$0xff] %v7809_v49  ;;  %v7829_v49 = vmax.f32 %v7637_v27, 0.0  ;;  %v7657_v27 = vadd.f32 %v13635_v38, %v7455_v31  ;;  %v7475_v31 = vld [vmem:[%s10236_s10 + $0x4c0] sm:$0xff] }
 0xe27   : > { %8002 = vst [vmem:[%s10236_s10 + $0x2e8] sm:$0xff] %v7810_v29  ;;  %v7830_v29 = vmax.f32 %v7638_v24, 0.0  ;;  %v7658_v24 = vadd.f32 %v13637_v32, %v7456_v42  ;;  %v7476_v42 = vld [vmem:[%s10236_s10 + $0x4c8] sm:$0xff] }
 0xe28   : > { %8003 = vst [vmem:[%s10236_s10 + $0x2f0] sm:$0xff] %v7811_v22  ;;  %v7831_v22 = vmax.f32 %v7639_v23, 0.0  ;;  %v7659_v23 = vadd.f32 %v13640_v16, %v7457_v45  ;;  %v7477_v45 = vld [vmem:[%s10236_s10 + $0x4d0] sm:$0xff] }
 0xe29   : > { %8004 = vst [vmem:[%s10236_s10 + $0x2f8] sm:$0xff] %v7812_v8  ;;  %v7832_v8 = vmax.f32 %v7640_v0, 0.0  ;;  %v7660_v0 = vadd.f32 %v13643_v1, %v7458_v36  ;;  %v7478_v36 = vld [vmem:[%s10236_s10 + $0x4d8] sm:$0xff] }
 0xe2a   : > { %8005 = vst [vmem:[%s10236_s10 + $0x300] sm:$0xff] %v7813_v52  ;;  %v7833_v52 = vmax.f32 %v7641_v2, 0.0  ;;  %v7661_v2 = vadd.f32 %v13635_v38, %v7459_v20  ;;  %v7479_v20 = vld [vmem:[%s10236_s10 + $0x4e0] sm:$0xff] }
 0xe2b   : > { %8006 = vst [vmem:[%s10236_s10 + $0x308] sm:$0xff] %v7814_v62  ;;  %v7834_v62 = vmax.f32 %v7642_v10, 0.0  ;;  %v7662_v10 = vadd.f32 %v13637_v32, %v7460_v14  ;;  %v7480_v14 = vld [vmem:[%s10236_s10 + $0x4e8] sm:$0xff] }
 0xe2c   : > { %8007 = vst [vmem:[%s10236_s10 + $0x310] sm:$0xff] %v7815_v56  ;;  %v7835_v56 = vmax.f32 %v7643_v33, 0.0  ;;  %v7663_v33 = vadd.f32 %v13640_v16, %v7461_v58  ;;  %v7481_v58 = vld [vmem:[%s10236_s10 + $0x4f0] sm:$0xff] }
 0xe2d   : > { %8008 = vst [vmem:[%s10236_s10 + $0x318] sm:$0xff] %v7816_v13  ;;  %v7836_v13 = vmax.f32 %v7644_v40, 0.0  ;;  %v7664_v40 = vadd.f32 %v13643_v1, %v7462_v61  ;;  %v7482_v61 = vld [vmem:[%s10236_s10 + $0x4f8] sm:$0xff] }
 0xe2e   : > { %8009 = vst [vmem:[%s10236_s10 + $0x320] sm:$0xff] %v7817_v3  ;;  %v7837_v3 = vmax.f32 %v7645_v26, 0.0  ;;  %v7665_v26 = vadd.f32 %v13635_v38, %v7463_v57  ;;  %v7483_v57 = vld [vmem:[%s10236_s10 + $0x500] sm:$0xff] }
 0xe2f   : > { %8010 = vst [vmem:[%s10236_s10 + $0x328] sm:$0xff] %v7818_v54  ;;  %v7838_v54 = vmax.f32 %v7646_v30, 0.0  ;;  %v7666_v30 = vadd.f32 %v13637_v32, %v7464_v53  ;;  %v7484_v53 = vld [vmem:[%s10236_s10 + $0x508] sm:$0xff] }
 0xe30   : > { %8011 = vst [vmem:[%s10236_s10 + $0x330] sm:$0xff] %v7819_v15  ;;  %v7839_v15 = vmax.f32 %v7647_v47, 0.0  ;;  %v7667_v47 = vadd.f32 %v13640_v16, %v7465_v59  ;;  %v7485_v59 = vld [vmem:[%s10236_s10 + $0x510] sm:$0xff] }
 0xe31   : > { %8012 = vst [vmem:[%s10236_s10 + $0x338] sm:$0xff] %v7820_v44  ;;  %v7840_v44 = vmax.f32 %v7648_v50, 0.0  ;;  %v7668_v50 = vadd.f32 %v13643_v1, %v7466_v60  ;;  %v7486_v60 = vld [vmem:[%s10236_s10 + $0x518] sm:$0xff] }
 0xe32   : > { %8013 = vst [vmem:[%s10236_s10 + $0x340] sm:$0xff] %v7821_v4  ;;  %v7841_v4 = vmax.f32 %v7649_v19, 0.0  ;;  %v7669_v19 = vadd.f32 %v13635_v38, %v7467_v5  ;;  %v7487_v5 = vld [vmem:[%s10236_s10 + $0x520] sm:$0xff] }
 0xe33   : > { %8014 = vst [vmem:[%s10236_s10 + $0x348] sm:$0xff] %v7822_v7  ;;  %v7842_v7 = vmax.f32 %v7650_v21, 0.0  ;;  %v7670_v21 = vadd.f32 %v13637_v32, %v7468_v41  ;;  %v7488_v41 = vld [vmem:[%s10236_s10 + $0x528] sm:$0xff] }
 0xe34   : > { %8015 = vst [vmem:[%s10236_s10 + $0x350] sm:$0xff] %v7823_v11  ;;  %v7843_v11 = vmax.f32 %v7651_v6, 0.0  ;;  %v7671_v6 = vadd.f32 %v13640_v16, %v7469_v9  ;;  %v7489_v9 = vld [vmem:[%s10236_s10 + $0x530] sm:$0xff] }
 0xe35   : > { %8016 = vst [vmem:[%s10236_s10 + $0x358] sm:$0xff] %v7824_v63  ;;  %v7844_v63 = vmax.f32 %v7652_v43, 0.0  ;;  %v7672_v43 = vadd.f32 %v13643_v1, %v7470_v51  ;;  %v7490_v51 = vld [vmem:[%s10236_s10 + $0x538] sm:$0xff] }
 0xe36   : > { %8017 = vst [vmem:[%s10236_s10 + $0x360] sm:$0xff] %v7825_v18  ;;  %v7845_v18 = vmax.f32 %v7653_v34, 0.0  ;;  %v7673_v34 = vadd.f32 %v13635_v38, %v7471_v37  ;;  %v7491_v37 = vld [vmem:[%s10236_s10 + $0x540] sm:$0xff] }
 0xe37   : > { %8018 = vst [vmem:[%s10236_s10 + $0x368] sm:$0xff] %v7826_v17  ;;  %v7846_v17 = vmax.f32 %v7654_v35, 0.0  ;;  %v7674_v35 = vadd.f32 %v13637_v32, %v7472_v12  ;;  %v7492_v12 = vld [vmem:[%s10236_s10 + $0x548] sm:$0xff] }
 0xe38   : > { %8019 = vst [vmem:[%s10236_s10 + $0x370] sm:$0xff] %v7827_v25  ;;  %v7847_v25 = vmax.f32 %v7655_v39, 0.0  ;;  %v7675_v39 = vadd.f32 %v13640_v16, %v7473_v28  ;;  %v7493_v28 = vld [vmem:[%s10236_s10 + $0x550] sm:$0xff] }
 0xe39   : > { %8020 = vst [vmem:[%s10236_s10 + $0x378] sm:$0xff] %v7828_v55  ;;  %v7848_v55 = vmax.f32 %v7656_v48, 0.0  ;;  %v7676_v48 = vadd.f32 %v13643_v1, %v7474_v46  ;;  %v7494_v46 = vld [vmem:[%s10236_s10 + $0x558] sm:$0xff] }
 0xe3a   : > { %8021 = vst [vmem:[%s10236_s10 + $0x380] sm:$0xff] %v7829_v49  ;;  %v7849_v49 = vmax.f32 %v7657_v27, 0.0  ;;  %v7677_v27 = vadd.f32 %v13635_v38, %v7475_v31  ;;  %v7495_v31 = vld [vmem:[%s10236_s10 + $0x560] sm:$0xff] }
 0xe3b   : > { %8022 = vst [vmem:[%s10236_s10 + $0x388] sm:$0xff] %v7830_v29  ;;  %v7850_v29 = vmax.f32 %v7658_v24, 0.0  ;;  %v7678_v24 = vadd.f32 %v13637_v32, %v7476_v42  ;;  %v7496_v42 = vld [vmem:[%s10236_s10 + $0x568] sm:$0xff] }
 0xe3c   : > { %8023 = vst [vmem:[%s10236_s10 + $0x390] sm:$0xff] %v7831_v22  ;;  %v7851_v22 = vmax.f32 %v7659_v23, 0.0  ;;  %v7679_v23 = vadd.f32 %v13640_v16, %v7477_v45  ;;  %v7497_v45 = vld [vmem:[%s10236_s10 + $0x570] sm:$0xff] }
 0xe3d   : > { %8024 = vst [vmem:[%s10236_s10 + $0x398] sm:$0xff] %v7832_v8  ;;  %v7852_v8 = vmax.f32 %v7660_v0, 0.0  ;;  %v7680_v0 = vadd.f32 %v13643_v1, %v7478_v36  ;;  %v7498_v36 = vld [vmem:[%s10236_s10 + $0x578] sm:$0xff] }
 0xe3e   : > { %8025 = vst [vmem:[%s10236_s10 + $0x3a0] sm:$0xff] %v7833_v52  ;;  %v7853_v52 = vmax.f32 %v7661_v2, 0.0  ;;  %v7681_v2 = vadd.f32 %v13635_v38, %v7479_v20  ;;  %v7499_v20 = vld [vmem:[%s10236_s10 + $0x580] sm:$0xff] }
 0xe3f   : > { %8026 = vst [vmem:[%s10236_s10 + $0x3a8] sm:$0xff] %v7834_v62  ;;  %v7854_v62 = vmax.f32 %v7662_v10, 0.0  ;;  %v7682_v10 = vadd.f32 %v13637_v32, %v7480_v14  ;;  %v7500_v14 = vld [vmem:[%s10236_s10 + $0x588] sm:$0xff] }
 0xe40   : > { %8027 = vst [vmem:[%s10236_s10 + $0x3b0] sm:$0xff] %v7835_v56  ;;  %v7855_v56 = vmax.f32 %v7663_v33, 0.0  ;;  %v7683_v33 = vadd.f32 %v13640_v16, %v7481_v58  ;;  %v7501_v58 = vld [vmem:[%s10236_s10 + $0x590] sm:$0xff] }
 0xe41   : > { %8028 = vst [vmem:[%s10236_s10 + $0x3b8] sm:$0xff] %v7836_v13  ;;  %v7856_v13 = vmax.f32 %v7664_v40, 0.0  ;;  %v7684_v40 = vadd.f32 %v13643_v1, %v7482_v61  ;;  %v7502_v61 = vld [vmem:[%s10236_s10 + $0x598] sm:$0xff] }
 0xe42   : > { %8029 = vst [vmem:[%s10236_s10 + $0x3c0] sm:$0xff] %v7837_v3  ;;  %v7857_v3 = vmax.f32 %v7665_v26, 0.0  ;;  %v7685_v26 = vadd.f32 %v13635_v38, %v7483_v57  ;;  %v7503_v57 = vld [vmem:[%s10236_s10 + $0x5a0] sm:$0xff] }
 0xe43   : > { %8030 = vst [vmem:[%s10236_s10 + $0x3c8] sm:$0xff] %v7838_v54  ;;  %v7858_v54 = vmax.f32 %v7666_v30, 0.0  ;;  %v7686_v30 = vadd.f32 %v13637_v32, %v7484_v53  ;;  %v7504_v53 = vld [vmem:[%s10236_s10 + $0x5a8] sm:$0xff] }
 0xe44   : > { %8031 = vst [vmem:[%s10236_s10 + $0x3d0] sm:$0xff] %v7839_v15  ;;  %v7859_v15 = vmax.f32 %v7667_v47, 0.0  ;;  %v7687_v47 = vadd.f32 %v13640_v16, %v7485_v59  ;;  %v7505_v59 = vld [vmem:[%s10236_s10 + $0x5b0] sm:$0xff] }
 0xe45   : > { %8032 = vst [vmem:[%s10236_s10 + $0x3d8] sm:$0xff] %v7840_v44  ;;  %v7860_v44 = vmax.f32 %v7668_v50, 0.0  ;;  %v7688_v50 = vadd.f32 %v13643_v1, %v7486_v60  ;;  %v7506_v60 = vld [vmem:[%s10236_s10 + $0x5b8] sm:$0xff] }
 0xe46   : > { %8033 = vst [vmem:[%s10236_s10 + $0x3e0] sm:$0xff] %v7841_v4  ;;  %v7861_v4 = vmax.f32 %v7669_v19, 0.0  ;;  %v7689_v19 = vadd.f32 %v13635_v38, %v7487_v5  ;;  %v7507_v5 = vld [vmem:[%s10236_s10 + $0x5c0] sm:$0xff] }
 0xe47   : > { %8034 = vst [vmem:[%s10236_s10 + $0x3e8] sm:$0xff] %v7842_v7  ;;  %v7862_v7 = vmax.f32 %v7670_v21, 0.0  ;;  %v7690_v21 = vadd.f32 %v13637_v32, %v7488_v41  ;;  %v7508_v41 = vld [vmem:[%s10236_s10 + $0x5c8] sm:$0xff] }
 0xe48   : > { %8035 = vst [vmem:[%s10236_s10 + $0x3f0] sm:$0xff] %v7843_v11  ;;  %v7863_v11 = vmax.f32 %v7671_v6, 0.0  ;;  %v7691_v6 = vadd.f32 %v13640_v16, %v7489_v9  ;;  %v7509_v9 = vld [vmem:[%s10236_s10 + $0x5d0] sm:$0xff] }
 0xe49   : > { %8036 = vst [vmem:[%s10236_s10 + $0x3f8] sm:$0xff] %v7844_v63  ;;  %v7864_v63 = vmax.f32 %v7672_v43, 0.0  ;;  %v7692_v43 = vadd.f32 %v13643_v1, %v7490_v51  ;;  %v7510_v51 = vld [vmem:[%s10236_s10 + $0x5d8] sm:$0xff] }
 0xe4a   : > { %8037 = vst [vmem:[%s10236_s10 + $0x400] sm:$0xff] %v7845_v18  ;;  %v7865_v18 = vmax.f32 %v7673_v34, 0.0  ;;  %v7693_v34 = vadd.f32 %v13635_v38, %v7491_v37  ;;  %v7511_v37 = vld [vmem:[%s10236_s10 + $0x5e0] sm:$0xff] }
 0xe4b   : > { %8038 = vst [vmem:[%s10236_s10 + $0x408] sm:$0xff] %v7846_v17  ;;  %v7866_v17 = vmax.f32 %v7674_v35, 0.0  ;;  %v7694_v35 = vadd.f32 %v13637_v32, %v7492_v12  ;;  %v7512_v12 = vld [vmem:[%s10236_s10 + $0x5e8] sm:$0xff] }
 0xe4c   : > { %8039 = vst [vmem:[%s10236_s10 + $0x410] sm:$0xff] %v7847_v25  ;;  %v7867_v25 = vmax.f32 %v7675_v39, 0.0  ;;  %v7695_v39 = vadd.f32 %v13640_v16, %v7493_v28  ;;  %v7513_v28 = vld [vmem:[%s10236_s10 + $0x5f0] sm:$0xff] }
 0xe4d   : > { %8040 = vst [vmem:[%s10236_s10 + $0x418] sm:$0xff] %v7848_v55  ;;  %v7868_v55 = vmax.f32 %v7676_v48, 0.0  ;;  %v7696_v48 = vadd.f32 %v13643_v1, %v7494_v46  ;;  %v7514_v46 = vld [vmem:[%s10236_s10 + $0x5f8] sm:$0xff] }
 0xe4e   : > { %8041 = vst [vmem:[%s10236_s10 + $0x420] sm:$0xff] %v7849_v49  ;;  %v7869_v49 = vmax.f32 %v7677_v27, 0.0  ;;  %v7697_v27 = vadd.f32 %v13635_v38, %v7495_v31 }
 0xe4f   : > { %8042 = vst [vmem:[%s10236_s10 + $0x428] sm:$0xff] %v7850_v29  ;;  %v7870_v29 = vmax.f32 %v7678_v24, 0.0  ;;  %v7698_v24 = vadd.f32 %v13637_v32, %v7496_v42  ;;  %v7716_v42 = vadd.f32 %v13643_v1, %v7514_v46 }
 0xe50   : > { %8043 = vst [vmem:[%s10236_s10 + $0x430] sm:$0xff] %v7851_v22  ;;  %v7871_v22 = vmax.f32 %v7679_v23, 0.0  ;;  %v7699_v23 = vadd.f32 %v13640_v16, %v7497_v45 }
 0xe51   : > { %8044 = vst [vmem:[%s10236_s10 + $0x438] sm:$0xff] %v7852_v8  ;;  %v7872_v8 = vmax.f32 %v7680_v0, 0.0  ;;  %v7700_v0 = vadd.f32 %v13643_v1, %v7498_v36  ;;  %v7908_v45 = vmax.f32 %v7716_v42, 0.0 }
 0xe52   : > { %8045 = vst [vmem:[%s10236_s10 + $0x440] sm:$0xff] %v7853_v52  ;;  %v7873_v52 = vmax.f32 %v7681_v2, 0.0  ;;  %v7701_v2 = vadd.f32 %v13635_v38, %v7499_v20 }
 0xe53   : > { %8046 = vst [vmem:[%s10236_s10 + $0x448] sm:$0xff] %v7854_v62  ;;  %v7874_v62 = vmax.f32 %v7682_v10, 0.0  ;;  %v7702_v10 = vadd.f32 %v13637_v32, %v7500_v14 }
 0xe54   : > { %8047 = vst [vmem:[%s10236_s10 + $0x450] sm:$0xff] %v7855_v56  ;;  %v7875_v56 = vmax.f32 %v7683_v33, 0.0  ;;  %v7703_v33 = vadd.f32 %v13640_v16, %v7501_v58 }
 0xe55   : > { %8048 = vst [vmem:[%s10236_s10 + $0x458] sm:$0xff] %v7856_v13  ;;  %v7876_v13 = vmax.f32 %v7684_v40, 0.0  ;;  %v7704_v40 = vadd.f32 %v13643_v1, %v7502_v61 }
 0xe56   : > { %8049 = vst [vmem:[%s10236_s10 + $0x460] sm:$0xff] %v7857_v3  ;;  %v7877_v3 = vmax.f32 %v7685_v26, 0.0  ;;  %v7705_v26 = vadd.f32 %v13635_v38, %v7503_v57 }
 0xe57   : > { %8050 = vst [vmem:[%s10236_s10 + $0x468] sm:$0xff] %v7858_v54  ;;  %v7878_v54 = vmax.f32 %v7686_v30, 0.0  ;;  %v7706_v30 = vadd.f32 %v13637_v32, %v7504_v53 }
 0xe58   : > { %8051 = vst [vmem:[%s10236_s10 + $0x470] sm:$0xff] %v7859_v15  ;;  %v7879_v15 = vmax.f32 %v7687_v47, 0.0  ;;  %v7707_v47 = vadd.f32 %v13640_v16, %v7505_v59 }
 0xe59   : > { %8052 = vst [vmem:[%s10236_s10 + $0x478] sm:$0xff] %v7860_v44  ;;  %v7880_v44 = vmax.f32 %v7688_v50, 0.0  ;;  %v7708_v50 = vadd.f32 %v13643_v1, %v7506_v60 }
 0xe5a   : > { %8053 = vst [vmem:[%s10236_s10 + $0x480] sm:$0xff] %v7861_v4  ;;  %v7881_v4 = vmax.f32 %v7689_v19, 0.0  ;;  %v7709_v19 = vadd.f32 %v13635_v38, %v7507_v5 }
 0xe5b   : > { %8054 = vst [vmem:[%s10236_s10 + $0x488] sm:$0xff] %v7862_v7  ;;  %v7882_v7 = vmax.f32 %v7690_v21, 0.0  ;;  %v7710_v21 = vadd.f32 %v13637_v32, %v7508_v41 }
 0xe5c   : > { %8055 = vst [vmem:[%s10236_s10 + $0x490] sm:$0xff] %v7863_v11  ;;  %v7883_v11 = vmax.f32 %v7691_v6, 0.0  ;;  %v7711_v6 = vadd.f32 %v13640_v16, %v7509_v9 }
 0xe5d   : > { %8056 = vst [vmem:[%s10236_s10 + $0x498] sm:$0xff] %v7864_v63  ;;  %v7884_v63 = vmax.f32 %v7692_v43, 0.0  ;;  %v7712_v43 = vadd.f32 %v13643_v1, %v7510_v51 }
 0xe5e   : > { %8057 = vst [vmem:[%s10236_s10 + $0x4a0] sm:$0xff] %v7865_v18  ;;  %v7885_v18 = vmax.f32 %v7693_v34, 0.0  ;;  %v7713_v34 = vadd.f32 %v13635_v38, %v7511_v37  ;;  %v7903_v31 = vmax.f32 %v7711_v6, 0.0 }
 0xe5f   : > { %8058 = vst [vmem:[%s10236_s10 + $0x4a8] sm:$0xff] %v7866_v17  ;;  %v7886_v17 = vmax.f32 %v7694_v35, 0.0  ;;  %v7714_v35 = vadd.f32 %v13637_v32, %v7512_v12 }
 0xe60   : > { %8059 = vst [vmem:[%s10236_s10 + $0x4b0] sm:$0xff] %v7867_v25  ;;  %v7887_v25 = vmax.f32 %v7695_v39, 0.0  ;;  %v7904_v39 = vmax.f32 %v7712_v43, 0.0  ;;  %v7905_v38 = vmax.f32 %v7713_v34, 0.0 }
 0xe61   : > { %8060 = vst [vmem:[%s10236_s10 + $0x4b8] sm:$0xff] %v7868_v55  ;;  %v7888_v55 = vmax.f32 %v7696_v48, 0.0 }
 0xe62   : > { %8061 = vst [vmem:[%s10236_s10 + $0x4c0] sm:$0xff] %v7869_v49  ;;  %v7889_v49 = vmax.f32 %v7697_v27, 0.0 }
 0xe63   : > { %8062 = vst [vmem:[%s10236_s10 + $0x4c8] sm:$0xff] %v7870_v29  ;;  %v7890_v29 = vmax.f32 %v7698_v24, 0.0 }
 0xe64   : > { %8063 = vst [vmem:[%s10236_s10 + $0x4d0] sm:$0xff] %v7871_v22  ;;  %v7891_v22 = vmax.f32 %v7699_v23, 0.0 }
 0xe65   : > { %8064 = vst [vmem:[%s10236_s10 + $0x4d8] sm:$0xff] %v7872_v8  ;;  %v7892_v8 = vmax.f32 %v7700_v0, 0.0 }
 0xe66   : > { %8065 = vst [vmem:[%s10236_s10 + $0x4e0] sm:$0xff] %v7873_v52  ;;  %v7893_v52 = vmax.f32 %v7701_v2, 0.0 }
 0xe67   : > { %8066 = vst [vmem:[%s10236_s10 + $0x4e8] sm:$0xff] %v7874_v62  ;;  %v7894_v62 = vmax.f32 %v7702_v10, 0.0 }
 0xe68   : > { %8067 = vst [vmem:[%s10236_s10 + $0x4f0] sm:$0xff] %v7875_v56  ;;  %v7895_v56 = vmax.f32 %v7703_v33, 0.0 }
 0xe69   : > { %8068 = vst [vmem:[%s10236_s10 + $0x4f8] sm:$0xff] %v7876_v13  ;;  %v7896_v13 = vmax.f32 %v7704_v40, 0.0 }
 0xe6a   : > { %8069 = vst [vmem:[%s10236_s10 + $0x500] sm:$0xff] %v7877_v3  ;;  %v7897_v3 = vmax.f32 %v7705_v26, 0.0 }
 0xe6b   : > { %8070 = vst [vmem:[%s10236_s10 + $0x508] sm:$0xff] %v7878_v54  ;;  %v7898_v54 = vmax.f32 %v7706_v30, 0.0 }
 0xe6c   : > { %8071 = vst [vmem:[%s10236_s10 + $0x510] sm:$0xff] %v7879_v15  ;;  %v7899_v15 = vmax.f32 %v7707_v47, 0.0 }
 0xe6d   : > { %8072 = vst [vmem:[%s10236_s10 + $0x518] sm:$0xff] %v7880_v44  ;;  %v7900_v44 = vmax.f32 %v7708_v50, 0.0 }
 0xe6e   : > { %8073 = vst [vmem:[%s10236_s10 + $0x520] sm:$0xff] %v7881_v4  ;;  %v7901_v4 = vmax.f32 %v7709_v19, 0.0 }
 0xe6f   : > { %8074 = vst [vmem:[%s10236_s10 + $0x528] sm:$0xff] %v7882_v7  ;;  %v7902_v7 = vmax.f32 %v7710_v21, 0.0 }
 0xe70   : > { %8075 = vst [vmem:[%s10236_s10 + $0x530] sm:$0xff] %v7883_v11  ;;  %v7715_v11 = vadd.f32 %v13640_v16, %v7513_v28 }
 0xe71   : > { %8076 = vst [vmem:[%s10236_s10 + $0x538] sm:$0xff] %v7884_v63  ;;  %v7906_v63 = vmax.f32 %v7714_v35, 0.0 }
 0xe72   : > { %8077 = vst [vmem:[%s10236_s10 + $0x540] sm:$0xff] %v7885_v18  ;;  %v7907_v48 = vmax.f32 %v7715_v11, 0.0 }
 0xe73   : > { %8078 = vst [vmem:[%s10236_s10 + $0x548] sm:$0xff] %v7886_v17 }
 0xe74   : > { %8079 = vst [vmem:[%s10236_s10 + $0x550] sm:$0xff] %v7887_v25 }
 0xe75   : > { %8080 = vst [vmem:[%s10236_s10 + $0x558] sm:$0xff] %v7888_v55 }
 0xe76   : > { %8081 = vst [vmem:[%s10236_s10 + $0x560] sm:$0xff] %v7889_v49 }
 0xe77   : > { %8082 = vst [vmem:[%s10236_s10 + $0x568] sm:$0xff] %v7890_v29 }
 0xe78   : > { %8083 = vst [vmem:[%s10236_s10 + $0x570] sm:$0xff] %v7891_v22 }
 0xe79   : > { %8084 = vst [vmem:[%s10236_s10 + $0x578] sm:$0xff] %v7892_v8 }
 0xe7a   : > { %8085 = vst [vmem:[%s10236_s10 + $0x580] sm:$0xff] %v7893_v52 }
 0xe7b   : > { %8086 = vst [vmem:[%s10236_s10 + $0x588] sm:$0xff] %v7894_v62 }
 0xe7c   : > { %8087 = vst [vmem:[%s10236_s10 + $0x590] sm:$0xff] %v7895_v56 }
 0xe7d   : > { %8088 = vst [vmem:[%s10236_s10 + $0x598] sm:$0xff] %v7896_v13 }
 0xe7e   : > { %8089 = vst [vmem:[%s10236_s10 + $0x5a0] sm:$0xff] %v7897_v3 }
 0xe7f   : > { %8090 = vst [vmem:[%s10236_s10 + $0x5a8] sm:$0xff] %v7898_v54 }
 0xe80   : > { %8091 = vst [vmem:[%s10236_s10 + $0x5b0] sm:$0xff] %v7899_v15 }
 0xe81   : > { %8092 = vst [vmem:[%s10236_s10 + $0x5b8] sm:$0xff] %v7900_v44 }
 0xe82   : > { %8093 = vst [vmem:[%s10236_s10 + $0x5c0] sm:$0xff] %v7901_v4 }
 0xe83   : > { %8094 = vst [vmem:[%s10236_s10 + $0x5c8] sm:$0xff] %v7902_v7 }
 0xe84   : > { %8095 = vst [vmem:[%s10236_s10 + $0x5d0] sm:$0xff] %v7903_v31 }
 0xe85   : > { %8096 = vst [vmem:[%s10236_s10 + $0x5d8] sm:$0xff] %v7904_v39 }
 0xe86   : > { %8097 = vst [vmem:[%s10236_s10 + $0x5e0] sm:$0xff] %v7905_v38 }
 0xe87   : > { %8098 = vst [vmem:[%s10236_s10 + $0x5e8] sm:$0xff] %v7906_v63 }
 0xe88   : > { %8099 = vst [vmem:[%s10236_s10 + $0x5f0] sm:$0xff] %v7907_v48 }
 0xe89   : > { %8100 = vst [vmem:[%s10236_s10 + $0x5f8] sm:$0xff] %v7908_v45 }
 0xe8a PF: > { %s9563_s17 = sshll.u32 %s9945_s22, 5  ;;  %s15535_s26 = sld [smem:[#allocation225_spill]] }
 0xe8b   : > { %s8117_s30 = sshll.u32 %s10236_s10, 4  ;;  %s8102_s18 = scalar_lea.sflag [#allocation4], %s10226_s24  ;;  %s8118_s30 = int_to_ptr.vmem [resolvable:$true] %s8117_s30 }
 0xe90   : > { %s8116_s4 = scalar_lea.hbm %s15535_s26, %s9563_s17  ;;  %s9823_s22 = scalar_lea.hbm %s15535_s26, 3072 }
 0xe91   : > { %s8119_s6 = sshll.u32 %s8116_s4, 4  ;;  %s8120_s6 = int_to_ptr.hbm [resolvable:$true] %s8119_s6 }
 0xe92   : > { %s9817_s7 = sshra.s32 %s8120_s6, 4  ;;  %s9818_s7 = int_to_ptr.hbm [resolvable:$true] %s9817_s7 }
 0xe93   : > { %s9819_s15 = scalar_lea.hbm %s9818_s7, 1536  ;;  %p9824_p10 = scmp.lt.s32.totalorder %s9818_s7, %s15535_s26 }
 0xe94   : > { %p9820_p5 = scmp.ne.s32.totalorder %s9818_s7, %s9819_s15  ;;  %p9825_p12 = scmp.lt.s32.totalorder %s9823_s22, %s9819_s15 }
 0xe96   : > { %p9821_p8 = pnand %p9820_p5, %p10190_p1  ;;  %p9826_p13 = por %p9825_p12, %p9824_p10 }
 0xe98   : > { %p9822_p4 = pneg %p9821_p8 }
 0xe9a   : > { %p9827_p6 = pnand %p9826_p13, %p9822_p4 }
 0xe9c   : > { %9830 = shalt.err (!%p9827_p6)
}
 0xe9d   : > { %s9966_s3 = smov 512   ;;  %s9967_s24 = smov 1024  }
 0xe9e   : > { %s9968_s28 = smov 32  }
 0xe9f   : > { %9573 = dma.vmem_to_hbm [thread:$0]  (%p10190_p1), %s8118_s30, 24576, %s8120_s6, %s8102_s18, %s9966_s3, %s9967_s24, %s9968_s28  }
 0xea0 PF: > { %p9590_p0 = scmp.ge.s32.totalorder %s9957_s25, 2  ;;  %s8134_s23 = sand.u32 1, %s9905_s12  }
 0xea1   : > { %s8135_s5 = scalar_lea.sflag [#allocation4], %s8134_s23 }
 0xea2   : > { %p9586_p2 = pnand %p9590_p0, %p10194_p9 }
 0xea4   : > { %p9587_p3 = pneg %p9586_p2 }
 0xea6   : > { %9900 = dma.done.wait (%p9587_p3), %s8135_s5, 24576  }
 0xea7   : > { %9902 = vsyncadd (%p9587_p3), %s8135_s5, 4294942720  ;;  %s22_s25 = sadd.s32 1, %s9957_s25   ;;  %s15537_s11 = sld [smem:[#allocation13_spill]] }
 0xea8   : > { %p14238_p7 = scmp.ge.s32.totalorder %s22_s25, 6   ;;  %s15538_s17 = sld [smem:[#allocation20_spill]] }
 0xea9   : > { %s15539_s21 = sld [smem:[#allocation14_spill]]  ;;  %s15545_s12 = smov %s9909_s13 }
 0xeaa   : > { %s15540_s20 = sld [smem:[#allocation18_spill]]  ;;  %s15546_s13 = smov %s9913_s14 }
 0xeab   : > { %s15541_s1 = sld [smem:[#allocation15_spill]]  ;;  %s15547_s14 = smov %s10175_s29 }
 0xeac   : > { %s15542_s22 = sld [smem:[#allocation16_spill]]  ;;  %s15548_s15 = smov %s9921_s16 }
 0xead   : > { %s15543_s23 = sld [smem:[#allocation17_spill]]  ;;  %s15549_s16 = smov %s15537_s11 }
 0xeae   : > { %s15544_s24 = sld [smem:[#allocation19_spill]]  ;;  %s15550_s18 = smov %s9933_s19 }
 0xeaf   : > { %s15551_s19 = smov %s15539_s21  ;;  %21 = sbr.rel (!%p14238_p7) target bundleno = 16 (0x10), region = 109 }
 0xeb1   : > { %s15552_s21 = smov %s15541_s1 }
 0xeb4   :  { %8141 = vsyncpa [#allocation3], 1 }
 0xeb5   :  { %8143 = vsyncpa [#allocation3 + $0x1], 1 }
 0xeb6   :  { %8144 = vsyncpa [#allocation6], 1 }
 0xeb7   :  { %8146 = vsyncpa [#allocation6 + $0x1], 1 }
 0xeb8   :  { %8147 = vsyncpa [#allocation4], 1 }
 0xeb9   :  { %8149 = vsyncpa [#allocation4 + $0x1], 1 }

</bundles_post_ra>
